<compile_context>
chip_gen: v7x
topology: tpu7x:2x2x1
jax: 0.10.0
libtpu: 0.0.40
codegen_flags: <defaults>
</compile_context>

<pallas_src>
import jax
import jax.numpy as jnp
from jax.experimental import pallas as pl
from jax.experimental.pallas import tpu as pltpu


# ---------------------------------------------------------------------------
# In-kernel building blocks
# ---------------------------------------------------------------------------
def _conv2d_bias_relu(x_ref, w_ref, b_ref, o_ref, *, apply_relu=True):
    """VALID conv (stride 1) + bias (+ ReLU), one output row per loop step.

    x_ref: (H, W, Cin) VMEM      w_ref: (k, k, Cin, Cout)
    b_ref: (1, Cout)             o_ref: (Ho, Wo, Cout), Ho=H-k+1, Wo=W-k+1
    """
    k = w_ref.shape[0]
    cin = x_ref.shape[-1]
    ho, wo, cout = o_ref.shape

    @pl.loop(0, ho)
    def _(h):
        acc = jnp.zeros((wo, cout), jnp.float32)
        for dh in range(k):
            row = x_ref[h + dh]                     # (W, Cin), dynamic row load
            for dw in range(k):
                xs = row[dw:dw + wo, :]             # (Wo, Cin)
                wt = w_ref[dh, dw]                  # (Cin, Cout)
                if cin == 1:
                    acc = acc + xs * wt             # outer product via broadcast
                else:
                    acc = acc + jnp.dot(xs, wt,
                                        preferred_element_type=jnp.float32)
        y = acc + b_ref[...]
        if apply_relu:
            y = jnp.maximum(y, 0.0)
        o_ref[h] = y


def _maxpool_2x2(x_ref, o_ref):
    """2x2 max pool, stride 2.  x_ref: (H, W, C) -> o_ref: (H//2, W//2, C)."""
    w_in = x_ref.shape[1]
    hp, wp, _ = o_ref.shape
    # Exact 0/1 selection matrices that pick even / odd columns via the MXU
    # (each output element has exactly one contributing term -> exact in f32).
    r = jax.lax.broadcasted_iota(jnp.int32, (wp, w_in), 0)
    c = jax.lax.broadcasted_iota(jnp.int32, (wp, w_in), 1)
    sel_even = (c == 2 * r).astype(jnp.float32)
    sel_odd = (c == 2 * r + 1).astype(jnp.float32)

    @pl.loop(0, hp)
    def _(h):
        v = jnp.maximum(x_ref[2 * h], x_ref[2 * h + 1])                 # (W, C)
        even = jnp.dot(sel_even, v, preferred_element_type=jnp.float32)  # (Wp, C)
        odd = jnp.dot(sel_odd, v, preferred_element_type=jnp.float32)
        o_ref[h] = jnp.maximum(even, odd)


def _convnet2fc_kernel(x_ref,
                       w1_ref, b1_ref, w2_ref, b2_ref, w3_ref, b3_ref,
                       w4_ref, b4_ref, w5_ref, b5_ref, w6_ref, b6_ref,
                       o_ref,
                       a0, a1, a2, p1, a3, a4, p2):
    # Stage this grid step's (1, H, W, Cin) sample into VMEM scratch as (H, W, Cin).
    a0[...] = x_ref[0]

    _conv2d_bias_relu(a0, w1_ref, b1_ref, a1)    # (26, 26, 32)
    _conv2d_bias_relu(a1, w2_ref, b2_ref, a2)    # (24, 24, 64)
    _maxpool_2x2(a2, p1)                         # (12, 12, 64)
    _conv2d_bias_relu(p1, w3_ref, b3_ref, a3)    # (10, 10, 64)
    _conv2d_bias_relu(a3, w4_ref, b4_ref, a4)    # (8,  8, 128)
    _maxpool_2x2(a4, p2)                         # (4,  4, 128)

    # conv5: 4x4 VALID conv -> spatial collapses to 1x1 (16 taps, unrolled).
    k5h, k5w = w5_ref.shape[0], w5_ref.shape[1]
    nh_mlp = w5_ref.shape[-1]
    acc = jnp.zeros((1, nh_mlp), jnp.float32)
    for dh in range(k5h):
        row = p2[dh]                                                  # (4, 128)
        for dw in range(k5w):
            acc = acc + jnp.dot(row[dw:dw + 1, :], w5_ref[dh, dw],
                                preferred_element_type=jnp.float32)
    h5 = jnp.maximum(acc + b5_ref[...], 0.0)                          # (1, nh_mlp)

    # conv6: 1x1 conv == dense layer; out_activation='linear' -> identity.
    out = jnp.dot(h5, w6_ref[...], preferred_element_type=jnp.float32) + b6_ref[...]
    o_ref[0] = out                                                    # (1, out_chan)


# ---------------------------------------------------------------------------
# Wrapper
# ---------------------------------------------------------------------------
def convnet2fc_forward(x_nchw, params):
    """ConvNet2FC.forward: x (B, in_chan, 28, 28) NCHW -> (B, out_chan)."""
    (w1, b1), (w2, b2), (w3, b3), (w4, b4), (w5, b5), (w6, b6) = params
    x = jnp.transpose(x_nchw, (0, 2, 3, 1)).astype(jnp.float32)   # NHWC, C on lanes
    batch, h0, w0, cin = x.shape
    c1, c2, c3, c4, c5 = (w1.shape[-1], w2.shape[-1], w3.shape[-1],
                          w4.shape[-1], w5.shape[-1])
    c_out = w6.shape[-1]

    # Spatial sizes through the net (VALID convs, 2x2/stride-2 pools).
    h1, w1s = h0 - 2, w0 - 2
    h2, w2s = h1 - 2, w1s - 2
    hp1, wp1 = h2 // 2, w2s // 2
    h3, w3s = hp1 - 2, wp1 - 2
    h4, w4s = h3 - 2, w3s - 2
    hp2, wp2 = h4 // 2, w4s // 2
    assert (hp2, wp2) == (w5.shape[0], w5.shape[1]), (
        "input spatial size must collapse to 1x1 after conv5 (use 28x28 input)")

    flat_args = (x,
                 w1, b1.reshape(1, -1), w2, b2.reshape(1, -1),
                 w3, b3.reshape(1, -1), w4, b4.reshape(1, -1),
                 w5, b5.reshape(1, -1), w6, b6.reshape(1, -1))

    def resident(a):
        # Whole-array block with a constant index_map: stays VMEM-resident
        # across the batch grid (no per-step re-fetch).
        n = a.ndim
        return pl.BlockSpec(a.shape, lambda i: (0,) * n)

    in_specs = [pl.BlockSpec((1, h0, w0, cin), lambda i: (i, 0, 0, 0))]
    in_specs += [resident(a) for a in flat_args[1:]]

    scratch_shapes = [
        pltpu.VMEM((h0, w0, cin), jnp.float32),   # a0: staged input sample
        pltpu.VMEM((h1, w1s, c1), jnp.float32),   # a1
        pltpu.VMEM((h2, w2s, c2), jnp.float32),   # a2
        pltpu.VMEM((hp1, wp1, c2), jnp.float32),  # p1
        pltpu.VMEM((h3, w3s, c3), jnp.float32),   # a3
        pltpu.VMEM((h4, w4s, c4), jnp.float32),   # a4
        pltpu.VMEM((hp2, wp2, c4), jnp.float32),  # p2
    ]

    def cflops(ho, wo, kh, kw, ci, co):
        return 2 * ho * wo * kh * kw * ci * co

    flops = batch * (cflops(h1, w1s, 3, 3, cin, c1) + cflops(h2, w2s, 3, 3, c1, c2) +
                     cflops(h3, w3s, 3, 3, c2, c3) + cflops(h4, w4s, 3, 3, c3, c4) +
                     cflops(1, 1, hp2, wp2, c4, c5) + 2 * c5 * c_out)
    bytes_accessed = (sum(int(a.size) * a.dtype.itemsize for a in flat_args)
                      + batch * c_out * 4)

    out = pl.pallas_call(
        _convnet2fc_kernel,
        out_shape=jax.ShapeDtypeStruct((batch, 1, c_out), jnp.float32),
        grid=(batch,),
        in_specs=in_specs,
        out_specs=pl.BlockSpec((1, 1, c_out), lambda i: (i, 0, 0)),
        scratch_shapes=scratch_shapes,
        compiler_params=pltpu.CompilerParams(
            dimension_semantics=("parallel",),   # megacore-shard the batch on v7x
            vmem_limit_bytes=32 * 1024 * 1024,   # fits v5e/v6e/v7x scoped VMEM
        ),
        cost_estimate=pl.CostEstimate(
            flops=int(flops), transcendentals=0,
            bytes_accessed=int(bytes_accessed)),
    )(*flat_args)

    return out.reshape(batch, c_out)   # torch: .squeeze(2).squeeze(2)


# ---------------------------------------------------------------------------
# Deterministic parameters + pure-JAX reference
# ---------------------------------------------------------------------------
def _init_params(key, *, in_chan=1, out_chan=64, nh=8, nh_mlp=512):
    """Deterministic ConvNet2FC parameters in HWIO layout (conv6 as (Cin, Cout))."""
    layer_shapes = [
        (3, 3, in_chan, nh * 4),     # conv1
        (3, 3, nh * 4, nh * 8),      # conv2
        (3, 3, nh * 8, nh * 8),      # conv3
        (3, 3, nh * 8, nh * 16),     # conv4
        (4, 4, nh * 16, nh_mlp),     # conv5
        (1, 1, nh_mlp, out_chan),    # conv6 (1x1)
    ]
    params = []
    for kh, kw, ci, co in layer_shapes:
        key, k_w, k_b = jax.random.split(key, 3)
        fan_in = kh * kw * ci
        w = jax.random.normal(k_w, (kh, kw, ci, co), jnp.float32) / jnp.sqrt(float(fan_in))
        b = 0.01 * jax.random.normal(k_b, (co,), jnp.float32)
        params.append((w, b))
    w6, b6 = params[-1]
    params[-1] = (w6.reshape(nh_mlp, out_chan), b6)
    return params


def _reference_forward(x_nchw, params):
    """Pure-JAX/XLA reference with the same semantics as the torch module."""
    (w1, b1), (w2, b2), (w3, b3), (w4, b4), (w5, b5), (w6, b6) = params

    def conv(a, w, b):
        y = jax.lax.conv_general_dilated(
            a, w, window_strides=(1, 1), padding="VALID",
            dimension_numbers=("NHWC", "HWIO", "NHWC"),
            precision=jax.lax.Precision.HIGHEST)
        return y + b.reshape(1, 1, 1, -1)

    def pool(a):
        n, h, w, c = a.shape
        return jnp.max(a.reshape(n, h // 2, 2, w // 2, 2, c), axis=(2, 4))

    a = jnp.transpose(x_nchw, (0, 2, 3, 1))
    a = jax.nn.relu(conv(a, w1, b1))
    a = jax.nn.relu(conv(a, w2, b2))
    a = pool(a)
    a = jax.nn.relu(conv(a, w3, b3))
    a = jax.nn.relu(conv(a, w4, b4))
    a = pool(a)
    a = jax.nn.relu(conv(a, w5, b5))
    a = conv(a, w6.reshape(1, 1, *w6.shape), b6)
    return a.reshape(a.shape[0], -1)   # == .squeeze(2).squeeze(2)


if __name__ == "__main__":
    B, C_IN, H_IN, W_IN = 2, 1, 28, 28   # 28x28 is the size the module is built for
    key = jax.random.PRNGKey(0)
    kx, kp = jax.random.split(key)
    x = jax.random.normal(kx, (B, C_IN, H_IN, W_IN), dtype=jnp.float32)  # NCHW like torch
    params = _init_params(kp, in_chan=C_IN, out_chan=64, nh=8, nh_mlp=512)

    out = convnet2fc_forward(x, params)
    out = jax.block_until_ready(out)
    assert out.shape == (B, 64), out.shape

    ref = _reference_forward(x, params)
    max_err = float(jnp.max(jnp.abs(out - ref)))
    # f32 everywhere; tolerance only needs to absorb MXU accumulation-order noise.
    assert jnp.allclose(out, ref, atol=1e-2, rtol=1e-2), f"max |err| = {max_err}"

    print("KERNEL_OK")
</pallas_src>

<mosaic_0001>
module attributes {stable_mosaic.version = 11 : i64} {
  func.func @_convnet2fc_kernel(%arg0: i32, %arg1: memref<1x28x28x1xf32, #tpu.memory_space<vmem>>, %arg2: memref<3x3x1x32xf32, #tpu.memory_space<vmem>>, %arg3: memref<1x32xf32, #tpu.memory_space<vmem>>, %arg4: memref<3x3x32x64xf32, #tpu.memory_space<vmem>>, %arg5: memref<1x64xf32, #tpu.memory_space<vmem>>, %arg6: memref<3x3x64x64xf32, #tpu.memory_space<vmem>>, %arg7: memref<1x64xf32, #tpu.memory_space<vmem>>, %arg8: memref<3x3x64x128xf32, #tpu.memory_space<vmem>>, %arg9: memref<1x128xf32, #tpu.memory_space<vmem>>, %arg10: memref<4x4x128x512xf32, #tpu.memory_space<vmem>>, %arg11: memref<1x512xf32, #tpu.memory_space<vmem>>, %arg12: memref<512x64xf32, #tpu.memory_space<vmem>>, %arg13: memref<1x64xf32, #tpu.memory_space<vmem>>, %arg14: memref<1x1x64xf32, #tpu.memory_space<vmem>>, %arg15: memref<28x28x1xf32, #tpu.memory_space<vmem>>, %arg16: memref<26x26x32xf32, #tpu.memory_space<vmem>>, %arg17: memref<24x24x64xf32, #tpu.memory_space<vmem>>, %arg18: memref<12x12x64xf32, #tpu.memory_space<vmem>>, %arg19: memref<10x10x64xf32, #tpu.memory_space<vmem>>, %arg20: memref<8x8x128xf32, #tpu.memory_space<vmem>>, %arg21: memref<4x4x128xf32, #tpu.memory_space<vmem>>) attributes {dimension_semantics = [#tpu.dimension_semantics<parallel>], iteration_bounds = array<i64: 2>, scalar_prefetch = 0 : i64, scratch_operands = 7 : i64, tpu.core_type = #tpu.core_type<tc>, window_params = [{transform_indices = @transform_0, window_bounds = array<i64: 1, 28, 28, 1>}, {pipeline_mode = #tpu.pipeline_mode<synchronous>, transform_indices = @transform_1, window_bounds = array<i64: 3, 3, 1, 32>}, {pipeline_mode = #tpu.pipeline_mode<synchronous>, transform_indices = @transform_2, window_bounds = array<i64: 1, 32>}, {pipeline_mode = #tpu.pipeline_mode<synchronous>, transform_indices = @transform_3, window_bounds = array<i64: 3, 3, 32, 64>}, {pipeline_mode = #tpu.pipeline_mode<synchronous>, transform_indices = @transform_4, window_bounds = array<i64: 1, 64>}, {pipeline_mode = #tpu.pipeline_mode<synchronous>, transform_indices = @transform_5, window_bounds = array<i64: 3, 3, 64, 64>}, {pipeline_mode = #tpu.pipeline_mode<synchronous>, transform_indices = @transform_6, window_bounds = array<i64: 1, 64>}, {pipeline_mode = #tpu.pipeline_mode<synchronous>, transform_indices = @transform_7, window_bounds = array<i64: 3, 3, 64, 128>}, {pipeline_mode = #tpu.pipeline_mode<synchronous>, transform_indices = @transform_8, window_bounds = array<i64: 1, 128>}, {pipeline_mode = #tpu.pipeline_mode<synchronous>, transform_indices = @transform_9, window_bounds = array<i64: 4, 4, 128, 512>}, {pipeline_mode = #tpu.pipeline_mode<synchronous>, transform_indices = @transform_10, window_bounds = array<i64: 1, 512>}, {pipeline_mode = #tpu.pipeline_mode<synchronous>, transform_indices = @transform_11, window_bounds = array<i64: 512, 64>}, {pipeline_mode = #tpu.pipeline_mode<synchronous>, transform_indices = @transform_12, window_bounds = array<i64: 1, 64>}, {transform_indices = @transform_13, window_bounds = array<i64: 1, 1, 64>}]} {
    %c0 = arith.constant 0 : index
    %c0_0 = arith.constant 0 : index
    %c0_1 = arith.constant 0 : index
    %c0_2 = arith.constant 0 : index
    %0 = vector.load %arg1[%c0, %c0_0, %c0_1, %c0_2] : memref<1x28x28x1xf32, #tpu.memory_space<vmem>>, vector<1x28x28x1xf32>
    %1 = vector.shape_cast %0 : vector<1x28x28x1xf32> to vector<28x28x1xf32>
    %c0_3 = arith.constant 0 : index
    %c0_4 = arith.constant 0 : index
    %c0_5 = arith.constant 0 : index
    %2 = vector.load %arg15[%c0_3, %c0_4, %c0_5] : memref<28x28x1xf32, #tpu.memory_space<vmem>>, vector<28x28x1xf32>
    tpu.vector_store %arg15[%c0_3, %c0_4, %c0_5], %1 {strides = array<i32>} : memref<28x28x1xf32, #tpu.memory_space<vmem>>, vector<28x28x1xf32>,
    %c0_i32 = arith.constant 0 : i32
    %c26_i32 = arith.constant 26 : i32
    %3 = arith.addi %c0_i32, %c26_i32 : i32
    %c1_i32 = arith.constant 1 : i32
    scf.for %arg22 = %c0_i32 to %3 step %c1_i32  : i32 {
      %c1_i32_127 = arith.constant 1 : i32
      %137 = arith.muli %arg22, %c1_i32_127 : i32
      %c0_i32_128 = arith.constant 0 : i32
      %138 = arith.addi %c0_i32_128, %137 : i32
      %cst_129 = arith.constant 0.000000e+00 : f32
      %139 = vector.broadcast %cst_129 : f32 to vector<26x32xf32>
      %c0_i32_130 = arith.constant 0 : i32
      %140 = arith.addi %138, %c0_i32_130 : i32
      %141 = arith.index_cast %140 : i32 to index
      %c0_131 = arith.constant 0 : index
      %c0_132 = arith.constant 0 : index
      %142 = vector.load %arg15[%141, %c0_131, %c0_132] : memref<28x28x1xf32, #tpu.memory_space<vmem>>, vector<1x28x1xf32>
      %143 = vector.shape_cast %142 : vector<1x28x1xf32> to vector<28x1xf32>
      %144 = vector.extract_strided_slice %143 {offsets = [0, 0], sizes = [26, 1], strides = [1, 1]} : vector<28x1xf32> to vector<26x1xf32>
      %c0_133 = arith.constant 0 : index
      %c0_134 = arith.constant 0 : index
      %c0_135 = arith.constant 0 : index
      %c0_136 = arith.constant 0 : index
      %145 = vector.load %arg2[%c0_133, %c0_134, %c0_135, %c0_136] : memref<3x3x1x32xf32, #tpu.memory_space<vmem>>, vector<1x1x1x32xf32>
      %146 = vector.shape_cast %145 : vector<1x1x1x32xf32> to vector<1x32xf32>
      %147 = vector.broadcast %144 : vector<26x1xf32> to vector<26x32xf32>
      %148 = vector.broadcast %146 : vector<1x32xf32> to vector<26x32xf32>
      %149 = arith.mulf %147, %148 : vector<26x32xf32>
      %150 = arith.addf %139, %149 : vector<26x32xf32>
      %151 = vector.extract_strided_slice %143 {offsets = [1, 0], sizes = [26, 1], strides = [1, 1]} : vector<28x1xf32> to vector<26x1xf32>
      %c0_137 = arith.constant 0 : index
      %c1_138 = arith.constant 1 : index
      %c0_139 = arith.constant 0 : index
      %c0_140 = arith.constant 0 : index
      %152 = vector.load %arg2[%c0_137, %c1_138, %c0_139, %c0_140] : memref<3x3x1x32xf32, #tpu.memory_space<vmem>>, vector<1x1x1x32xf32>
      %153 = vector.shape_cast %152 : vector<1x1x1x32xf32> to vector<1x32xf32>
      %154 = vector.broadcast %151 : vector<26x1xf32> to vector<26x32xf32>
      %155 = vector.broadcast %153 : vector<1x32xf32> to vector<26x32xf32>
      %156 = arith.mulf %154, %155 : vector<26x32xf32>
      %157 = arith.addf %150, %156 : vector<26x32xf32>
      %158 = vector.extract_strided_slice %143 {offsets = [2, 0], sizes = [26, 1], strides = [1, 1]} : vector<28x1xf32> to vector<26x1xf32>
      %c0_141 = arith.constant 0 : index
      %c2_142 = arith.constant 2 : index
      %c0_143 = arith.constant 0 : index
      %c0_144 = arith.constant 0 : index
      %159 = vector.load %arg2[%c0_141, %c2_142, %c0_143, %c0_144] : memref<3x3x1x32xf32, #tpu.memory_space<vmem>>, vector<1x1x1x32xf32>
      %160 = vector.shape_cast %159 : vector<1x1x1x32xf32> to vector<1x32xf32>
      %161 = vector.broadcast %158 : vector<26x1xf32> to vector<26x32xf32>
      %162 = vector.broadcast %160 : vector<1x32xf32> to vector<26x32xf32>
      %163 = arith.mulf %161, %162 : vector<26x32xf32>
      %164 = arith.addf %157, %163 : vector<26x32xf32>
      %c1_i32_145 = arith.constant 1 : i32
      %165 = arith.addi %138, %c1_i32_145 : i32
      %166 = arith.index_cast %165 : i32 to index
      %c0_146 = arith.constant 0 : index
      %c0_147 = arith.constant 0 : index
      %167 = vector.load %arg15[%166, %c0_146, %c0_147] : memref<28x28x1xf32, #tpu.memory_space<vmem>>, vector<1x28x1xf32>
      %168 = vector.shape_cast %167 : vector<1x28x1xf32> to vector<28x1xf32>
      %169 = vector.extract_strided_slice %168 {offsets = [0, 0], sizes = [26, 1], strides = [1, 1]} : vector<28x1xf32> to vector<26x1xf32>
      %c1_148 = arith.constant 1 : index
      %c0_149 = arith.constant 0 : index
      %c0_150 = arith.constant 0 : index
      %c0_151 = arith.constant 0 : index
      %170 = vector.load %arg2[%c1_148, %c0_149, %c0_150, %c0_151] : memref<3x3x1x32xf32, #tpu.memory_space<vmem>>, vector<1x1x1x32xf32>
      %171 = vector.shape_cast %170 : vector<1x1x1x32xf32> to vector<1x32xf32>
      %172 = vector.broadcast %169 : vector<26x1xf32> to vector<26x32xf32>
      %173 = vector.broadcast %171 : vector<1x32xf32> to vector<26x32xf32>
      %174 = arith.mulf %172, %173 : vector<26x32xf32>
      %175 = arith.addf %164, %174 : vector<26x32xf32>
      %176 = vector.extract_strided_slice %168 {offsets = [1, 0], sizes = [26, 1], strides = [1, 1]} : vector<28x1xf32> to vector<26x1xf32>
      %c1_152 = arith.constant 1 : index
      %c1_153 = arith.constant 1 : index
      %c0_154 = arith.constant 0 : index
      %c0_155 = arith.constant 0 : index
      %177 = vector.load %arg2[%c1_152, %c1_153, %c0_154, %c0_155] : memref<3x3x1x32xf32, #tpu.memory_space<vmem>>, vector<1x1x1x32xf32>
      %178 = vector.shape_cast %177 : vector<1x1x1x32xf32> to vector<1x32xf32>
      %179 = vector.broadcast %176 : vector<26x1xf32> to vector<26x32xf32>
      %180 = vector.broadcast %178 : vector<1x32xf32> to vector<26x32xf32>
      %181 = arith.mulf %179, %180 : vector<26x32xf32>
      %182 = arith.addf %175, %181 : vector<26x32xf32>
      %183 = vector.extract_strided_slice %168 {offsets = [2, 0], sizes = [26, 1], strides = [1, 1]} : vector<28x1xf32> to vector<26x1xf32>
      %c1_156 = arith.constant 1 : index
      %c2_157 = arith.constant 2 : index
      %c0_158 = arith.constant 0 : index
      %c0_159 = arith.constant 0 : index
      %184 = vector.load %arg2[%c1_156, %c2_157, %c0_158, %c0_159] : memref<3x3x1x32xf32, #tpu.memory_space<vmem>>, vector<1x1x1x32xf32>
      %185 = vector.shape_cast %184 : vector<1x1x1x32xf32> to vector<1x32xf32>
      %186 = vector.broadcast %183 : vector<26x1xf32> to vector<26x32xf32>
      %187 = vector.broadcast %185 : vector<1x32xf32> to vector<26x32xf32>
      %188 = arith.mulf %186, %187 : vector<26x32xf32>
      %189 = arith.addf %182, %188 : vector<26x32xf32>
      %c2_i32_160 = arith.constant 2 : i32
      %190 = arith.addi %138, %c2_i32_160 : i32
      %191 = arith.index_cast %190 : i32 to index
      %c0_161 = arith.constant 0 : index
      %c0_162 = arith.constant 0 : index
      %192 = vector.load %arg15[%191, %c0_161, %c0_162] : memref<28x28x1xf32, #tpu.memory_space<vmem>>, vector<1x28x1xf32>
      %193 = vector.shape_cast %192 : vector<1x28x1xf32> to vector<28x1xf32>
      %194 = vector.extract_strided_slice %193 {offsets = [0, 0], sizes = [26, 1], strides = [1, 1]} : vector<28x1xf32> to vector<26x1xf32>
      %c2_163 = arith.constant 2 : index
      %c0_164 = arith.constant 0 : index
      %c0_165 = arith.constant 0 : index
      %c0_166 = arith.constant 0 : index
      %195 = vector.load %arg2[%c2_163, %c0_164, %c0_165, %c0_166] : memref<3x3x1x32xf32, #tpu.memory_space<vmem>>, vector<1x1x1x32xf32>
      %196 = vector.shape_cast %195 : vector<1x1x1x32xf32> to vector<1x32xf32>
      %197 = vector.broadcast %194 : vector<26x1xf32> to vector<26x32xf32>
      %198 = vector.broadcast %196 : vector<1x32xf32> to vector<26x32xf32>
      %199 = arith.mulf %197, %198 : vector<26x32xf32>
      %200 = arith.addf %189, %199 : vector<26x32xf32>
      %201 = vector.extract_strided_slice %193 {offsets = [1, 0], sizes = [26, 1], strides = [1, 1]} : vector<28x1xf32> to vector<26x1xf32>
      %c2_167 = arith.constant 2 : index
      %c1_168 = arith.constant 1 : index
      %c0_169 = arith.constant 0 : index
      %c0_170 = arith.constant 0 : index
      %202 = vector.load %arg2[%c2_167, %c1_168, %c0_169, %c0_170] : memref<3x3x1x32xf32, #tpu.memory_space<vmem>>, vector<1x1x1x32xf32>
      %203 = vector.shape_cast %202 : vector<1x1x1x32xf32> to vector<1x32xf32>
      %204 = vector.broadcast %201 : vector<26x1xf32> to vector<26x32xf32>
      %205 = vector.broadcast %203 : vector<1x32xf32> to vector<26x32xf32>
      %206 = arith.mulf %204, %205 : vector<26x32xf32>
      %207 = arith.addf %200, %206 : vector<26x32xf32>
      %208 = vector.extract_strided_slice %193 {offsets = [2, 0], sizes = [26, 1], strides = [1, 1]} : vector<28x1xf32> to vector<26x1xf32>
      %c2_171 = arith.constant 2 : index
      %c2_172 = arith.constant 2 : index
      %c0_173 = arith.constant 0 : index
      %c0_174 = arith.constant 0 : index
      %209 = vector.load %arg2[%c2_171, %c2_172, %c0_173, %c0_174] : memref<3x3x1x32xf32, #tpu.memory_space<vmem>>, vector<1x1x1x32xf32>
      %210 = vector.shape_cast %209 : vector<1x1x1x32xf32> to vector<1x32xf32>
      %211 = vector.broadcast %208 : vector<26x1xf32> to vector<26x32xf32>
      %212 = vector.broadcast %210 : vector<1x32xf32> to vector<26x32xf32>
      %213 = arith.mulf %211, %212 : vector<26x32xf32>
      %214 = arith.addf %207, %213 : vector<26x32xf32>
      %c0_175 = arith.constant 0 : index
      %c0_176 = arith.constant 0 : index
      %215 = vector.load %arg3[%c0_175, %c0_176] : memref<1x32xf32, #tpu.memory_space<vmem>>, vector<1x32xf32>
      %216 = vector.broadcast %215 : vector<1x32xf32> to vector<26x32xf32>
      %217 = arith.addf %214, %216 : vector<26x32xf32>
      %cst_177 = arith.constant 0.000000e+00 : f32
      %218 = vector.broadcast %cst_177 : f32 to vector<26x32xf32>
      %219 = arith.maximumf %217, %218 : vector<26x32xf32>
      %220 = arith.index_cast %138 : i32 to index
      %c0_178 = arith.constant 0 : index
      %c0_179 = arith.constant 0 : index
      %221 = vector.load %arg16[%220, %c0_178, %c0_179] : memref<26x26x32xf32, #tpu.memory_space<vmem>>, vector<1x26x32xf32>
      %222 = vector.shape_cast %221 : vector<1x26x32xf32> to vector<26x32xf32>
      %223 = vector.shape_cast %219 : vector<26x32xf32> to vector<1x26x32xf32>
      tpu.vector_store %arg16[%220, %c0_178, %c0_179], %223 {strides = array<i32>} : memref<26x26x32xf32, #tpu.memory_space<vmem>>, vector<1x26x32xf32>,
    }
    %c26_i32_6 = arith.constant 26 : i32
    %c0_i32_7 = arith.constant 0 : i32
    %c24_i32 = arith.constant 24 : i32
    %4 = arith.addi %c0_i32_7, %c24_i32 : i32
    %c1_i32_8 = arith.constant 1 : i32
    scf.for %arg22 = %c0_i32_7 to %4 step %c1_i32_8  : i32 {
      %c1_i32_127 = arith.constant 1 : i32
      %137 = arith.muli %arg22, %c1_i32_127 : i32
      %c0_i32_128 = arith.constant 0 : i32
      %138 = arith.addi %c0_i32_128, %137 : i32
      %cst_129 = arith.constant 0.000000e+00 : f32
      %139 = vector.broadcast %cst_129 : f32 to vector<24x64xf32>
      %c0_i32_130 = arith.constant 0 : i32
      %140 = arith.addi %138, %c0_i32_130 : i32
      %141 = arith.index_cast %140 : i32 to index
      %c0_131 = arith.constant 0 : index
      %c0_132 = arith.constant 0 : index
      %142 = vector.load %arg16[%141, %c0_131, %c0_132] : memref<26x26x32xf32, #tpu.memory_space<vmem>>, vector<1x26x32xf32>
      %143 = vector.shape_cast %142 : vector<1x26x32xf32> to vector<26x32xf32>
      %144 = vector.extract_strided_slice %143 {offsets = [0, 0], sizes = [24, 32], strides = [1, 1]} : vector<26x32xf32> to vector<24x32xf32>
      %c0_133 = arith.constant 0 : index
      %c0_134 = arith.constant 0 : index
      %c0_135 = arith.constant 0 : index
      %c0_136 = arith.constant 0 : index
      %145 = vector.load %arg4[%c0_133, %c0_134, %c0_135, %c0_136] : memref<3x3x32x64xf32, #tpu.memory_space<vmem>>, vector<1x1x32x64xf32>
      %146 = vector.shape_cast %145 : vector<1x1x32x64xf32> to vector<32x64xf32>
      %cst_137 = arith.constant dense<0.000000e+00> : vector<24x64xf32>
      %147 = tpu.matmul %144, %146, %cst_137 {dimension_numbers = #tpu.dot_dimension_numbers<[1], [0], [0], [1], [0, 0, 1, 1], [], []>} : vector<24x32xf32>, vector<32x64xf32>, vector<24x64xf32> -> vector<24x64xf32>
      %148 = arith.addf %139, %147 : vector<24x64xf32>
      %149 = vector.extract_strided_slice %143 {offsets = [1, 0], sizes = [24, 32], strides = [1, 1]} : vector<26x32xf32> to vector<24x32xf32>
      %c0_138 = arith.constant 0 : index
      %c1_139 = arith.constant 1 : index
      %c0_140 = arith.constant 0 : index
      %c0_141 = arith.constant 0 : index
      %150 = vector.load %arg4[%c0_138, %c1_139, %c0_140, %c0_141] : memref<3x3x32x64xf32, #tpu.memory_space<vmem>>, vector<1x1x32x64xf32>
      %151 = vector.shape_cast %150 : vector<1x1x32x64xf32> to vector<32x64xf32>
      %cst_142 = arith.constant dense<0.000000e+00> : vector<24x64xf32>
      %152 = tpu.matmul %149, %151, %cst_142 {dimension_numbers = #tpu.dot_dimension_numbers<[1], [0], [0], [1], [0, 0, 1, 1], [], []>} : vector<24x32xf32>, vector<32x64xf32>, vector<24x64xf32> -> vector<24x64xf32>
      %153 = arith.addf %148, %152 : vector<24x64xf32>
      %154 = vector.extract_strided_slice %143 {offsets = [2, 0], sizes = [24, 32], strides = [1, 1]} : vector<26x32xf32> to vector<24x32xf32>
      %c0_143 = arith.constant 0 : index
      %c2_144 = arith.constant 2 : index
      %c0_145 = arith.constant 0 : index
      %c0_146 = arith.constant 0 : index
      %155 = vector.load %arg4[%c0_143, %c2_144, %c0_145, %c0_146] : memref<3x3x32x64xf32, #tpu.memory_space<vmem>>, vector<1x1x32x64xf32>
      %156 = vector.shape_cast %155 : vector<1x1x32x64xf32> to vector<32x64xf32>
      %cst_147 = arith.constant dense<0.000000e+00> : vector<24x64xf32>
      %157 = tpu.matmul %154, %156, %cst_147 {dimension_numbers = #tpu.dot_dimension_numbers<[1], [0], [0], [1], [0, 0, 1, 1], [], []>} : vector<24x32xf32>, vector<32x64xf32>, vector<24x64xf32> -> vector<24x64xf32>
      %158 = arith.addf %153, %157 : vector<24x64xf32>
      %c1_i32_148 = arith.constant 1 : i32
      %159 = arith.addi %138, %c1_i32_148 : i32
      %160 = arith.index_cast %159 : i32 to index
      %c0_149 = arith.constant 0 : index
      %c0_150 = arith.constant 0 : index
      %161 = vector.load %arg16[%160, %c0_149, %c0_150] : memref<26x26x32xf32, #tpu.memory_space<vmem>>, vector<1x26x32xf32>
      %162 = vector.shape_cast %161 : vector<1x26x32xf32> to vector<26x32xf32>
      %163 = vector.extract_strided_slice %162 {offsets = [0, 0], sizes = [24, 32], strides = [1, 1]} : vector<26x32xf32> to vector<24x32xf32>
      %c1_151 = arith.constant 1 : index
      %c0_152 = arith.constant 0 : index
      %c0_153 = arith.constant 0 : index
      %c0_154 = arith.constant 0 : index
      %164 = vector.load %arg4[%c1_151, %c0_152, %c0_153, %c0_154] : memref<3x3x32x64xf32, #tpu.memory_space<vmem>>, vector<1x1x32x64xf32>
      %165 = vector.shape_cast %164 : vector<1x1x32x64xf32> to vector<32x64xf32>
      %cst_155 = arith.constant dense<0.000000e+00> : vector<24x64xf32>
      %166 = tpu.matmul %163, %165, %cst_155 {dimension_numbers = #tpu.dot_dimension_numbers<[1], [0], [0], [1], [0, 0, 1, 1], [], []>} : vector<24x32xf32>, vector<32x64xf32>, vector<24x64xf32> -> vector<24x64xf32>
      %167 = arith.addf %158, %166 : vector<24x64xf32>
      %168 = vector.extract_strided_slice %162 {offsets = [1, 0], sizes = [24, 32], strides = [1, 1]} : vector<26x32xf32> to vector<24x32xf32>
      %c1_156 = arith.constant 1 : index
      %c1_157 = arith.constant 1 : index
      %c0_158 = arith.constant 0 : index
      %c0_159 = arith.constant 0 : index
      %169 = vector.load %arg4[%c1_156, %c1_157, %c0_158, %c0_159] : memref<3x3x32x64xf32, #tpu.memory_space<vmem>>, vector<1x1x32x64xf32>
      %170 = vector.shape_cast %169 : vector<1x1x32x64xf32> to vector<32x64xf32>
      %cst_160 = arith.constant dense<0.000000e+00> : vector<24x64xf32>
      %171 = tpu.matmul %168, %170, %cst_160 {dimension_numbers = #tpu.dot_dimension_numbers<[1], [0], [0], [1], [0, 0, 1, 1], [], []>} : vector<24x32xf32>, vector<32x64xf32>, vector<24x64xf32> -> vector<24x64xf32>
      %172 = arith.addf %167, %171 : vector<24x64xf32>
      %173 = vector.extract_strided_slice %162 {offsets = [2, 0], sizes = [24, 32], strides = [1, 1]} : vector<26x32xf32> to vector<24x32xf32>
      %c1_161 = arith.constant 1 : index
      %c2_162 = arith.constant 2 : index
      %c0_163 = arith.constant 0 : index
      %c0_164 = arith.constant 0 : index
      %174 = vector.load %arg4[%c1_161, %c2_162, %c0_163, %c0_164] : memref<3x3x32x64xf32, #tpu.memory_space<vmem>>, vector<1x1x32x64xf32>
      %175 = vector.shape_cast %174 : vector<1x1x32x64xf32> to vector<32x64xf32>
      %cst_165 = arith.constant dense<0.000000e+00> : vector<24x64xf32>
      %176 = tpu.matmul %173, %175, %cst_165 {dimension_numbers = #tpu.dot_dimension_numbers<[1], [0], [0], [1], [0, 0, 1, 1], [], []>} : vector<24x32xf32>, vector<32x64xf32>, vector<24x64xf32> -> vector<24x64xf32>
      %177 = arith.addf %172, %176 : vector<24x64xf32>
      %c2_i32_166 = arith.constant 2 : i32
      %178 = arith.addi %138, %c2_i32_166 : i32
      %179 = arith.index_cast %178 : i32 to index
      %c0_167 = arith.constant 0 : index
      %c0_168 = arith.constant 0 : index
      %180 = vector.load %arg16[%179, %c0_167, %c0_168] : memref<26x26x32xf32, #tpu.memory_space<vmem>>, vector<1x26x32xf32>
      %181 = vector.shape_cast %180 : vector<1x26x32xf32> to vector<26x32xf32>
      %182 = vector.extract_strided_slice %181 {offsets = [0, 0], sizes = [24, 32], strides = [1, 1]} : vector<26x32xf32> to vector<24x32xf32>
      %c2_169 = arith.constant 2 : index
      %c0_170 = arith.constant 0 : index
      %c0_171 = arith.constant 0 : index
      %c0_172 = arith.constant 0 : index
      %183 = vector.load %arg4[%c2_169, %c0_170, %c0_171, %c0_172] : memref<3x3x32x64xf32, #tpu.memory_space<vmem>>, vector<1x1x32x64xf32>
      %184 = vector.shape_cast %183 : vector<1x1x32x64xf32> to vector<32x64xf32>
      %cst_173 = arith.constant dense<0.000000e+00> : vector<24x64xf32>
      %185 = tpu.matmul %182, %184, %cst_173 {dimension_numbers = #tpu.dot_dimension_numbers<[1], [0], [0], [1], [0, 0, 1, 1], [], []>} : vector<24x32xf32>, vector<32x64xf32>, vector<24x64xf32> -> vector<24x64xf32>
      %186 = arith.addf %177, %185 : vector<24x64xf32>
      %187 = vector.extract_strided_slice %181 {offsets = [1, 0], sizes = [24, 32], strides = [1, 1]} : vector<26x32xf32> to vector<24x32xf32>
      %c2_174 = arith.constant 2 : index
      %c1_175 = arith.constant 1 : index
      %c0_176 = arith.constant 0 : index
      %c0_177 = arith.constant 0 : index
      %188 = vector.load %arg4[%c2_174, %c1_175, %c0_176, %c0_177] : memref<3x3x32x64xf32, #tpu.memory_space<vmem>>, vector<1x1x32x64xf32>
      %189 = vector.shape_cast %188 : vector<1x1x32x64xf32> to vector<32x64xf32>
      %cst_178 = arith.constant dense<0.000000e+00> : vector<24x64xf32>
      %190 = tpu.matmul %187, %189, %cst_178 {dimension_numbers = #tpu.dot_dimension_numbers<[1], [0], [0], [1], [0, 0, 1, 1], [], []>} : vector<24x32xf32>, vector<32x64xf32>, vector<24x64xf32> -> vector<24x64xf32>
      %191 = arith.addf %186, %190 : vector<24x64xf32>
      %192 = vector.extract_strided_slice %181 {offsets = [2, 0], sizes = [24, 32], strides = [1, 1]} : vector<26x32xf32> to vector<24x32xf32>
      %c2_179 = arith.constant 2 : index
      %c2_180 = arith.constant 2 : index
      %c0_181 = arith.constant 0 : index
      %c0_182 = arith.constant 0 : index
      %193 = vector.load %arg4[%c2_179, %c2_180, %c0_181, %c0_182] : memref<3x3x32x64xf32, #tpu.memory_space<vmem>>, vector<1x1x32x64xf32>
      %194 = vector.shape_cast %193 : vector<1x1x32x64xf32> to vector<32x64xf32>
      %cst_183 = arith.constant dense<0.000000e+00> : vector<24x64xf32>
      %195 = tpu.matmul %192, %194, %cst_183 {dimension_numbers = #tpu.dot_dimension_numbers<[1], [0], [0], [1], [0, 0, 1, 1], [], []>} : vector<24x32xf32>, vector<32x64xf32>, vector<24x64xf32> -> vector<24x64xf32>
      %196 = arith.addf %191, %195 : vector<24x64xf32>
      %c0_184 = arith.constant 0 : index
      %c0_185 = arith.constant 0 : index
      %197 = vector.load %arg5[%c0_184, %c0_185] : memref<1x64xf32, #tpu.memory_space<vmem>>, vector<1x64xf32>
      %198 = vector.broadcast %197 : vector<1x64xf32> to vector<24x64xf32>
      %199 = arith.addf %196, %198 : vector<24x64xf32>
      %cst_186 = arith.constant 0.000000e+00 : f32
      %200 = vector.broadcast %cst_186 : f32 to vector<24x64xf32>
      %201 = arith.maximumf %199, %200 : vector<24x64xf32>
      %202 = arith.index_cast %138 : i32 to index
      %c0_187 = arith.constant 0 : index
      %c0_188 = arith.constant 0 : index
      %203 = vector.load %arg17[%202, %c0_187, %c0_188] : memref<24x24x64xf32, #tpu.memory_space<vmem>>, vector<1x24x64xf32>
      %204 = vector.shape_cast %203 : vector<1x24x64xf32> to vector<24x64xf32>
      %205 = vector.shape_cast %201 : vector<24x64xf32> to vector<1x24x64xf32>
      tpu.vector_store %arg17[%202, %c0_187, %c0_188], %205 {strides = array<i32>} : memref<24x24x64xf32, #tpu.memory_space<vmem>>, vector<1x24x64xf32>,
    }
    %c24_i32_9 = arith.constant 24 : i32
    %5 = tpu.iota {dimensions = array<i32: 0>} : vector<12x24xi32>
    %6 = tpu.iota {dimensions = array<i32: 1>} : vector<12x24xi32>
    %c2_i32 = arith.constant 2 : i32
    %7 = vector.broadcast %c2_i32 : i32 to vector<12x24xi32>
    %8 = arith.muli %7, %5 : vector<12x24xi32>
    %9 = arith.cmpi eq, %6, %8 : vector<12x24xi32>
    %10 = arith.extui %9 : vector<12x24xi1> to vector<12x24xi32>
    %11 = arith.sitofp %10 : vector<12x24xi32> to vector<12x24xf32>
    %c2_i32_10 = arith.constant 2 : i32
    %12 = vector.broadcast %c2_i32_10 : i32 to vector<12x24xi32>
    %13 = arith.muli %12, %5 : vector<12x24xi32>
    %c1_i32_11 = arith.constant 1 : i32
    %14 = vector.broadcast %c1_i32_11 : i32 to vector<12x24xi32>
    %15 = arith.addi %13, %14 : vector<12x24xi32>
    %16 = arith.cmpi eq, %6, %15 : vector<12x24xi32>
    %17 = arith.extui %16 : vector<12x24xi1> to vector<12x24xi32>
    %18 = arith.sitofp %17 : vector<12x24xi32> to vector<12x24xf32>
    %c0_i32_12 = arith.constant 0 : i32
    %c12_i32 = arith.constant 12 : i32
    %19 = arith.addi %c0_i32_12, %c12_i32 : i32
    %c1_i32_13 = arith.constant 1 : i32
    scf.for %arg22 = %c0_i32_12 to %19 step %c1_i32_13  : i32 {
      %c1_i32_127 = arith.constant 1 : i32
      %137 = arith.muli %arg22, %c1_i32_127 : i32
      %c0_i32_128 = arith.constant 0 : i32
      %138 = arith.addi %c0_i32_128, %137 : i32
      %c2_i32_129 = arith.constant 2 : i32
      %139 = arith.muli %c2_i32_129, %138 : i32
      %140 = arith.index_cast %139 : i32 to index
      %c0_130 = arith.constant 0 : index
      %c0_131 = arith.constant 0 : index
      %141 = vector.load %arg17[%140, %c0_130, %c0_131] : memref<24x24x64xf32, #tpu.memory_space<vmem>>, vector<1x24x64xf32>
      %142 = vector.shape_cast %141 : vector<1x24x64xf32> to vector<24x64xf32>
      %c2_i32_132 = arith.constant 2 : i32
      %143 = arith.muli %c2_i32_132, %138 : i32
      %c1_i32_133 = arith.constant 1 : i32
      %144 = arith.addi %143, %c1_i32_133 : i32
      %145 = arith.index_cast %144 : i32 to index
      %c0_134 = arith.constant 0 : index
      %c0_135 = arith.constant 0 : index
      %146 = vector.load %arg17[%145, %c0_134, %c0_135] : memref<24x24x64xf32, #tpu.memory_space<vmem>>, vector<1x24x64xf32>
      %147 = vector.shape_cast %146 : vector<1x24x64xf32> to vector<24x64xf32>
      %148 = arith.maximumf %142, %147 : vector<24x64xf32>
      %cst_136 = arith.constant dense<0.000000e+00> : vector<12x64xf32>
      %149 = tpu.matmul %11, %148, %cst_136 {dimension_numbers = #tpu.dot_dimension_numbers<[1], [0], [0], [1], [0, 0, 1, 1], [], []>} : vector<12x24xf32>, vector<24x64xf32>, vector<12x64xf32> -> vector<12x64xf32>
      %cst_137 = arith.constant dense<0.000000e+00> : vector<12x64xf32>
      %150 = tpu.matmul %18, %148, %cst_137 {dimension_numbers = #tpu.dot_dimension_numbers<[1], [0], [0], [1], [0, 0, 1, 1], [], []>} : vector<12x24xf32>, vector<24x64xf32>, vector<12x64xf32> -> vector<12x64xf32>
      %151 = arith.maximumf %149, %150 : vector<12x64xf32>
      %152 = arith.index_cast %138 : i32 to index
      %c0_138 = arith.constant 0 : index
      %c0_139 = arith.constant 0 : index
      %153 = vector.load %arg18[%152, %c0_138, %c0_139] : memref<12x12x64xf32, #tpu.memory_space<vmem>>, vector<1x12x64xf32>
      %154 = vector.shape_cast %153 : vector<1x12x64xf32> to vector<12x64xf32>
      %155 = vector.shape_cast %151 : vector<12x64xf32> to vector<1x12x64xf32>
      tpu.vector_store %arg18[%152, %c0_138, %c0_139], %155 {strides = array<i32>} : memref<12x12x64xf32, #tpu.memory_space<vmem>>, vector<1x12x64xf32>,
    }
    %c12_i32_14 = arith.constant 12 : i32
    %c0_i32_15 = arith.constant 0 : i32
    %c10_i32 = arith.constant 10 : i32
    %20 = arith.addi %c0_i32_15, %c10_i32 : i32
    %c1_i32_16 = arith.constant 1 : i32
    scf.for %arg22 = %c0_i32_15 to %20 step %c1_i32_16  : i32 {
      %c1_i32_127 = arith.constant 1 : i32
      %137 = arith.muli %arg22, %c1_i32_127 : i32
      %c0_i32_128 = arith.constant 0 : i32
      %138 = arith.addi %c0_i32_128, %137 : i32
      %cst_129 = arith.constant 0.000000e+00 : f32
      %139 = vector.broadcast %cst_129 : f32 to vector<10x64xf32>
      %c0_i32_130 = arith.constant 0 : i32
      %140 = arith.addi %138, %c0_i32_130 : i32
      %141 = arith.index_cast %140 : i32 to index
      %c0_131 = arith.constant 0 : index
      %c0_132 = arith.constant 0 : index
      %142 = vector.load %arg18[%141, %c0_131, %c0_132] : memref<12x12x64xf32, #tpu.memory_space<vmem>>, vector<1x12x64xf32>
      %143 = vector.shape_cast %142 : vector<1x12x64xf32> to vector<12x64xf32>
      %144 = vector.extract_strided_slice %143 {offsets = [0, 0], sizes = [10, 64], strides = [1, 1]} : vector<12x64xf32> to vector<10x64xf32>
      %c0_133 = arith.constant 0 : index
      %c0_134 = arith.constant 0 : index
      %c0_135 = arith.constant 0 : index
      %c0_136 = arith.constant 0 : index
      %145 = vector.load %arg6[%c0_133, %c0_134, %c0_135, %c0_136] : memref<3x3x64x64xf32, #tpu.memory_space<vmem>>, vector<1x1x64x64xf32>
      %146 = vector.shape_cast %145 : vector<1x1x64x64xf32> to vector<64x64xf32>
      %cst_137 = arith.constant dense<0.000000e+00> : vector<10x64xf32>
      %147 = tpu.matmul %144, %146, %cst_137 {dimension_numbers = #tpu.dot_dimension_numbers<[1], [0], [0], [1], [0, 0, 1, 1], [], []>} : vector<10x64xf32>, vector<64x64xf32>, vector<10x64xf32> -> vector<10x64xf32>
      %148 = arith.addf %139, %147 : vector<10x64xf32>
      %149 = vector.extract_strided_slice %143 {offsets = [1, 0], sizes = [10, 64], strides = [1, 1]} : vector<12x64xf32> to vector<10x64xf32>
      %c0_138 = arith.constant 0 : index
      %c1_139 = arith.constant 1 : index
      %c0_140 = arith.constant 0 : index
      %c0_141 = arith.constant 0 : index
      %150 = vector.load %arg6[%c0_138, %c1_139, %c0_140, %c0_141] : memref<3x3x64x64xf32, #tpu.memory_space<vmem>>, vector<1x1x64x64xf32>
      %151 = vector.shape_cast %150 : vector<1x1x64x64xf32> to vector<64x64xf32>
      %cst_142 = arith.constant dense<0.000000e+00> : vector<10x64xf32>
      %152 = tpu.matmul %149, %151, %cst_142 {dimension_numbers = #tpu.dot_dimension_numbers<[1], [0], [0], [1], [0, 0, 1, 1], [], []>} : vector<10x64xf32>, vector<64x64xf32>, vector<10x64xf32> -> vector<10x64xf32>
      %153 = arith.addf %148, %152 : vector<10x64xf32>
      %154 = vector.extract_strided_slice %143 {offsets = [2, 0], sizes = [10, 64], strides = [1, 1]} : vector<12x64xf32> to vector<10x64xf32>
      %c0_143 = arith.constant 0 : index
      %c2_144 = arith.constant 2 : index
      %c0_145 = arith.constant 0 : index
      %c0_146 = arith.constant 0 : index
      %155 = vector.load %arg6[%c0_143, %c2_144, %c0_145, %c0_146] : memref<3x3x64x64xf32, #tpu.memory_space<vmem>>, vector<1x1x64x64xf32>
      %156 = vector.shape_cast %155 : vector<1x1x64x64xf32> to vector<64x64xf32>
      %cst_147 = arith.constant dense<0.000000e+00> : vector<10x64xf32>
      %157 = tpu.matmul %154, %156, %cst_147 {dimension_numbers = #tpu.dot_dimension_numbers<[1], [0], [0], [1], [0, 0, 1, 1], [], []>} : vector<10x64xf32>, vector<64x64xf32>, vector<10x64xf32> -> vector<10x64xf32>
      %158 = arith.addf %153, %157 : vector<10x64xf32>
      %c1_i32_148 = arith.constant 1 : i32
      %159 = arith.addi %138, %c1_i32_148 : i32
      %160 = arith.index_cast %159 : i32 to index
      %c0_149 = arith.constant 0 : index
      %c0_150 = arith.constant 0 : index
      %161 = vector.load %arg18[%160, %c0_149, %c0_150] : memref<12x12x64xf32, #tpu.memory_space<vmem>>, vector<1x12x64xf32>
      %162 = vector.shape_cast %161 : vector<1x12x64xf32> to vector<12x64xf32>
      %163 = vector.extract_strided_slice %162 {offsets = [0, 0], sizes = [10, 64], strides = [1, 1]} : vector<12x64xf32> to vector<10x64xf32>
      %c1_151 = arith.constant 1 : index
      %c0_152 = arith.constant 0 : index
      %c0_153 = arith.constant 0 : index
      %c0_154 = arith.constant 0 : index
      %164 = vector.load %arg6[%c1_151, %c0_152, %c0_153, %c0_154] : memref<3x3x64x64xf32, #tpu.memory_space<vmem>>, vector<1x1x64x64xf32>
      %165 = vector.shape_cast %164 : vector<1x1x64x64xf32> to vector<64x64xf32>
      %cst_155 = arith.constant dense<0.000000e+00> : vector<10x64xf32>
      %166 = tpu.matmul %163, %165, %cst_155 {dimension_numbers = #tpu.dot_dimension_numbers<[1], [0], [0], [1], [0, 0, 1, 1], [], []>} : vector<10x64xf32>, vector<64x64xf32>, vector<10x64xf32> -> vector<10x64xf32>
      %167 = arith.addf %158, %166 : vector<10x64xf32>
      %168 = vector.extract_strided_slice %162 {offsets = [1, 0], sizes = [10, 64], strides = [1, 1]} : vector<12x64xf32> to vector<10x64xf32>
      %c1_156 = arith.constant 1 : index
      %c1_157 = arith.constant 1 : index
      %c0_158 = arith.constant 0 : index
      %c0_159 = arith.constant 0 : index
      %169 = vector.load %arg6[%c1_156, %c1_157, %c0_158, %c0_159] : memref<3x3x64x64xf32, #tpu.memory_space<vmem>>, vector<1x1x64x64xf32>
      %170 = vector.shape_cast %169 : vector<1x1x64x64xf32> to vector<64x64xf32>
      %cst_160 = arith.constant dense<0.000000e+00> : vector<10x64xf32>
      %171 = tpu.matmul %168, %170, %cst_160 {dimension_numbers = #tpu.dot_dimension_numbers<[1], [0], [0], [1], [0, 0, 1, 1], [], []>} : vector<10x64xf32>, vector<64x64xf32>, vector<10x64xf32> -> vector<10x64xf32>
      %172 = arith.addf %167, %171 : vector<10x64xf32>
      %173 = vector.extract_strided_slice %162 {offsets = [2, 0], sizes = [10, 64], strides = [1, 1]} : vector<12x64xf32> to vector<10x64xf32>
      %c1_161 = arith.constant 1 : index
      %c2_162 = arith.constant 2 : index
      %c0_163 = arith.constant 0 : index
      %c0_164 = arith.constant 0 : index
      %174 = vector.load %arg6[%c1_161, %c2_162, %c0_163, %c0_164] : memref<3x3x64x64xf32, #tpu.memory_space<vmem>>, vector<1x1x64x64xf32>
      %175 = vector.shape_cast %174 : vector<1x1x64x64xf32> to vector<64x64xf32>
      %cst_165 = arith.constant dense<0.000000e+00> : vector<10x64xf32>
      %176 = tpu.matmul %173, %175, %cst_165 {dimension_numbers = #tpu.dot_dimension_numbers<[1], [0], [0], [1], [0, 0, 1, 1], [], []>} : vector<10x64xf32>, vector<64x64xf32>, vector<10x64xf32> -> vector<10x64xf32>
      %177 = arith.addf %172, %176 : vector<10x64xf32>
      %c2_i32_166 = arith.constant 2 : i32
      %178 = arith.addi %138, %c2_i32_166 : i32
      %179 = arith.index_cast %178 : i32 to index
      %c0_167 = arith.constant 0 : index
      %c0_168 = arith.constant 0 : index
      %180 = vector.load %arg18[%179, %c0_167, %c0_168] : memref<12x12x64xf32, #tpu.memory_space<vmem>>, vector<1x12x64xf32>
      %181 = vector.shape_cast %180 : vector<1x12x64xf32> to vector<12x64xf32>
      %182 = vector.extract_strided_slice %181 {offsets = [0, 0], sizes = [10, 64], strides = [1, 1]} : vector<12x64xf32> to vector<10x64xf32>
      %c2_169 = arith.constant 2 : index
      %c0_170 = arith.constant 0 : index
      %c0_171 = arith.constant 0 : index
      %c0_172 = arith.constant 0 : index
      %183 = vector.load %arg6[%c2_169, %c0_170, %c0_171, %c0_172] : memref<3x3x64x64xf32, #tpu.memory_space<vmem>>, vector<1x1x64x64xf32>
      %184 = vector.shape_cast %183 : vector<1x1x64x64xf32> to vector<64x64xf32>
      %cst_173 = arith.constant dense<0.000000e+00> : vector<10x64xf32>
      %185 = tpu.matmul %182, %184, %cst_173 {dimension_numbers = #tpu.dot_dimension_numbers<[1], [0], [0], [1], [0, 0, 1, 1], [], []>} : vector<10x64xf32>, vector<64x64xf32>, vector<10x64xf32> -> vector<10x64xf32>
      %186 = arith.addf %177, %185 : vector<10x64xf32>
      %187 = vector.extract_strided_slice %181 {offsets = [1, 0], sizes = [10, 64], strides = [1, 1]} : vector<12x64xf32> to vector<10x64xf32>
      %c2_174 = arith.constant 2 : index
      %c1_175 = arith.constant 1 : index
      %c0_176 = arith.constant 0 : index
      %c0_177 = arith.constant 0 : index
      %188 = vector.load %arg6[%c2_174, %c1_175, %c0_176, %c0_177] : memref<3x3x64x64xf32, #tpu.memory_space<vmem>>, vector<1x1x64x64xf32>
      %189 = vector.shape_cast %188 : vector<1x1x64x64xf32> to vector<64x64xf32>
      %cst_178 = arith.constant dense<0.000000e+00> : vector<10x64xf32>
      %190 = tpu.matmul %187, %189, %cst_178 {dimension_numbers = #tpu.dot_dimension_numbers<[1], [0], [0], [1], [0, 0, 1, 1], [], []>} : vector<10x64xf32>, vector<64x64xf32>, vector<10x64xf32> -> vector<10x64xf32>
      %191 = arith.addf %186, %190 : vector<10x64xf32>
      %192 = vector.extract_strided_slice %181 {offsets = [2, 0], sizes = [10, 64], strides = [1, 1]} : vector<12x64xf32> to vector<10x64xf32>
      %c2_179 = arith.constant 2 : index
      %c2_180 = arith.constant 2 : index
      %c0_181 = arith.constant 0 : index
      %c0_182 = arith.constant 0 : index
      %193 = vector.load %arg6[%c2_179, %c2_180, %c0_181, %c0_182] : memref<3x3x64x64xf32, #tpu.memory_space<vmem>>, vector<1x1x64x64xf32>
      %194 = vector.shape_cast %193 : vector<1x1x64x64xf32> to vector<64x64xf32>
      %cst_183 = arith.constant dense<0.000000e+00> : vector<10x64xf32>
      %195 = tpu.matmul %192, %194, %cst_183 {dimension_numbers = #tpu.dot_dimension_numbers<[1], [0], [0], [1], [0, 0, 1, 1], [], []>} : vector<10x64xf32>, vector<64x64xf32>, vector<10x64xf32> -> vector<10x64xf32>
      %196 = arith.addf %191, %195 : vector<10x64xf32>
      %c0_184 = arith.constant 0 : index
      %c0_185 = arith.constant 0 : index
      %197 = vector.load %arg7[%c0_184, %c0_185] : memref<1x64xf32, #tpu.memory_space<vmem>>, vector<1x64xf32>
      %198 = vector.broadcast %197 : vector<1x64xf32> to vector<10x64xf32>
      %199 = arith.addf %196, %198 : vector<10x64xf32>
      %cst_186 = arith.constant 0.000000e+00 : f32
      %200 = vector.broadcast %cst_186 : f32 to vector<10x64xf32>
      %201 = arith.maximumf %199, %200 : vector<10x64xf32>
      %202 = arith.index_cast %138 : i32 to index
      %c0_187 = arith.constant 0 : index
      %c0_188 = arith.constant 0 : index
      %203 = vector.load %arg19[%202, %c0_187, %c0_188] : memref<10x10x64xf32, #tpu.memory_space<vmem>>, vector<1x10x64xf32>
      %204 = vector.shape_cast %203 : vector<1x10x64xf32> to vector<10x64xf32>
      %205 = vector.shape_cast %201 : vector<10x64xf32> to vector<1x10x64xf32>
      tpu.vector_store %arg19[%202, %c0_187, %c0_188], %205 {strides = array<i32>} : memref<10x10x64xf32, #tpu.memory_space<vmem>>, vector<1x10x64xf32>,
    }
    %c10_i32_17 = arith.constant 10 : i32
    %c0_i32_18 = arith.constant 0 : i32
    %c8_i32 = arith.constant 8 : i32
    %21 = arith.addi %c0_i32_18, %c8_i32 : i32
    %c1_i32_19 = arith.constant 1 : i32
    scf.for %arg22 = %c0_i32_18 to %21 step %c1_i32_19  : i32 {
      %c1_i32_127 = arith.constant 1 : i32
      %137 = arith.muli %arg22, %c1_i32_127 : i32
      %c0_i32_128 = arith.constant 0 : i32
      %138 = arith.addi %c0_i32_128, %137 : i32
      %cst_129 = arith.constant 0.000000e+00 : f32
      %139 = vector.broadcast %cst_129 : f32 to vector<8x128xf32>
      %c0_i32_130 = arith.constant 0 : i32
      %140 = arith.addi %138, %c0_i32_130 : i32
      %141 = arith.index_cast %140 : i32 to index
      %c0_131 = arith.constant 0 : index
      %c0_132 = arith.constant 0 : index
      %142 = vector.load %arg19[%141, %c0_131, %c0_132] : memref<10x10x64xf32, #tpu.memory_space<vmem>>, vector<1x10x64xf32>
      %143 = vector.shape_cast %142 : vector<1x10x64xf32> to vector<10x64xf32>
      %144 = vector.extract_strided_slice %143 {offsets = [0, 0], sizes = [8, 64], strides = [1, 1]} : vector<10x64xf32> to vector<8x64xf32>
      %c0_133 = arith.constant 0 : index
      %c0_134 = arith.constant 0 : index
      %c0_135 = arith.constant 0 : index
      %c0_136 = arith.constant 0 : index
      %145 = vector.load %arg8[%c0_133, %c0_134, %c0_135, %c0_136] : memref<3x3x64x128xf32, #tpu.memory_space<vmem>>, vector<1x1x64x128xf32>
      %146 = vector.shape_cast %145 : vector<1x1x64x128xf32> to vector<64x128xf32>
      %cst_137 = arith.constant dense<0.000000e+00> : vector<8x128xf32>
      %147 = tpu.matmul %144, %146, %cst_137 {dimension_numbers = #tpu.dot_dimension_numbers<[1], [0], [0], [1], [0, 0, 1, 1], [], []>} : vector<8x64xf32>, vector<64x128xf32>, vector<8x128xf32> -> vector<8x128xf32>
      %148 = arith.addf %139, %147 : vector<8x128xf32>
      %149 = vector.extract_strided_slice %143 {offsets = [1, 0], sizes = [8, 64], strides = [1, 1]} : vector<10x64xf32> to vector<8x64xf32>
      %c0_138 = arith.constant 0 : index
      %c1_139 = arith.constant 1 : index
      %c0_140 = arith.constant 0 : index
      %c0_141 = arith.constant 0 : index
      %150 = vector.load %arg8[%c0_138, %c1_139, %c0_140, %c0_141] : memref<3x3x64x128xf32, #tpu.memory_space<vmem>>, vector<1x1x64x128xf32>
      %151 = vector.shape_cast %150 : vector<1x1x64x128xf32> to vector<64x128xf32>
      %cst_142 = arith.constant dense<0.000000e+00> : vector<8x128xf32>
      %152 = tpu.matmul %149, %151, %cst_142 {dimension_numbers = #tpu.dot_dimension_numbers<[1], [0], [0], [1], [0, 0, 1, 1], [], []>} : vector<8x64xf32>, vector<64x128xf32>, vector<8x128xf32> -> vector<8x128xf32>
      %153 = arith.addf %148, %152 : vector<8x128xf32>
      %154 = vector.extract_strided_slice %143 {offsets = [2, 0], sizes = [8, 64], strides = [1, 1]} : vector<10x64xf32> to vector<8x64xf32>
      %c0_143 = arith.constant 0 : index
      %c2_144 = arith.constant 2 : index
      %c0_145 = arith.constant 0 : index
      %c0_146 = arith.constant 0 : index
      %155 = vector.load %arg8[%c0_143, %c2_144, %c0_145, %c0_146] : memref<3x3x64x128xf32, #tpu.memory_space<vmem>>, vector<1x1x64x128xf32>
      %156 = vector.shape_cast %155 : vector<1x1x64x128xf32> to vector<64x128xf32>
      %cst_147 = arith.constant dense<0.000000e+00> : vector<8x128xf32>
      %157 = tpu.matmul %154, %156, %cst_147 {dimension_numbers = #tpu.dot_dimension_numbers<[1], [0], [0], [1], [0, 0, 1, 1], [], []>} : vector<8x64xf32>, vector<64x128xf32>, vector<8x128xf32> -> vector<8x128xf32>
      %158 = arith.addf %153, %157 : vector<8x128xf32>
      %c1_i32_148 = arith.constant 1 : i32
      %159 = arith.addi %138, %c1_i32_148 : i32
      %160 = arith.index_cast %159 : i32 to index
      %c0_149 = arith.constant 0 : index
      %c0_150 = arith.constant 0 : index
      %161 = vector.load %arg19[%160, %c0_149, %c0_150] : memref<10x10x64xf32, #tpu.memory_space<vmem>>, vector<1x10x64xf32>
      %162 = vector.shape_cast %161 : vector<1x10x64xf32> to vector<10x64xf32>
      %163 = vector.extract_strided_slice %162 {offsets = [0, 0], sizes = [8, 64], strides = [1, 1]} : vector<10x64xf32> to vector<8x64xf32>
      %c1_151 = arith.constant 1 : index
      %c0_152 = arith.constant 0 : index
      %c0_153 = arith.constant 0 : index
      %c0_154 = arith.constant 0 : index
      %164 = vector.load %arg8[%c1_151, %c0_152, %c0_153, %c0_154] : memref<3x3x64x128xf32, #tpu.memory_space<vmem>>, vector<1x1x64x128xf32>
      %165 = vector.shape_cast %164 : vector<1x1x64x128xf32> to vector<64x128xf32>
      %cst_155 = arith.constant dense<0.000000e+00> : vector<8x128xf32>
      %166 = tpu.matmul %163, %165, %cst_155 {dimension_numbers = #tpu.dot_dimension_numbers<[1], [0], [0], [1], [0, 0, 1, 1], [], []>} : vector<8x64xf32>, vector<64x128xf32>, vector<8x128xf32> -> vector<8x128xf32>
      %167 = arith.addf %158, %166 : vector<8x128xf32>
      %168 = vector.extract_strided_slice %162 {offsets = [1, 0], sizes = [8, 64], strides = [1, 1]} : vector<10x64xf32> to vector<8x64xf32>
      %c1_156 = arith.constant 1 : index
      %c1_157 = arith.constant 1 : index
      %c0_158 = arith.constant 0 : index
      %c0_159 = arith.constant 0 : index
      %169 = vector.load %arg8[%c1_156, %c1_157, %c0_158, %c0_159] : memref<3x3x64x128xf32, #tpu.memory_space<vmem>>, vector<1x1x64x128xf32>
      %170 = vector.shape_cast %169 : vector<1x1x64x128xf32> to vector<64x128xf32>
      %cst_160 = arith.constant dense<0.000000e+00> : vector<8x128xf32>
      %171 = tpu.matmul %168, %170, %cst_160 {dimension_numbers = #tpu.dot_dimension_numbers<[1], [0], [0], [1], [0, 0, 1, 1], [], []>} : vector<8x64xf32>, vector<64x128xf32>, vector<8x128xf32> -> vector<8x128xf32>
      %172 = arith.addf %167, %171 : vector<8x128xf32>
      %173 = vector.extract_strided_slice %162 {offsets = [2, 0], sizes = [8, 64], strides = [1, 1]} : vector<10x64xf32> to vector<8x64xf32>
      %c1_161 = arith.constant 1 : index
      %c2_162 = arith.constant 2 : index
      %c0_163 = arith.constant 0 : index
      %c0_164 = arith.constant 0 : index
      %174 = vector.load %arg8[%c1_161, %c2_162, %c0_163, %c0_164] : memref<3x3x64x128xf32, #tpu.memory_space<vmem>>, vector<1x1x64x128xf32>
      %175 = vector.shape_cast %174 : vector<1x1x64x128xf32> to vector<64x128xf32>
      %cst_165 = arith.constant dense<0.000000e+00> : vector<8x128xf32>
      %176 = tpu.matmul %173, %175, %cst_165 {dimension_numbers = #tpu.dot_dimension_numbers<[1], [0], [0], [1], [0, 0, 1, 1], [], []>} : vector<8x64xf32>, vector<64x128xf32>, vector<8x128xf32> -> vector<8x128xf32>
      %177 = arith.addf %172, %176 : vector<8x128xf32>
      %c2_i32_166 = arith.constant 2 : i32
      %178 = arith.addi %138, %c2_i32_166 : i32
      %179 = arith.index_cast %178 : i32 to index
      %c0_167 = arith.constant 0 : index
      %c0_168 = arith.constant 0 : index
      %180 = vector.load %arg19[%179, %c0_167, %c0_168] : memref<10x10x64xf32, #tpu.memory_space<vmem>>, vector<1x10x64xf32>
      %181 = vector.shape_cast %180 : vector<1x10x64xf32> to vector<10x64xf32>
      %182 = vector.extract_strided_slice %181 {offsets = [0, 0], sizes = [8, 64], strides = [1, 1]} : vector<10x64xf32> to vector<8x64xf32>
      %c2_169 = arith.constant 2 : index
      %c0_170 = arith.constant 0 : index
      %c0_171 = arith.constant 0 : index
      %c0_172 = arith.constant 0 : index
      %183 = vector.load %arg8[%c2_169, %c0_170, %c0_171, %c0_172] : memref<3x3x64x128xf32, #tpu.memory_space<vmem>>, vector<1x1x64x128xf32>
      %184 = vector.shape_cast %183 : vector<1x1x64x128xf32> to vector<64x128xf32>
      %cst_173 = arith.constant dense<0.000000e+00> : vector<8x128xf32>
      %185 = tpu.matmul %182, %184, %cst_173 {dimension_numbers = #tpu.dot_dimension_numbers<[1], [0], [0], [1], [0, 0, 1, 1], [], []>} : vector<8x64xf32>, vector<64x128xf32>, vector<8x128xf32> -> vector<8x128xf32>
      %186 = arith.addf %177, %185 : vector<8x128xf32>
      %187 = vector.extract_strided_slice %181 {offsets = [1, 0], sizes = [8, 64], strides = [1, 1]} : vector<10x64xf32> to vector<8x64xf32>
      %c2_174 = arith.constant 2 : index
      %c1_175 = arith.constant 1 : index
      %c0_176 = arith.constant 0 : index
      %c0_177 = arith.constant 0 : index
      %188 = vector.load %arg8[%c2_174, %c1_175, %c0_176, %c0_177] : memref<3x3x64x128xf32, #tpu.memory_space<vmem>>, vector<1x1x64x128xf32>
      %189 = vector.shape_cast %188 : vector<1x1x64x128xf32> to vector<64x128xf32>
      %cst_178 = arith.constant dense<0.000000e+00> : vector<8x128xf32>
      %190 = tpu.matmul %187, %189, %cst_178 {dimension_numbers = #tpu.dot_dimension_numbers<[1], [0], [0], [1], [0, 0, 1, 1], [], []>} : vector<8x64xf32>, vector<64x128xf32>, vector<8x128xf32> -> vector<8x128xf32>
      %191 = arith.addf %186, %190 : vector<8x128xf32>
      %192 = vector.extract_strided_slice %181 {offsets = [2, 0], sizes = [8, 64], strides = [1, 1]} : vector<10x64xf32> to vector<8x64xf32>
      %c2_179 = arith.constant 2 : index
      %c2_180 = arith.constant 2 : index
      %c0_181 = arith.constant 0 : index
      %c0_182 = arith.constant 0 : index
      %193 = vector.load %arg8[%c2_179, %c2_180, %c0_181, %c0_182] : memref<3x3x64x128xf32, #tpu.memory_space<vmem>>, vector<1x1x64x128xf32>
      %194 = vector.shape_cast %193 : vector<1x1x64x128xf32> to vector<64x128xf32>
      %cst_183 = arith.constant dense<0.000000e+00> : vector<8x128xf32>
      %195 = tpu.matmul %192, %194, %cst_183 {dimension_numbers = #tpu.dot_dimension_numbers<[1], [0], [0], [1], [0, 0, 1, 1], [], []>} : vector<8x64xf32>, vector<64x128xf32>, vector<8x128xf32> -> vector<8x128xf32>
      %196 = arith.addf %191, %195 : vector<8x128xf32>
      %c0_184 = arith.constant 0 : index
      %c0_185 = arith.constant 0 : index
      %197 = vector.load %arg9[%c0_184, %c0_185] : memref<1x128xf32, #tpu.memory_space<vmem>>, vector<1x128xf32>
      %198 = vector.broadcast %197 : vector<1x128xf32> to vector<8x128xf32>
      %199 = arith.addf %196, %198 : vector<8x128xf32>
      %cst_186 = arith.constant 0.000000e+00 : f32
      %200 = vector.broadcast %cst_186 : f32 to vector<8x128xf32>
      %201 = arith.maximumf %199, %200 : vector<8x128xf32>
      %202 = arith.index_cast %138 : i32 to index
      %c0_187 = arith.constant 0 : index
      %c0_188 = arith.constant 0 : index
      %203 = vector.load %arg20[%202, %c0_187, %c0_188] : memref<8x8x128xf32, #tpu.memory_space<vmem>>, vector<1x8x128xf32>
      %204 = vector.shape_cast %203 : vector<1x8x128xf32> to vector<8x128xf32>
      %205 = vector.shape_cast %201 : vector<8x128xf32> to vector<1x8x128xf32>
      tpu.vector_store %arg20[%202, %c0_187, %c0_188], %205 {strides = array<i32>} : memref<8x8x128xf32, #tpu.memory_space<vmem>>, vector<1x8x128xf32>,
    }
    %c8_i32_20 = arith.constant 8 : i32
    %22 = tpu.iota {dimensions = array<i32: 0>} : vector<4x8xi32>
    %23 = tpu.iota {dimensions = array<i32: 1>} : vector<4x8xi32>
    %c2_i32_21 = arith.constant 2 : i32
    %24 = vector.broadcast %c2_i32_21 : i32 to vector<4x8xi32>
    %25 = arith.muli %24, %22 : vector<4x8xi32>
    %26 = arith.cmpi eq, %23, %25 : vector<4x8xi32>
    %27 = arith.extui %26 : vector<4x8xi1> to vector<4x8xi32>
    %28 = arith.sitofp %27 : vector<4x8xi32> to vector<4x8xf32>
    %c2_i32_22 = arith.constant 2 : i32
    %29 = vector.broadcast %c2_i32_22 : i32 to vector<4x8xi32>
    %30 = arith.muli %29, %22 : vector<4x8xi32>
    %c1_i32_23 = arith.constant 1 : i32
    %31 = vector.broadcast %c1_i32_23 : i32 to vector<4x8xi32>
    %32 = arith.addi %30, %31 : vector<4x8xi32>
    %33 = arith.cmpi eq, %23, %32 : vector<4x8xi32>
    %34 = arith.extui %33 : vector<4x8xi1> to vector<4x8xi32>
    %35 = arith.sitofp %34 : vector<4x8xi32> to vector<4x8xf32>
    %c0_i32_24 = arith.constant 0 : i32
    %c4_i32 = arith.constant 4 : i32
    %36 = arith.addi %c0_i32_24, %c4_i32 : i32
    %c1_i32_25 = arith.constant 1 : i32
    scf.for %arg22 = %c0_i32_24 to %36 step %c1_i32_25  : i32 {
      %c1_i32_127 = arith.constant 1 : i32
      %137 = arith.muli %arg22, %c1_i32_127 : i32
      %c0_i32_128 = arith.constant 0 : i32
      %138 = arith.addi %c0_i32_128, %137 : i32
      %c2_i32_129 = arith.constant 2 : i32
      %139 = arith.muli %c2_i32_129, %138 : i32
      %140 = arith.index_cast %139 : i32 to index
      %c0_130 = arith.constant 0 : index
      %c0_131 = arith.constant 0 : index
      %141 = vector.load %arg20[%140, %c0_130, %c0_131] : memref<8x8x128xf32, #tpu.memory_space<vmem>>, vector<1x8x128xf32>
      %142 = vector.shape_cast %141 : vector<1x8x128xf32> to vector<8x128xf32>
      %c2_i32_132 = arith.constant 2 : i32
      %143 = arith.muli %c2_i32_132, %138 : i32
      %c1_i32_133 = arith.constant 1 : i32
      %144 = arith.addi %143, %c1_i32_133 : i32
      %145 = arith.index_cast %144 : i32 to index
      %c0_134 = arith.constant 0 : index
      %c0_135 = arith.constant 0 : index
      %146 = vector.load %arg20[%145, %c0_134, %c0_135] : memref<8x8x128xf32, #tpu.memory_space<vmem>>, vector<1x8x128xf32>
      %147 = vector.shape_cast %146 : vector<1x8x128xf32> to vector<8x128xf32>
      %148 = arith.maximumf %142, %147 : vector<8x128xf32>
      %cst_136 = arith.constant dense<0.000000e+00> : vector<4x128xf32>
      %149 = tpu.matmul %28, %148, %cst_136 {dimension_numbers = #tpu.dot_dimension_numbers<[1], [0], [0], [1], [0, 0, 1, 1], [], []>} : vector<4x8xf32>, vector<8x128xf32>, vector<4x128xf32> -> vector<4x128xf32>
      %cst_137 = arith.constant dense<0.000000e+00> : vector<4x128xf32>
      %150 = tpu.matmul %35, %148, %cst_137 {dimension_numbers = #tpu.dot_dimension_numbers<[1], [0], [0], [1], [0, 0, 1, 1], [], []>} : vector<4x8xf32>, vector<8x128xf32>, vector<4x128xf32> -> vector<4x128xf32>
      %151 = arith.maximumf %149, %150 : vector<4x128xf32>
      %152 = arith.index_cast %138 : i32 to index
      %c0_138 = arith.constant 0 : index
      %c0_139 = arith.constant 0 : index
      %153 = vector.load %arg21[%152, %c0_138, %c0_139] : memref<4x4x128xf32, #tpu.memory_space<vmem>>, vector<1x4x128xf32>
      %154 = vector.shape_cast %153 : vector<1x4x128xf32> to vector<4x128xf32>
      %155 = vector.shape_cast %151 : vector<4x128xf32> to vector<1x4x128xf32>
      tpu.vector_store %arg21[%152, %c0_138, %c0_139], %155 {strides = array<i32>} : memref<4x4x128xf32, #tpu.memory_space<vmem>>, vector<1x4x128xf32>,
    }
    %c4_i32_26 = arith.constant 4 : i32
    %cst = arith.constant 0.000000e+00 : f32
    %37 = vector.broadcast %cst : f32 to vector<1x512xf32>
    %c0_27 = arith.constant 0 : index
    %c0_28 = arith.constant 0 : index
    %c0_29 = arith.constant 0 : index
    %38 = vector.load %arg21[%c0_27, %c0_28, %c0_29] : memref<4x4x128xf32, #tpu.memory_space<vmem>>, vector<1x4x128xf32>
    %39 = vector.shape_cast %38 : vector<1x4x128xf32> to vector<4x128xf32>
    %40 = vector.extract_strided_slice %39 {offsets = [0, 0], sizes = [1, 128], strides = [1, 1]} : vector<4x128xf32> to vector<1x128xf32>
    %c0_30 = arith.constant 0 : index
    %c0_31 = arith.constant 0 : index
    %c0_32 = arith.constant 0 : index
    %c0_33 = arith.constant 0 : index
    %41 = vector.load %arg10[%c0_30, %c0_31, %c0_32, %c0_33] : memref<4x4x128x512xf32, #tpu.memory_space<vmem>>, vector<1x1x128x512xf32>
    %42 = vector.shape_cast %41 : vector<1x1x128x512xf32> to vector<128x512xf32>
    %cst_34 = arith.constant dense<0.000000e+00> : vector<1x512xf32>
    %43 = tpu.matmul %40, %42, %cst_34 {dimension_numbers = #tpu.dot_dimension_numbers<[1], [0], [0], [1], [0, 0, 1, 1], [], []>} : vector<1x128xf32>, vector<128x512xf32>, vector<1x512xf32> -> vector<1x512xf32>
    %44 = arith.addf %37, %43 : vector<1x512xf32>
    %45 = vector.extract_strided_slice %39 {offsets = [1, 0], sizes = [1, 128], strides = [1, 1]} : vector<4x128xf32> to vector<1x128xf32>
    %c0_35 = arith.constant 0 : index
    %c1 = arith.constant 1 : index
    %c0_36 = arith.constant 0 : index
    %c0_37 = arith.constant 0 : index
    %46 = vector.load %arg10[%c0_35, %c1, %c0_36, %c0_37] : memref<4x4x128x512xf32, #tpu.memory_space<vmem>>, vector<1x1x128x512xf32>
    %47 = vector.shape_cast %46 : vector<1x1x128x512xf32> to vector<128x512xf32>
    %cst_38 = arith.constant dense<0.000000e+00> : vector<1x512xf32>
    %48 = tpu.matmul %45, %47, %cst_38 {dimension_numbers = #tpu.dot_dimension_numbers<[1], [0], [0], [1], [0, 0, 1, 1], [], []>} : vector<1x128xf32>, vector<128x512xf32>, vector<1x512xf32> -> vector<1x512xf32>
    %49 = arith.addf %44, %48 : vector<1x512xf32>
    %50 = vector.extract_strided_slice %39 {offsets = [2, 0], sizes = [1, 128], strides = [1, 1]} : vector<4x128xf32> to vector<1x128xf32>
    %c0_39 = arith.constant 0 : index
    %c2 = arith.constant 2 : index
    %c0_40 = arith.constant 0 : index
    %c0_41 = arith.constant 0 : index
    %51 = vector.load %arg10[%c0_39, %c2, %c0_40, %c0_41] : memref<4x4x128x512xf32, #tpu.memory_space<vmem>>, vector<1x1x128x512xf32>
    %52 = vector.shape_cast %51 : vector<1x1x128x512xf32> to vector<128x512xf32>
    %cst_42 = arith.constant dense<0.000000e+00> : vector<1x512xf32>
    %53 = tpu.matmul %50, %52, %cst_42 {dimension_numbers = #tpu.dot_dimension_numbers<[1], [0], [0], [1], [0, 0, 1, 1], [], []>} : vector<1x128xf32>, vector<128x512xf32>, vector<1x512xf32> -> vector<1x512xf32>
    %54 = arith.addf %49, %53 : vector<1x512xf32>
    %55 = vector.extract_strided_slice %39 {offsets = [3, 0], sizes = [1, 128], strides = [1, 1]} : vector<4x128xf32> to vector<1x128xf32>
    %c0_43 = arith.constant 0 : index
    %c3 = arith.constant 3 : index
    %c0_44 = arith.constant 0 : index
    %c0_45 = arith.constant 0 : index
    %56 = vector.load %arg10[%c0_43, %c3, %c0_44, %c0_45] : memref<4x4x128x512xf32, #tpu.memory_space<vmem>>, vector<1x1x128x512xf32>
    %57 = vector.shape_cast %56 : vector<1x1x128x512xf32> to vector<128x512xf32>
    %cst_46 = arith.constant dense<0.000000e+00> : vector<1x512xf32>
    %58 = tpu.matmul %55, %57, %cst_46 {dimension_numbers = #tpu.dot_dimension_numbers<[1], [0], [0], [1], [0, 0, 1, 1], [], []>} : vector<1x128xf32>, vector<128x512xf32>, vector<1x512xf32> -> vector<1x512xf32>
    %59 = arith.addf %54, %58 : vector<1x512xf32>
    %c1_47 = arith.constant 1 : index
    %c0_48 = arith.constant 0 : index
    %c0_49 = arith.constant 0 : index
    %60 = vector.load %arg21[%c1_47, %c0_48, %c0_49] : memref<4x4x128xf32, #tpu.memory_space<vmem>>, vector<1x4x128xf32>
    %61 = vector.shape_cast %60 : vector<1x4x128xf32> to vector<4x128xf32>
    %62 = vector.extract_strided_slice %61 {offsets = [0, 0], sizes = [1, 128], strides = [1, 1]} : vector<4x128xf32> to vector<1x128xf32>
    %c1_50 = arith.constant 1 : index
    %c0_51 = arith.constant 0 : index
    %c0_52 = arith.constant 0 : index
    %c0_53 = arith.constant 0 : index
    %63 = vector.load %arg10[%c1_50, %c0_51, %c0_52, %c0_53] : memref<4x4x128x512xf32, #tpu.memory_space<vmem>>, vector<1x1x128x512xf32>
    %64 = vector.shape_cast %63 : vector<1x1x128x512xf32> to vector<128x512xf32>
    %cst_54 = arith.constant dense<0.000000e+00> : vector<1x512xf32>
    %65 = tpu.matmul %62, %64, %cst_54 {dimension_numbers = #tpu.dot_dimension_numbers<[1], [0], [0], [1], [0, 0, 1, 1], [], []>} : vector<1x128xf32>, vector<128x512xf32>, vector<1x512xf32> -> vector<1x512xf32>
    %66 = arith.addf %59, %65 : vector<1x512xf32>
    %67 = vector.extract_strided_slice %61 {offsets = [1, 0], sizes = [1, 128], strides = [1, 1]} : vector<4x128xf32> to vector<1x128xf32>
    %c1_55 = arith.constant 1 : index
    %c1_56 = arith.constant 1 : index
    %c0_57 = arith.constant 0 : index
    %c0_58 = arith.constant 0 : index
    %68 = vector.load %arg10[%c1_55, %c1_56, %c0_57, %c0_58] : memref<4x4x128x512xf32, #tpu.memory_space<vmem>>, vector<1x1x128x512xf32>
    %69 = vector.shape_cast %68 : vector<1x1x128x512xf32> to vector<128x512xf32>
    %cst_59 = arith.constant dense<0.000000e+00> : vector<1x512xf32>
    %70 = tpu.matmul %67, %69, %cst_59 {dimension_numbers = #tpu.dot_dimension_numbers<[1], [0], [0], [1], [0, 0, 1, 1], [], []>} : vector<1x128xf32>, vector<128x512xf32>, vector<1x512xf32> -> vector<1x512xf32>
    %71 = arith.addf %66, %70 : vector<1x512xf32>
    %72 = vector.extract_strided_slice %61 {offsets = [2, 0], sizes = [1, 128], strides = [1, 1]} : vector<4x128xf32> to vector<1x128xf32>
    %c1_60 = arith.constant 1 : index
    %c2_61 = arith.constant 2 : index
    %c0_62 = arith.constant 0 : index
    %c0_63 = arith.constant 0 : index
    %73 = vector.load %arg10[%c1_60, %c2_61, %c0_62, %c0_63] : memref<4x4x128x512xf32, #tpu.memory_space<vmem>>, vector<1x1x128x512xf32>
    %74 = vector.shape_cast %73 : vector<1x1x128x512xf32> to vector<128x512xf32>
    %cst_64 = arith.constant dense<0.000000e+00> : vector<1x512xf32>
    %75 = tpu.matmul %72, %74, %cst_64 {dimension_numbers = #tpu.dot_dimension_numbers<[1], [0], [0], [1], [0, 0, 1, 1], [], []>} : vector<1x128xf32>, vector<128x512xf32>, vector<1x512xf32> -> vector<1x512xf32>
    %76 = arith.addf %71, %75 : vector<1x512xf32>
    %77 = vector.extract_strided_slice %61 {offsets = [3, 0], sizes = [1, 128], strides = [1, 1]} : vector<4x128xf32> to vector<1x128xf32>
    %c1_65 = arith.constant 1 : index
    %c3_66 = arith.constant 3 : index
    %c0_67 = arith.constant 0 : index
    %c0_68 = arith.constant 0 : index
    %78 = vector.load %arg10[%c1_65, %c3_66, %c0_67, %c0_68] : memref<4x4x128x512xf32, #tpu.memory_space<vmem>>, vector<1x1x128x512xf32>
    %79 = vector.shape_cast %78 : vector<1x1x128x512xf32> to vector<128x512xf32>
    %cst_69 = arith.constant dense<0.000000e+00> : vector<1x512xf32>
    %80 = tpu.matmul %77, %79, %cst_69 {dimension_numbers = #tpu.dot_dimension_numbers<[1], [0], [0], [1], [0, 0, 1, 1], [], []>} : vector<1x128xf32>, vector<128x512xf32>, vector<1x512xf32> -> vector<1x512xf32>
    %81 = arith.addf %76, %80 : vector<1x512xf32>
    %c2_70 = arith.constant 2 : index
    %c0_71 = arith.constant 0 : index
    %c0_72 = arith.constant 0 : index
    %82 = vector.load %arg21[%c2_70, %c0_71, %c0_72] : memref<4x4x128xf32, #tpu.memory_space<vmem>>, vector<1x4x128xf32>
    %83 = vector.shape_cast %82 : vector<1x4x128xf32> to vector<4x128xf32>
    %84 = vector.extract_strided_slice %83 {offsets = [0, 0], sizes = [1, 128], strides = [1, 1]} : vector<4x128xf32> to vector<1x128xf32>
    %c2_73 = arith.constant 2 : index
    %c0_74 = arith.constant 0 : index
    %c0_75 = arith.constant 0 : index
    %c0_76 = arith.constant 0 : index
    %85 = vector.load %arg10[%c2_73, %c0_74, %c0_75, %c0_76] : memref<4x4x128x512xf32, #tpu.memory_space<vmem>>, vector<1x1x128x512xf32>
    %86 = vector.shape_cast %85 : vector<1x1x128x512xf32> to vector<128x512xf32>
    %cst_77 = arith.constant dense<0.000000e+00> : vector<1x512xf32>
    %87 = tpu.matmul %84, %86, %cst_77 {dimension_numbers = #tpu.dot_dimension_numbers<[1], [0], [0], [1], [0, 0, 1, 1], [], []>} : vector<1x128xf32>, vector<128x512xf32>, vector<1x512xf32> -> vector<1x512xf32>
    %88 = arith.addf %81, %87 : vector<1x512xf32>
    %89 = vector.extract_strided_slice %83 {offsets = [1, 0], sizes = [1, 128], strides = [1, 1]} : vector<4x128xf32> to vector<1x128xf32>
    %c2_78 = arith.constant 2 : index
    %c1_79 = arith.constant 1 : index
    %c0_80 = arith.constant 0 : index
    %c0_81 = arith.constant 0 : index
    %90 = vector.load %arg10[%c2_78, %c1_79, %c0_80, %c0_81] : memref<4x4x128x512xf32, #tpu.memory_space<vmem>>, vector<1x1x128x512xf32>
    %91 = vector.shape_cast %90 : vector<1x1x128x512xf32> to vector<128x512xf32>
    %cst_82 = arith.constant dense<0.000000e+00> : vector<1x512xf32>
    %92 = tpu.matmul %89, %91, %cst_82 {dimension_numbers = #tpu.dot_dimension_numbers<[1], [0], [0], [1], [0, 0, 1, 1], [], []>} : vector<1x128xf32>, vector<128x512xf32>, vector<1x512xf32> -> vector<1x512xf32>
    %93 = arith.addf %88, %92 : vector<1x512xf32>
    %94 = vector.extract_strided_slice %83 {offsets = [2, 0], sizes = [1, 128], strides = [1, 1]} : vector<4x128xf32> to vector<1x128xf32>
    %c2_83 = arith.constant 2 : index
    %c2_84 = arith.constant 2 : index
    %c0_85 = arith.constant 0 : index
    %c0_86 = arith.constant 0 : index
    %95 = vector.load %arg10[%c2_83, %c2_84, %c0_85, %c0_86] : memref<4x4x128x512xf32, #tpu.memory_space<vmem>>, vector<1x1x128x512xf32>
    %96 = vector.shape_cast %95 : vector<1x1x128x512xf32> to vector<128x512xf32>
    %cst_87 = arith.constant dense<0.000000e+00> : vector<1x512xf32>
    %97 = tpu.matmul %94, %96, %cst_87 {dimension_numbers = #tpu.dot_dimension_numbers<[1], [0], [0], [1], [0, 0, 1, 1], [], []>} : vector<1x128xf32>, vector<128x512xf32>, vector<1x512xf32> -> vector<1x512xf32>
    %98 = arith.addf %93, %97 : vector<1x512xf32>
    %99 = vector.extract_strided_slice %83 {offsets = [3, 0], sizes = [1, 128], strides = [1, 1]} : vector<4x128xf32> to vector<1x128xf32>
    %c2_88 = arith.constant 2 : index
    %c3_89 = arith.constant 3 : index
    %c0_90 = arith.constant 0 : index
    %c0_91 = arith.constant 0 : index
    %100 = vector.load %arg10[%c2_88, %c3_89, %c0_90, %c0_91] : memref<4x4x128x512xf32, #tpu.memory_space<vmem>>, vector<1x1x128x512xf32>
    %101 = vector.shape_cast %100 : vector<1x1x128x512xf32> to vector<128x512xf32>
    %cst_92 = arith.constant dense<0.000000e+00> : vector<1x512xf32>
    %102 = tpu.matmul %99, %101, %cst_92 {dimension_numbers = #tpu.dot_dimension_numbers<[1], [0], [0], [1], [0, 0, 1, 1], [], []>} : vector<1x128xf32>, vector<128x512xf32>, vector<1x512xf32> -> vector<1x512xf32>
    %103 = arith.addf %98, %102 : vector<1x512xf32>
    %c3_93 = arith.constant 3 : index
    %c0_94 = arith.constant 0 : index
    %c0_95 = arith.constant 0 : index
    %104 = vector.load %arg21[%c3_93, %c0_94, %c0_95] : memref<4x4x128xf32, #tpu.memory_space<vmem>>, vector<1x4x128xf32>
    %105 = vector.shape_cast %104 : vector<1x4x128xf32> to vector<4x128xf32>
    %106 = vector.extract_strided_slice %105 {offsets = [0, 0], sizes = [1, 128], strides = [1, 1]} : vector<4x128xf32> to vector<1x128xf32>
    %c3_96 = arith.constant 3 : index
    %c0_97 = arith.constant 0 : index
    %c0_98 = arith.constant 0 : index
    %c0_99 = arith.constant 0 : index
    %107 = vector.load %arg10[%c3_96, %c0_97, %c0_98, %c0_99] : memref<4x4x128x512xf32, #tpu.memory_space<vmem>>, vector<1x1x128x512xf32>
    %108 = vector.shape_cast %107 : vector<1x1x128x512xf32> to vector<128x512xf32>
    %cst_100 = arith.constant dense<0.000000e+00> : vector<1x512xf32>
    %109 = tpu.matmul %106, %108, %cst_100 {dimension_numbers = #tpu.dot_dimension_numbers<[1], [0], [0], [1], [0, 0, 1, 1], [], []>} : vector<1x128xf32>, vector<128x512xf32>, vector<1x512xf32> -> vector<1x512xf32>
    %110 = arith.addf %103, %109 : vector<1x512xf32>
    %111 = vector.extract_strided_slice %105 {offsets = [1, 0], sizes = [1, 128], strides = [1, 1]} : vector<4x128xf32> to vector<1x128xf32>
    %c3_101 = arith.constant 3 : index
    %c1_102 = arith.constant 1 : index
    %c0_103 = arith.constant 0 : index
    %c0_104 = arith.constant 0 : index
    %112 = vector.load %arg10[%c3_101, %c1_102, %c0_103, %c0_104] : memref<4x4x128x512xf32, #tpu.memory_space<vmem>>, vector<1x1x128x512xf32>
    %113 = vector.shape_cast %112 : vector<1x1x128x512xf32> to vector<128x512xf32>
    %cst_105 = arith.constant dense<0.000000e+00> : vector<1x512xf32>
    %114 = tpu.matmul %111, %113, %cst_105 {dimension_numbers = #tpu.dot_dimension_numbers<[1], [0], [0], [1], [0, 0, 1, 1], [], []>} : vector<1x128xf32>, vector<128x512xf32>, vector<1x512xf32> -> vector<1x512xf32>
    %115 = arith.addf %110, %114 : vector<1x512xf32>
    %116 = vector.extract_strided_slice %105 {offsets = [2, 0], sizes = [1, 128], strides = [1, 1]} : vector<4x128xf32> to vector<1x128xf32>
    %c3_106 = arith.constant 3 : index
    %c2_107 = arith.constant 2 : index
    %c0_108 = arith.constant 0 : index
    %c0_109 = arith.constant 0 : index
    %117 = vector.load %arg10[%c3_106, %c2_107, %c0_108, %c0_109] : memref<4x4x128x512xf32, #tpu.memory_space<vmem>>, vector<1x1x128x512xf32>
    %118 = vector.shape_cast %117 : vector<1x1x128x512xf32> to vector<128x512xf32>
    %cst_110 = arith.constant dense<0.000000e+00> : vector<1x512xf32>
    %119 = tpu.matmul %116, %118, %cst_110 {dimension_numbers = #tpu.dot_dimension_numbers<[1], [0], [0], [1], [0, 0, 1, 1], [], []>} : vector<1x128xf32>, vector<128x512xf32>, vector<1x512xf32> -> vector<1x512xf32>
    %120 = arith.addf %115, %119 : vector<1x512xf32>
    %121 = vector.extract_strided_slice %105 {offsets = [3, 0], sizes = [1, 128], strides = [1, 1]} : vector<4x128xf32> to vector<1x128xf32>
    %c3_111 = arith.constant 3 : index
    %c3_112 = arith.constant 3 : index
    %c0_113 = arith.constant 0 : index
    %c0_114 = arith.constant 0 : index
    %122 = vector.load %arg10[%c3_111, %c3_112, %c0_113, %c0_114] : memref<4x4x128x512xf32, #tpu.memory_space<vmem>>, vector<1x1x128x512xf32>
    %123 = vector.shape_cast %122 : vector<1x1x128x512xf32> to vector<128x512xf32>
    %cst_115 = arith.constant dense<0.000000e+00> : vector<1x512xf32>
    %124 = tpu.matmul %121, %123, %cst_115 {dimension_numbers = #tpu.dot_dimension_numbers<[1], [0], [0], [1], [0, 0, 1, 1], [], []>} : vector<1x128xf32>, vector<128x512xf32>, vector<1x512xf32> -> vector<1x512xf32>
    %125 = arith.addf %120, %124 : vector<1x512xf32>
    %c0_116 = arith.constant 0 : index
    %c0_117 = arith.constant 0 : index
    %126 = vector.load %arg11[%c0_116, %c0_117] : memref<1x512xf32, #tpu.memory_space<vmem>>, vector<1x512xf32>
    %127 = arith.addf %125, %126 : vector<1x512xf32>
    %cst_118 = arith.constant 0.000000e+00 : f32
    %128 = vector.broadcast %cst_118 : f32 to vector<1x512xf32>
    %129 = arith.maximumf %127, %128 : vector<1x512xf32>
    %c0_119 = arith.constant 0 : index
    %c0_120 = arith.constant 0 : index
    %130 = vector.load %arg12[%c0_119, %c0_120] : memref<512x64xf32, #tpu.memory_space<vmem>>, vector<512x64xf32>
    %cst_121 = arith.constant dense<0.000000e+00> : vector<1x64xf32>
    %131 = tpu.matmul %129, %130, %cst_121 {dimension_numbers = #tpu.dot_dimension_numbers<[1], [0], [0], [1], [0, 0, 1, 1], [], []>} : vector<1x512xf32>, vector<512x64xf32>, vector<1x64xf32> -> vector<1x64xf32>
    %c0_122 = arith.constant 0 : index
    %c0_123 = arith.constant 0 : index
    %132 = vector.load %arg13[%c0_122, %c0_123] : memref<1x64xf32, #tpu.memory_space<vmem>>, vector<1x64xf32>
    %133 = arith.addf %131, %132 : vector<1x64xf32>
    %c0_124 = arith.constant 0 : index
    %c0_125 = arith.constant 0 : index
    %c0_126 = arith.constant 0 : index
    %134 = vector.load %arg14[%c0_124, %c0_125, %c0_126] : memref<1x1x64xf32, #tpu.memory_space<vmem>>, vector<1x1x64xf32>
    %135 = vector.shape_cast %134 : vector<1x1x64xf32> to vector<1x64xf32>
    %136 = vector.shape_cast %133 : vector<1x64xf32> to vector<1x1x64xf32>
    tpu.vector_store %arg14[%c0_124, %c0_125, %c0_126], %136 {strides = array<i32>} : memref<1x1x64xf32, #tpu.memory_space<vmem>>, vector<1x1x64xf32>,
    return
  }
  func.func @transform_0(%arg0: i32) -> (i32, i32, i32, i32) {
    %c0_i32 = arith.constant 0 : i32
    %c0_i32_0 = arith.constant 0 : i32
    %c0_i32_1 = arith.constant 0 : i32
    %c0_i32_2 = arith.constant 0 : i32
    return %arg0, %c0_i32, %c0_i32_0, %c0_i32_1 : i32, i32, i32, i32
  }
  func.func @transform_1(%arg0: i32) -> (i32, i32, i32, i32) {
    %c0_i32 = arith.constant 0 : i32
    %c0_i32_0 = arith.constant 0 : i32
    %c0_i32_1 = arith.constant 0 : i32
    %c0_i32_2 = arith.constant 0 : i32
    %c0_i32_3 = arith.constant 0 : i32
    return %c0_i32, %c0_i32_0, %c0_i32_1, %c0_i32_2 : i32, i32, i32, i32
  }
  func.func @transform_2(%arg0: i32) -> (i32, i32) {
    %c0_i32 = arith.constant 0 : i32
    %c0_i32_0 = arith.constant 0 : i32
    %c0_i32_1 = arith.constant 0 : i32
    return %c0_i32, %c0_i32_0 : i32, i32
  }
  func.func @transform_3(%arg0: i32) -> (i32, i32, i32, i32) {
    %c0_i32 = arith.constant 0 : i32
    %c0_i32_0 = arith.constant 0 : i32
    %c0_i32_1 = arith.constant 0 : i32
    %c0_i32_2 = arith.constant 0 : i32
    %c0_i32_3 = arith.constant 0 : i32
    return %c0_i32, %c0_i32_0, %c0_i32_1, %c0_i32_2 : i32, i32, i32, i32
  }
  func.func @transform_4(%arg0: i32) -> (i32, i32) {
    %c0_i32 = arith.constant 0 : i32
    %c0_i32_0 = arith.constant 0 : i32
    %c0_i32_1 = arith.constant 0 : i32
    return %c0_i32, %c0_i32_0 : i32, i32
  }
  func.func @transform_5(%arg0: i32) -> (i32, i32, i32, i32) {
    %c0_i32 = arith.constant 0 : i32
    %c0_i32_0 = arith.constant 0 : i32
    %c0_i32_1 = arith.constant 0 : i32
    %c0_i32_2 = arith.constant 0 : i32
    %c0_i32_3 = arith.constant 0 : i32
    return %c0_i32, %c0_i32_0, %c0_i32_1, %c0_i32_2 : i32, i32, i32, i32
  }
  func.func @transform_6(%arg0: i32) -> (i32, i32) {
    %c0_i32 = arith.constant 0 : i32
    %c0_i32_0 = arith.constant 0 : i32
    %c0_i32_1 = arith.constant 0 : i32
    return %c0_i32, %c0_i32_0 : i32, i32
  }
  func.func @transform_7(%arg0: i32) -> (i32, i32, i32, i32) {
    %c0_i32 = arith.constant 0 : i32
    %c0_i32_0 = arith.constant 0 : i32
    %c0_i32_1 = arith.constant 0 : i32
    %c0_i32_2 = arith.constant 0 : i32
    %c0_i32_3 = arith.constant 0 : i32
    return %c0_i32, %c0_i32_0, %c0_i32_1, %c0_i32_2 : i32, i32, i32, i32
  }
  func.func @transform_8(%arg0: i32) -> (i32, i32) {
    %c0_i32 = arith.constant 0 : i32
    %c0_i32_0 = arith.constant 0 : i32
    %c0_i32_1 = arith.constant 0 : i32
    return %c0_i32, %c0_i32_0 : i32, i32
  }
  func.func @transform_9(%arg0: i32) -> (i32, i32, i32, i32) {
    %c0_i32 = arith.constant 0 : i32
    %c0_i32_0 = arith.constant 0 : i32
    %c0_i32_1 = arith.constant 0 : i32
    %c0_i32_2 = arith.constant 0 : i32
    %c0_i32_3 = arith.constant 0 : i32
    return %c0_i32, %c0_i32_0, %c0_i32_1, %c0_i32_2 : i32, i32, i32, i32
  }
  func.func @transform_10(%arg0: i32) -> (i32, i32) {
    %c0_i32 = arith.constant 0 : i32
    %c0_i32_0 = arith.constant 0 : i32
    %c0_i32_1 = arith.constant 0 : i32
    return %c0_i32, %c0_i32_0 : i32, i32
  }
  func.func @transform_11(%arg0: i32) -> (i32, i32) {
    %c0_i32 = arith.constant 0 : i32
    %c0_i32_0 = arith.constant 0 : i32
    %c0_i32_1 = arith.constant 0 : i32
    return %c0_i32, %c0_i32_0 : i32, i32
  }
  func.func @transform_12(%arg0: i32) -> (i32, i32) {
    %c0_i32 = arith.constant 0 : i32
    %c0_i32_0 = arith.constant 0 : i32
    %c0_i32_1 = arith.constant 0 : i32
    return %c0_i32, %c0_i32_0 : i32, i32
  }
  func.func @transform_13(%arg0: i32) -> (i32, i32, i32) {
    %c0_i32 = arith.constant 0 : i32
    %c0_i32_0 = arith.constant 0 : i32
    %c0_i32_1 = arith.constant 0 : i32
    return %arg0, %c0_i32, %c0_i32_0 : i32, i32, i32
  }
}

</mosaic_0001>

<bundles_post_ra>
// kernel: tpu_custom_call.1
= control target key start
LH: loop header
LB: loop body
LE: loop exit
PB: predicated region body
PF: predicated region fallthrough
CT: control target
= control target key end

     0   :  { %s12552_s0 = inlined_call_operand.vmem [shape: f32[2,28,28,1], index: 0, kind: input, shape index: {}]   ;;  %s12553_s1 = inlined_call_operand.hbm [shape: f32[3,3,1,32], index: 1, kind: input, shape index: {}]   ;;  %s12554_s2 = inlined_call_operand.hbm [shape: f32[1,32], index: 2, kind: input, shape index: {}]   ;;  %s12555_s3 = inlined_call_operand.hbm [shape: f32[3,3,32,64], index: 3, kind: input, shape index: {}]   ;;  %s12556_s4 = inlined_call_operand.hbm [shape: f32[1,64], index: 4, kind: input, shape index: {}]   ;;  %s12557_s5 = inlined_call_operand.hbm [shape: f32[3,3,64,64], index: 5, kind: input, shape index: {}]   ;;  %s12558_s6 = inlined_call_operand.hbm [shape: f32[1,64], index: 6, kind: input, shape index: {}]   ;;  %s12559_s7 = inlined_call_operand.hbm [shape: f32[3,3,64,128], index: 7, kind: input, shape index: {}]   ;;  %s12560_s8 = inlined_call_operand.hbm [shape: f32[1,128], index: 8, kind: input, shape index: {}]   ;;  %s12561_s9 = inlined_call_operand.hbm [shape: f32[4,4,128,512], index: 9, kind: input, shape index: {}]   ;;  %s12562_s10 = inlined_call_operand.hbm [shape: f32[1,512], index: 10, kind: input, shape index: {}]   ;;  %s12563_s11 = inlined_call_operand.vmem [shape: f32[512,64], index: 11, kind: input, shape index: {}]   ;;  %s12564_s12 = inlined_call_operand.hbm [shape: f32[1,64], index: 12, kind: input, shape index: {}]   ;;  %s12565_s13 = inlined_call_operand.hbm [shape: f32[2,1,64], index: 13, kind: output, shape index: {}]  }
   0x1   :  { %12576 = sst [smem:[#allocation41_spill]] %s12553_s1 }
   0x2   :  { %12577 = sst [smem:[#allocation42_spill]] %s12554_s2 }
   0x3   :  { %12578 = sst [smem:[#allocation43_spill]] %s12556_s4 }
   0x4   :  { %12579 = sst [smem:[#allocation44_spill]] %s12558_s6 }
   0x5   :  { %12580 = sst [smem:[#allocation45_spill]] %s12565_s13 }
   0x6   :  { %18 = vsyncpa [#allocation10], 0 }
   0x7   :  { %19 = vsyncpa [#allocation13], 0 }
   0x8   :  { %20 = vsyncpa [#allocation16], 0 }
   0x9   :  { %21 = vsyncpa [#allocation19], 0 }
   0xa   :  { %22 = vsyncpa [#allocation22], 0 }
   0xb   :  { %23 = vsyncpa [#allocation25], 0 }
   0xc   :  { %24 = vsyncpa [#allocation11], 0 }
   0xd   :  { %26 = vsyncpa [#allocation11 + $0x1], 0  ;;  %s11278_s25 = smov 0   ;;  %s11280_s26 = smov 0  }
   0xe   :  { %s11282_s27 = smov 0   ;;  %s11284_s28 = smov 0  }
   0xf LB: > { %12581 = sst [smem:[#allocation35_spill]] %s11142_s25  ;;  %s11299_s29 = sadd.s32 4294967295, %s11154_s28   ;;  %s11154_s28 = sphi %s11284_s28, %s12615_s28   ;;  %s11150_s27 = sphi %s11282_s27, %s12617_s27   ;;  %s11146_s26 = sphi %s11280_s26, %s12619_s26   ;;  %s11142_s25 = sphi %s11278_s25, %s12618_s25  }
  0x10   : > { %12582 = sst [smem:[#allocation36_spill]] %s11150_s27  ;;  %s8036_s30 = sadd.s32 4294967294, %s11154_s28  }
  0x11   : > { %12583 = sst [smem:[#allocation37_spill]] %s11154_s28  ;;  %s11303_s14 = sadd.s32 1, %s11154_s28  }
  0x12   : > { %12584 = sst [smem:[#allocation38_spill]] %s11303_s14  ;;  %s317_s15 = sadd.s32 1, %s11150_s27 }
  0x13   : > { %s314_s16 = ssub.s32 %s11154_s28, %s11303_s14  ;;  %p327_p0 = scmp.ne.s32.totalorder %s11150_s27, %s11146_s26 }
  0x14   : > { %p315_p1 = scmp.eq.s32.totalorder %s314_s16, 0  ;;  %p328_p2 = scmp.eq.s32.totalorder %s11299_s29, 1 }
  0x15   : > { %p333_p3 = scmp.ne.s32.totalorder %s11146_s26, %s11142_s25  ;;  %p334_p4 = scmp.eq.s32.totalorder %s8036_s30, 1 }
  0x16   : > { %s11314_s17 = scalar_select %p315_p1, %s11150_s27, %s317_s15  }
  0x17   : > { %p11316_p5 = por %p328_p2, %p327_p0  ;;  %p11320_p6 = por %p334_p4, %p333_p3 }
  0x18   : > { %12585 = sst [smem:[#allocation39_spill]] %s11314_s17  ;;  %p8037_p7 = scmp.ge.s32.totalorder %s11154_s28, 1 }
  0x19   : > { %s12586_s18 = scalar_select %p11316_p5, 1, 0 }
  0x1a   : > { %s12587_s19 = scalar_select %p11320_p6, 1, 0 }
  0x1b   : > { %p341_p8 = scmp.lt.s32.totalorder %s11154_s28, 3  ;;  %p12571_p9 = scmp.eq.s32.totalorder %s11299_s29, 0 }
  0x1c   : > { %12588 = sst [smem:[#allocation40_spill]] %s12587_s19  ;;  %s11180_s21 = smov [#allocation12]  }
  0x1d   : > { %p11327_p10 = pnand %p8037_p7, %p341_p8  ;;  %s367_s22 = sshll.u32 %s11180_s21, 4  ;;  %s368_s22 = int_to_ptr.vmem [resolvable:$true] %s367_s22 }
  0x1e   : > { %s11181_s23 = smov [#allocation15]   ;;  %s11182_s15 = smov [#allocation18]  }
  0x1f   : > { %s12589_s20 = scalar_select %p11327_p10, 1, 0 }
  0x20   : > { %p10566_p11 = pneg %p11327_p10  ;;  %s391_s24 = sshll.u32 %s11181_s23, 4  ;;  %s11339_s24 = int_to_ptr.vmem [resolvable:$true] %s391_s24 }
  0x21   : > { %s415_s16 = sshll.u32 %s11182_s15, 4  ;;  %s12591_s2 = sld [smem:[#allocation42_spill]]  ;;  %s11341_s16 = int_to_ptr.vmem [resolvable:$true] %s415_s16 }
  0x22   : > { %p11335_p12 = pnand %p12571_p9, %p10566_p11 }
  0x24   : > { %p11351_p0 = pneg %p11335_p12 }
  0x27   : > { %s10736_s21 = scalar_lea.hbm %s12591_s2, 16 }
  0x28   : > { %p10737_p13 = scmp.ne.s32.totalorder %s12591_s2, %s10736_s21  ;;  %p10743_p3 = scmp.lt.u32.totalorder %s10736_s21, %s12591_s2 }
  0x2a   : > { %p10739_p1 = pnand %p11351_p0, %p10737_p13 }
  0x2c   : > { %p10740_p2 = pneg %p10739_p1 }
  0x2e   : > { %p10745_p4 = pnand %p10743_p3, %p10740_p2 }
  0x30   : > { %10748 = shalt.err (!%p10745_p4)
}
  0x31   : > { %s10749_s27 = scalar_lea.vmem %s368_s22, 16  ;;  %s10756_s14 = scalar_lea.vmem %s368_s22, 32 }
  0x32   : > { %p10750_p7 = scmp.ne.s32.totalorder %s368_s22, %s10749_s27  ;;  %p10757_p9 = scmp.lt.s32.totalorder %s368_s22, %s368_s22 }
  0x33   : > { %p10758_p6 = scmp.lt.s32.totalorder %s10756_s14, %s10749_s27 }
  0x34   : > { %p10752_p8 = pnand %p10750_p7, %p11351_p0 }
  0x35   : > { %p10759_p5 = por %p10758_p6, %p10757_p9 }
  0x36   : > { %p10753_p11 = pneg %p10752_p8 }
  0x38   : > { %p10760_p10 = pnand %p10759_p5, %p10753_p11 }
  0x3a   : > { %10763 = shalt.err (!%p10760_p10)
}
  0x3b   : > { %10572 = dma.hbm_to_vmem [thread:$0]  (!%p11335_p12), %s12591_s2, 16, %s368_s22, [#allocation13]  }
  0x3c   : > { %s12593_s4 = sld [smem:[#allocation43_spill]] }
  0x42   : > { %s10764_s15 = scalar_lea.hbm %s12593_s4, 16 }
  0x43   : > { %p10765_p13 = scmp.ne.s32.totalorder %s12593_s4, %s10764_s15  ;;  %p10771_p5 = scmp.lt.u32.totalorder %s10764_s15, %s12593_s4 }
  0x45   : > { %p10767_p1 = pnand %p10765_p13, %p11351_p0 }
  0x47   : > { %p10768_p6 = pneg %p10767_p1 }
  0x49   : > { %p10773_p9 = pnand %p10771_p5, %p10768_p6 }
  0x4b   : > { %10776 = shalt.err (!%p10773_p9)
}
  0x4c   : > { %s10777_s22 = scalar_lea.vmem %s11339_s24, 16  ;;  %s10784_s13 = scalar_lea.vmem %s11339_s24, 32 }
  0x4d   : > { %p10778_p10 = scmp.ne.s32.totalorder %s11339_s24, %s10777_s22  ;;  %p10785_p4 = scmp.lt.s32.totalorder %s11339_s24, %s11339_s24 }
  0x4e   : > { %p10786_p7 = scmp.lt.s32.totalorder %s10784_s13, %s10777_s22 }
  0x4f   : > { %p10780_p2 = pnand %p10778_p10, %p11351_p0 }
  0x50   : > { %p10787_p8 = por %p10786_p7, %p10785_p4 }
  0x51   : > { %p10781_p3 = pneg %p10780_p2 }
  0x53   : > { %p10788_p11 = pnand %p10787_p8, %p10781_p3 }
  0x55   : > { %10791 = shalt.err (!%p10788_p11)
}
  0x56   : > { %10578 = dma.hbm_to_vmem [thread:$0]  (!%p11335_p12), %s12593_s4, 16, %s11339_s24, [#allocation16]  }
  0x57   : > { %s12594_s6 = sld [smem:[#allocation44_spill]] }
  0x5d   : > { %s10792_s21 = scalar_lea.hbm %s12594_s6, 16 }
  0x5e   : > { %p10793_p13 = scmp.ne.s32.totalorder %s12594_s6, %s10792_s21  ;;  %p10799_p5 = scmp.lt.u32.totalorder %s10792_s21, %s12594_s6 }
  0x60   : > { %p10795_p1 = pnand %p10793_p13, %p11351_p0 }
  0x62   : > { %p10796_p6 = pneg %p10795_p1 }
  0x64   : > { %p10801_p9 = pnand %p10799_p5, %p10796_p6 }
  0x66   : > { %10804 = shalt.err (!%p10801_p9)
}
  0x67   : > { %s10805_s24 = scalar_lea.vmem %s11341_s16, 16  ;;  %s10812_s13 = scalar_lea.vmem %s11341_s16, 32 }
  0x68   : > { %p10806_p10 = scmp.ne.s32.totalorder %s11341_s16, %s10805_s24  ;;  %p10813_p4 = scmp.lt.s32.totalorder %s11341_s16, %s11341_s16 }
  0x69   : > { %p10814_p7 = scmp.lt.s32.totalorder %s10812_s13, %s10805_s24 }
  0x6a   : > { %p10808_p2 = pnand %p10806_p10, %p11351_p0 }
  0x6b   : > { %p10815_p8 = por %p10814_p7, %p10813_p4 }
  0x6c   : > { %p10809_p3 = pneg %p10808_p2 }
  0x6e   : > { %p10816_p11 = pnand %p10815_p8, %p10809_p3 }
  0x70   : > { %10819 = shalt.err (!%p10816_p11)
}
  0x71   : > { %10584 = dma.hbm_to_vmem [thread:$0]  (!%p11335_p12), %s12594_s6, 16, %s11341_s16, [#allocation19]  }
  0x72   : > { %s11183_s19 = smov [#allocation21]   ;;  %s11184_s21 = smov [#allocation24]  }
  0x73   : > { %s439_s25 = sshll.u32 %s11183_s19, 4  ;;  %s463_s15 = sshll.u32 %s11184_s21, 4  ;;  %s440_s25 = int_to_ptr.vmem [resolvable:$true] %s439_s25  ;;  %s464_s15 = int_to_ptr.vmem [resolvable:$true] %s463_s15 }
  0x74   : > { %s10820_s22 = scalar_lea.hbm %s12560_s8, 16 }
  0x75   : > { %p10821_p13 = scmp.ne.s32.totalorder %s12560_s8, %s10820_s22  ;;  %p10827_p5 = scmp.lt.u32.totalorder %s10820_s22, %s12560_s8 }
  0x77   : > { %p10823_p1 = pnand %p10821_p13, %p11351_p0 }
  0x79   : > { %p10824_p6 = pneg %p10823_p1 }
  0x7b   : > { %p10829_p9 = pnand %p10827_p5, %p10824_p6 }
  0x7d   : > { %10832 = shalt.err (!%p10829_p9)
}
  0x7e   : > { %s10833_s16 = scalar_lea.vmem %s440_s25, 16  ;;  %s10840_s17 = scalar_lea.vmem %s440_s25, 32 }
  0x7f   : > { %p10834_p10 = scmp.ne.s32.totalorder %s440_s25, %s10833_s16  ;;  %p10841_p4 = scmp.lt.s32.totalorder %s440_s25, %s440_s25 }
  0x80   : > { %p10842_p7 = scmp.lt.s32.totalorder %s10840_s17, %s10833_s16 }
  0x81   : > { %p10836_p2 = pnand %p10834_p10, %p11351_p0 }
  0x82   : > { %p10843_p8 = por %p10842_p7, %p10841_p4 }
  0x83   : > { %p10837_p3 = pneg %p10836_p2 }
  0x85   : > { %p10844_p11 = pnand %p10843_p8, %p10837_p3 }
  0x87   : > { %10847 = shalt.err (!%p10844_p11)
}
  0x88   : > { %10590 = dma.hbm_to_vmem [thread:$0]  (!%p11335_p12), %s12560_s8, 16, %s440_s25, [#allocation22]  }
  0x89   : > { %s10848_s14 = scalar_lea.hbm %s12562_s10, 64 }
  0x8a   : > { %p10849_p13 = scmp.ne.s32.totalorder %s12562_s10, %s10848_s14  ;;  %p10855_p5 = scmp.lt.u32.totalorder %s10848_s14, %s12562_s10 }
  0x8c   : > { %p10851_p1 = pnand %p10849_p13, %p11351_p0 }
  0x8e   : > { %p10852_p6 = pneg %p10851_p1 }
  0x90   : > { %p10857_p9 = pnand %p10855_p5, %p10852_p6 }
  0x92   : > { %10860 = shalt.err (!%p10857_p9)
}
  0x93   : > { %s10861_s16 = scalar_lea.vmem %s464_s15, 64  ;;  %p10869_p4 = scmp.lt.s32.totalorder %s464_s15, %s464_s15 }
  0x94   : > { %p10862_p10 = scmp.ne.s32.totalorder %s464_s15, %s10861_s16  ;;  %p10870_p7 = scmp.lt.s32.totalorder %s10861_s16, %s10861_s16 }
  0x96   : > { %p10864_p2 = pnand %p10862_p10, %p11351_p0  ;;  %p10871_p8 = por %p10870_p7, %p10869_p4 }
  0x98   : > { %p10865_p3 = pneg %p10864_p2 }
  0x9a   : > { %p10872_p11 = pnand %p10871_p8, %p10865_p3 }
  0x9c   : > { %10875 = shalt.err (!%p10872_p11)
}
  0x9d   : > { %10596 = dma.hbm_to_vmem [thread:$0]  (!%p11335_p12), %s12562_s10, 64, %s464_s15, [#allocation25]  }
  0x9e   : > { %s11185_s19 = smov [#allocation9]   ;;  %s12595_s1 = sld [smem:[#allocation41_spill]] }
  0x9f   : > { %s353_s21 = sshll.u32 %s11185_s19, 4  ;;  %s354_s21 = int_to_ptr.vmem [resolvable:$true] %s353_s21 }
  0xa4   : > { %s10876_s14 = scalar_lea.hbm %s12595_s1, 144 }
  0xa5   : > { %p10877_p13 = scmp.ne.s32.totalorder %s12595_s1, %s10876_s14  ;;  %p10883_p5 = scmp.lt.u32.totalorder %s10876_s14, %s12595_s1 }
  0xa7   : > { %p10879_p1 = pnand %p10877_p13, %p11351_p0 }
  0xa9   : > { %p10880_p6 = pneg %p10879_p1 }
  0xab   : > { %p10885_p9 = pnand %p10883_p5, %p10880_p6 }
  0xad   : > { %10888 = shalt.err (!%p10885_p9)
}
  0xae   : > { %s10889_s15 = scalar_lea.vmem %s354_s21, 144  ;;  %s10896_s16 = scalar_lea.vmem %s354_s21, 160 }
  0xaf   : > { %p10890_p10 = scmp.ne.s32.totalorder %s354_s21, %s10889_s15  ;;  %p10897_p4 = scmp.lt.s32.totalorder %s354_s21, %s354_s21 }
  0xb0   : > { %p10898_p7 = scmp.lt.s32.totalorder %s10896_s16, %s10889_s15 }
  0xb1   : > { %p10892_p2 = pnand %p10890_p10, %p11351_p0 }
  0xb2   : > { %p10899_p8 = por %p10898_p7, %p10897_p4 }
  0xb3   : > { %p10893_p3 = pneg %p10892_p2 }
  0xb5   : > { %p10900_p11 = pnand %p10899_p8, %p10893_p3 }
  0xb7   : > { %10903 = shalt.err (!%p10900_p11)
}
  0xb8   : > { %s11186_s25 = smov 16   ;;  %s11187_s17 = smov 1  }
  0xb9   : > { %10569 = dma.hbm_to_vmem [thread:$0]  (!%p11335_p12), %s12595_s1, 144, %s354_s21, [#allocation10], %s11186_s25, %s11186_s25, %s11187_s17  }
  0xba   : > { %s11188_s27 = smov [#allocation14]   ;;  %s10904_s13 = scalar_lea.hbm %s12555_s3, 4608 }
  0xbb   : > { %s377_s14 = sshll.u32 %s11188_s27, 4  ;;  %p10905_p13 = scmp.ne.s32.totalorder %s12555_s3, %s10904_s13  ;;  %s378_s14 = int_to_ptr.vmem [resolvable:$true] %s377_s14 }
  0xbc   : > { %p10911_p5 = scmp.lt.u32.totalorder %s10904_s13, %s12555_s3 }
  0xbd   : > { %p10907_p1 = pnand %p10905_p13, %p11351_p0 }
  0xbf   : > { %p10908_p6 = pneg %p10907_p1 }
  0xc1   : > { %p10913_p9 = pnand %p10911_p5, %p10908_p6 }
  0xc3   : > { %10916 = shalt.err (!%p10913_p9)
}
  0xc4   : > { %s10917_s21 = scalar_lea.vmem %s378_s14, 4608  ;;  %p10925_p4 = scmp.lt.s32.totalorder %s378_s14, %s378_s14 }
  0xc5   : > { %p10918_p10 = scmp.ne.s32.totalorder %s378_s14, %s10917_s21  ;;  %p10926_p7 = scmp.lt.s32.totalorder %s10917_s21, %s10917_s21 }
  0xc7   : > { %p10920_p2 = pnand %p10918_p10, %p11351_p0  ;;  %p10927_p8 = por %p10926_p7, %p10925_p4 }
  0xc9   : > { %p10921_p3 = pneg %p10920_p2 }
  0xcb   : > { %p10928_p11 = pnand %p10927_p8, %p10921_p3 }
  0xcd   : > { %10931 = shalt.err (!%p10928_p11)
}
  0xce   : > { %s11189_s25 = smov 128   ;;  %s11190_s17 = smov 8  }
  0xcf   : > { %10575 = dma.hbm_to_vmem [thread:$0]  (!%p11335_p12), %s12555_s3, 4608, %s378_s14, [#allocation13], %s11189_s25, %s11189_s25, %s11190_s17  }
  0xd0   : > { %s11191_s2 = smov [#allocation17]   ;;  %s11192_s22 = smov [#allocation20]  }
  0xd1   : > { %s401_s27 = sshll.u32 %s11191_s2, 4  ;;  %s425_s24 = sshll.u32 %s11192_s22, 4  ;;  %s402_s27 = int_to_ptr.vmem [resolvable:$true] %s401_s27  ;;  %s426_s24 = int_to_ptr.vmem [resolvable:$true] %s425_s24 }
  0xd2   : > { %s10932_s15 = scalar_lea.hbm %s12557_s5, 9216 }
  0xd3   : > { %p10933_p13 = scmp.ne.s32.totalorder %s12557_s5, %s10932_s15  ;;  %p10939_p5 = scmp.lt.u32.totalorder %s10932_s15, %s12557_s5 }
  0xd5   : > { %p10935_p1 = pnand %p10933_p13, %p11351_p0 }
  0xd7   : > { %p10936_p6 = pneg %p10935_p1 }
  0xd9   : > { %p10941_p9 = pnand %p10939_p5, %p10936_p6 }
  0xdb   : > { %10944 = shalt.err (!%p10941_p9)
}
  0xdc   : > { %s10945_s14 = scalar_lea.vmem %s402_s27, 9216  ;;  %p10953_p4 = scmp.lt.s32.totalorder %s402_s27, %s402_s27 }
  0xdd   : > { %p10946_p10 = scmp.ne.s32.totalorder %s402_s27, %s10945_s14  ;;  %p10954_p7 = scmp.lt.s32.totalorder %s10945_s14, %s10945_s14 }
  0xdf   : > { %p10948_p2 = pnand %p10946_p10, %p11351_p0  ;;  %p10955_p8 = por %p10954_p7, %p10953_p4 }
  0xe1   : > { %p10949_p3 = pneg %p10948_p2 }
  0xe3   : > { %p10956_p11 = pnand %p10955_p8, %p10949_p3 }
  0xe5   : > { %10959 = shalt.err (!%p10956_p11)
}
  0xe6   : > { %10581 = dma.hbm_to_vmem [thread:$0]  (!%p11335_p12), %s12557_s5, 9216, %s402_s27, [#allocation16], %s11189_s25, %s11189_s25, %s11190_s17  }
  0xe7   : > { %s10960_s2 = scalar_lea.hbm %s12559_s7, 9216 }
  0xe8   : > { %p10961_p13 = scmp.ne.s32.totalorder %s12559_s7, %s10960_s2  ;;  %p10967_p5 = scmp.lt.u32.totalorder %s10960_s2, %s12559_s7 }
  0xea   : > { %p10963_p1 = pnand %p10961_p13, %p11351_p0 }
  0xec   : > { %p10964_p6 = pneg %p10963_p1 }
  0xee   : > { %p10969_p9 = pnand %p10967_p5, %p10964_p6 }
  0xf0   : > { %10972 = shalt.err (!%p10969_p9)
}
  0xf1   : > { %s10973_s16 = scalar_lea.vmem %s426_s24, 9216  ;;  %p10981_p4 = scmp.lt.s32.totalorder %s426_s24, %s426_s24 }
  0xf2   : > { %p10974_p10 = scmp.ne.s32.totalorder %s426_s24, %s10973_s16  ;;  %p10982_p7 = scmp.lt.s32.totalorder %s10973_s16, %s10973_s16 }
  0xf4   : > { %p10976_p2 = pnand %p10974_p10, %p11351_p0  ;;  %p10983_p8 = por %p10982_p7, %p10981_p4 }
  0xf6   : > { %p10977_p3 = pneg %p10976_p2 }
  0xf8   : > { %p10984_p11 = pnand %p10983_p8, %p10977_p3 }
  0xfa   : > { %10987 = shalt.err (!%p10984_p11)
}
  0xfb   : > { %10587 = dma.hbm_to_vmem [thread:$0]  (!%p11335_p12), %s12559_s7, 9216, %s426_s24, [#allocation19], %s11189_s25, %s11189_s25, %s11190_s17  }
  0xfc   : > { %s11193_s14 = smov [#allocation23]   ;;  %s10988_s19 = scalar_lea.hbm %s12561_s9, 131072 }
  0xfd   : > { %s449_s1 = sshll.u32 %s11193_s14, 4  ;;  %p10989_p13 = scmp.ne.s32.totalorder %s12561_s9, %s10988_s19  ;;  %s450_s1 = int_to_ptr.vmem [resolvable:$true] %s449_s1 }
  0xfe   : > { %p10995_p5 = scmp.lt.u32.totalorder %s10988_s19, %s12561_s9 }
  0xff   : > { %p10991_p1 = pnand %p10989_p13, %p11351_p0 }
 0x101   : > { %p10992_p6 = pneg %p10991_p1 }
 0x103   : > { %p10997_p9 = pnand %p10995_p5, %p10992_p6 }
 0x105   : > { %11000 = shalt.err (!%p10997_p9)
}
 0x106   : > { %s11001_s25 = scalar_lea.vmem %s450_s1, 131072  ;;  %p11009_p4 = scmp.lt.s32.totalorder %s450_s1, %s450_s1 }
 0x107   : > { %p11002_p10 = scmp.ne.s32.totalorder %s450_s1, %s11001_s25  ;;  %p11010_p7 = scmp.lt.s32.totalorder %s11001_s25, %s11001_s25 }
 0x109   : > { %p11004_p2 = pnand %p11002_p10, %p11351_p0  ;;  %p11011_p8 = por %p11010_p7, %p11009_p4 }
 0x10b   : > { %p11005_p3 = pneg %p11004_p2 }
 0x10d   : > { %p11012_p11 = pnand %p11011_p8, %p11005_p3 }
 0x10f   : > { %11015 = shalt.err (!%p11012_p11)
}
 0x110   : > { %s11194_s17 = smov 512   ;;  %s11195_s24 = smov 32  }
 0x111   : > { %10593 = dma.hbm_to_vmem [thread:$0]  (!%p11335_p12), %s12561_s9, 131072, %s450_s1, [#allocation22], %s11194_s17, %s11194_s17, %s11195_s24  }
 0x112   : > { %s11196_s27 = smov [#allocation26]   ;;  %s11016_s4 = scalar_lea.hbm %s12564_s12, 16 }
 0x113   : > { %s477_s21 = sshll.u32 %s11196_s27, 4  ;;  %p11017_p13 = scmp.ne.s32.totalorder %s12564_s12, %s11016_s4  ;;  %s478_s21 = int_to_ptr.vmem [resolvable:$true] %s477_s21 }
 0x114   : > { %p11023_p5 = scmp.lt.u32.totalorder %s11016_s4, %s12564_s12 }
 0x115   : > { %p11019_p1 = pnand %p11017_p13, %p11351_p0 }
 0x117   : > { %p11020_p6 = pneg %p11019_p1 }
 0x119   : > { %p11025_p9 = pnand %p11023_p5, %p11020_p6 }
 0x11b   : > { %11028 = shalt.err (!%p11025_p9)
}
 0x11c   : > { %s11029_s1 = scalar_lea.vmem %s478_s21, 16  ;;  %s11036_s28 = scalar_lea.vmem %s478_s21, 32 }
 0x11d   : > { %p11030_p10 = scmp.ne.s32.totalorder %s478_s21, %s11029_s1  ;;  %p11037_p4 = scmp.lt.s32.totalorder %s478_s21, %s478_s21 }
 0x11e   : > { %p11038_p7 = scmp.lt.s32.totalorder %s11036_s28, %s11029_s1 }
 0x11f   : > { %p11032_p2 = pnand %p11030_p10, %p11351_p0 }
 0x120   : > { %p11039_p8 = por %p11038_p7, %p11037_p4 }
 0x121   : > { %p11033_p3 = pneg %p11032_p2 }
 0x123   : > { %p11040_p11 = pnand %p11039_p8, %p11033_p3 }
 0x125   : > { %11043 = shalt.err (!%p11040_p11)
}
 0x126   : > { %10599 = dma.hbm_to_vmem [thread:$0]  (!%p11335_p12), %s12564_s12, 16, %s478_s21, [#allocation25]  }
 0x127   : > { %p12596_p13 = scmp.ne.s32.totalorder %s12589_s20, 0 }
 0x128   : > { %p12597_p1 = scmp.eq.s32.totalorder (!%p12596_p13), %s11299_s29, 0 }
 0x129   : > { %498 = sbr.rel (%p12596_p13) target bundleno = 2852 (0xb24), region = 72 }
 0x130   : > { %11113 = dma.done.wait (%p12597_p1), [#allocation10], 144   ;;  %p12598_p0 = pmov %p12597_p1 }
 0x132   : > { %11115 = vsyncadd (%p12598_p0), [#allocation10], 4294967152  ;;  %p12599_p6 = pmov %p12598_p0 }
 0x133   : > { %p12600_p5 = pmov %p12598_p0 }
 0x134   : > { %11117 = dma.done.wait (%p12599_p6), [#allocation13], 4624  }
 0x135   : > { %11119 = vsyncadd (%p12600_p5), [#allocation13], 4294962672  ;;  %p12601_p9 = pmov %p12598_p0 }
 0x136   : > { %p12602_p12 = pmov %p12598_p0 }
 0x137   : > { %11121 = dma.done.wait (%p12601_p9), [#allocation16], 9232  }
 0x138   : > { %11123 = vsyncadd (%p12602_p12), [#allocation16], 4294958064  ;;  %p12603_p10 = pmov %p12598_p0 }
 0x139   : > { %p12604_p2 = pmov %p12598_p0 }
 0x13a   : > { %11125 = dma.done.wait (%p12603_p10), [#allocation19], 9232  }
 0x13b   : > { %11127 = vsyncadd (%p12604_p2), [#allocation19], 4294958064  ;;  %p12605_p3 = pmov %p12598_p0 }
 0x13c   : > { %p12606_p4 = pmov %p12598_p0 }
 0x13d   : > { %11129 = dma.done.wait (%p12605_p3), [#allocation22], 131088  }
 0x13e   : > { %11131 = vsyncadd (%p12606_p4), [#allocation22], 4294836208  ;;  %p12607_p7 = pmov %p12598_p0 }
 0x13f   : > { %p12608_p8 = pmov %p12598_p0 }
 0x140   : > { %11133 = dma.done.wait (%p12607_p7), [#allocation25], 80  }
 0x141   : > { %11135 = vsyncadd (%p12608_p8), [#allocation25], 4294967216  ;;  %s579_s20 = sand.u32 1, %s11146_s26   ;;  %p581_p11 = scmp.lt.s32.totalorder %s11299_s29, 1  ;;  %vm698_vm0 = vcmask 7168   ;;  %vm702_vm1 = vcmask 3072  }
 0x142   : > { %s11828_s27 = scalar_lea.vmem [#allocation27], %s579_s20  ;;  %s11830_s21 = smov 0  }
 0x143   : > { %s582_s30 = scalar_select %p581_p11, %s11299_s29, 1 }
 0x145   : > { %s10519_s23 = smul.u32 896, %s582_s30 }
 0x147   : > { %s11600_s16 = scalar_lea.vmem %s12552_s0, %s10519_s23 }
 0x148   : > { %v586_v0 = vld [vmem:[%s11600_s16] sm:$0xff]  ;;  %v587_v1 = vld [vmem:[%s11600_s16 + $0x8] sm:$0xff]  ;;  %v588_v2 = vld [vmem:[%s11600_s16 + $0x10] sm:$0xff] }
 0x149   : > { %699 = vst.msk [vmem:[#allocation2] sm:$0xff] %vm698_vm0, %v586_v0  ;;  %700 = vst.msk [vmem:[#allocation2 + $0x8] sm:$0xff] %vm698_vm0, %v587_v1  ;;  %v589_v3 = vld [vmem:[%s11600_s16 + $0x18] sm:$0xf]  ;;  %v590_v4 = vld [vmem:[%s11600_s16 + $0x20] sm:$0xff] }
 0x14a   : > { %701 = vst.msk [vmem:[#allocation2 + $0x10] sm:$0xff] %vm698_vm0, %v588_v2  ;;  %v591_v5 = vld [vmem:[%s11600_s16 + $0x28] sm:$0xff]  ;;  %704 = vst.msk [vmem:[#allocation2 + $0x20] sm:$0xff] %vm698_vm0, %v590_v4  ;;  %v592_v6 = vld [vmem:[%s11600_s16 + $0x30] sm:$0xff] }
 0x14b   : > { %703 = vst.msk [vmem:[#allocation2 + $0x18] sm:$0xf] %vm702_vm1, %v589_v3  ;;  %v593_v7 = vld [vmem:[%s11600_s16 + $0x38] sm:$0xf]  ;;  %v594_v8 = vld [vmem:[%s11600_s16 + $0x40] sm:$0xff]  ;;  %v595_v9 = vld [vmem:[%s11600_s16 + $0x48] sm:$0xff] }
 0x14c   : > { %705 = vst.msk [vmem:[#allocation2 + $0x28] sm:$0xff] %vm698_vm0, %v591_v5  ;;  %706 = vst.msk [vmem:[#allocation2 + $0x30] sm:$0xff] %vm698_vm0, %v592_v6  ;;  %v596_v10 = vld [vmem:[%s11600_s16 + $0x50] sm:$0xff]  ;;  %v597_v11 = vld [vmem:[%s11600_s16 + $0x58] sm:$0xf] }
 0x14d   : > { %707 = vst.msk [vmem:[#allocation2 + $0x38] sm:$0xf] %vm702_vm1, %v593_v7  ;;  %711 = vst.msk [vmem:[#allocation2 + $0x58] sm:$0xf] %vm702_vm1, %v597_v11  ;;  %v598_v12 = vld [vmem:[%s11600_s16 + $0x60] sm:$0xff]  ;;  %v599_v13 = vld [vmem:[%s11600_s16 + $0x68] sm:$0xff] }
 0x14e   : > { %708 = vst.msk [vmem:[#allocation2 + $0x40] sm:$0xff] %vm698_vm0, %v594_v8  ;;  %709 = vst.msk [vmem:[#allocation2 + $0x48] sm:$0xff] %vm698_vm0, %v595_v9  ;;  %v600_v14 = vld [vmem:[%s11600_s16 + $0x70] sm:$0xff]  ;;  %v601_v15 = vld [vmem:[%s11600_s16 + $0x78] sm:$0xf] }
 0x14f   : > { %710 = vst.msk [vmem:[#allocation2 + $0x50] sm:$0xff] %vm698_vm0, %v596_v10  ;;  %712 = vst.msk [vmem:[#allocation2 + $0x60] sm:$0xff] %vm698_vm0, %v598_v12  ;;  %v602_v16 = vld [vmem:[%s11600_s16 + $0x80] sm:$0xff]  ;;  %v603_v17 = vld [vmem:[%s11600_s16 + $0x88] sm:$0xff] }
 0x150   : > { %713 = vst.msk [vmem:[#allocation2 + $0x68] sm:$0xff] %vm698_vm0, %v599_v13  ;;  %714 = vst.msk [vmem:[#allocation2 + $0x70] sm:$0xff] %vm698_vm0, %v600_v14  ;;  %v604_v18 = vld [vmem:[%s11600_s16 + $0x90] sm:$0xff]  ;;  %v605_v19 = vld [vmem:[%s11600_s16 + $0x98] sm:$0xf] }
 0x151   : > { %715 = vst.msk [vmem:[#allocation2 + $0x78] sm:$0xf] %vm702_vm1, %v601_v15  ;;  %v606_v20 = vld [vmem:[%s11600_s16 + $0xa0] sm:$0xff]  ;;  %719 = vst.msk [vmem:[#allocation2 + $0x98] sm:$0xf] %vm702_vm1, %v605_v19  ;;  %v607_v21 = vld [vmem:[%s11600_s16 + $0xa8] sm:$0xff] }
 0x152   : > { %716 = vst.msk [vmem:[#allocation2 + $0x80] sm:$0xff] %vm698_vm0, %v602_v16  ;;  %717 = vst.msk [vmem:[#allocation2 + $0x88] sm:$0xff] %vm698_vm0, %v603_v17  ;;  %v608_v22 = vld [vmem:[%s11600_s16 + $0xb0] sm:$0xff]  ;;  %v609_v23 = vld [vmem:[%s11600_s16 + $0xb8] sm:$0xf] }
 0x153   : > { %718 = vst.msk [vmem:[#allocation2 + $0x90] sm:$0xff] %vm698_vm0, %v604_v18  ;;  %720 = vst.msk [vmem:[#allocation2 + $0xa0] sm:$0xff] %vm698_vm0, %v606_v20  ;;  %v610_v24 = vld [vmem:[%s11600_s16 + $0xc0] sm:$0xff]  ;;  %v611_v25 = vld [vmem:[%s11600_s16 + $0xc8] sm:$0xff] }
 0x154   : > { %721 = vst.msk [vmem:[#allocation2 + $0xa8] sm:$0xff] %vm698_vm0, %v607_v21  ;;  %722 = vst.msk [vmem:[#allocation2 + $0xb0] sm:$0xff] %vm698_vm0, %v608_v22  ;;  %v612_v26 = vld [vmem:[%s11600_s16 + $0xd0] sm:$0xff]  ;;  %v613_v27 = vld [vmem:[%s11600_s16 + $0xd8] sm:$0xf] }
 0x155   : > { %723 = vst.msk [vmem:[#allocation2 + $0xb8] sm:$0xf] %vm702_vm1, %v609_v23  ;;  %v614_v28 = vld [vmem:[%s11600_s16 + $0xe0] sm:$0xff]  ;;  %v615_v29 = vld [vmem:[%s11600_s16 + $0xe8] sm:$0xff]  ;;  %727 = vst.msk [vmem:[#allocation2 + $0xd8] sm:$0xf] %vm702_vm1, %v613_v27 }
 0x156   : > { %724 = vst.msk [vmem:[#allocation2 + $0xc0] sm:$0xff] %vm698_vm0, %v610_v24  ;;  %725 = vst.msk [vmem:[#allocation2 + $0xc8] sm:$0xff] %vm698_vm0, %v611_v25  ;;  %v616_v30 = vld [vmem:[%s11600_s16 + $0xf0] sm:$0xff]  ;;  %v617_v31 = vld [vmem:[%s11600_s16 + $0xf8] sm:$0xf] }
 0x157   : > { %726 = vst.msk [vmem:[#allocation2 + $0xd0] sm:$0xff] %vm698_vm0, %v612_v26  ;;  %728 = vst.msk [vmem:[#allocation2 + $0xe0] sm:$0xff] %vm698_vm0, %v614_v28  ;;  %v618_v32 = vld [vmem:[%s11600_s16 + $0x100] sm:$0xff]  ;;  %v619_v33 = vld [vmem:[%s11600_s16 + $0x108] sm:$0xff] }
 0x158   : > { %729 = vst.msk [vmem:[#allocation2 + $0xe8] sm:$0xff] %vm698_vm0, %v615_v29  ;;  %730 = vst.msk [vmem:[#allocation2 + $0xf0] sm:$0xff] %vm698_vm0, %v616_v30  ;;  %v620_v34 = vld [vmem:[%s11600_s16 + $0x110] sm:$0xff]  ;;  %v621_v35 = vld [vmem:[%s11600_s16 + $0x118] sm:$0xf] }
 0x159   : > { %731 = vst.msk [vmem:[#allocation2 + $0xf8] sm:$0xf] %vm702_vm1, %v617_v31  ;;  %735 = vst.msk [vmem:[#allocation2 + $0x118] sm:$0xf] %vm702_vm1, %v621_v35  ;;  %v622_v36 = vld [vmem:[%s11600_s16 + $0x120] sm:$0xff]  ;;  %v623_v37 = vld [vmem:[%s11600_s16 + $0x128] sm:$0xff] }
 0x15a   : > { %732 = vst.msk [vmem:[#allocation2 + $0x100] sm:$0xff] %vm698_vm0, %v618_v32  ;;  %733 = vst.msk [vmem:[#allocation2 + $0x108] sm:$0xff] %vm698_vm0, %v619_v33  ;;  %v624_v38 = vld [vmem:[%s11600_s16 + $0x130] sm:$0xff]  ;;  %v625_v39 = vld [vmem:[%s11600_s16 + $0x138] sm:$0xf] }
 0x15b   : > { %734 = vst.msk [vmem:[#allocation2 + $0x110] sm:$0xff] %vm698_vm0, %v620_v34  ;;  %736 = vst.msk [vmem:[#allocation2 + $0x120] sm:$0xff] %vm698_vm0, %v622_v36  ;;  %v626_v40 = vld [vmem:[%s11600_s16 + $0x140] sm:$0xff]  ;;  %v627_v41 = vld [vmem:[%s11600_s16 + $0x148] sm:$0xff] }
 0x15c   : > { %737 = vst.msk [vmem:[#allocation2 + $0x128] sm:$0xff] %vm698_vm0, %v623_v37  ;;  %738 = vst.msk [vmem:[#allocation2 + $0x130] sm:$0xff] %vm698_vm0, %v624_v38  ;;  %v628_v42 = vld [vmem:[%s11600_s16 + $0x150] sm:$0xff]  ;;  %v629_v43 = vld [vmem:[%s11600_s16 + $0x158] sm:$0xf] }
 0x15d   : > { %739 = vst.msk [vmem:[#allocation2 + $0x138] sm:$0xf] %vm702_vm1, %v625_v39  ;;  %v630_v44 = vld [vmem:[%s11600_s16 + $0x160] sm:$0xff]  ;;  %743 = vst.msk [vmem:[#allocation2 + $0x158] sm:$0xf] %vm702_vm1, %v629_v43  ;;  %v631_v45 = vld [vmem:[%s11600_s16 + $0x168] sm:$0xff] }
 0x15e   : > { %740 = vst.msk [vmem:[#allocation2 + $0x140] sm:$0xff] %vm698_vm0, %v626_v40  ;;  %741 = vst.msk [vmem:[#allocation2 + $0x148] sm:$0xff] %vm698_vm0, %v627_v41  ;;  %v632_v46 = vld [vmem:[%s11600_s16 + $0x170] sm:$0xff]  ;;  %v633_v47 = vld [vmem:[%s11600_s16 + $0x178] sm:$0xf] }
 0x15f   : > { %742 = vst.msk [vmem:[#allocation2 + $0x150] sm:$0xff] %vm698_vm0, %v628_v42  ;;  %744 = vst.msk [vmem:[#allocation2 + $0x160] sm:$0xff] %vm698_vm0, %v630_v44  ;;  %v634_v48 = vld [vmem:[%s11600_s16 + $0x180] sm:$0xff]  ;;  %v635_v49 = vld [vmem:[%s11600_s16 + $0x188] sm:$0xff] }
 0x160   : > { %745 = vst.msk [vmem:[#allocation2 + $0x168] sm:$0xff] %vm698_vm0, %v631_v45  ;;  %746 = vst.msk [vmem:[#allocation2 + $0x170] sm:$0xff] %vm698_vm0, %v632_v46  ;;  %v636_v50 = vld [vmem:[%s11600_s16 + $0x190] sm:$0xff]  ;;  %v637_v51 = vld [vmem:[%s11600_s16 + $0x198] sm:$0xf] }
 0x161   : > { %747 = vst.msk [vmem:[#allocation2 + $0x178] sm:$0xf] %vm702_vm1, %v633_v47  ;;  %v638_v52 = vld [vmem:[%s11600_s16 + $0x1a0] sm:$0xff]  ;;  %v639_v53 = vld [vmem:[%s11600_s16 + $0x1a8] sm:$0xff]  ;;  %751 = vst.msk [vmem:[#allocation2 + $0x198] sm:$0xf] %vm702_vm1, %v637_v51 }
 0x162   : > { %748 = vst.msk [vmem:[#allocation2 + $0x180] sm:$0xff] %vm698_vm0, %v634_v48  ;;  %749 = vst.msk [vmem:[#allocation2 + $0x188] sm:$0xff] %vm698_vm0, %v635_v49  ;;  %v640_v54 = vld [vmem:[%s11600_s16 + $0x1b0] sm:$0xff]  ;;  %v641_v55 = vld [vmem:[%s11600_s16 + $0x1b8] sm:$0xf] }
 0x163   : > { %750 = vst.msk [vmem:[#allocation2 + $0x190] sm:$0xff] %vm698_vm0, %v636_v50  ;;  %752 = vst.msk [vmem:[#allocation2 + $0x1a0] sm:$0xff] %vm698_vm0, %v638_v52  ;;  %v642_v56 = vld [vmem:[%s11600_s16 + $0x1c0] sm:$0xff]  ;;  %v643_v57 = vld [vmem:[%s11600_s16 + $0x1c8] sm:$0xff] }
 0x164   : > { %753 = vst.msk [vmem:[#allocation2 + $0x1a8] sm:$0xff] %vm698_vm0, %v639_v53  ;;  %754 = vst.msk [vmem:[#allocation2 + $0x1b0] sm:$0xff] %vm698_vm0, %v640_v54  ;;  %v644_v58 = vld [vmem:[%s11600_s16 + $0x1d0] sm:$0xff]  ;;  %v645_v59 = vld [vmem:[%s11600_s16 + $0x1d8] sm:$0xf] }
 0x165   : > { %755 = vst.msk [vmem:[#allocation2 + $0x1b8] sm:$0xf] %vm702_vm1, %v641_v55  ;;  %759 = vst.msk [vmem:[#allocation2 + $0x1d8] sm:$0xf] %vm702_vm1, %v645_v59  ;;  %v646_v60 = vld [vmem:[%s11600_s16 + $0x1e0] sm:$0xff]  ;;  %v647_v61 = vld [vmem:[%s11600_s16 + $0x1e8] sm:$0xff] }
 0x166   : > { %756 = vst.msk [vmem:[#allocation2 + $0x1c0] sm:$0xff] %vm698_vm0, %v642_v56  ;;  %757 = vst.msk [vmem:[#allocation2 + $0x1c8] sm:$0xff] %vm698_vm0, %v643_v57  ;;  %v648_v62 = vld [vmem:[%s11600_s16 + $0x1f0] sm:$0xff]  ;;  %v649_v63 = vld [vmem:[%s11600_s16 + $0x1f8] sm:$0xf] }
 0x167   : > { %758 = vst.msk [vmem:[#allocation2 + $0x1d0] sm:$0xff] %vm698_vm0, %v644_v58  ;;  %760 = vst.msk [vmem:[#allocation2 + $0x1e0] sm:$0xff] %vm698_vm0, %v646_v60  ;;  %v650_v0 = vld [vmem:[%s11600_s16 + $0x200] sm:$0xff]  ;;  %v651_v1 = vld [vmem:[%s11600_s16 + $0x208] sm:$0xff] }
 0x168   : > { %761 = vst.msk [vmem:[#allocation2 + $0x1e8] sm:$0xff] %vm698_vm0, %v647_v61  ;;  %762 = vst.msk [vmem:[#allocation2 + $0x1f0] sm:$0xff] %vm698_vm0, %v648_v62  ;;  %v652_v2 = vld [vmem:[%s11600_s16 + $0x210] sm:$0xff]  ;;  %v653_v3 = vld [vmem:[%s11600_s16 + $0x218] sm:$0xf] }
 0x169   : > { %763 = vst.msk [vmem:[#allocation2 + $0x1f8] sm:$0xf] %vm702_vm1, %v649_v63  ;;  %v654_v4 = vld [vmem:[%s11600_s16 + $0x220] sm:$0xff]  ;;  %767 = vst.msk [vmem:[#allocation2 + $0x218] sm:$0xf] %vm702_vm1, %v653_v3  ;;  %v655_v5 = vld [vmem:[%s11600_s16 + $0x228] sm:$0xff] }
 0x16a   : > { %764 = vst.msk [vmem:[#allocation2 + $0x200] sm:$0xff] %vm698_vm0, %v650_v0  ;;  %765 = vst.msk [vmem:[#allocation2 + $0x208] sm:$0xff] %vm698_vm0, %v651_v1  ;;  %v656_v6 = vld [vmem:[%s11600_s16 + $0x230] sm:$0xff]  ;;  %v657_v7 = vld [vmem:[%s11600_s16 + $0x238] sm:$0xf] }
 0x16b   : > { %766 = vst.msk [vmem:[#allocation2 + $0x210] sm:$0xff] %vm698_vm0, %v652_v2  ;;  %768 = vst.msk [vmem:[#allocation2 + $0x220] sm:$0xff] %vm698_vm0, %v654_v4  ;;  %v658_v8 = vld [vmem:[%s11600_s16 + $0x240] sm:$0xff]  ;;  %v659_v9 = vld [vmem:[%s11600_s16 + $0x248] sm:$0xff] }
 0x16c   : > { %769 = vst.msk [vmem:[#allocation2 + $0x228] sm:$0xff] %vm698_vm0, %v655_v5  ;;  %770 = vst.msk [vmem:[#allocation2 + $0x230] sm:$0xff] %vm698_vm0, %v656_v6  ;;  %v660_v10 = vld [vmem:[%s11600_s16 + $0x250] sm:$0xff]  ;;  %v661_v11 = vld [vmem:[%s11600_s16 + $0x258] sm:$0xf] }
 0x16d   : > { %771 = vst.msk [vmem:[#allocation2 + $0x238] sm:$0xf] %vm702_vm1, %v657_v7  ;;  %v662_v12 = vld [vmem:[%s11600_s16 + $0x260] sm:$0xff]  ;;  %v663_v13 = vld [vmem:[%s11600_s16 + $0x268] sm:$0xff]  ;;  %775 = vst.msk [vmem:[#allocation2 + $0x258] sm:$0xf] %vm702_vm1, %v661_v11 }
 0x16e   : > { %772 = vst.msk [vmem:[#allocation2 + $0x240] sm:$0xff] %vm698_vm0, %v658_v8  ;;  %773 = vst.msk [vmem:[#allocation2 + $0x248] sm:$0xff] %vm698_vm0, %v659_v9  ;;  %v664_v14 = vld [vmem:[%s11600_s16 + $0x270] sm:$0xff]  ;;  %v665_v15 = vld [vmem:[%s11600_s16 + $0x278] sm:$0xf] }
 0x16f   : > { %774 = vst.msk [vmem:[#allocation2 + $0x250] sm:$0xff] %vm698_vm0, %v660_v10  ;;  %776 = vst.msk [vmem:[#allocation2 + $0x260] sm:$0xff] %vm698_vm0, %v662_v12  ;;  %v666_v16 = vld [vmem:[%s11600_s16 + $0x280] sm:$0xff]  ;;  %v667_v17 = vld [vmem:[%s11600_s16 + $0x288] sm:$0xff] }
 0x170   : > { %777 = vst.msk [vmem:[#allocation2 + $0x268] sm:$0xff] %vm698_vm0, %v663_v13  ;;  %778 = vst.msk [vmem:[#allocation2 + $0x270] sm:$0xff] %vm698_vm0, %v664_v14  ;;  %v668_v18 = vld [vmem:[%s11600_s16 + $0x290] sm:$0xff]  ;;  %v669_v19 = vld [vmem:[%s11600_s16 + $0x298] sm:$0xf] }
 0x171   : > { %779 = vst.msk [vmem:[#allocation2 + $0x278] sm:$0xf] %vm702_vm1, %v665_v15  ;;  %783 = vst.msk [vmem:[#allocation2 + $0x298] sm:$0xf] %vm702_vm1, %v669_v19  ;;  %v670_v20 = vld [vmem:[%s11600_s16 + $0x2a0] sm:$0xff]  ;;  %v671_v21 = vld [vmem:[%s11600_s16 + $0x2a8] sm:$0xff] }
 0x172   : > { %780 = vst.msk [vmem:[#allocation2 + $0x280] sm:$0xff] %vm698_vm0, %v666_v16  ;;  %781 = vst.msk [vmem:[#allocation2 + $0x288] sm:$0xff] %vm698_vm0, %v667_v17  ;;  %v672_v22 = vld [vmem:[%s11600_s16 + $0x2b0] sm:$0xff]  ;;  %v673_v23 = vld [vmem:[%s11600_s16 + $0x2b8] sm:$0xf] }
 0x173   : > { %782 = vst.msk [vmem:[#allocation2 + $0x290] sm:$0xff] %vm698_vm0, %v668_v18  ;;  %784 = vst.msk [vmem:[#allocation2 + $0x2a0] sm:$0xff] %vm698_vm0, %v670_v20  ;;  %v674_v24 = vld [vmem:[%s11600_s16 + $0x2c0] sm:$0xff]  ;;  %v675_v25 = vld [vmem:[%s11600_s16 + $0x2c8] sm:$0xff] }
 0x174   : > { %785 = vst.msk [vmem:[#allocation2 + $0x2a8] sm:$0xff] %vm698_vm0, %v671_v21  ;;  %786 = vst.msk [vmem:[#allocation2 + $0x2b0] sm:$0xff] %vm698_vm0, %v672_v22  ;;  %v676_v26 = vld [vmem:[%s11600_s16 + $0x2d0] sm:$0xff]  ;;  %v677_v27 = vld [vmem:[%s11600_s16 + $0x2d8] sm:$0xf] }
 0x175   : > { %787 = vst.msk [vmem:[#allocation2 + $0x2b8] sm:$0xf] %vm702_vm1, %v673_v23  ;;  %v678_v28 = vld [vmem:[%s11600_s16 + $0x2e0] sm:$0xff]  ;;  %791 = vst.msk [vmem:[#allocation2 + $0x2d8] sm:$0xf] %vm702_vm1, %v677_v27  ;;  %v679_v29 = vld [vmem:[%s11600_s16 + $0x2e8] sm:$0xff] }
 0x176   : > { %788 = vst.msk [vmem:[#allocation2 + $0x2c0] sm:$0xff] %vm698_vm0, %v674_v24  ;;  %789 = vst.msk [vmem:[#allocation2 + $0x2c8] sm:$0xff] %vm698_vm0, %v675_v25  ;;  %v680_v30 = vld [vmem:[%s11600_s16 + $0x2f0] sm:$0xff]  ;;  %v681_v31 = vld [vmem:[%s11600_s16 + $0x2f8] sm:$0xf] }
 0x177   : > { %790 = vst.msk [vmem:[#allocation2 + $0x2d0] sm:$0xff] %vm698_vm0, %v676_v26  ;;  %792 = vst.msk [vmem:[#allocation2 + $0x2e0] sm:$0xff] %vm698_vm0, %v678_v28  ;;  %v682_v32 = vld [vmem:[%s11600_s16 + $0x300] sm:$0xff]  ;;  %v683_v33 = vld [vmem:[%s11600_s16 + $0x308] sm:$0xff] }
 0x178   : > { %793 = vst.msk [vmem:[#allocation2 + $0x2e8] sm:$0xff] %vm698_vm0, %v679_v29  ;;  %794 = vst.msk [vmem:[#allocation2 + $0x2f0] sm:$0xff] %vm698_vm0, %v680_v30  ;;  %v684_v34 = vld [vmem:[%s11600_s16 + $0x310] sm:$0xff]  ;;  %v685_v35 = vld [vmem:[%s11600_s16 + $0x318] sm:$0xf] }
 0x179   : > { %795 = vst.msk [vmem:[#allocation2 + $0x2f8] sm:$0xf] %vm702_vm1, %v681_v31  ;;  %v686_v36 = vld [vmem:[%s11600_s16 + $0x320] sm:$0xff]  ;;  %v687_v37 = vld [vmem:[%s11600_s16 + $0x328] sm:$0xff]  ;;  %799 = vst.msk [vmem:[#allocation2 + $0x318] sm:$0xf] %vm702_vm1, %v685_v35 }
 0x17a   : > { %796 = vst.msk [vmem:[#allocation2 + $0x300] sm:$0xff] %vm698_vm0, %v682_v32  ;;  %797 = vst.msk [vmem:[#allocation2 + $0x308] sm:$0xff] %vm698_vm0, %v683_v33  ;;  %v688_v38 = vld [vmem:[%s11600_s16 + $0x330] sm:$0xff]  ;;  %v689_v39 = vld [vmem:[%s11600_s16 + $0x338] sm:$0xf] }
 0x17b   : > { %798 = vst.msk [vmem:[#allocation2 + $0x310] sm:$0xff] %vm698_vm0, %v684_v34  ;;  %800 = vst.msk [vmem:[#allocation2 + $0x320] sm:$0xff] %vm698_vm0, %v686_v36  ;;  %v690_v40 = vld [vmem:[%s11600_s16 + $0x340] sm:$0xff]  ;;  %v691_v41 = vld [vmem:[%s11600_s16 + $0x348] sm:$0xff] }
 0x17c   : > { %801 = vst.msk [vmem:[#allocation2 + $0x328] sm:$0xff] %vm698_vm0, %v687_v37  ;;  %802 = vst.msk [vmem:[#allocation2 + $0x330] sm:$0xff] %vm698_vm0, %v688_v38  ;;  %v692_v42 = vld [vmem:[%s11600_s16 + $0x350] sm:$0xff]  ;;  %v693_v43 = vld [vmem:[%s11600_s16 + $0x358] sm:$0xf] }
 0x17d   : > { %803 = vst.msk [vmem:[#allocation2 + $0x338] sm:$0xf] %vm702_vm1, %v689_v39  ;;  %807 = vst.msk [vmem:[#allocation2 + $0x358] sm:$0xf] %vm702_vm1, %v693_v43  ;;  %v694_v44 = vld [vmem:[%s11600_s16 + $0x360] sm:$0xff]  ;;  %v695_v45 = vld [vmem:[%s11600_s16 + $0x368] sm:$0xff] }
 0x17e   : > { %804 = vst.msk [vmem:[#allocation2 + $0x340] sm:$0xff] %vm698_vm0, %v690_v40  ;;  %805 = vst.msk [vmem:[#allocation2 + $0x348] sm:$0xff] %vm698_vm0, %v691_v41  ;;  %v696_v46 = vld [vmem:[%s11600_s16 + $0x370] sm:$0xff]  ;;  %v697_v47 = vld [vmem:[%s11600_s16 + $0x378] sm:$0xf] }
 0x17f   : > { %806 = vst.msk [vmem:[#allocation2 + $0x350] sm:$0xff] %vm698_vm0, %v692_v42  ;;  %808 = vst.msk [vmem:[#allocation2 + $0x360] sm:$0xff] %vm698_vm0, %v694_v44 }
 0x180   : > { %809 = vst.msk [vmem:[#allocation2 + $0x368] sm:$0xff] %vm698_vm0, %v695_v45  ;;  %810 = vst.msk [vmem:[#allocation2 + $0x370] sm:$0xff] %vm698_vm0, %v696_v46 }
 0x181   : > { %811 = vst.msk [vmem:[#allocation2 + $0x378] sm:$0xf] %vm702_vm1, %v697_v47 }
 0x182 LB: >> { %v11197_v48 = vmov 0   ;;  %s8063_s14 = sshll.u32 %s11158_s21, 5  ;;  %v8065_v61 = vld [vmem:[#allocation9 + $0x1] ss:$0 sm:$0xff]  ;;  %v8066_v62 = vld [vmem:[#allocation9 + $0x2] ss:$0 sm:$0xff]  ;;  %s11158_s21 = sphi %s11830_s21, %s817_s21  }
 0x183   : >> { %10735 = vset.pattern.permute.xlu1 %v11197_v48  ;;  %10734 = vset.pattern.permute.xlu0 %v11197_v48  ;;  %s819_s6 = scalar_lea.vmem [#allocation2], %s8063_s14  ;;  %v8064_v1 = vld [vmem:[#allocation9] ss:$0 sm:$0xff]  ;;  %vm875_vm2 = vcmask 1046528   ;;  %vm907_vm3 = vcmask 1045504   ;;  %vm1149_vm4 = vcmask 261120  }
 0x184   : >> { %v8073_v14 = vld [vmem:[#allocation9 + $0x4] ss:$0 sm:$0xff]  ;;  %v8072_v19 = vld [vmem:[#allocation9 + $0x3] ss:$0 sm:$0xff]  ;;  %v8074_v24 = vld [vmem:[#allocation9 + $0x5] ss:$0 sm:$0xff] }
 0x185   : >> { %vm1153_vm5 = vcmask 254976   ;;  %s1148_s4 = scalar_lea.vmem [#allocation3], %s8063_s14  ;;  %s817_s21 = sadd.s32 1, %s11158_s21  }
 0x186   : >> { %p814_p13 = scmp.ge.s32.totalorder %s817_s21, 26  }
 0x187   : > { %s11864_s19 = smov (%p814_p13), 0  }
 0x188   : >> { %v822_v49 = vld [vmem:[%s819_s6 + $0x10] sm:$0xff]  ;;  %v820_v50 = vld [vmem:[%s819_s6] sm:$0xff]  ;;  %v823_v51 = vld [vmem:[%s819_s6 + $0x18] sm:$0xf] }
 0x189   : >> { %837 = vperm.xlu1 %10735, %v822_v49   ;;  %827 = vperm.xlu0 %10734, %v820_v50   ;;  %v821_v52 = vld [vmem:[%s819_s6 + $0x8] sm:$0xff]  ;;  %v8068_v54 = vld [vmem:[%s819_s6 + $0x20] sm:$0xff]  ;;  %v8071_v55 = vld [vmem:[%s819_s6 + $0x38] sm:$0xf] }
 0x18a   : >> { %v8069_v53 = vld [vmem:[%s819_s6 + $0x28] sm:$0xff]  ;;  %v8070_v56 = vld [vmem:[%s819_s6 + $0x30] sm:$0xff]  ;;  %v8076_v58 = vld [vmem:[%s819_s6 + $0x40] sm:$0xff] }
 0x18b   : >> { %v8077_v57 = vld [vmem:[%s819_s6 + $0x48] sm:$0xff]  ;;  %v8079_v59 = vld [vmem:[%s819_s6 + $0x58] sm:$0xf]  ;;  %v8078_v60 = vld [vmem:[%s819_s6 + $0x50] sm:$0xff] }
 0x18d   : >> { %842 = vperm.xlu1 %10735, %v823_v51   ;;  %832 = vperm.xlu0 %10734, %v821_v52  }
 0x191   : >> { %939 = vperm.xlu1 %10735, %v8069_v53   ;;  %934 = vperm.xlu0 %10734, %v8068_v54  }
 0x195   : >> { %949 = vperm.xlu1 %10735, %v8071_v55   ;;  %944 = vperm.xlu0 %10734, %v8070_v56  }
 0x199   : >> { %1044 = vperm.xlu1 %10735, %v8077_v57   ;;  %1039 = vperm.xlu0 %10734, %v8076_v58   ;;  %v8081_v57 = vld [vmem:[#allocation9 + $0x7] ss:$0 sm:$0xff] }
 0x19d   : >> { %1054 = vperm.xlu1 %10735, %v8079_v59   ;;  %1049 = vperm.xlu0 %10734, %v8078_v60  }
 0x208   : >> { %v838_v63 = vpop.permute.xlu1 %837  ;;  %v828_v0 = vpop.permute.xlu0 %827 }
 0x209   : >> { %v869_v2 = vmul.f32 %v8065_v61, %v838_v63  ;;  %v901_v3 = vmul.f32 %v8066_v62, %v838_v63  ;;  %v867_v4 = vmul.f32 %v8065_v61, %v828_v0  ;;  %v899_v5 = vmul.f32 %v8066_v62, %v828_v0 }
 0x20a   : >> { %v853_v10 = vmul.f32 %v8064_v1, %v838_v63  ;;  %v851_v11 = vmul.f32 %v8064_v1, %v828_v0 }
 0x20b   : >> { %v879_v15 = vrot.slane %v869_v2, 1  ;;  %v911_v16 = vrot.slane %v901_v3, 2  ;;  %v876_v20 = vrot.slane %v867_v4, 1  ;;  %v908_v21 = vrot.slane %v899_v5, 2  ;;  %v8080_v4 = vld [vmem:[#allocation9 + $0x6] ss:$0 sm:$0xff] }
 0x20c   : >> { %v843_v6 = vpop.permute.xlu1 %842  ;;  %v833_v7 = vpop.permute.xlu0 %832 }
 0x20d   : >> { %v870_v8 = vmul.f32 %v8065_v61, %v843_v6  ;;  %v902_v9 = vmul.f32 %v8066_v62, %v843_v6  ;;  %v868_v12 = vmul.f32 %v8065_v61, %v833_v7  ;;  %v900_v13 = vmul.f32 %v8066_v62, %v833_v7  ;;  %v8082_v62 = vld [vmem:[#allocation9 + $0x8] ss:$0 sm:$0xff] }
 0x20e   : >> { %v854_v17 = vmul.f32 %v8064_v1, %v843_v6  ;;  %v852_v29 = vmul.f32 %v8064_v1, %v833_v7 }
 0x20f   : >> { %v881_v18 = vrot.slane %v870_v8, 1  ;;  %v877_v22 = vrot.slane %v868_v12, 1  ;;  %v909_v23 = vrot.slane %v900_v13, 2  ;;  %v913_v28 = vrot.slane %v902_v9, 2 }
 0x210   : >> { %v940_v25 = vpop.permute.xlu1 %939  ;;  %v935_v26 = vpop.permute.xlu0 %934 }
 0x211   : >> { %v890_v27 = vadd.f32 %v881_v18, %v854_v17  ;;  %v975_v30 = vmul.f32 %v8073_v14, %v940_v25  ;;  %v882_v31 = vsel %vm875_vm2, %v879_v15, %v881_v18  ;;  %v878_v32 = vsel %vm875_vm2, %v876_v20, %v877_v22 }
 0x212   : >> { %v880_v33 = vsel %vm875_vm2, %v877_v22, %v879_v15  ;;  %v959_v34 = vmul.f32 %v8072_v19, %v940_v25  ;;  %v912_v36 = vsel %vm907_vm3, %v909_v23, %v911_v16  ;;  %v1006_v37 = vmul.f32 %v8074_v24, %v940_v25 }
 0x213   : >> { %v888_v35 = vadd.f32 %v880_v33, %v852_v29  ;;  %v887_v38 = vadd.f32 %v878_v32, %v851_v11  ;;  %v922_v39 = vadd.f32 %v913_v28, %v890_v27  ;;  %v983_v40 = vrot.slane %v975_v30, 1 }
 0x214   : >> { %v910_v41 = vsel %vm907_vm3, %v908_v21, %v909_v23  ;;  %v974_v42 = vmul.f32 %v8073_v14, %v935_v26  ;;  %v950_v43 = vpop.permute.xlu1 %949  ;;  %v945_v44 = vpop.permute.xlu0 %944  ;;  %v958_v46 = vmul.f32 %v8072_v19, %v935_v26  ;;  %v1005_v47 = vmul.f32 %v8074_v24, %v935_v26 }
 0x215   : >> { %v919_v45 = vadd.f32 %v910_v41, %v887_v38  ;;  %v961_v48 = vmul.f32 %v8072_v19, %v950_v43  ;;  %v920_v49 = vadd.f32 %v912_v36, %v888_v35  ;;  %v977_v51 = vmul.f32 %v8073_v14, %v950_v43 }
 0x216   : >> { %v982_v50 = vrot.slane %v974_v42, 1  ;;  %v889_v52 = vadd.f32 %v882_v31, %v853_v10  ;;  %v1014_v53 = vrot.slane %v1006_v37, 2  ;;  %v1013_v55 = vrot.slane %v1005_v47, 2 }
 0x217   : >> { %v962_v54 = vadd.f32 %v958_v46, %v919_v45  ;;  %v965_v56 = vadd.f32 %v961_v48, %v922_v39  ;;  %v987_v59 = vrot.slane %v977_v51, 1  ;;  %v1008_v60 = vmul.f32 %v8074_v24, %v950_v43 }
 0x218   : >> { %v984_v58 = vsel %vm875_vm2, %v982_v50, %v983_v40  ;;  %v914_v61 = vsel %vm907_vm3, %v911_v16, %v913_v28  ;;  %v1045_v63 = vpop.permute.xlu1 %1044  ;;  %v960_v2 = vmul.f32 %v8072_v19, %v945_v44  ;;  %v976_v3 = vmul.f32 %v8073_v14, %v945_v44  ;;  %v1040_v5 = vpop.permute.xlu0 %1039 }
 0x219   : >> { %v993_v0 = vadd.f32 %v984_v58, %v962_v54  ;;  %v921_v1 = vadd.f32 %v914_v61, %v889_v52  ;;  %v963_v6 = vadd.f32 %v959_v34, %v920_v49  ;;  %v996_v7 = vadd.f32 %v987_v59, %v965_v56 }
 0x21a   : >> { %v1007_v8 = vmul.f32 %v8074_v24, %v945_v44  ;;  %v1080_v9 = vmul.f32 %v8081_v57, %v1045_v63  ;;  %v985_v11 = vrot.slane %v976_v3, 1  ;;  %v1111_v12 = vmul.f32 %v8082_v62, %v1045_v63  ;;  %v8083_v44 = vld [vmem:[#allocation12] ss:$0 sm:$0xff] }
 0x21b   : >> { %v964_v10 = vadd.f32 %v960_v2, %v921_v1  ;;  %v1015_v13 = vsel %vm907_vm3, %v1013_v55, %v1014_v53  ;;  %v1018_v15 = vrot.slane %v1008_v60, 2  ;;  %v1063_v18 = vmul.f32 %v8080_v4, %v1040_v5 }
 0x21c   : >> { %v1016_v17 = vrot.slane %v1007_v8, 2  ;;  %v1024_v16 = vadd.f32 %v1015_v13, %v993_v0  ;;  %v1055_v20 = vpop.permute.xlu1 %1054  ;;  %v986_v21 = vsel %vm875_vm2, %v983_v40, %v985_v11  ;;  %v988_v14 = vsel %vm875_vm2, %v985_v11, %v987_v59  ;;  %v1050_v35 = vpop.permute.xlu0 %1049 }
 0x21d   : >> { %v1088_v19 = vrot.slane %v1080_v9, 1  ;;  %v1079_v22 = vmul.f32 %v8081_v57, %v1040_v5  ;;  %v995_v23 = vadd.f32 %v988_v14, %v964_v10  ;;  %v994_v25 = vadd.f32 %v986_v21, %v963_v6 }
 0x21e   : >> { %v1119_v24 = vrot.slane %v1111_v12, 2  ;;  %v1067_v26 = vadd.f32 %v1063_v18, %v1024_v16  ;;  %v1110_v28 = vmul.f32 %v8082_v62, %v1040_v5  ;;  %v1027_v29 = vadd.f32 %v1018_v15, %v996_v7 }
 0x21f   : >> { %v1087_v27 = vrot.slane %v1079_v22, 1  ;;  %v1066_v30 = vmul.f32 %v8080_v4, %v1055_v20  ;;  %v1017_v31 = vsel %vm907_vm3, %v1014_v53, %v1016_v17  ;;  %v1082_v32 = vmul.f32 %v8081_v57, %v1055_v20 }
 0x220   : >> { %v1113_v33 = vmul.f32 %v8082_v62, %v1055_v20  ;;  %v1019_v34 = vsel %vm907_vm3, %v1016_v17, %v1018_v15  ;;  %v1118_v37 = vrot.slane %v1110_v28, 2  ;;  %v1025_v40 = vadd.f32 %v1017_v31, %v994_v25 }
 0x221   : >> { %v1089_v36 = vsel %vm875_vm2, %v1087_v27, %v1088_v19  ;;  %v1070_v38 = vadd.f32 %v1066_v30, %v1027_v29  ;;  %v1026_v39 = vadd.f32 %v1019_v34, %v995_v23  ;;  %v1092_v42 = vrot.slane %v1082_v32, 1 }
 0x222   : >> { %v1098_v41 = vadd.f32 %v1089_v36, %v1067_v26  ;;  %v1120_v43 = vsel %vm907_vm3, %v1118_v37, %v1119_v24  ;;  %v1065_v45 = vmul.f32 %v8080_v4, %v1050_v35  ;;  %v1081_v46 = vmul.f32 %v8081_v57, %v1050_v35 }
 0x223   : >> { %v1112_v47 = vmul.f32 %v8082_v62, %v1050_v35  ;;  %v1064_v48 = vmul.f32 %v8080_v4, %v1045_v63  ;;  %v1101_v50 = vadd.f32 %v1092_v42, %v1070_v38  ;;  %v1123_v51 = vrot.slane %v1113_v33, 2 }
 0x224   : >> { %v1129_v49 = vadd.f32 %v1120_v43, %v1098_v41  ;;  %v1069_v52 = vadd.f32 %v1065_v45, %v1026_v39  ;;  %v1090_v53 = vrot.slane %v1081_v46, 1 }
 0x225   : >> { %v1121_v54 = vrot.slane %v1112_v47, 2  ;;  %v1068_v55 = vadd.f32 %v1064_v48, %v1025_v40  ;;  %v1132_v56 = vadd.f32 %v1123_v51, %v1101_v50 }
 0x226   : >> { %v1140_v58 = vadd.f32 %v8083_v44, %v1129_v49  ;;  %v1091_v59 = vsel %vm875_vm2, %v1088_v19, %v1090_v53  ;;  %v1093_v60 = vsel %vm875_vm2, %v1090_v53, %v1092_v42 }
 0x227   : >> { %v1143_v61 = vadd.f32 %v8083_v44, %v1132_v56  ;;  %v1099_v57 = vadd.f32 %v1091_v59, %v1068_v55  ;;  %v1100_v62 = vadd.f32 %v1093_v60, %v1069_v52  ;;  %v1122_v63 = vsel %vm907_vm3, %v1119_v24, %v1121_v54 }
 0x228   : >> { %v1144_v0 = vmax.f32 %v1140_v58, 0.0  ;;  %v1124_v1 = vsel %vm907_vm3, %v1121_v54, %v1123_v51 }
 0x229   : >> { %v1147_v2 = vmax.f32 %v1143_v61, 0.0  ;;  %v1130_v3 = vadd.f32 %v1122_v63, %v1099_v57  ;;  %v1131_v4 = vadd.f32 %v1124_v1, %v1100_v62  ;;  %816 = sbr.rel (!%p814_p13) target bundleno = 386 (0x182), region = 266 }
 0x22a   : >> { %1150 = vst.msk [vmem:[%s1148_s4] sm:$0xff] %vm1149_vm4, %v1144_v0 }
 0x22b   : >> { %1154 = vst.msk [vmem:[%s1148_s4 + $0x18] sm:$0x3] %vm1153_vm5, %v1147_v2  ;;  %v1141_v5 = vadd.f32 %v8083_v44, %v1130_v3  ;;  %v1142_v6 = vadd.f32 %v8083_v44, %v1131_v4 }
 0x22d   : >> { %v1145_v7 = vmax.f32 %v1141_v5, 0.0  ;;  %v1146_v8 = vmax.f32 %v1142_v6, 0.0 }
 0x22f   : >> { %1151 = vst.msk [vmem:[%s1148_s4 + $0x8] sm:$0xff] %vm1149_vm4, %v1145_v7  ;;  %1152 = vst.msk [vmem:[%s1148_s4 + $0x10] sm:$0xff] %vm1149_vm4, %v1146_v8 }
 0x230 LB: >> { %v1172_v9 = vld [vmem:[#allocation14 + $0x20] sm:$0xff]  ;;  %v1173_v10 = vld [vmem:[#allocation14 + $0x28] sm:$0xff]  ;;  %v1174_v11 = vld [vmem:[#allocation14 + $0x30] sm:$0xff]  ;;  %v11198_v12 = vmov 0.0|0.0   ;;  %vm11199_vm6 = vmmov 0   ;;  %v11200_v17 = vmov 0.0   ;;  %s11162_s19 = sphi %s11864_s19, %s1160_s19  }
 0x231   : >> { %10439 = vmatprep.subr.bf16.mxu1 %v11198_v12  ;;  %v9038_v13 = vpack.c.bf16 %v1173_v10, %v1172_v9  ;;  %9037 = vmatprep.subr.bf16.mxu0 %v11198_v12  ;;  %v1175_v15 = vld [vmem:[#allocation14 + $0x38] sm:$0xff]  ;;  %s8084_s2 = sshll.u32 %s11162_s19, 5  ;;  %v1167_v16 = vld [vmem:[#allocation14] sm:$0xff]  ;;  %v1168_v20 = vld [vmem:[#allocation14 + $0x8] sm:$0xff]  ;;  %s2090_s13 = smul.u32 24, %s11162_s19  ;;  %vm2092_vm7 = vcmask 523264  }
 0x232   : >> { %8528 = vmatprep.mubr.msk.f32.mxu1 %vm11199_vm6, %v11200_v17  ;;  %8522 = vmatprep.mubr.msk.f32.mxu0 %vm11199_vm6, %v11200_v17  ;;  %v9041_v18 = vpack.c.bf16 %v1175_v15, %v1174_v11  ;;  %v1362_v21 = vld [vmem:[#allocation14 + $0x40] sm:$0xff]  ;;  %v1363_v14 = vld [vmem:[#allocation14 + $0x48] sm:$0xff]  ;;  %s11878_s22 = scalar_lea.vmem [#allocation3], %s8084_s2  ;;  %v9044_v30 = vpack.c.bf16 %v1168_v20, %v1167_v16  ;;  %v1169_v32 = vld [vmem:[#allocation14 + $0x10] sm:$0xff]  ;;  %s1160_s19 = sadd.s32 1, %s11162_s19  }
 0x233   : >> { %10441 = vmatpush3.bf16.msra.mxu1 %v9038_v13  ;;  %9039 = vmatpush3.bf16.msra.mxu0 %v9038_v13  ;;  %v9050_v31 = vpack.c.bf16 %v1363_v14, %v1362_v21  ;;  %v1170_v33 = vld [vmem:[#allocation14 + $0x18] sm:$0xff]  ;;  %v1364_v35 = vld [vmem:[#allocation14 + $0x50] sm:$0xff]  ;;  %v1471_v42 = vld [vmem:[#allocation14 + $0x60] sm:$0xff]  ;;  %s2091_s1 = scalar_lea.vmem [#allocation4], %s2090_s13  ;;  %p1157_p1 = scmp.ge.s32.totalorder %s1160_s19, 24  }
 0x234   : >> { %10440 = vmatprep.subr.bf16.mxu1 %v11198_v12  ;;  %9040 = vmatprep.subr.bf16.mxu0 %v11198_v12  ;;  %v1365_v36 = vld [vmem:[#allocation14 + $0x58] sm:$0xff]  ;;  %v9047_v37 = vpack.c.bf16 %v1170_v33, %v1169_v32  ;;  %v1472_v43 = vld [vmem:[#allocation14 + $0x68] sm:$0xff]  ;;  %v1568_v44 = vld [vmem:[#allocation14 + $0x80] sm:$0xff]  ;;  %s12050_s28 = smov (%p1157_p1), 0  }
 0x235   : >> { %v9053_v39 = vpack.c.bf16 %v1365_v36, %v1364_v35  ;;  %v1569_v45 = vld [vmem:[#allocation14 + $0x88] sm:$0xff]  ;;  %v9056_v46 = vpack.c.bf16 %v1472_v43, %v1471_v42  ;;  %v1473_v50 = vld [vmem:[#allocation14 + $0x70] sm:$0xff]  ;;  %v1474_v51 = vld [vmem:[#allocation14 + $0x78] sm:$0xff] }
 0x236   : >> { %v11881_v19 = vld [vmem:[%s11878_s22 + $0x10] sm:$0xff]  ;;  %v11884_v22 = vld [vmem:[%s11878_s22 + $0x18] sm:$0x3]  ;;  %v1163_v23 = vld [vmem:[%s11878_s22] sm:$0xff]  ;;  %v9062_v49 = vpack.c.bf16 %v1569_v45, %v1568_v44  ;;  %v9059_v55 = vpack.c.bf16 %v1474_v51, %v1473_v50 }
 0x237   : >> { %v1184_v25 = vrot.slane %v11881_v19, 1  ;;  %v1186_v24 = vrot.slane %v11884_v22, 1  ;;  %v1164_v26 = vld [vmem:[%s11878_s22 + $0x8] sm:$0xff]  ;;  %v1181_v27 = vrot.slane %v1163_v23, 1  ;;  %10442 = vmatpush3.bf16.msra.mxu1 %v9041_v18  ;;  %9042 = vmatpush3.bf16.msra.mxu0 %v9041_v18  ;;  %v1367_v40 = vrot.slane %v1163_v23, 2  ;;  %v1571_v53 = vld [vmem:[#allocation14 + $0x98] sm:$0xff] }
 0x238   : >> { %v1182_v28 = vrot.slane %v1164_v26, 1  ;;  %9043 = vmatprep.subr.bf16.mxu1 %v11198_v12  ;;  %9049 = vmatprep.subr.bf16.mxu0 %v11198_v12  ;;  %v1368_v41 = vrot.slane %v1164_v26, 2  ;;  %v1370_v48 = vrot.slane %v11881_v19, 2  ;;  %v1570_v52 = vld [vmem:[#allocation14 + $0x90] sm:$0xff]  ;;  %v1372_v56 = vrot.slane %v11884_v22, 2  ;;  %v11919_v59 = vld [vmem:[%s11878_s22 + $0x20] sm:$0xff] }
 0x239   : >> { %v1187_v29 = vsel %vm875_vm2, %v1184_v25, %v1186_v24  ;;  %v9065_v58 = vpack.c.bf16 %v1571_v53, %v1570_v52  ;;  %v11922_v60 = vld [vmem:[%s11878_s22 + $0x28] sm:$0xff]  ;;  %v1573_v0 = vrot.slane %v11919_v59, 1  ;;  %v1670_v62 = vld [vmem:[#allocation14 + $0xa0] sm:$0xff]  ;;  %v11936_v1 = vld [vmem:[%s11878_s22 + $0x30] sm:$0xff]  ;;  %v1674_v14 = vrot.slane %v11919_v59, 2 }
 0x23a   : >> { %v1183_v34 = vsel %vm875_vm2, %v1181_v27, %v1182_v28  ;;  %8529 = vmatmul.mubr.msk.f32.vlgmr.msra.gmra.mrb[0].mxu1 %vm1149_vm4, %v1187_v29  ;;  %v1185_v38 = vsel %vm875_vm2, %v1182_v28, %v1184_v25  ;;  %v1369_v47 = vsel %vm907_vm3, %v1367_v40, %v1368_v41  ;;  %v1371_v54 = vsel %vm907_vm3, %v1368_v41, %v1370_v48  ;;  %v1671_v63 = vld [vmem:[#allocation14 + $0xa8] sm:$0xff]  ;;  %v1778_v2 = vld [vmem:[#allocation14 + $0xc0] sm:$0xff]  ;;  %v1672_v8 = vld [vmem:[#allocation14 + $0xb0] sm:$0xff] }
 0x23b   : >> { %8523 = vmatmul.mubr.msk.f32.vlgmr.msra.gmra.mrb[0].mxu0 %vm1149_vm4, %v1183_v34  ;;  %9045 = vmatpush3.bf16.msra.mxu1 %v9044_v30  ;;  %v1373_v61 = vsel %vm907_vm3, %v1370_v48, %v1372_v56  ;;  %v1574_v57 = vrot.slane %v11922_v60, 1  ;;  %v1779_v3 = vld [vmem:[#allocation14 + $0xc8] sm:$0xff]  ;;  %v9068_v4 = vpack.c.bf16 %v1671_v63, %v1670_v62  ;;  %v1576_v6 = vrot.slane %v11936_v1, 1  ;;  %v1673_v9 = vld [vmem:[#allocation14 + $0xb8] sm:$0xff]  ;;  %v1780_v11 = vld [vmem:[#allocation14 + $0xd0] sm:$0xff] }
 0x23c   : >> { %9051 = vmatpush3.bf16.msra.mxu0 %v9050_v31  ;;  %9046 = vmatprep.subr.bf16.mxu1 %v11198_v12  ;;  %v9074_v7 = vpack.c.bf16 %v1779_v3, %v1778_v2  ;;  %v11950_v10 = vld [vmem:[%s11878_s22 + $0x38] sm:$0x3]  ;;  %v9071_v16 = vpack.c.bf16 %v1673_v9, %v1672_v8  ;;  %v1875_v22 = vld [vmem:[#allocation14 + $0xe0] sm:$0xff]  ;;  %v1978_v24 = vld [vmem:[#allocation14 + $0x108] sm:$0xff]  ;;  %v1677_v29 = vrot.slane %v11936_v1, 2 }
 0x23d   : >> { %8525 = vmatprep.mubr.msk.f32.mxu0 %vm11199_vm6, %v11200_v17  ;;  %9052 = vmatprep.subr.bf16.mxu0 %v11198_v12  ;;  %v1575_v5 = vsel %vm875_vm2, %v1573_v0, %v1574_v57  ;;  %v1781_v13 = vld [vmem:[#allocation14 + $0xd8] sm:$0xff]  ;;  %v1577_v15 = vsel %vm875_vm2, %v1574_v57, %v1576_v6  ;;  %v1578_v18 = vrot.slane %v11950_v10, 1  ;;  %v1977_v25 = vld [vmem:[#allocation14 + $0x100] sm:$0xff]  ;;  %v1877_v31 = vld [vmem:[#allocation14 + $0xf0] sm:$0xff] }
 0x23e   : >> { %8539 = vmatprep.mubr.msk.f32.mxu1 %vm11199_vm6, %v11200_v17  ;;  %v9077_v20 = vpack.c.bf16 %v1781_v13, %v1780_v11  ;;  %v8109_v28 = vld [vmem:[%s11878_s22 + $0x40] sm:$0xff]  ;;  %v9086_v30 = vpack.c.bf16 %v1978_v24, %v1977_v25  ;;  %v1878_v32 = vld [vmem:[#allocation14 + $0xf8] sm:$0xff]  ;;  %v1979_v33 = vld [vmem:[#allocation14 + $0x110] sm:$0xff] }
 0x23f   : >> { %8526 = vmatmul.mubr.msk.f32.gmra.mrb[2].mxu0 %vm1149_vm4, %v1185_v38  ;;  %9048 = vmatpush3.bf16.msra.mxu1 %v9047_v37  ;;  %v1579_v21 = vsel %vm875_vm2, %v1576_v6, %v1578_v18  ;;  %v1980_v34 = vld [vmem:[#allocation14 + $0x118] sm:$0xff]  ;;  %v8110_v36 = vld [vmem:[%s11878_s22 + $0x48] sm:$0xff]  ;;  %v9083_v37 = vpack.c.bf16 %v1878_v32, %v1877_v31  ;;  %v1679_v38 = vrot.slane %v11950_v10, 2  ;;  %v1880_v44 = vrot.slane %v8109_v28, 1 }
 0x240   : >> { %9054 = vmatpush3.bf16.msra.mxu0 %v9053_v39  ;;  %9055 = vmatprep.subr.bf16.mxu1 %v11198_v12  ;;  %v9089_v39 = vpack.c.bf16 %v1980_v34, %v1979_v33  ;;  %v1881_v40 = vrot.slane %v8110_v36, 1  ;;  %v1982_v41 = vrot.slane %v8110_v36, 2  ;;  %v8111_v43 = vld [vmem:[%s11878_s22 + $0x50] sm:$0xff]  ;;  %v1981_v45 = vrot.slane %v8109_v28, 2 }
 0x241   : >> { %8556 = vmatprep.mubr.msk.f32.mxu0 %vm11199_vm6, %v11200_v17  ;;  %9061 = vmatprep.subr.bf16.mxu0 %v11198_v12  ;;  %v1680_v42 = vsel %vm907_vm3, %v1677_v29, %v1679_v38  ;;  %v1984_v48 = vrot.slane %v8111_v43, 2 }
 0x242   : >> { %8540 = vmatmul.mubr.msk.f32.vlgmr.msra.gmra.mrb[2].mxu1 %vm1149_vm4, %v1163_v23  ;;  %v1876_v23 = vld [vmem:[#allocation14 + $0xe8] sm:$0xff] }
 0x243   : >> { %8557 = vmatmul.mubr.msk.f32.vlgmr.msra.gmra.mrb[4].mxu0 %vm1149_vm4, %v1369_v47  ;;  %9057 = vmatpush3.bf16.msra.mxu1 %v9056_v46  ;;  %v9080_v27 = vpack.c.bf16 %v1876_v23, %v1875_v22  ;;  %v1983_v46 = vsel %vm907_vm3, %v1981_v45, %v1982_v41  ;;  %v1883_v47 = vrot.slane %v8111_v43, 1  ;;  %v1985_v51 = vsel %vm907_vm3, %v1982_v41, %v1984_v48 }
 0x244   : >> { %8542 = vmatprep.mubr.msk.f32.mxu1 %vm11199_vm6, %v11200_v17  ;;  %9063 = vmatpush3.bf16.msra.mxu0 %v9062_v49  ;;  %v8112_v49 = vld [vmem:[%s11878_s22 + $0x58] sm:$0x3] }
 0x245   : >> { %8559 = vmatprep.mubr.msk.f32.mxu0 %vm11199_vm6, %v11200_v17  ;;  %9058 = vmatprep.subr.bf16.mxu1 %v11198_v12  ;;  %v1884_v50 = vsel %vm875_vm2, %v1881_v40, %v1883_v47  ;;  %v1885_v52 = vrot.slane %v8112_v49, 1  ;;  %v1986_v53 = vrot.slane %v8112_v49, 2 }
 0x246   : >> { %9064 = vmatprep.subr.bf16.mxu0 %v11198_v12  ;;  %8543 = vmatmul.mubr.msk.f32.gmra.mrb[4].mxu1 %vm1149_vm4, %v1164_v26 }
 0x247   : >> { %8560 = vmatmul.mubr.msk.f32.gmra.mrb[6].mxu0 %vm1149_vm4, %v1371_v54  ;;  %8545 = vmatprep.mubr.msk.f32.mxu1 %vm11199_vm6, %v11200_v17  ;;  %v1886_v54 = vsel %vm875_vm2, %v1883_v47, %v1885_v52 }
 0x248   : >> { %9060 = vmatpush3.bf16.msra.mxu1 %v9059_v55  ;;  %8562 = vmatprep.mubr.msk.f32.mxu0 %vm11199_vm6, %v11200_v17  ;;  %v1987_v55 = vsel %vm907_vm3, %v1984_v48, %v1986_v53 }
 0x249   : >> { %9066 = vmatpush3.bf16.msra.mxu0 %v9065_v58  ;;  %9067 = vmatprep.subr.bf16.mxu1 %v11198_v12 }
 0x24a   : >> { %9073 = vmatprep.subr.bf16.mxu0 %v11198_v12  ;;  %8546 = vmatmul.mubr.msk.f32.gmra.mrb[6].mxu1 %vm1149_vm4, %v11881_v19  ;;  %v1675_v19 = vrot.slane %v11922_v60, 2 }
 0x24b   : >> { %8563 = vmatmul.mubr.msk.f32.gmra.mrb[8].mxu0 %vm1149_vm4, %v1373_v61  ;;  %8573 = vmatprep.mubr.msk.f32.mxu1 %vm11199_vm6, %v11200_v17 }
 0x24c   : >> { %8590 = vmatprep.mubr.msk.f32.mxu0 %vm11199_vm6, %v11200_v17  ;;  %v1676_v26 = vsel %vm907_vm3, %v1674_v14, %v1675_v19  ;;  %v1678_v35 = vsel %vm907_vm3, %v1675_v19, %v1677_v29 }
 0x24e   : >> { %8574 = vmatmul.mubr.msk.f32.vlgmr.msra.gmra.mrb[8].mxu1 %vm1149_vm4, %v11919_v59 }
 0x24f   : >> { %8591 = vmatmul.mubr.msk.f32.vlgmr.msra.gmra.mrb[10].mxu0 %vm1149_vm4, %v1575_v5  ;;  %9069 = vmatpush3.bf16.msra.mxu1 %v9068_v4 }
 0x250   : >> { %8576 = vmatprep.mubr.msk.f32.mxu1 %vm11199_vm6, %v11200_v17  ;;  %9075 = vmatpush3.bf16.msra.mxu0 %v9074_v7 }
 0x251   : >> { %8593 = vmatprep.mubr.msk.f32.mxu0 %vm11199_vm6, %v11200_v17  ;;  %9070 = vmatprep.subr.bf16.mxu1 %v11198_v12 }
 0x252   : >> { %9076 = vmatprep.subr.bf16.mxu0 %v11198_v12  ;;  %8577 = vmatmul.mubr.msk.f32.gmra.mrb[10].mxu1 %vm1149_vm4, %v11922_v60 }
 0x253   : >> { %8594 = vmatmul.mubr.msk.f32.gmra.mrb[12].mxu0 %vm1149_vm4, %v1577_v15  ;;  %8579 = vmatprep.mubr.msk.f32.mxu1 %vm11199_vm6, %v11200_v17 }
 0x254   : >> { %9072 = vmatpush3.bf16.msra.mxu1 %v9071_v16  ;;  %8596 = vmatprep.mubr.msk.f32.mxu0 %vm11199_vm6, %v11200_v17 }
 0x255   : >> { %9078 = vmatpush3.bf16.msra.mxu0 %v9077_v20  ;;  %9079 = vmatprep.subr.bf16.mxu1 %v11198_v12 }
 0x256   : >> { %9085 = vmatprep.subr.bf16.mxu0 %v11198_v12  ;;  %8580 = vmatmul.mubr.msk.f32.gmra.mrb[12].mxu1 %vm1149_vm4, %v11936_v1 }
 0x257   : >> { %8597 = vmatmul.mubr.msk.f32.gmra.mrb[14].mxu0 %vm1149_vm4, %v1579_v21  ;;  %8607 = vmatprep.mubr.msk.f32.mxu1 %vm11199_vm6, %v11200_v17 }
 0x258   : >> { %8624 = vmatprep.mubr.msk.f32.mxu0 %vm11199_vm6, %v11200_v17 }
 0x25a   : >> { %8608 = vmatmul.mubr.msk.f32.vlgmr.msra.gmra.mrb[14].mxu1 %vm1149_vm4, %v1676_v26 }
 0x25b   : >> { %8625 = vmatmul.mubr.msk.f32.vlgmr.msra.gmra.mrb[16].mxu0 %vm1149_vm4, %v8109_v28  ;;  %9081 = vmatpush3.bf16.msra.mxu1 %v9080_v27 }
 0x25c   : >> { %8610 = vmatprep.mubr.msk.f32.mxu1 %vm11199_vm6, %v11200_v17  ;;  %9087 = vmatpush3.bf16.msra.mxu0 %v9086_v30 }
 0x25d   : >> { %8627 = vmatprep.mubr.msk.f32.mxu0 %vm11199_vm6, %v11200_v17  ;;  %9082 = vmatprep.subr.bf16.mxu1 %v11198_v12 }
 0x25e   : >> { %9088 = vmatprep.subr.bf16.mxu0 %v11198_v12  ;;  %8611 = vmatmul.mubr.msk.f32.gmra.mrb[16].mxu1 %vm1149_vm4, %v1678_v35  ;;  %v1882_v12 = vsel %vm875_vm2, %v1880_v44, %v1881_v40 }
 0x25f   : >> { %8628 = vmatmul.mubr.msk.f32.gmra.mrb[18].mxu0 %vm1149_vm4, %v8110_v36  ;;  %8613 = vmatprep.mubr.msk.f32.mxu1 %vm11199_vm6, %v11200_v17 }
 0x260   : >> { %9084 = vmatpush3.bf16.msra.mxu1 %v9083_v37  ;;  %8630 = vmatprep.mubr.msk.f32.mxu0 %vm11199_vm6, %v11200_v17 }
 0x261   : >> { %9090 = vmatpush3.bf16.msra.mxu0 %v9089_v39 }
 0x262   : >> { %8614 = vmatmul.mubr.msk.f32.gmra.mrb[18].mxu1 %vm1149_vm4, %v1680_v42 }
 0x263   : >> { %8631 = vmatmul.mubr.msk.f32.gmra.mrb[20].mxu0 %vm1149_vm4, %v8111_v43  ;;  %8641 = vmatprep.mubr.msk.f32.mxu1 %vm11199_vm6, %v11200_v17 }
 0x264   : >> { %8658 = vmatprep.mubr.msk.f32.mxu0 %vm11199_vm6, %v11200_v17 }
 0x266   : >> { %8642 = vmatmul.mubr.msk.f32.vlgmr.msra.gmra.mrb[20].mxu1 %vm1149_vm4, %v1882_v12 }
 0x267   : >> { %8659 = vmatmul.mubr.msk.f32.vlgmr.msra.gmra.mrb[22].mxu0 %vm1149_vm4, %v1983_v46  ;;  %8644 = vmatprep.mubr.msk.f32.mxu1 %vm11199_vm6, %v11200_v17 }
 0x268   : >> { %8661 = vmatprep.mubr.msk.f32.mxu0 %vm11199_vm6, %v11200_v17 }
 0x26a   : >> { %8645 = vmatmul.mubr.msk.f32.gmra.mrb[22].mxu1 %vm1149_vm4, %v1884_v50 }
 0x26b   : >> { %8662 = vmatmul.mubr.msk.f32.gmra.mrb[24].mxu0 %vm1149_vm4, %v1985_v51  ;;  %8647 = vmatprep.mubr.msk.f32.mxu1 %vm11199_vm6, %v11200_v17 }
 0x26c   : >> { %8664 = vmatprep.mubr.msk.f32.mxu0 %vm11199_vm6, %v11200_v17 }
 0x26e   : >> { %8648 = vmatmul.mubr.msk.f32.gmra.mrb[24].mxu1 %vm1149_vm4, %v1886_v54 }
 0x26f   : >> { %8665 = vmatmul.mubr.msk.f32.gmra.mrb[26].mxu0 %vm1149_vm4, %v1987_v55 }
 0x30d   : >> { %v1271_v56 = vpop.f32.mrb[0].mxu1 }
 0x30e   : >> { %v1261_v58 = vpop.f32.mrb[0].mxu0  ;;  %v8530_v59 = vpop.f32.mrb[1].mxu1 }
 0x30f   : >> { %v8524_v60 = vpop.f32.mrb[1].mxu0 }
 0x312   : >> { %v1266_v61 = vpop.f32.mrb[2].mxu0 }
 0x313   : >> { %v8527_v0 = vpop.f32.mrb[3].mxu0 }
 0x315   : >> { %v1347_v57 = vpop.f32.mrb[2].mxu1 }
 0x316   : >> { %v1446_v62 = vpop.f32.mrb[4].mxu0  ;;  %v1348_v63 = vadd.f32 %v1347_v57, %v1261_v58  ;;  %v8541_v1 = vpop.f32.mrb[3].mxu1  ;;  %v8122_v58 = vld [vmem:[#allocation15] ss:$0 sm:$0xff] }
 0x317   : >> { %v8558_v2 = vpop.f32.mrb[5].mxu0 }
 0x318   : >> { %v1460_v3 = vadd.f32 %v1446_v62, %v1348_v63 }
 0x319   : >> { %v1352_v4 = vpop.f32.mrb[4].mxu1 }
 0x31a   : >> { %v1451_v17 = vpop.f32.mrb[6].mxu0  ;;  %v1353_v5 = vadd.f32 %v1352_v4, %v1266_v61  ;;  %v8544_v6 = vpop.f32.mrb[5].mxu1 }
 0x31b   : >> { %v8561_v7 = vpop.f32.mrb[7].mxu0 }
 0x31c   : >> { %v1461_v8 = vadd.f32 %v1451_v17, %v1353_v5 }
 0x31d   : >> { %v1357_v9 = vpop.f32.mrb[6].mxu1 }
 0x31e   : >> { %v1456_v10 = vpop.f32.mrb[8].mxu0  ;;  %v1358_v11 = vadd.f32 %v1357_v9, %v1271_v56  ;;  %v8547_v13 = vpop.f32.mrb[7].mxu1 }
 0x31f   : >> { %v8564_v15 = vpop.f32.mrb[9].mxu0  ;;  %v2096_v13 = vlaneseq (%p1157_p1) }
 0x320   : >> { %v1462_v16 = vadd.f32 %v1456_v10, %v1358_v11 }
 0x321   : >> { %v1550_v18 = vpop.f32.mrb[8].mxu1  ;;  %v12038_v15 = vshrl.u32 (%p1157_p1), %v2096_v13, 7 }
 0x322   : >> { %v1652_v20 = vpop.f32.mrb[10].mxu0  ;;  %v1564_v21 = vadd.f32 %v1550_v18, %v1460_v3  ;;  %v8575_v14 = vpop.f32.mrb[9].mxu1 }
 0x323   : >> { %v8592_v19 = vpop.f32.mrb[11].mxu0  ;;  %v2098_v18 = vadd.s32 (%p1157_p1), 8, %v12038_v15 }
 0x324   : >> { %v1666_v22 = vadd.f32 %v1652_v20, %v1564_v21  ;;  %v2101_v20 = vmul.u32 (%p1157_p1), 2, %v12038_v15  ;;  %v11201_v19 = vmov (%p1157_p1), 0.0  }
 0x325   : >> { %v1555_v23 = vpop.f32.mrb[10].mxu1  ;;  %v2102_v21 = vmul.u32 (%p1157_p1), 2, %v2098_v18 }
 0x326   : >> { %v1657_v25 = vpop.f32.mrb[12].mxu0  ;;  %v1565_v24 = vadd.f32 %v1555_v23, %v1461_v8  ;;  %v8578_v26 = vpop.f32.mrb[11].mxu1  ;;  %v2109_v14 = vadd.s32 (%p1157_p1), 1, %v2101_v20 }
 0x327   : >> { %v8595_v27 = vpop.f32.mrb[13].mxu0  ;;  %v2110_v23 = vadd.s32 (%p1157_p1), 1, %v2102_v21 }
 0x328   : >> { %v1667_v28 = vadd.f32 %v1657_v25, %v1565_v24 }
 0x329   : >> { %v1560_v29 = vpop.f32.mrb[12].mxu1 }
 0x32a   : >> { %v1662_v30 = vpop.f32.mrb[14].mxu0  ;;  %v1566_v31 = vadd.f32 %v1560_v29, %v1462_v16  ;;  %v8581_v32 = vpop.f32.mrb[13].mxu1  ;;  %v2100_v16 = vand.u32 (%p1157_p1), 127, %v2096_v13 }
 0x32b   : >> { %v8598_v33 = vpop.f32.mrb[15].mxu0 }
 0x32c   : >> { %v1668_v34 = vadd.f32 %v1662_v30, %v1566_v31  ;;  %vm2103_vm8 = vcmp.eq.s32.totalorder (%p1157_p1), %v2100_v16, %v2101_v20  ;;  %vm2104_vm9 = vcmp.eq.s32.totalorder (%p1157_p1), %v2100_v16, %v2102_v21  ;;  %vm2111_vm10 = vcmp.eq.s32.totalorder (%p1157_p1), %v2100_v16, %v2109_v14 }
 0x32d   : >> { %v1753_v35 = vpop.f32.mrb[14].mxu1  ;;  %v8124_v25 = vsel (%p1157_p1), %vm2104_vm9, 1.0, %v11201_v19  ;;  %v12047_v24 = vsel (%p1157_p1), %vm2111_vm10, 1.0, %v11201_v19  ;;  %vm2112_vm11 = vcmp.eq.s32.totalorder (%p1157_p1), %v2100_v16, %v2110_v23 }
 0x32e   : >> { %v1857_v36 = vpop.f32.mrb[16].mxu0  ;;  %v1767_v37 = vadd.f32 %v1753_v35, %v1666_v22  ;;  %v8609_v38 = vpop.f32.mrb[15].mxu1  ;;  %v12043_v22 = vsel (%p1157_p1), %vm2103_vm8, 1.0, %v11201_v19  ;;  %v8126_v26 = vsel (%p1157_p1), %vm2112_vm11, 1.0, %v11201_v19 }
 0x32f   : >> { %v8626_v39 = vpop.f32.mrb[17].mxu0 }
 0x330   : >> { %v1871_v40 = vadd.f32 %v1857_v36, %v1767_v37 }
 0x331   : >> { %v1758_v41 = vpop.f32.mrb[16].mxu1 }
 0x332   : >> { %v1862_v42 = vpop.f32.mrb[18].mxu0  ;;  %v1768_v43 = vadd.f32 %v1758_v41, %v1667_v28  ;;  %v8612_v44 = vpop.f32.mrb[17].mxu1 }
 0x333   : >> { %v8629_v45 = vpop.f32.mrb[19].mxu0 }
 0x334   : >> { %v1872_v12 = vadd.f32 %v1862_v42, %v1768_v43 }
 0x335   : >> { %v1763_v46 = vpop.f32.mrb[18].mxu1 }
 0x336   : >> { %v1867_v47 = vpop.f32.mrb[20].mxu0  ;;  %v1769_v48 = vadd.f32 %v1763_v46, %v1668_v34  ;;  %v8615_v49 = vpop.f32.mrb[19].mxu1 }
 0x337   : >> { %v8632_v50 = vpop.f32.mrb[21].mxu0 }
 0x338   : >> { %v1873_v51 = vadd.f32 %v1867_v47, %v1769_v48 }
 0x339   : >> { %v1959_v52 = vpop.f32.mrb[20].mxu1 }
 0x33a   : >> { %v2060_v53 = vpop.f32.mrb[22].mxu0  ;;  %v1973_v54 = vadd.f32 %v1959_v52, %v1871_v40  ;;  %v8643_v55 = vpop.f32.mrb[21].mxu1 }
 0x33b   : >> { %v8660_v56 = vpop.f32.mrb[23].mxu0 }
 0x33c   : >> { %v2074_v59 = vadd.f32 %v2060_v53, %v1973_v54 }
 0x33d   : >> { %v1964_v60 = vpop.f32.mrb[22].mxu1 }
 0x33e   : >> { %v2065_v61 = vpop.f32.mrb[24].mxu0  ;;  %v2084_v0 = vadd.f32 %v8122_v58, %v2074_v59  ;;  %v1974_v57 = vadd.f32 %v1964_v60, %v1872_v12  ;;  %v8646_v62 = vpop.f32.mrb[23].mxu1 }
 0x33f   : >> { %v8663_v63 = vpop.f32.mrb[25].mxu0 }
 0x340   : >> { %v2087_v1 = vmax.f32 %v2084_v0, 0.0  ;;  %v2075_v2 = vadd.f32 %v2065_v61, %v1974_v57 }
 0x341   : >> { %v1969_v3 = vpop.f32.mrb[24].mxu1 }
 0x342   : >> { %v2070_v4 = vpop.f32.mrb[26].mxu0  ;;  %2093 = vst.msk [vmem:[%s2091_s1] sm:$0xff] %vm2092_vm7, %v2087_v1  ;;  %v2085_v17 = vadd.f32 %v8122_v58, %v2075_v2  ;;  %v1975_v5 = vadd.f32 %v1969_v3, %v1873_v51  ;;  %v8649_v6 = vpop.f32.mrb[25].mxu1 }
 0x343   : >> { %v8666_v7 = vpop.f32.mrb[27].mxu0 }
 0x344   : >> { %v2088_v8 = vmax.f32 %v2085_v17, 0.0  ;;  %v2076_v9 = vadd.f32 %v2070_v4, %v1975_v5  ;;  %1159 = sbr.rel (!%p1157_p1) target bundleno = 560 (0x230), region = 277 }
 0x346   : >> { %2094 = vst.msk [vmem:[%s2091_s1 + $0x8] sm:$0xff] %vm2092_vm7, %v2088_v8  ;;  %v2086_v10 = vadd.f32 %v8122_v58, %v2076_v9 }
 0x348   : >> { %v2089_v11 = vmax.f32 %v2086_v10, 0.0 }
 0x34a   : >> { %2095 = vst.msk [vmem:[%s2091_s1 + $0x10] sm:$0xff] %vm2092_vm7, %v2089_v11 }
 0x34b LB: >> { %vm2138_vm12 = vcmask 195584   ;;  %s8128_s25 = smul.u32 48, %s11166_s28  ;;  %s8138_s30 = sshll.u32 %s11166_s28, 4  ;;  %vm2307_vm13 = vcmask 519168   ;;  %s11166_s28 = sphi %s12050_s28, %s2122_s28  }
 0x34c   : >> { %8673 = vmatprep.mubr.msk.f32.mxu0 %vm2138_vm12, %v12043_v22  ;;  %8682 = vmatprep.mubr.msk.f32.mxu1 %vm2138_vm12, %v12047_v24  ;;  %s2304_s23 = scalar_lea.vmem [#allocation5], %s8138_s30  ;;  %s2122_s28 = sadd.s32 1, %s11166_s28  }
 0x34d   : >> { %s2125_s17 = scalar_lea.vmem [#allocation4], %s8128_s25  ;;  %p2119_p0 = scmp.ge.s32.totalorder %s2122_s28, 12  }
 0x34e   : > { %s12067_s24 = smov (%p2119_p0), 0  }
 0x351   : >> { %v2126_v27 = vld [vmem:[%s2125_s17] sm:$0xff]  ;;  %v2127_v28 = vld [vmem:[%s2125_s17 + $0x8] sm:$0xff]  ;;  %v8131_v29 = vld [vmem:[%s2125_s17 + $0x18] sm:$0xff] }
 0x352   : >> { %v8132_v30 = vld [vmem:[%s2125_s17 + $0x20] sm:$0xff]  ;;  %v2135_v31 = vmax.f32 %v2126_v27, %v8131_v29  ;;  %v2128_v32 = vld [vmem:[%s2125_s17 + $0x10] sm:$0xff]  ;;  %v8133_v33 = vld [vmem:[%s2125_s17 + $0x28] sm:$0xff] }
 0x353   : >> { %v2136_v34 = vmax.f32 %v2127_v28, %v8132_v30  ;;  %v2137_v36 = vmax.f32 %v2128_v32, %v8133_v33 }
 0x355   : >> { %v9091_v35 = vpack.c.bf16 %v2136_v34, %v2135_v31 }
 0x357   : >> { %9092 = vmatprep.subr.bf16.mxu0 %v9091_v35  ;;  %9096 = vmatprep.subr.bf16.mxu1 %v9091_v35 }
 0x358   : >> { %9094 = vmatpush3.bf16.msra.mxu0 %v9091_v35  ;;  %9098 = vmatpush3.bf16.msra.mxu1 %v9091_v35 }
 0x359   : >> { %8671 = vmatprep.subr.mxu0 %v2137_v36  ;;  %8680 = vmatprep.subr.mxu1 %v2137_v36 }
 0x35c   : >> { %8672 = vmatpush3.msra.mxu0 %v2137_v36  ;;  %8681 = vmatpush3.msra.mxu1 %v2137_v36 }
 0x35d   : >> { %8674 = vmatmul.mubr.msk.f32.vlgmr.msra.gmra.mrb[0].mxu0 %vm2138_vm12, %v8124_v25  ;;  %8683 = vmatmul.mubr.msk.f32.vlgmr.msra.gmra.mrb[0].mxu1 %vm2138_vm12, %v8126_v26 }
 0x42e   : > { %2121 = sbr.rel (!%p2119_p0) target bundleno = 843 (0x34b), region = 288 }
 0x430   : >> { %v8675_v37 = vpop.f32.mrb[0].mxu0  ;;  %v8684_v38 = vpop.f32.mrb[0].mxu1 }
 0x431   : >> { %v2302_v39 = vmax.f32 %v8675_v37, %v8684_v38  ;;  %v2211_v40 = vpop.f32.mrb[1].mxu0  ;;  %v2292_v41 = vpop.f32.mrb[1].mxu1 }
 0x432   : >> { %v2301_v42 = vmax.f32 %v2211_v40, %v2292_v41 }
 0x433   : >> { %2308 = vst.msk [vmem:[%s2304_s23 + $0x8] sm:$0xf] %vm2307_vm13, %v2302_v39 }
 0x434   : >> { %2306 = vst.msk [vmem:[%s2304_s23] sm:$0xff] %vm2092_vm7, %v2301_v42 }
 0x435 LB: >> { %v2328_v43 = vld [vmem:[#allocation17 + $0x40] sm:$0xff]  ;;  %v2329_v44 = vld [vmem:[#allocation17 + $0x48] sm:$0xff]  ;;  %v2330_v47 = vld [vmem:[#allocation17 + $0x50] sm:$0xff]  ;;  %s8139_s15 = sshll.u32 %s11170_s24, 4  ;;  %vm3174_vm14 = vcmask 517120   ;;  %s2314_s24 = sadd.s32 1, %s11170_s24   ;;  %s11170_s24 = sphi %s12067_s24, %s2314_s24  }
 0x436   : >> { %v2693_v45 = vld [vmem:[#allocation17 + $0x100] sm:$0xff]  ;;  %v9099_v12 = vpack.c.bf16 %v2329_v44, %v2328_v43  ;;  %v2694_v46 = vld [vmem:[#allocation17 + $0x108] sm:$0xff]  ;;  %v2331_v48 = vld [vmem:[#allocation17 + $0x58] sm:$0xff]  ;;  %s12075_s16 = scalar_lea.vmem [#allocation5], %s8139_s15  ;;  %s3172_s21 = scalar_lea.vmem [#allocation6], %s8139_s15 }
 0x437   : >> { %v9163_v49 = vpack.c.bf16 %v2694_v46, %v2693_v45  ;;  %v9103_v50 = vpack.c.bf16 %v2331_v48, %v2330_v47  ;;  %v2695_v51 = vld [vmem:[#allocation17 + $0x110] sm:$0xff]  ;;  %v2696_v52 = vld [vmem:[#allocation17 + $0x118] sm:$0xff]  ;;  %v2332_v53 = vld [vmem:[#allocation17 + $0x60] sm:$0xff]  ;;  %p2311_p6 = scmp.ge.s32.totalorder %s2314_s24, 10  }
 0x438   : >> { %9100 = vmatprep.subr.bf16.mxu1 %v9099_v12  ;;  %v9167_v54 = vpack.c.bf16 %v2696_v52, %v2695_v51  ;;  %v2333_v55 = vld [vmem:[#allocation17 + $0x68] sm:$0xff]  ;;  %v2697_v56 = vld [vmem:[#allocation17 + $0x120] sm:$0xff]  ;;  %v2334_v57 = vld [vmem:[#allocation17 + $0x70] sm:$0xff]  ;;  %s12143_s14 = smov (%p2311_p6), 0  }
 0x439   : >> { %v2698_v58 = vld [vmem:[#allocation17 + $0x128] sm:$0xff]  ;;  %9164 = vmatprep.subr.bf16.mxu0 %v9163_v49  ;;  %9102 = vmatpush3.bf16.msra.mxu1 %v9099_v12  ;;  %v9107_v59 = vpack.c.bf16 %v2333_v55, %v2332_v53  ;;  %v2335_v62 = vld [vmem:[#allocation17 + $0x78] sm:$0xff]  ;;  %v2699_v3 = vld [vmem:[#allocation17 + $0x130] sm:$0xff] }
 0x43a   : >> { %9166 = vmatpush3.bf16.msra.mxu0 %v9163_v49  ;;  %9104 = vmatprep.subr.bf16.mxu1 %v9103_v50  ;;  %v9171_v0 = vpack.c.bf16 %v2698_v58, %v2697_v56  ;;  %v2700_v4 = vld [vmem:[#allocation17 + $0x138] sm:$0xff]  ;;  %v9111_v8 = vpack.c.bf16 %v2335_v62, %v2334_v57  ;;  %v2319_v10 = vld [vmem:[#allocation17] sm:$0xff]  ;;  %v2320_v11 = vld [vmem:[#allocation17 + $0x8] sm:$0xff] }
 0x43b   : >> { %v12078_v60 = vld [vmem:[%s12075_s16] sm:$0xff]  ;;  %v12081_v61 = vld [vmem:[%s12075_s16 + $0x8] sm:$0xf]  ;;  %9168 = vmatprep.subr.bf16.mxu0 %v9167_v54  ;;  %v12086_v2 = vld [vmem:[%s12075_s16 + $0x10] sm:$0xff]  ;;  %v9175_v9 = vpack.c.bf16 %v2700_v4, %v2699_v3  ;;  %v9115_v20 = vpack.c.bf16 %v2320_v11, %v2319_v10 }
 0x43c   : >> { %v2339_v63 = vrot.slane %v12078_v60, 1  ;;  %v2340_v1 = vrot.slane %v12081_v61, 1  ;;  %v12089_v17 = vld [vmem:[%s12075_s16 + $0x18] sm:$0xf]  ;;  %v2701_v5 = vrot.slane %v12086_v2, 1  ;;  %v2786_v16 = vld [vmem:[#allocation17 + $0x140] sm:$0xff] }
 0x43d   : >> { %9106 = vmatpush3.bf16.msra.mxu1 %v9103_v50  ;;  %v2702_v7 = vrot.slane %v12089_v17, 1  ;;  %v2787_v18 = vld [vmem:[#allocation17 + $0x148] sm:$0xff]  ;;  %v2321_v14 = vld [vmem:[#allocation17 + $0x10] sm:$0xff]  ;;  %v2322_v23 = vld [vmem:[#allocation17 + $0x18] sm:$0xff]  ;;  %v2794_v27 = vrot.slane %v12086_v2, 2  ;;  %v2795_v28 = vrot.slane %v12089_v17, 2 }
 0x43e   : >> { %v2341_v6 = vsel %vm875_vm2, %v2339_v63, %v2340_v1  ;;  %9170 = vmatpush3.bf16.msra.mxu0 %v9167_v54  ;;  %9108 = vmatprep.subr.bf16.mxu1 %v9107_v59  ;;  %v9179_v21 = vpack.c.bf16 %v2787_v18, %v2786_v16  ;;  %v2788_v25 = vld [vmem:[#allocation17 + $0x150] sm:$0xff]  ;;  %v2789_v26 = vld [vmem:[#allocation17 + $0x158] sm:$0xff]  ;;  %v9119_v29 = vpack.c.bf16 %v2322_v23, %v2321_v14  ;;  %v2323_v31 = vld [vmem:[#allocation17 + $0x20] sm:$0xff]  ;;  %v2511_v53 = vrot.slane %v12078_v60, 2 }
 0x43f   : >> { %9172 = vmatprep.subr.bf16.mxu0 %v9171_v0  ;;  %8701 = vmatprep.mubr.msk.f32.mxu1 %vm2092_vm7, %v2341_v6  ;;  %v2703_v13 = vsel %vm875_vm2, %v2701_v5, %v2702_v7  ;;  %v9183_v30 = vpack.c.bf16 %v2789_v26, %v2788_v25  ;;  %v2324_v32 = vld [vmem:[#allocation17 + $0x28] sm:$0xff]  ;;  %v2790_v33 = vld [vmem:[#allocation17 + $0x160] sm:$0xff]  ;;  %v2796_v35 = vsel %vm907_vm3, %v2794_v27, %v2795_v28  ;;  %v2325_v38 = vld [vmem:[#allocation17 + $0x30] sm:$0xff]  ;;  %v2512_v54 = vrot.slane %v12081_v61, 2 }
 0x440   : >> { %8777 = vmatprep.mubr.msk.f32.mxu0 %vm2092_vm7, %v2703_v13  ;;  %v2791_v34 = vld [vmem:[#allocation17 + $0x168] sm:$0xff]  ;;  %v9123_v36 = vpack.c.bf16 %v2324_v32, %v2323_v31  ;;  %v2326_v39 = vld [vmem:[#allocation17 + $0x38] sm:$0xff]  ;;  %v2792_v40 = vld [vmem:[#allocation17 + $0x170] sm:$0xff] }
 0x441   : >> { %9110 = vmatpush3.bf16.msra.mxu1 %v9107_v59  ;;  %v9187_v37 = vpack.c.bf16 %v2791_v34, %v2790_v33  ;;  %v2793_v41 = vld [vmem:[#allocation17 + $0x178] sm:$0xff]  ;;  %v9127_v42 = vpack.c.bf16 %v2326_v39, %v2325_v38  ;;  %v2502_v44 = vld [vmem:[#allocation17 + $0x80] sm:$0xff]  ;;  %v2503_v45 = vld [vmem:[#allocation17 + $0x88] sm:$0xff]  ;;  %v2513_v62 = vsel %vm907_vm3, %v2511_v53, %v2512_v54 }
 0x442   : >> { %9174 = vmatpush3.bf16.msra.mxu0 %v9171_v0  ;;  %9112 = vmatprep.subr.bf16.mxu1 %v9111_v8  ;;  %v9191_v43 = vpack.c.bf16 %v2793_v41, %v2792_v40  ;;  %v2884_v12 = vld [vmem:[#allocation17 + $0x180] sm:$0xff]  ;;  %v2885_v46 = vld [vmem:[#allocation17 + $0x188] sm:$0xff]  ;;  %v9131_v47 = vpack.c.bf16 %v2503_v45, %v2502_v44  ;;  %v2504_v49 = vld [vmem:[#allocation17 + $0x90] sm:$0xff] }
 0x443   : >> { %9176 = vmatprep.subr.bf16.mxu0 %v9175_v9  ;;  %v9195_v48 = vpack.c.bf16 %v2885_v46, %v2884_v12  ;;  %v2505_v50 = vld [vmem:[#allocation17 + $0x98] sm:$0xff]  ;;  %v2886_v51 = vld [vmem:[#allocation17 + $0x190] sm:$0xff]  ;;  %v2506_v58 = vld [vmem:[#allocation17 + $0xa0] sm:$0xff] }
 0x444   : >> { %v2887_v52 = vld [vmem:[#allocation17 + $0x198] sm:$0xff]  ;;  %v9135_v55 = vpack.c.bf16 %v2505_v50, %v2504_v49  ;;  %v2507_v59 = vld [vmem:[#allocation17 + $0xa8] sm:$0xff]  ;;  %v2888_v0 = vld [vmem:[#allocation17 + $0x1a0] sm:$0xff] }
 0x445   : >> { %9114 = vmatpush3.bf16.msra.mxu1 %v9111_v8  ;;  %v9199_v56 = vpack.c.bf16 %v2887_v52, %v2886_v51  ;;  %v2889_v57 = vld [vmem:[#allocation17 + $0x1a8] sm:$0xff]  ;;  %v9139_v63 = vpack.c.bf16 %v2507_v59, %v2506_v58  ;;  %v2508_v3 = vld [vmem:[#allocation17 + $0xb0] sm:$0xff]  ;;  %v2509_v4 = vld [vmem:[#allocation17 + $0xb8] sm:$0xff] }
 0x446   : >> { %9178 = vmatpush3.bf16.msra.mxu0 %v9175_v9  ;;  %9116 = vmatprep.subr.bf16.mxu1 %v9115_v20  ;;  %v2890_v5 = vld [vmem:[#allocation17 + $0x1b0] sm:$0xff]  ;;  %v9143_v6 = vpack.c.bf16 %v2509_v4, %v2508_v3  ;;  %v2601_v8 = vld [vmem:[#allocation17 + $0xc0] sm:$0xff]  ;;  %v2602_v9 = vld [vmem:[#allocation17 + $0xc8] sm:$0xff] }
 0x447   : >> { %9180 = vmatprep.subr.bf16.mxu0 %v9179_v21  ;;  %v2976_v10 = vld [vmem:[#allocation17 + $0x1c0] sm:$0xff]  ;;  %v2977_v11 = vld [vmem:[#allocation17 + $0x1c8] sm:$0xff]  ;;  %v9147_v13 = vpack.c.bf16 %v2602_v9, %v2601_v8  ;;  %v2603_v18 = vld [vmem:[#allocation17 + $0xd0] sm:$0xff] }
 0x448   : >> { %8702 = vmatmul.mubr.msk.f32.vlgmr.msra.gmra.mrb[0].mxu1 %vm2092_vm7, %v2340_v1  ;;  %v9203_v1 = vpack.c.bf16 %v2889_v57, %v2888_v0  ;;  %v9211_v16 = vpack.c.bf16 %v2977_v11, %v2976_v10  ;;  %v2978_v14 = vld [vmem:[#allocation17 + $0x1d0] sm:$0xff]  ;;  %v2979_v23 = vld [vmem:[#allocation17 + $0x1d8] sm:$0xff]  ;;  %v2980_v31 = vld [vmem:[#allocation17 + $0x1e0] sm:$0xff] }
 0x449   : >> { %9118 = vmatpush3.bf16.msra.mxu1 %v9115_v20  ;;  %8778 = vmatmul.mubr.msk.f32.vlgmr.msra.gmra.mrb[0].mxu0 %vm2092_vm7, %v2702_v7  ;;  %v2604_v20 = vld [vmem:[#allocation17 + $0xd8] sm:$0xff]  ;;  %v2981_v32 = vld [vmem:[#allocation17 + $0x1e8] sm:$0xff]  ;;  %v2982_v38 = vld [vmem:[#allocation17 + $0x1f0] sm:$0xff] }
 0x44a   : >> { %9182 = vmatpush3.bf16.msra.mxu0 %v9179_v21  ;;  %9120 = vmatprep.subr.bf16.mxu1 %v9119_v29  ;;  %v12118_v21 = vld [vmem:[%s12075_s16 + $0x28] sm:$0xf]  ;;  %v9151_v27 = vpack.c.bf16 %v2604_v20, %v2603_v18  ;;  %v2983_v39 = vld [vmem:[#allocation17 + $0x1f8] sm:$0xff]  ;;  %v3071_v12 = vld [vmem:[#allocation17 + $0x210] sm:$0xff] }
 0x44b   : >> { %9184 = vmatprep.subr.bf16.mxu0 %v9183_v30  ;;  %8720 = vmatprep.mubr.msk.f32.mxu1 %vm2092_vm7, %v12078_v60  ;;  %v12112_v60 = vld [vmem:[%s12075_s16 + $0x20] sm:$0xff]  ;;  %v2985_v26 = vrot.slane %v12118_v21, 1  ;;  %v9223_v41 = vpack.c.bf16 %v2983_v39, %v2982_v38  ;;  %v3072_v46 = vld [vmem:[#allocation17 + $0x218] sm:$0xff]  ;;  %v3075_v52 = vld [vmem:[#allocation17 + $0x230] sm:$0xff] }
 0x44c   : >> { %8796 = vmatprep.mubr.msk.f32.mxu0 %vm2092_vm7, %v2796_v35  ;;  %v2984_v25 = vrot.slane %v12112_v60, 1  ;;  %v9219_v35 = vpack.c.bf16 %v2981_v32, %v2980_v31  ;;  %v3077_v45 = vrot.slane %v12112_v60, 2  ;;  %v3073_v49 = vld [vmem:[#allocation17 + $0x220] sm:$0xff]  ;;  %v3074_v50 = vld [vmem:[#allocation17 + $0x228] sm:$0xff]  ;;  %v3076_v53 = vld [vmem:[#allocation17 + $0x238] sm:$0xff] }
 0x44d   : >> { %9122 = vmatpush3.bf16.msra.mxu1 %v9119_v29  ;;  %v2605_v29 = vld [vmem:[#allocation17 + $0xe0] sm:$0xff]  ;;  %v9235_v51 = vpack.c.bf16 %v3074_v50, %v3073_v49 }
 0x44e   : >> { %9186 = vmatpush3.bf16.msra.mxu0 %v9183_v30  ;;  %9124 = vmatprep.subr.bf16.mxu1 %v9123_v36  ;;  %v2606_v30 = vld [vmem:[#allocation17 + $0xe8] sm:$0xff]  ;;  %v2986_v33 = vsel %vm875_vm2, %v2984_v25, %v2985_v26  ;;  %v8164_v58 = vld [vmem:[#allocation18] ss:$0 sm:$0xff] }
 0x44f   : >> { %9188 = vmatprep.subr.bf16.mxu0 %v9187_v37  ;;  %v9155_v34 = vpack.c.bf16 %v2606_v30, %v2605_v29 }
 0x451   : >> { %9126 = vmatpush3.bf16.msra.mxu1 %v9123_v36  ;;  %v2607_v36 = vld [vmem:[#allocation17 + $0xf0] sm:$0xff] }
 0x452   : >> { %9190 = vmatpush3.bf16.msra.mxu0 %v9187_v37  ;;  %9128 = vmatprep.subr.bf16.mxu1 %v9127_v42  ;;  %v2608_v37 = vld [vmem:[#allocation17 + $0xf8] sm:$0xff] }
 0x453   : >> { %9192 = vmatprep.subr.bf16.mxu0 %v9191_v43  ;;  %v9159_v40 = vpack.c.bf16 %v2608_v37, %v2607_v36 }
 0x455   : >> { %9130 = vmatpush3.bf16.msra.mxu1 %v9127_v42  ;;  %v3069_v42 = vld [vmem:[#allocation17 + $0x200] sm:$0xff] }
 0x456   : >> { %9194 = vmatpush3.bf16.msra.mxu0 %v9191_v43  ;;  %9132 = vmatprep.subr.bf16.mxu1 %v9131_v47  ;;  %v3070_v43 = vld [vmem:[#allocation17 + $0x208] sm:$0xff] }
 0x457   : >> { %9196 = vmatprep.subr.bf16.mxu0 %v9195_v48  ;;  %v9227_v44 = vpack.c.bf16 %v3070_v43, %v3069_v42 }
 0x458   : >> { %8721 = vmatmul.mubr.msk.f32.vlgmr.msra.gmra.mrb[0].mxu1 %vm2092_vm7, %v12081_v61  ;;  %v2891_v61 = vld [vmem:[#allocation17 + $0x1b8] sm:$0xff] }
 0x459   : >> { %9134 = vmatpush3.bf16.msra.mxu1 %v9131_v47  ;;  %8797 = vmatmul.mubr.msk.f32.vlgmr.msra.gmra.mrb[0].mxu0 %vm2092_vm7, %v2795_v28  ;;  %v9207_v7 = vpack.c.bf16 %v2891_v61, %v2890_v5  ;;  %v9215_v28 = vpack.c.bf16 %v2979_v23, %v2978_v14  ;;  %v9231_v47 = vpack.c.bf16 %v3072_v46, %v3071_v12 }
 0x45a   : >> { %9198 = vmatpush3.bf16.msra.mxu0 %v9195_v48  ;;  %9136 = vmatprep.subr.bf16.mxu1 %v9135_v55 }
 0x45b   : >> { %9200 = vmatprep.subr.bf16.mxu0 %v9199_v56  ;;  %8739 = vmatprep.mubr.msk.f32.mxu1 %vm2092_vm7, %v2513_v62 }
 0x45c   : >> { %8815 = vmatprep.mubr.msk.f32.mxu0 %vm2092_vm7, %v12112_v60 }
 0x45d   : >> { %9138 = vmatpush3.bf16.msra.mxu1 %v9135_v55 }
 0x45e   : >> { %9202 = vmatpush3.bf16.msra.mxu0 %v9199_v56  ;;  %9140 = vmatprep.subr.bf16.mxu1 %v9139_v63 }
 0x45f   : >> { %9204 = vmatprep.subr.bf16.mxu0 %v9203_v1 }
 0x461   : >> { %9142 = vmatpush3.bf16.msra.mxu1 %v9139_v63 }
 0x462   : >> { %9206 = vmatpush3.bf16.msra.mxu0 %v9203_v1  ;;  %9144 = vmatprep.subr.bf16.mxu1 %v9143_v6 }
 0x463   : >> { %9208 = vmatprep.subr.bf16.mxu0 %v9207_v7 }
 0x465   : >> { %9146 = vmatpush3.bf16.msra.mxu1 %v9143_v6 }
 0x466   : >> { %9210 = vmatpush3.bf16.msra.mxu0 %v9207_v7  ;;  %9148 = vmatprep.subr.bf16.mxu1 %v9147_v13 }
 0x467   : >> { %9212 = vmatprep.subr.bf16.mxu0 %v9211_v16 }
 0x468   : >> { %8740 = vmatmul.mubr.msk.f32.vlgmr.msra.gmra.mrb[0].mxu1 %vm2092_vm7, %v2512_v54  ;;  %v9239_v54 = vpack.c.bf16 %v3076_v53, %v3075_v52 }
 0x469   : >> { %9150 = vmatpush3.bf16.msra.mxu1 %v9147_v13  ;;  %8816 = vmatmul.mubr.msk.f32.vlgmr.msra.gmra.mrb[0].mxu0 %vm2092_vm7, %v12118_v21 }
 0x46a   : >> { %9214 = vmatpush3.bf16.msra.mxu0 %v9211_v16  ;;  %9152 = vmatprep.subr.bf16.mxu1 %v9151_v27 }
 0x46b   : >> { %9216 = vmatprep.subr.bf16.mxu0 %v9215_v28  ;;  %8758 = vmatprep.mubr.msk.f32.mxu1 %vm2092_vm7, %v12086_v2  ;;  %v3078_v2 = vrot.slane %v12118_v21, 2 }
 0x46c   : >> { %8834 = vmatprep.mubr.msk.f32.mxu0 %vm2092_vm7, %v2986_v33 }
 0x46d   : >> { %9154 = vmatpush3.bf16.msra.mxu1 %v9151_v27  ;;  %v3079_v48 = vsel %vm907_vm3, %v3077_v45, %v3078_v2 }
 0x46e   : >> { %9218 = vmatpush3.bf16.msra.mxu0 %v9215_v28  ;;  %9156 = vmatprep.subr.bf16.mxu1 %v9155_v34 }
 0x46f   : >> { %9220 = vmatprep.subr.bf16.mxu0 %v9219_v35 }
 0x471   : >> { %9158 = vmatpush3.bf16.msra.mxu1 %v9155_v34 }
 0x472   : >> { %9222 = vmatpush3.bf16.msra.mxu0 %v9219_v35  ;;  %9160 = vmatprep.subr.bf16.mxu1 %v9159_v40 }
 0x473   : >> { %9224 = vmatprep.subr.bf16.mxu0 %v9223_v41 }
 0x475   : >> { %9162 = vmatpush3.bf16.msra.mxu1 %v9159_v40 }
 0x476   : >> { %9226 = vmatpush3.bf16.msra.mxu0 %v9223_v41 }
 0x477   : >> { %9228 = vmatprep.subr.bf16.mxu0 %v9227_v44 }
 0x478   : >> { %8759 = vmatmul.mubr.msk.f32.vlgmr.msra.gmra.mrb[0].mxu1 %vm2092_vm7, %v12089_v17 }
 0x479   : >> { %8835 = vmatmul.mubr.msk.f32.vlgmr.msra.gmra.mrb[0].mxu0 %vm2092_vm7, %v2985_v26 }
 0x47a   : >> { %9230 = vmatpush3.bf16.msra.mxu0 %v9227_v44  ;;  %8853 = vmatprep.mubr.msk.f32.mxu0 %vm2092_vm7, %v3079_v48 }
 0x47b   : >> { %9232 = vmatprep.subr.bf16.mxu0 %v9231_v47 }
 0x47e   : >> { %9234 = vmatpush3.bf16.msra.mxu0 %v9231_v47 }
 0x47f   : >> { %9236 = vmatprep.subr.bf16.mxu0 %v9235_v51 }
 0x482   : >> { %9238 = vmatpush3.bf16.msra.mxu0 %v9235_v51 }
 0x483   : >> { %9240 = vmatprep.subr.bf16.mxu0 %v9239_v54 }
 0x486   : >> { %9242 = vmatpush3.bf16.msra.mxu0 %v9239_v54 }
 0x489   : >> { %8854 = vmatmul.mubr.msk.f32.vlgmr.msra.gmra.mrb[0].mxu0 %vm2092_vm7, %v3078_v2 }
 0x54b   : >> { %v8760_v17 = vpop.f32.mrb[0].mxu1 }
 0x54c   : >> { %v2681_v55 = vpop.f32.mrb[1].mxu1 }
 0x55c   : >> { %v8855_v56 = vpop.f32.mrb[0].mxu0 }
 0x55d   : >> { %v10443_v59 = vadd.f32 %v8855_v56, %v8760_v17  ;;  %v3150_v0 = vpop.f32.mrb[1].mxu0 }
 0x55e   : >> { %v10444_v57 = vadd.f32 %v3150_v0, %v2681_v55  ;;  %2313 = sbr.rel (!%p2311_p6) target bundleno = 1077 (0x435), region = 299 }
 0x55f   : >> { %v3169_v62 = vadd.f32 %v10443_v59, %v8164_v58 }
 0x560   : >> { %v3168_v60 = vadd.f32 %v10444_v57, %v8164_v58 }
 0x561   : >> { %v3171_v63 = vmax.f32 %v3169_v62, 0.0 }
 0x562   : >> { %v3170_v1 = vmax.f32 %v3168_v60, 0.0 }
 0x563   : >> { %3175 = vst.msk [vmem:[%s3172_s21 + $0x8] sm:$0x3] %vm3174_vm14, %v3171_v63 }
 0x564   : >> { %3173 = vst.msk [vmem:[%s3172_s21] sm:$0xff] %vm2092_vm7, %v3170_v1 }
 0x565 LB: >> { %v3195_v3 = vld [vmem:[#allocation20 + $0x40] sm:$0xff]  ;;  %v3196_v4 = vld [vmem:[#allocation20 + $0x48] sm:$0xff]  ;;  %v11202_v61 = vmov 0.0|0.0   ;;  %v3197_v8 = vld [vmem:[#allocation20 + $0x50] sm:$0xff]  ;;  %vm11203_vm15 = vmmov 0   ;;  %v11204_v16 = vmov 0.0   ;;  %s11174_s14 = sphi %s12143_s14, %s3181_s14  }
 0x566   : >> { %v3186_v5 = vld [vmem:[#allocation20] sm:$0xff]  ;;  %9243 = vmatprep.subr.bf16.mxu0 %v11202_v61  ;;  %v9244_v6 = vpack.c.bf16 %v3196_v4, %v3195_v3  ;;  %9255 = vmatprep.subr.bf16.mxu1 %v11202_v61  ;;  %v3187_v7 = vld [vmem:[#allocation20 + $0x8] sm:$0xff]  ;;  %v3198_v9 = vld [vmem:[#allocation20 + $0x58] sm:$0xff]  ;;  %s8165_s6 = sshll.u32 %s11174_s14, 4  ;;  %s8182_s19 = sshll.u32 %s11174_s14, 3 }
 0x567   : >> { %v9256_v10 = vpack.c.bf16 %v3187_v7, %v3186_v5  ;;  %v3188_v11 = vld [vmem:[#allocation20 + $0x10] sm:$0xff]  ;;  %v3189_v13 = vld [vmem:[#allocation20 + $0x18] sm:$0xff]  ;;  %8872 = vmatprep.mubr.msk.f32.mxu0 %vm11203_vm15, %v11204_v16  ;;  %8891 = vmatprep.mubr.msk.f32.mxu1 %vm11203_vm15, %v11204_v16  ;;  %v9247_v18 = vpack.c.bf16 %v3198_v9, %v3197_v8  ;;  %v3199_v21 = vld [vmem:[#allocation20 + $0x60] sm:$0xff]  ;;  %s12158_s4 = scalar_lea.vmem [#allocation6], %s8165_s6  ;;  %s3968_s2 = scalar_lea.vmem [#allocation7], %s8182_s19 }
 0x568   : >> { %9245 = vmatpush3.bf16.msra.mxu0 %v9244_v6  ;;  %v9259_v20 = vpack.c.bf16 %v3189_v13, %v3188_v11  ;;  %v3200_v14 = vld [vmem:[#allocation20 + $0x68] sm:$0xff]  ;;  %v3190_v23 = vld [vmem:[#allocation20 + $0x20] sm:$0xff]  ;;  %v3201_v27 = vld [vmem:[#allocation20 + $0x70] sm:$0xff]  ;;  %s3181_s14 = sadd.s32 1, %s11174_s14  }
 0x569   : >> { %9257 = vmatpush3.bf16.msra.mxu1 %v9256_v10  ;;  %9246 = vmatprep.subr.bf16.mxu0 %v11202_v61  ;;  %v3191_v25 = vld [vmem:[#allocation20 + $0x28] sm:$0xff]  ;;  %v9250_v26 = vpack.c.bf16 %v3200_v14, %v3199_v21  ;;  %v3202_v29 = vld [vmem:[#allocation20 + $0x78] sm:$0xff]  ;;  %v3192_v32 = vld [vmem:[#allocation20 + $0x30] sm:$0xff]  ;;  %p3178_p5 = scmp.ge.s32.totalorder %s3181_s14, 8  }
 0x56a   : >> { %9258 = vmatprep.subr.bf16.mxu1 %v11202_v61  ;;  %v9262_v28 = vpack.c.bf16 %v3191_v25, %v3190_v23  ;;  %v3193_v33 = vld [vmem:[#allocation20 + $0x38] sm:$0xff]  ;;  %v9253_v34 = vpack.c.bf16 %v3202_v29, %v3201_v27  ;;  %v3355_v38 = vld [vmem:[#allocation20 + $0x80] sm:$0xff]  ;;  %v3356_v39 = vld [vmem:[#allocation20 + $0x88] sm:$0xff]  ;;  %s12239_s22 = smov (%p3178_p5), 0  }
 0x56b   : >> { %v12161_v30 = vld [vmem:[%s12158_s4] sm:$0xff]  ;;  %v12164_v31 = vld [vmem:[%s12158_s4 + $0x8] sm:$0x3]  ;;  %v9265_v37 = vpack.c.bf16 %v3193_v33, %v3192_v32  ;;  %v9268_v43 = vpack.c.bf16 %v3356_v39, %v3355_v38  ;;  %v3357_v45 = vld [vmem:[#allocation20 + $0x90] sm:$0xff] }
 0x56c   : >> { %9248 = vmatpush3.bf16.msra.mxu0 %v9247_v18  ;;  %v3206_v35 = vrot.slane %v12161_v30, 1  ;;  %v3207_v36 = vrot.slane %v12164_v31, 1  ;;  %v3446_v40 = vld [vmem:[#allocation20 + $0xc0] sm:$0xff]  ;;  %v3447_v41 = vld [vmem:[#allocation20 + $0xc8] sm:$0xff]  ;;  %v3358_v2 = vld [vmem:[#allocation20 + $0x98] sm:$0xff]  ;;  %v3364_v0 = vrot.slane %v12161_v30, 2 }
 0x56d   : >> { %9260 = vmatpush3.bf16.msra.mxu1 %v9259_v20  ;;  %9249 = vmatprep.subr.bf16.mxu0 %v11202_v61  ;;  %v9280_v44 = vpack.c.bf16 %v3447_v41, %v3446_v40  ;;  %v3448_v12 = vld [vmem:[#allocation20 + $0xd0] sm:$0xff]  ;;  %v3449_v46 = vld [vmem:[#allocation20 + $0xd8] sm:$0xff]  ;;  %v9271_v47 = vpack.c.bf16 %v3358_v2, %v3357_v45  ;;  %v3359_v49 = vld [vmem:[#allocation20 + $0xa0] sm:$0xff]  ;;  %v3365_v57 = vrot.slane %v12164_v31, 2 }
 0x56e   : >> { %9261 = vmatprep.subr.bf16.mxu1 %v11202_v61  ;;  %v3208_v42 = vsel %vm875_vm2, %v3206_v35, %v3207_v36  ;;  %v9283_v48 = vpack.c.bf16 %v3449_v46, %v3448_v12  ;;  %v3360_v50 = vld [vmem:[#allocation20 + $0xa8] sm:$0xff]  ;;  %v3450_v51 = vld [vmem:[#allocation20 + $0xe0] sm:$0xff]  ;;  %v3361_v17 = vld [vmem:[#allocation20 + $0xb0] sm:$0xff] }
 0x56f   : >> { %v3451_v52 = vld [vmem:[#allocation20 + $0xe8] sm:$0xff]  ;;  %v9274_v53 = vpack.c.bf16 %v3360_v50, %v3359_v49  ;;  %v3362_v55 = vld [vmem:[#allocation20 + $0xb8] sm:$0xff]  ;;  %v3452_v56 = vld [vmem:[#allocation20 + $0xf0] sm:$0xff]  ;;  %v3366_v4 = vsel %vm907_vm3, %v3364_v0, %v3365_v57 }
 0x570   : >> { %9251 = vmatpush3.bf16.msra.mxu0 %v9250_v26  ;;  %v9286_v54 = vpack.c.bf16 %v3451_v52, %v3450_v51  ;;  %v3453_v58 = vld [vmem:[#allocation20 + $0xf8] sm:$0xff]  ;;  %v9277_v59 = vpack.c.bf16 %v3362_v55, %v3361_v17  ;;  %v3529_v60 = vld [vmem:[#allocation20 + $0x100] sm:$0xff]  ;;  %v3530_v63 = vld [vmem:[#allocation20 + $0x108] sm:$0xff] }
 0x571   : >> { %9263 = vmatpush3.bf16.msra.mxu1 %v9262_v28  ;;  %9252 = vmatprep.subr.bf16.mxu0 %v11202_v61  ;;  %v9289_v62 = vpack.c.bf16 %v3453_v58, %v3452_v56  ;;  %v3615_v1 = vld [vmem:[#allocation20 + $0x140] sm:$0xff]  ;;  %v3616_v3 = vld [vmem:[#allocation20 + $0x148] sm:$0xff]  ;;  %v9292_v5 = vpack.c.bf16 %v3530_v63, %v3529_v60  ;;  %v8170_v6 = vld [vmem:[%s12158_s4 + $0x10] sm:$0xff] }
 0x572   : >> { %9264 = vmatprep.subr.bf16.mxu1 %v11202_v61  ;;  %v9304_v7 = vpack.c.bf16 %v3616_v3, %v3615_v1  ;;  %v3531_v8 = vld [vmem:[#allocation20 + $0x110] sm:$0xff]  ;;  %v3532_v9 = vld [vmem:[#allocation20 + $0x118] sm:$0xff]  ;;  %v3533_v20 = vld [vmem:[#allocation20 + $0x120] sm:$0xff]  ;;  %v3538_v33 = vrot.slane %v8170_v6, 1  ;;  %v3623_v38 = vrot.slane %v8170_v6, 2 }
 0x573   : >> { %v3617_v10 = vld [vmem:[#allocation20 + $0x150] sm:$0xff]  ;;  %v3618_v11 = vld [vmem:[#allocation20 + $0x158] sm:$0xff]  ;;  %v9295_v13 = vpack.c.bf16 %v3532_v9, %v3531_v8  ;;  %v3534_v21 = vld [vmem:[#allocation20 + $0x128] sm:$0xff] }
 0x574   : >> { %9254 = vmatpush3.bf16.msra.mxu0 %v9253_v34  ;;  %v9307_v18 = vpack.c.bf16 %v3618_v11, %v3617_v10  ;;  %v3619_v14 = vld [vmem:[#allocation20 + $0x160] sm:$0xff]  ;;  %v3620_v23 = vld [vmem:[#allocation20 + $0x168] sm:$0xff]  ;;  %v9298_v25 = vpack.c.bf16 %v3534_v21, %v3533_v20  ;;  %v3535_v27 = vld [vmem:[#allocation20 + $0x130] sm:$0xff] }
 0x575   : >> { %9266 = vmatpush3.bf16.msra.mxu1 %v9265_v37  ;;  %9267 = vmatprep.subr.bf16.mxu0 %v11202_v61  ;;  %v9310_v26 = vpack.c.bf16 %v3620_v23, %v3619_v14  ;;  %v3536_v28 = vld [vmem:[#allocation20 + $0x138] sm:$0xff]  ;;  %v3705_v36 = vld [vmem:[#allocation20 + $0x180] sm:$0xff]  ;;  %v3706_v37 = vld [vmem:[#allocation20 + $0x188] sm:$0xff] }
 0x576   : >> { %9279 = vmatprep.subr.bf16.mxu1 %v11202_v61  ;;  %v8171_v29 = vld [vmem:[%s12158_s4 + $0x18] sm:$0x3]  ;;  %v9301_v32 = vpack.c.bf16 %v3536_v28, %v3535_v27  ;;  %v3788_v40 = vld [vmem:[#allocation20 + $0x1c0] sm:$0xff]  ;;  %v3789_v41 = vld [vmem:[#allocation20 + $0x1c8] sm:$0xff] }
 0x577   : >> { %8873 = vmatmul.mubr.msk.f32.vlgmr.msra.gmra.mrb[0].mxu0 %vm2092_vm7, %v3208_v42  ;;  %v3622_v31 = vld [vmem:[#allocation20 + $0x178] sm:$0xff]  ;;  %v3539_v34 = vrot.slane %v8171_v29, 1  ;;  %v3624_v39 = vrot.slane %v8171_v29, 2  ;;  %v9328_v45 = vpack.c.bf16 %v3789_v41, %v3788_v40  ;;  %v3707_v2 = vld [vmem:[#allocation20 + $0x190] sm:$0xff]  ;;  %v3709_v50 = vld [vmem:[#allocation20 + $0x1a0] sm:$0xff] }
 0x578   : >> { %8892 = vmatmul.mubr.msk.f32.vlgmr.msra.gmra.mrb[0].mxu1 %vm2092_vm7, %v12161_v30  ;;  %9269 = vmatpush3.bf16.msra.mxu0 %v9268_v43  ;;  %v3621_v30 = vld [vmem:[#allocation20 + $0x170] sm:$0xff]  ;;  %v9316_v43 = vpack.c.bf16 %v3706_v37, %v3705_v36  ;;  %v3708_v12 = vld [vmem:[#allocation20 + $0x198] sm:$0xff]  ;;  %v3710_v51 = vld [vmem:[#allocation20 + $0x1a8] sm:$0xff] }
 0x579   : >> { %9281 = vmatpush3.bf16.msra.mxu1 %v9280_v44  ;;  %9270 = vmatprep.subr.bf16.mxu0 %v11202_v61  ;;  %v9313_v35 = vpack.c.bf16 %v3622_v31, %v3621_v30  ;;  %v3540_v42 = vsel %vm875_vm2, %v3538_v33, %v3539_v34  ;;  %v3625_v44 = vsel %vm907_vm3, %v3623_v38, %v3624_v39  ;;  %v3790_v46 = vld [vmem:[#allocation20 + $0x1d0] sm:$0xff]  ;;  %v3792_v52 = vld [vmem:[#allocation20 + $0x1e0] sm:$0xff]  ;;  %v3712_v56 = vld [vmem:[#allocation20 + $0x1b8] sm:$0xff] }
 0x57a   : >> { %9282 = vmatprep.subr.bf16.mxu1 %v11202_v61  ;;  %8910 = vmatprep.mubr.msk.f32.mxu0 %vm11203_vm15, %v11204_v16  ;;  %v3711_v55 = vld [vmem:[#allocation20 + $0x1b0] sm:$0xff]  ;;  %v8176_v0 = vld [vmem:[%s12158_s4 + $0x20] sm:$0xff]  ;;  %v8177_v57 = vld [vmem:[%s12158_s4 + $0x28] sm:$0x3] }
 0x57b   : >> { %8929 = vmatprep.mubr.msk.f32.mxu1 %vm11203_vm15, %v11204_v16  ;;  %v3794_v58 = vld [vmem:[#allocation20 + $0x1f0] sm:$0xff]  ;;  %v3874_v63 = vld [vmem:[#allocation20 + $0x200] sm:$0xff]  ;;  %v3875_v1 = vld [vmem:[#allocation20 + $0x208] sm:$0xff]  ;;  %v3797_v3 = vrot.slane %v8176_v0, 1  ;;  %v3882_v14 = vrot.slane %v8176_v0, 2  ;;  %v3883_v23 = vrot.slane %v8177_v57, 2 }
 0x57c   : >> { %9272 = vmatpush3.bf16.msra.mxu0 %v9271_v47  ;;  %v3791_v47 = vld [vmem:[#allocation20 + $0x1d8] sm:$0xff]  ;;  %v3878_v10 = vld [vmem:[#allocation20 + $0x220] sm:$0xff]  ;;  %v3879_v11 = vld [vmem:[#allocation20 + $0x228] sm:$0xff] }
 0x57d   : >> { %9284 = vmatpush3.bf16.msra.mxu1 %v9283_v48  ;;  %9273 = vmatprep.subr.bf16.mxu0 %v11202_v61  ;;  %v9319_v48 = vpack.c.bf16 %v3708_v12, %v3707_v2  ;;  %v9331_v49 = vpack.c.bf16 %v3791_v47, %v3790_v46  ;;  %v3877_v8 = vld [vmem:[#allocation20 + $0x218] sm:$0xff]  ;;  %v8181_v46 = vld [vmem:[#allocation21] ss:$0 sm:$0xff] }
 0x57e   : >> { %9285 = vmatprep.subr.bf16.mxu1 %v11202_v61  ;;  %v3881_v20 = vld [vmem:[#allocation20 + $0x238] sm:$0xff] }
 0x580   : >> { %9275 = vmatpush3.bf16.msra.mxu0 %v9274_v53  ;;  %v3793_v53 = vld [vmem:[#allocation20 + $0x1e8] sm:$0xff] }
 0x581   : >> { %9287 = vmatpush3.bf16.msra.mxu1 %v9286_v54  ;;  %9276 = vmatprep.subr.bf16.mxu0 %v11202_v61  ;;  %v9322_v54 = vpack.c.bf16 %v3710_v51, %v3709_v50  ;;  %v9334_v17 = vpack.c.bf16 %v3793_v53, %v3792_v52 }
 0x582   : >> { %9288 = vmatprep.subr.bf16.mxu1 %v11202_v61 }
 0x584   : >> { %9278 = vmatpush3.bf16.msra.mxu0 %v9277_v59  ;;  %v3795_v59 = vld [vmem:[#allocation20 + $0x1f8] sm:$0xff] }
 0x585   : >> { %9290 = vmatpush3.bf16.msra.mxu1 %v9289_v62  ;;  %9291 = vmatprep.subr.bf16.mxu0 %v11202_v61  ;;  %v9325_v62 = vpack.c.bf16 %v3712_v56, %v3711_v55  ;;  %v9337_v60 = vpack.c.bf16 %v3795_v59, %v3794_v58 }
 0x586   : >> { %9303 = vmatprep.subr.bf16.mxu1 %v11202_v61 }
 0x587   : >> { %8911 = vmatmul.mubr.msk.f32.vlgmr.msra.gmra.mrb[2].mxu0 %vm2092_vm7, %v3366_v4  ;;  %v3798_v4 = vrot.slane %v8177_v57, 1 }
 0x588   : >> { %9293 = vmatpush3.bf16.msra.mxu0 %v9292_v5  ;;  %8930 = vmatmul.mubr.msk.f32.vlgmr.msra.gmra.mrb[2].mxu1 %vm2092_vm7, %v8170_v6  ;;  %v9340_v5 = vpack.c.bf16 %v3875_v1, %v3874_v63 }
 0x589   : >> { %9305 = vmatpush3.bf16.msra.mxu1 %v9304_v7  ;;  %9294 = vmatprep.subr.bf16.mxu0 %v11202_v61  ;;  %v3799_v6 = vsel %vm875_vm2, %v3797_v3, %v3798_v4  ;;  %v3876_v7 = vld [vmem:[#allocation20 + $0x210] sm:$0xff] }
 0x58a   : >> { %9306 = vmatprep.subr.bf16.mxu1 %v11202_v61  ;;  %8948 = vmatprep.mubr.msk.f32.mxu0 %vm11203_vm15, %v11204_v16  ;;  %v9343_v9 = vpack.c.bf16 %v3877_v8, %v3876_v7 }
 0x58b   : >> { %8967 = vmatprep.mubr.msk.f32.mxu1 %vm11203_vm15, %v11204_v16 }
 0x58c   : >> { %9296 = vmatpush3.bf16.msra.mxu0 %v9295_v13  ;;  %v9346_v13 = vpack.c.bf16 %v3879_v11, %v3878_v10 }
 0x58d   : >> { %9308 = vmatpush3.bf16.msra.mxu1 %v9307_v18  ;;  %9297 = vmatprep.subr.bf16.mxu0 %v11202_v61  ;;  %v3880_v18 = vld [vmem:[#allocation20 + $0x230] sm:$0xff] }
 0x58e   : >> { %9309 = vmatprep.subr.bf16.mxu1 %v11202_v61  ;;  %v9349_v21 = vpack.c.bf16 %v3881_v20, %v3880_v18 }
 0x590   : >> { %9299 = vmatpush3.bf16.msra.mxu0 %v9298_v25  ;;  %v3884_v25 = vsel %vm907_vm3, %v3882_v14, %v3883_v23 }
 0x591   : >> { %9311 = vmatpush3.bf16.msra.mxu1 %v9310_v26  ;;  %9300 = vmatprep.subr.bf16.mxu0 %v11202_v61 }
 0x592   : >> { %9312 = vmatprep.subr.bf16.mxu1 %v11202_v61 }
 0x594   : >> { %9302 = vmatpush3.bf16.msra.mxu0 %v9301_v32 }
 0x595   : >> { %9314 = vmatpush3.bf16.msra.mxu1 %v9313_v35  ;;  %9315 = vmatprep.subr.bf16.mxu0 %v11202_v61 }
 0x596   : >> { %9327 = vmatprep.subr.bf16.mxu1 %v11202_v61 }
 0x597   : >> { %8949 = vmatmul.mubr.msk.f32.vlgmr.msra.gmra.mrb[4].mxu0 %vm2092_vm7, %v3540_v42 }
 0x598   : >> { %9317 = vmatpush3.bf16.msra.mxu0 %v9316_v43  ;;  %8968 = vmatmul.mubr.msk.f32.vlgmr.msra.gmra.mrb[4].mxu1 %vm2092_vm7, %v3625_v44 }
 0x599   : >> { %9329 = vmatpush3.bf16.msra.mxu1 %v9328_v45  ;;  %9318 = vmatprep.subr.bf16.mxu0 %v11202_v61 }
 0x59a   : >> { %9330 = vmatprep.subr.bf16.mxu1 %v11202_v61  ;;  %8986 = vmatprep.mubr.msk.f32.mxu0 %vm11203_vm15, %v11204_v16 }
 0x59b   : >> { %9005 = vmatprep.mubr.msk.f32.mxu1 %vm11203_vm15, %v11204_v16 }
 0x59c   : >> { %9320 = vmatpush3.bf16.msra.mxu0 %v9319_v48 }
 0x59d   : >> { %9332 = vmatpush3.bf16.msra.mxu1 %v9331_v49  ;;  %9321 = vmatprep.subr.bf16.mxu0 %v11202_v61 }
 0x59e   : >> { %9333 = vmatprep.subr.bf16.mxu1 %v11202_v61 }
 0x5a0   : >> { %9323 = vmatpush3.bf16.msra.mxu0 %v9322_v54 }
 0x5a1   : >> { %9335 = vmatpush3.bf16.msra.mxu1 %v9334_v17  ;;  %9324 = vmatprep.subr.bf16.mxu0 %v11202_v61 }
 0x5a2   : >> { %9336 = vmatprep.subr.bf16.mxu1 %v11202_v61 }
 0x5a4   : >> { %9326 = vmatpush3.bf16.msra.mxu0 %v9325_v62 }
 0x5a5   : >> { %9338 = vmatpush3.bf16.msra.mxu1 %v9337_v60  ;;  %9339 = vmatprep.subr.bf16.mxu0 %v11202_v61 }
 0x5a7   : >> { %8987 = vmatmul.mubr.msk.f32.vlgmr.msra.gmra.mrb[6].mxu0 %vm2092_vm7, %v8176_v0 }
 0x5a8   : >> { %9341 = vmatpush3.bf16.msra.mxu0 %v9340_v5  ;;  %9006 = vmatmul.mubr.msk.f32.vlgmr.msra.gmra.mrb[6].mxu1 %vm2092_vm7, %v3799_v6 }
 0x5a9   : >> { %9342 = vmatprep.subr.bf16.mxu0 %v11202_v61  ;;  %9024 = vmatprep.mubr.msk.f32.mxu0 %vm11203_vm15, %v11204_v16 }
 0x5ac   : >> { %9344 = vmatpush3.bf16.msra.mxu0 %v9343_v9 }
 0x5ad   : >> { %9345 = vmatprep.subr.bf16.mxu0 %v11202_v61 }
 0x5b0   : >> { %9347 = vmatpush3.bf16.msra.mxu0 %v9346_v13 }
 0x5b1   : >> { %9348 = vmatprep.subr.bf16.mxu0 %v11202_v61 }
 0x5b4   : >> { %9350 = vmatpush3.bf16.msra.mxu0 %v9349_v21 }
 0x5b7   : >> { %9025 = vmatmul.mubr.msk.f32.vlgmr.msra.gmra.mrb[8].mxu0 %vm2092_vm7, %v3884_v25 }
 0x64a   : >> { %v3278_v26 = vpop.f32.mrb[0].mxu0 }
 0x64b   : >> { %v8874_v27 = vpop.f32.mrb[1].mxu0  ;;  %v3350_v16 = vpop.f32.mrb[0].mxu1 }
 0x64c   : >> { %v3351_v28 = vadd.f32 %v3350_v16, %v3278_v26  ;;  %v8893_v29 = vpop.f32.mrb[1].mxu1 }
 0x65a   : >> { %v3435_v30 = vpop.f32.mrb[2].mxu0 }
 0x65b   : >> { %v3439_v31 = vadd.f32 %v3435_v30, %v3351_v28  ;;  %v8912_v32 = vpop.f32.mrb[3].mxu0  ;;  %v3523_v33 = vpop.f32.mrb[2].mxu1 }
 0x65c   : >> { %v8931_v34 = vpop.f32.mrb[3].mxu1 }
 0x65d   : >> { %v3527_v35 = vadd.f32 %v3523_v33, %v3439_v31 }
 0x66a   : >> { %v3609_v36 = vpop.f32.mrb[4].mxu0 }
 0x66b   : >> { %v3613_v37 = vadd.f32 %v3609_v36, %v3527_v35  ;;  %v8950_v61 = vpop.f32.mrb[5].mxu0  ;;  %v3694_v38 = vpop.f32.mrb[4].mxu1 }
 0x66c   : >> { %v8969_v39 = vpop.f32.mrb[5].mxu1 }
 0x66d   : >> { %v3698_v40 = vadd.f32 %v3694_v38, %v3613_v37 }
 0x67a   : >> { %v3782_v41 = vpop.f32.mrb[6].mxu0 }
 0x67b   : >> { %v3786_v42 = vadd.f32 %v3782_v41, %v3698_v40  ;;  %v8988_v43 = vpop.f32.mrb[7].mxu0  ;;  %v3868_v44 = vpop.f32.mrb[6].mxu1 }
 0x67c   : >> { %v9007_v45 = vpop.f32.mrb[7].mxu1 }
 0x67d   : >> { %v3872_v2 = vadd.f32 %v3868_v44, %v3786_v42 }
 0x68a   : >> { %v3953_v12 = vpop.f32.mrb[8].mxu0 }
 0x68b   : >> { %v3957_v47 = vadd.f32 %v3953_v12, %v3872_v2  ;;  %v9026_v48 = vpop.f32.mrb[9].mxu0  ;;  %3180 = sbr.rel (!%p3178_p5) target bundleno = 1381 (0x565), region = 310 }
 0x68d   : >> { %v3965_v49 = vadd.f32 %v8181_v46, %v3957_v47 }
 0x68f   : >> { %v3966_v50 = vmax.f32 %v3965_v49, 0.0 }
 0x691   : >> { %3969 = vst [vmem:[%s3968_s2] sm:$0xff] %v3966_v50 }
 0x692 LB: >> { %v11205_v51 = vmov 0.0   ;;  %s8194_s13 = sshll.u32 %s11178_s22, 4  ;;  %vm11206_vm0 = vmmov 0   ;;  %vm3985_vm1 = vcmask 64512   ;;  %s8190_s28 = sshll.u32 %s11178_s22, 2  ;;  %s11178_s22 = sphi %s12239_s22, %s3975_s22  }
 0x693   : >> { %9027 = vmatprep.subr.mxu0 %v11205_v51  ;;  %9032 = vmatprep.subr.mxu1 %v11205_v51  ;;  %s3978_s1 = scalar_lea.vmem [#allocation7], %s8194_s13  ;;  %s4134_s25 = scalar_lea.vmem [#allocation8], %s8190_s28 }
 0x694   : >> { %9029 = vmatprep.mubr.msk.f32.mxu0 %vm11206_vm0, %v11205_v51  ;;  %9034 = vmatprep.mubr.msk.f32.mxu1 %vm11206_vm0, %v11205_v51  ;;  %s3975_s22 = sadd.s32 1, %s11178_s22  }
 0x695   : >> { %p3972_p9 = scmp.ge.s32.totalorder %s3975_s22, 4  }
 0x696   : > { %v4203_v0 = vld [vmem:[#allocation23 + $0x208] sm:$0xff] (%p3972_p9)  ;;  %v4205_v62 = vld [vmem:[#allocation23 + $0x218] sm:$0xff] (%p3972_p9)  ;;  %v4202_v1 = vld [vmem:[#allocation23 + $0x200] sm:$0xff] (%p3972_p9)  ;;  %s8191_s4 = sshll.u32 (%p3972_p9), %s11299_s29, 4  ;;  %s7788_s19 = sshll.u32 (%p3972_p9), %s11828_s27, 4  ;;  %vm7773_vm2 = vcmask (%p3972_p9), 516096   ;;  %s12509_s19 = int_to_ptr.vmem [resolvable:$true] %s7788_s19 }
 0x697   : > { %v4207_v57 = vld [vmem:[#allocation23 + $0x228] sm:$0xff] (%p3972_p9)  ;;  %v4209_v63 = vld [vmem:[#allocation23 + $0x238] sm:$0xff] (%p3972_p9)  ;;  %v4206_v3 = vld [vmem:[#allocation23 + $0x220] sm:$0xff] (%p3972_p9)  ;;  %s12609_s13 = sld [smem:[#allocation45_spill]] (%p3972_p9)  ;;  %s7776_s28 = scalar_lea.sflag (%p3972_p9), [#allocation11], %s579_s20 }
 0x698   : >> { %v3979_v52 = vld [vmem:[%s3978_s1] sm:$0xff]  ;;  %v8187_v53 = vld [vmem:[%s3978_s1 + $0x8] sm:$0xff]  ;;  %v9351_v60 = vpack.c.bf16 (%p3972_p9), %v4207_v57, %v4203_v0  ;;  %v9383_v4 = vpack.c.bf16 (%p3972_p9), %v4209_v63, %v4205_v62  ;;  %v9353_v5 = vpack.c.bf16 (%p3972_p9), %v4206_v3, %v4202_v1  ;;  %v4204_v6 = vld [vmem:[#allocation23 + $0x210] sm:$0xff] (%p3972_p9)  ;;  %p12610_p10 = scmp.ne.s32.totalorder (%p3972_p9), %s12586_s18, 0  ;;  %s11207_s29 = smov (%p3972_p9), [#allocation27]  }
 0x699   : >> { %v3984_v54 = vmax.f32 %v3979_v52, %v8187_v53  ;;  %v4208_v7 = vld [vmem:[#allocation23 + $0x230] sm:$0xff] (%p3972_p9)  ;;  %v4211_v8 = vld [vmem:[#allocation23 + $0x248] sm:$0xff] (%p3972_p9)  ;;  %v4213_v11 = vld [vmem:[#allocation23 + $0x258] sm:$0xff] (%p3972_p9)  ;;  %s11048_s17 = sshll.u32 (%p3972_p9), %s11207_s29, 4  ;;  %s11049_s17 = int_to_ptr.vmem [resolvable:$false] %s11048_s17 }
 0x69a   : > { %v9385_v9 = vpack.c.bf16 (%p3972_p9), %v4208_v7, %v4204_v6  ;;  %v4215_v10 = vld [vmem:[#allocation23 + $0x268] sm:$0xff] (%p3972_p9)  ;;  %v4210_v18 = vld [vmem:[#allocation23 + $0x240] sm:$0xff] (%p3972_p9)  ;;  %v4212_v21 = vld [vmem:[#allocation23 + $0x250] sm:$0xff] (%p3972_p9)  ;;  %s11050_s30 = scalar_lea.vmem (%p3972_p9), %s11049_s17, 32  ;;  %p11051_p4 = scmp.lt.s32.totalorder (%p3972_p9), %s12509_s19, %s11049_s17 }
 0x69b   : >> { %9028 = vmatpush3.msra.mxu0 %v3984_v54  ;;  %9033 = vmatpush3.msra.mxu1 %v3984_v54  ;;  %v4214_v20 = vld [vmem:[#allocation23 + $0x260] sm:$0xff] (%p3972_p9)  ;;  %v4216_v23 = vld [vmem:[#allocation23 + $0x270] sm:$0xff] (%p3972_p9)  ;;  %v4219_v25 = vld [vmem:[#allocation23 + $0x288] sm:$0xff] (%p3972_p9) }
 0x69c   : >> { %9030 = vmatmul.mubr.msk.f32.vlgmr.msra.gmra.mrb[0].mxu0 %vm3985_vm1, %v12043_v22  ;;  %9035 = vmatmul.mubr.msk.f32.vlgmr.msra.gmra.mrb[0].mxu1 %vm3985_vm1, %v12047_v24  ;;  %v4217_v22 = vld [vmem:[#allocation23 + $0x278] sm:$0xff] (%p3972_p9)  ;;  %v9355_v24 = vpack.c.bf16 (%p3972_p9), %v4215_v10, %v4211_v8  ;;  %v9357_v14 = vpack.c.bf16 (%p3972_p9), %v4214_v20, %v4210_v18  ;;  %v4223_v26 = vld [vmem:[#allocation23 + $0x2a8] sm:$0xff] (%p3972_p9)  ;;  %v9389_v27 = vpack.c.bf16 (%p3972_p9), %v4216_v23, %v4212_v21  ;;  %v4218_v30 = vld [vmem:[#allocation23 + $0x280] sm:$0xff] (%p3972_p9) }
 0x69d   : > { %4333 = vmatprep.mubr.f32.mxu0 (%p3972_p9), %v11201_v19  ;;  %4404 = vmatprep.mubr.f32.mxu1 (%p3972_p9), %v11201_v19  ;;  %v9387_v13 = vpack.c.bf16 (%p3972_p9), %v4217_v22, %v4213_v11  ;;  %v9359_v16 = vpack.c.bf16 (%p3972_p9), %v4223_v26, %v4219_v25  ;;  %v4221_v28 = vld [vmem:[#allocation23 + $0x298] sm:$0xff] (%p3972_p9)  ;;  %v4222_v32 = vld [vmem:[#allocation23 + $0x2a0] sm:$0xff] (%p3972_p9)  ;;  %v4220_v33 = vld [vmem:[#allocation23 + $0x290] sm:$0xff] (%p3972_p9)  ;;  %s12507_s1 = scalar_lea.hbm (%p3972_p9), %s12609_s13, %s8191_s4 }
 0x69e   : > { %9352 = vmatprep.subr.bf16.mxu0 (%p3972_p9), %v9351_v60  ;;  %9384 = vmatprep.subr.bf16.mxu1 (%p3972_p9), %v9383_v4  ;;  %v4225_v29 = vld [vmem:[#allocation23 + $0x2b8] sm:$0xff] (%p3972_p9)  ;;  %v4224_v34 = vld [vmem:[#allocation23 + $0x2b0] sm:$0xff] (%p3972_p9)  ;;  %v9361_v35 = vpack.c.bf16 (%p3972_p9), %v4222_v32, %v4218_v30  ;;  %v4227_v36 = vld [vmem:[#allocation23 + $0x2c8] sm:$0xff] (%p3972_p9) }
 0x69f   : > { %9354 = vmatpush1.bf16.msra.mxu0 (%p3972_p9), %v9353_v5  ;;  %9386 = vmatpush1.bf16.msra.mxu1 (%p3972_p9), %v9385_v9  ;;  %v9391_v31 = vpack.c.bf16 (%p3972_p9), %v4225_v29, %v4221_v28  ;;  %v4231_v37 = vld [vmem:[#allocation23 + $0x2e8] sm:$0xff] (%p3972_p9)  ;;  %v4229_v61 = vld [vmem:[#allocation23 + $0x2d8] sm:$0xff] (%p3972_p9)  ;;  %v9393_v38 = vpack.c.bf16 (%p3972_p9), %v4224_v34, %v4220_v33  ;;  %v4226_v41 = vld [vmem:[#allocation23 + $0x2c0] sm:$0xff] (%p3972_p9) }
 0x6a0   : > { %9356 = vmatprep.subr.bf16.mxu0 (%p3972_p9), %v9355_v24  ;;  %9388 = vmatprep.subr.bf16.mxu1 (%p3972_p9), %v9387_v13  ;;  %v9363_v39 = vpack.c.bf16 (%p3972_p9), %v4231_v37, %v4227_v36  ;;  %v4233_v40 = vld [vmem:[#allocation23 + $0x2f8] sm:$0xff] (%p3972_p9)  ;;  %v4230_v42 = vld [vmem:[#allocation23 + $0x2e0] sm:$0xff] (%p3972_p9)  ;;  %v4228_v44 = vld [vmem:[#allocation23 + $0x2d0] sm:$0xff] (%p3972_p9) }
 0x6a1   : > { %v9395_v43 = vpack.c.bf16 (%p3972_p9), %v4233_v40, %v4229_v61  ;;  %v4232_v45 = vld [vmem:[#allocation23 + $0x2f0] sm:$0xff] (%p3972_p9)  ;;  %v4235_v2 = vld [vmem:[#allocation23 + $0x308] sm:$0xff] (%p3972_p9)  ;;  %v4237_v46 = vld [vmem:[#allocation23 + $0x318] sm:$0xff] (%p3972_p9)  ;;  %v9365_v48 = vpack.c.bf16 (%p3972_p9), %v4230_v42, %v4226_v41 }
 0x6a2   : > { %v4239_v12 = vld [vmem:[#allocation23 + $0x328] sm:$0xff] (%p3972_p9)  ;;  %v4241_v47 = vld [vmem:[#allocation23 + $0x338] sm:$0xff] (%p3972_p9)  ;;  %v9397_v49 = vpack.c.bf16 (%p3972_p9), %v4232_v45, %v4228_v44  ;;  %v4234_v51 = vld [vmem:[#allocation23 + $0x300] sm:$0xff] (%p3972_p9) }
 0x6a3   : > { %9358 = vmatpush1.bf16.msra.mxu0 (%p3972_p9), %v9357_v14  ;;  %9390 = vmatpush1.bf16.msra.mxu1 (%p3972_p9), %v9389_v27  ;;  %v9367_v50 = vpack.c.bf16 (%p3972_p9), %v4239_v12, %v4235_v2  ;;  %v4238_v52 = vld [vmem:[#allocation23 + $0x320] sm:$0xff] (%p3972_p9)  ;;  %v4236_v53 = vld [vmem:[#allocation23 + $0x310] sm:$0xff] (%p3972_p9)  ;;  %v9399_v54 = vpack.c.bf16 (%p3972_p9), %v4241_v47, %v4237_v46  ;;  %v4251_v5 = vld [vmem:[#allocation23 + $0x388] sm:$0xff] (%p3972_p9) }
 0x6a4   : > { %9360 = vmatprep.subr.bf16.mxu0 (%p3972_p9), %v9359_v16  ;;  %9392 = vmatprep.subr.bf16.mxu1 (%p3972_p9), %v9391_v31  ;;  %v9369_v0 = vpack.c.bf16 (%p3972_p9), %v4238_v52, %v4234_v51  ;;  %v4242_v60 = vld [vmem:[#allocation23 + $0x340] sm:$0xff] (%p3972_p9)  ;;  %v4244_v1 = vld [vmem:[#allocation23 + $0x350] sm:$0xff] (%p3972_p9)  ;;  %v4255_v6 = vld [vmem:[#allocation23 + $0x3a8] sm:$0xff] (%p3972_p9) }
 0x6a5   : > { %v4246_v63 = vld [vmem:[#allocation23 + $0x360] sm:$0xff] (%p3972_p9)  ;;  %v4248_v4 = vld [vmem:[#allocation23 + $0x370] sm:$0xff] (%p3972_p9)  ;;  %v4253_v7 = vld [vmem:[#allocation23 + $0x398] sm:$0xff] (%p3972_p9)  ;;  %v9375_v11 = vpack.c.bf16 (%p3972_p9), %v4255_v6, %v4251_v5 }
 0x6a6   : > { %v4257_v8 = vld [vmem:[#allocation23 + $0x3b8] sm:$0xff] (%p3972_p9)  ;;  %v9373_v9 = vpack.c.bf16 (%p3972_p9), %v4246_v63, %v4242_v60  ;;  %v9405_v10 = vpack.c.bf16 (%p3972_p9), %v4248_v4, %v4244_v1  ;;  %v4250_v22 = vld [vmem:[#allocation23 + $0x380] sm:$0xff] (%p3972_p9)  ;;  %v4252_v13 = vld [vmem:[#allocation23 + $0x390] sm:$0xff] (%p3972_p9) }
 0x6a7   : > { %9362 = vmatpush1.bf16.msra.mxu0 (%p3972_p9), %v9361_v35  ;;  %9394 = vmatpush1.bf16.msra.mxu1 (%p3972_p9), %v9393_v38  ;;  %v4254_v24 = vld [vmem:[#allocation23 + $0x3a0] sm:$0xff] (%p3972_p9)  ;;  %v9407_v18 = vpack.c.bf16 (%p3972_p9), %v4257_v8, %v4253_v7  ;;  %v4256_v20 = vld [vmem:[#allocation23 + $0x3b0] sm:$0xff] (%p3972_p9)  ;;  %v4259_v21 = vld [vmem:[#allocation23 + $0x3c8] sm:$0xff] (%p3972_p9) }
 0x6a8   : > { %9364 = vmatprep.subr.bf16.mxu0 (%p3972_p9), %v9363_v39  ;;  %9396 = vmatprep.subr.bf16.mxu1 (%p3972_p9), %v9395_v43  ;;  %v4263_v14 = vld [vmem:[#allocation23 + $0x3e8] sm:$0xff] (%p3972_p9)  ;;  %v4261_v23 = vld [vmem:[#allocation23 + $0x3d8] sm:$0xff] (%p3972_p9)  ;;  %v9377_v26 = vpack.c.bf16 (%p3972_p9), %v4254_v24, %v4250_v22  ;;  %v9409_v27 = vpack.c.bf16 (%p3972_p9), %v4256_v20, %v4252_v13  ;;  %v4258_v28 = vld [vmem:[#allocation23 + $0x3c0] sm:$0xff] (%p3972_p9) }
 0x6a9   : > { %v4265_v25 = vld [vmem:[#allocation23 + $0x3f8] sm:$0xff] (%p3972_p9)  ;;  %v9379_v16 = vpack.c.bf16 (%p3972_p9), %v4263_v14, %v4259_v21  ;;  %v4262_v29 = vld [vmem:[#allocation23 + $0x3e0] sm:$0xff] (%p3972_p9)  ;;  %v4260_v30 = vld [vmem:[#allocation23 + $0x3d0] sm:$0xff] (%p3972_p9) }
 0x6aa   : > { %v9411_v31 = vpack.c.bf16 (%p3972_p9), %v4265_v25, %v4261_v23  ;;  %v4264_v32 = vld [vmem:[#allocation23 + $0x3f0] sm:$0xff] (%p3972_p9)  ;;  %v4138_v33 = vld [vmem:[#allocation23 + $0x8] sm:$0xff] (%p3972_p9)  ;;  %v4140_v35 = vld [vmem:[#allocation23 + $0x18] sm:$0xff] (%p3972_p9)  ;;  %v9381_v37 = vpack.c.bf16 (%p3972_p9), %v4262_v29, %v4258_v28 }
 0x6ab   : > { %9366 = vmatpush1.bf16.msra.mxu0 (%p3972_p9), %v9365_v48  ;;  %9398 = vmatpush1.bf16.msra.mxu1 (%p3972_p9), %v9397_v49  ;;  %v4142_v34 = vld [vmem:[#allocation23 + $0x28] sm:$0xff] (%p3972_p9)  ;;  %v4144_v36 = vld [vmem:[#allocation23 + $0x38] sm:$0xff] (%p3972_p9)  ;;  %v9413_v38 = vpack.c.bf16 (%p3972_p9), %v4264_v32, %v4260_v30  ;;  %v4137_v40 = vld [vmem:[#allocation23] sm:$0xff] (%p3972_p9) }
 0x6ac   : > { %9368 = vmatprep.subr.bf16.mxu0 (%p3972_p9), %v9367_v50  ;;  %9400 = vmatprep.subr.bf16.mxu1 (%p3972_p9), %v9399_v54  ;;  %v9415_v39 = vpack.c.bf16 (%p3972_p9), %v4142_v34, %v4138_v33  ;;  %v4141_v41 = vld [vmem:[#allocation23 + $0x20] sm:$0xff] (%p3972_p9)  ;;  %v4139_v42 = vld [vmem:[#allocation23 + $0x10] sm:$0xff] (%p3972_p9)  ;;  %v9447_v43 = vpack.c.bf16 (%p3972_p9), %v4144_v36, %v4140_v35  ;;  %v4146_v45 = vld [vmem:[#allocation23 + $0x48] sm:$0xff] (%p3972_p9) }
 0x6ad   : > { %v4143_v44 = vld [vmem:[#allocation23 + $0x30] sm:$0xff] (%p3972_p9)  ;;  %v4150_v2 = vld [vmem:[#allocation23 + $0x68] sm:$0xff] (%p3972_p9)  ;;  %v4148_v46 = vld [vmem:[#allocation23 + $0x58] sm:$0xff] (%p3972_p9)  ;;  %v9417_v48 = vpack.c.bf16 (%p3972_p9), %v4141_v41, %v4137_v40 }
 0x6ae   : > { %v4152_v47 = vld [vmem:[#allocation23 + $0x78] sm:$0xff] (%p3972_p9)  ;;  %v9449_v49 = vpack.c.bf16 (%p3972_p9), %v4143_v44, %v4139_v42  ;;  %v9419_v50 = vpack.c.bf16 (%p3972_p9), %v4150_v2, %v4146_v45  ;;  %v4145_v51 = vld [vmem:[#allocation23 + $0x40] sm:$0xff] (%p3972_p9)  ;;  %v4155_v1 = vld [vmem:[#allocation23 + $0x90] sm:$0xff] (%p3972_p9) }
 0x6af   : > { %9370 = vmatpush1.bf16.msra.mxu0 (%p3972_p9), %v9369_v0  ;;  %v4149_v52 = vld [vmem:[#allocation23 + $0x60] sm:$0xff] (%p3972_p9)  ;;  %v9451_v54 = vpack.c.bf16 (%p3972_p9), %v4152_v47, %v4148_v46  ;;  %v4159_v4 = vld [vmem:[#allocation23 + $0xb0] sm:$0xff] (%p3972_p9)  ;;  %v4162_v5 = vld [vmem:[#allocation23 + $0xc8] sm:$0xff] (%p3972_p9) }
 0x6b0   : > { %v9421_v0 = vpack.c.bf16 (%p3972_p9), %v4149_v52, %v4145_v51  ;;  %v4153_v60 = vld [vmem:[#allocation23 + $0x80] sm:$0xff] (%p3972_p9)  ;;  %v4166_v6 = vld [vmem:[#allocation23 + $0xe8] sm:$0xff] (%p3972_p9)  ;;  %v4164_v7 = vld [vmem:[#allocation23 + $0xd8] sm:$0xff] (%p3972_p9) }
 0x6b1   : > { %v4157_v63 = vld [vmem:[#allocation23 + $0xa0] sm:$0xff] (%p3972_p9)  ;;  %v4168_v8 = vld [vmem:[#allocation23 + $0xf8] sm:$0xff] (%p3972_p9)  ;;  %v4163_v13 = vld [vmem:[#allocation23 + $0xd0] sm:$0xff] (%p3972_p9) }
 0x6b2   : > { %v4161_v22 = vld [vmem:[#allocation23 + $0xc0] sm:$0xff] (%p3972_p9)  ;;  %v4167_v20 = vld [vmem:[#allocation23 + $0xf0] sm:$0xff] (%p3972_p9)  ;;  %v4170_v21 = vld [vmem:[#allocation23 + $0x108] sm:$0xff] (%p3972_p9) }
 0x6b3   : > { %v4165_v24 = vld [vmem:[#allocation23 + $0xe0] sm:$0xff] (%p3972_p9)  ;;  %v4174_v14 = vld [vmem:[#allocation23 + $0x128] sm:$0xff] (%p3972_p9)  ;;  %v4172_v23 = vld [vmem:[#allocation23 + $0x118] sm:$0xff] (%p3972_p9) }
 0x6b4   : > { %v4176_v25 = vld [vmem:[#allocation23 + $0x138] sm:$0xff] (%p3972_p9)  ;;  %v4169_v28 = vld [vmem:[#allocation23 + $0x100] sm:$0xff] (%p3972_p9)  ;;  %v4171_v30 = vld [vmem:[#allocation23 + $0x110] sm:$0xff] (%p3972_p9) }
 0x6b5   : > { %v4173_v29 = vld [vmem:[#allocation23 + $0x120] sm:$0xff] (%p3972_p9)  ;;  %v4175_v32 = vld [vmem:[#allocation23 + $0x130] sm:$0xff] (%p3972_p9)  ;;  %v4178_v33 = vld [vmem:[#allocation23 + $0x148] sm:$0xff] (%p3972_p9) }
 0x6b6   : > { %v4182_v34 = vld [vmem:[#allocation23 + $0x168] sm:$0xff] (%p3972_p9)  ;;  %v4180_v35 = vld [vmem:[#allocation23 + $0x158] sm:$0xff] (%p3972_p9)  ;;  %v4177_v40 = vld [vmem:[#allocation23 + $0x140] sm:$0xff] (%p3972_p9) }
 0x6b7   : > { %v4184_v36 = vld [vmem:[#allocation23 + $0x178] sm:$0xff] (%p3972_p9)  ;;  %v4181_v41 = vld [vmem:[#allocation23 + $0x160] sm:$0xff] (%p3972_p9)  ;;  %v4179_v42 = vld [vmem:[#allocation23 + $0x150] sm:$0xff] (%p3972_p9) }
 0x6b8   : > { %v4183_v44 = vld [vmem:[#allocation23 + $0x170] sm:$0xff] (%p3972_p9)  ;;  %v4186_v45 = vld [vmem:[#allocation23 + $0x188] sm:$0xff] (%p3972_p9)  ;;  %v4192_v46 = vld [vmem:[#allocation23 + $0x1b8] sm:$0xff] (%p3972_p9)  ;;  %v9437_v47 = vpack.c.bf16 (%p3972_p9), %v4181_v41, %v4177_v40 }
 0x6b9   : > { %v4190_v2 = vld [vmem:[#allocation23 + $0x1a8] sm:$0xff] (%p3972_p9)  ;;  %v4189_v51 = vld [vmem:[#allocation23 + $0x1a0] sm:$0xff] (%p3972_p9)  ;;  %v4187_v52 = vld [vmem:[#allocation23 + $0x190] sm:$0xff] (%p3972_p9) }
 0x6ba   : > { %v4574_v40 = vld [vmem:[#allocation23 + $0x4a0] sm:$0xff] (%p3972_p9)  ;;  %v4572_v41 = vld [vmem:[#allocation23 + $0x490] sm:$0xff] (%p3972_p9) }
 0x76c   : > { %3974 = sbr.rel (!%p3972_p9) target bundleno = 1682 (0x692), region = 321 }
 0x76f   : >> { %v4055_v17 = vpop.f32.mrb[0].mxu0  ;;  %v4128_v55 = vpop.f32.mrb[0].mxu1 }
 0x770   : >> { %v4132_v56 = vmax.f32 %v4055_v17, %v4128_v55  ;;  %v9031_v58 = vpop.f32.mrb[1].mxu0  ;;  %v9036_v59 = vpop.f32.mrb[1].mxu1  ;;  %v4240_v17 = vld [vmem:[#allocation23 + $0x330] sm:$0xff] (%p3972_p9)  ;;  %v4243_v55 = vld [vmem:[#allocation23 + $0x348] sm:$0xff] (%p3972_p9) }
 0x771   : > { %v4245_v58 = vld [vmem:[#allocation23 + $0x358] sm:$0xff] (%p3972_p9)  ;;  %v9401_v57 = vpack.c.bf16 (%p3972_p9), %v4240_v17, %v4236_v53  ;;  %v4147_v53 = vld [vmem:[#allocation23 + $0x50] sm:$0xff] (%p3972_p9) }
 0x772   : >> { %4135 = vst [vmem:[%s4134_s25] sm:$0xf] %v4132_v56  ;;  %v4247_v56 = vld [vmem:[#allocation23 + $0x368] sm:$0xff] (%p3972_p9)  ;;  %v4249_v59 = vld [vmem:[#allocation23 + $0x378] sm:$0xff] (%p3972_p9)  ;;  %v4151_v17 = vld [vmem:[#allocation23 + $0x70] sm:$0xff] (%p3972_p9)  ;;  %s11044_s25 = scalar_lea.vmem (%p3972_p9), %s12509_s19, 16 }
 0x773   : > { %v9371_v62 = vpack.c.bf16 %v4247_v56, %v4243_v55  ;;  %v9403_v3 = vpack.c.bf16 %v4249_v59, %v4245_v58  ;;  %9402 = vmatpush1.bf16.msra.mxu1 %v9401_v57  ;;  %v4154_v55 = vld [vmem:[#allocation23 + $0x88] sm:$0xff]  ;;  %v4156_v58 = vld [vmem:[#allocation23 + $0x98] sm:$0xff]  ;;  %v9453_v57 = vpack.c.bf16 %v4151_v17, %v4147_v53  ;;  %p11045_p12 = scmp.ne.s32.totalorder %s12509_s19, %s11044_s25  ;;  %p11052_p7 = scmp.lt.s32.totalorder %s11050_s30, %s11044_s25 }
 0x774   : > { %v4158_v56 = vld [vmem:[#allocation23 + $0xa8] sm:$0xff]  ;;  %v4160_v59 = vld [vmem:[#allocation23 + $0xb8] sm:$0xff] }
 0x775   : > { %9372 = vmatprep.subr.bf16.mxu0 %v9371_v62  ;;  %9404 = vmatprep.subr.bf16.mxu1 %v9403_v3  ;;  %v9423_v62 = vpack.c.bf16 %v4158_v56, %v4154_v55  ;;  %v9455_v3 = vpack.c.bf16 %v4160_v59, %v4156_v58  ;;  %v4194_v17 = vld [vmem:[#allocation23 + $0x1c8] sm:$0xff]  ;;  %v4196_v56 = vld [vmem:[#allocation23 + $0x1d8] sm:$0xff]  ;;  %p11046_p2 = pnand %p11045_p12, %p12610_p10  ;;  %p11053_p8 = por %p11052_p7, %p11051_p4 }
 0x776   : > { %9374 = vmatpush1.bf16.msra.mxu0 %v9373_v9  ;;  %v9425_v9 = vpack.c.bf16 %v4157_v63, %v4153_v60  ;;  %v4198_v55 = vld [vmem:[#allocation23 + $0x1e8] sm:$0xff]  ;;  %v4200_v58 = vld [vmem:[#allocation23 + $0x1f8] sm:$0xff]  ;;  %v4197_v60 = vld [vmem:[#allocation23 + $0x1e0] sm:$0xff] }
 0x777   : > { %9406 = vmatpush1.bf16.msra.mxu1 %v9405_v10  ;;  %9376 = vmatprep.subr.bf16.mxu0 %v9375_v11  ;;  %v9457_v10 = vpack.c.bf16 %v4159_v4, %v4155_v1  ;;  %v9427_v11 = vpack.c.bf16 %v4166_v6, %v4162_v5  ;;  %v4195_v63 = vld [vmem:[#allocation23 + $0x1d0] sm:$0xff]  ;;  %v9475_v1 = vpack.c.bf16 %v4200_v58, %v4196_v56  ;;  %v4555_v4 = vld [vmem:[#allocation23 + $0x408] sm:$0xff]  ;;  %v4557_v6 = vld [vmem:[#allocation23 + $0x418] sm:$0xff]  ;;  %p11047_p3 = pneg %p11046_p2 }
 0x778   : > { %9408 = vmatprep.subr.bf16.mxu1 %v9407_v18  ;;  %v9459_v18 = vpack.c.bf16 %v4168_v8, %v4164_v7  ;;  %v4559_v5 = vld [vmem:[#allocation23 + $0x428] sm:$0xff]  ;;  %v4561_v7 = vld [vmem:[#allocation23 + $0x438] sm:$0xff] }
 0x779   : > { %v12248_v61 = vld [vmem:[#allocation8] sm:$0xf]  ;;  %p11054_p11 = pnand %p11053_p8, %p11047_p3 }
 0x77a   : > { %9378 = vmatpush1.bf16.msra.mxu0 %v9377_v26  ;;  %v4267_v12 = vrot.slane %v12248_v61, 1  ;;  %v9429_v26 = vpack.c.bf16 %v4165_v24, %v4161_v22  ;;  %v4558_v22 = vld [vmem:[#allocation23 + $0x420] sm:$0xff]  ;;  %v4556_v24 = vld [vmem:[#allocation23 + $0x410] sm:$0xff]  ;;  %v4593_v56 = vld [vmem:[#allocation23 + $0x538] sm:$0xff] }
 0x77b   : > { %9410 = vmatpush1.bf16.msra.mxu1 %v9409_v27  ;;  %9380 = vmatprep.subr.bf16.mxu0 %v9379_v16  ;;  %v9461_v27 = vpack.c.bf16 %v4167_v20, %v4163_v13  ;;  %v9431_v16 = vpack.c.bf16 %v4174_v14, %v4170_v21  ;;  %v9511_v13 = vpack.c.bf16 %v4561_v7, %v4557_v6  ;;  %v4563_v20 = vld [vmem:[#allocation23 + $0x448] sm:$0xff]  ;;  %v4565_v14 = vld [vmem:[#allocation23 + $0x458] sm:$0xff] }
 0x77c   : > { %9412 = vmatprep.subr.bf16.mxu1 %v9411_v31  ;;  %v9463_v31 = vpack.c.bf16 %v4176_v25, %v4172_v23  ;;  %v4567_v21 = vld [vmem:[#allocation23 + $0x468] sm:$0xff]  ;;  %v4569_v23 = vld [vmem:[#allocation23 + $0x478] sm:$0xff] }
 0x77d   : > { %v4601_v6 = vld [vmem:[#allocation23 + $0x578] sm:$0xff] }
 0x77e   : > { %9382 = vmatpush1.bf16.msra.mxu0 %v9381_v37  ;;  %v9433_v37 = vpack.c.bf16 %v4173_v29, %v4169_v28  ;;  %v4566_v28 = vld [vmem:[#allocation23 + $0x460] sm:$0xff]  ;;  %v4564_v29 = vld [vmem:[#allocation23 + $0x450] sm:$0xff] }
 0x77f   : > { %9414 = vmatpush1.bf16.msra.mxu1 %v9413_v38  ;;  %9416 = vmatprep.subr.bf16.mxu0 %v9415_v39  ;;  %v9465_v38 = vpack.c.bf16 %v4175_v32, %v4171_v30  ;;  %v9435_v39 = vpack.c.bf16 %v4182_v34, %v4178_v33  ;;  %v9515_v30 = vpack.c.bf16 %v4569_v23, %v4565_v14  ;;  %v4571_v32 = vld [vmem:[#allocation23 + $0x488] sm:$0xff]  ;;  %v4573_v34 = vld [vmem:[#allocation23 + $0x498] sm:$0xff] }
 0x780   : > { %9448 = vmatprep.subr.bf16.mxu1 %v9447_v43  ;;  %v9467_v43 = vpack.c.bf16 %v4184_v36, %v4180_v35  ;;  %v4575_v33 = vld [vmem:[#allocation23 + $0x4a8] sm:$0xff]  ;;  %v4577_v35 = vld [vmem:[#allocation23 + $0x4b8] sm:$0xff] }
 0x781   : > { %4334 = vmatmul.mubr.f32.vlgmr.msra.gmra.mrb[0].mxu0 %v4267_v12  ;;  %v4609_v14 = vld [vmem:[#allocation23 + $0x5b8] sm:$0xff] }
 0x782   : > { %4405 = vmatmul.mubr.f32.vlgmr.msra.gmra.mrb[0].mxu1 %v4267_v12  ;;  %9418 = vmatpush1.bf16.msra.mxu0 %v9417_v48  ;;  %v4188_v12 = vld [vmem:[#allocation23 + $0x198] sm:$0xff]  ;;  %v9469_v48 = vpack.c.bf16 %v4183_v44, %v4179_v42  ;;  %v9519_v42 = vpack.c.bf16 %v4577_v35, %v4573_v34  ;;  %v4579_v44 = vld [vmem:[#allocation23 + $0x4c8] sm:$0xff] }
 0x783   : > { %9450 = vmatpush1.bf16.msra.mxu1 %v9449_v49  ;;  %9420 = vmatprep.subr.bf16.mxu0 %v9419_v50  ;;  %v9439_v49 = vpack.c.bf16 %v4190_v2, %v4186_v45  ;;  %v4185_v50 = vld [vmem:[#allocation23 + $0x180] sm:$0xff]  ;;  %v9471_v53 = vpack.c.bf16 %v4192_v46, %v4188_v12  ;;  %v4583_v45 = vld [vmem:[#allocation23 + $0x4e8] sm:$0xff]  ;;  %v4581_v2 = vld [vmem:[#allocation23 + $0x4d8] sm:$0xff] }
 0x784   : > { %9452 = vmatprep.subr.bf16.mxu1 %v9451_v54  ;;  %4475 = vmatprep.mubr.f32.mxu0 %v11201_v19  ;;  %v4191_v54 = vld [vmem:[#allocation23 + $0x1b0] sm:$0xff]  ;;  %v9441_v59 = vpack.c.bf16 %v4189_v51, %v4185_v50  ;;  %v4585_v12 = vld [vmem:[#allocation23 + $0x4f8] sm:$0xff]  ;;  %v4582_v50 = vld [vmem:[#allocation23 + $0x4e0] sm:$0xff] }
 0x785   : > { %4546 = vmatprep.mubr.f32.mxu1 %v11201_v19  ;;  %v4580_v51 = vld [vmem:[#allocation23 + $0x4d0] sm:$0xff]  ;;  %v4617_v34 = vld [vmem:[#allocation23 + $0x5f8] sm:$0xff] }
 0x786   : > { %9422 = vmatpush1.bf16.msra.mxu0 %v9421_v0  ;;  %v9473_v0 = vpack.c.bf16 %v4191_v54, %v4187_v52  ;;  %v9523_v52 = vpack.c.bf16 %v4585_v12, %v4581_v2  ;;  %v4587_v54 = vld [vmem:[#allocation23 + $0x508] sm:$0xff]  ;;  %v4774_v2 = vld [vmem:[#allocation23 + $0x638] sm:$0xff] }
 0x787   : > { %9454 = vmatpush1.bf16.msra.mxu1 %v9453_v57  ;;  %9424 = vmatprep.subr.bf16.mxu0 %v9423_v62  ;;  %v9443_v57 = vpack.c.bf16 %v4198_v55, %v4194_v17  ;;  %v4193_v62 = vld [vmem:[#allocation23 + $0x1c0] sm:$0xff]  ;;  %v4591_v17 = vld [vmem:[#allocation23 + $0x528] sm:$0xff]  ;;  %v4589_v55 = vld [vmem:[#allocation23 + $0x518] sm:$0xff] }
 0x788   : > { %9456 = vmatprep.subr.bf16.mxu1 %v9455_v3  ;;  %v4199_v3 = vld [vmem:[#allocation23 + $0x1f0] sm:$0xff]  ;;  %v9445_v8 = vpack.c.bf16 %v4197_v60, %v4193_v62  ;;  %v4590_v62 = vld [vmem:[#allocation23 + $0x520] sm:$0xff] }
 0x789   : > { %v4588_v60 = vld [vmem:[#allocation23 + $0x510] sm:$0xff] }
 0x78a   : > { %9426 = vmatpush1.bf16.msra.mxu0 %v9425_v9  ;;  %v9477_v9 = vpack.c.bf16 %v4199_v3, %v4195_v63  ;;  %v9527_v63 = vpack.c.bf16 %v4593_v56, %v4589_v55  ;;  %v4595_v3 = vld [vmem:[#allocation23 + $0x548] sm:$0xff]  ;;  %v4778_v55 = vld [vmem:[#allocation23 + $0x658] sm:$0xff] }
 0x78b   : > { %9458 = vmatpush1.bf16.msra.mxu1 %v9457_v10  ;;  %9428 = vmatprep.subr.bf16.mxu0 %v9427_v11  ;;  %v9479_v10 = vpack.c.bf16 %v4559_v5, %v4555_v4  ;;  %v4554_v11 = vld [vmem:[#allocation23 + $0x400] sm:$0xff]  ;;  %v4599_v4 = vld [vmem:[#allocation23 + $0x568] sm:$0xff]  ;;  %v4597_v5 = vld [vmem:[#allocation23 + $0x558] sm:$0xff] }
 0x78c   : > { %9460 = vmatprep.subr.bf16.mxu1 %v9459_v18  ;;  %v4560_v18 = vld [vmem:[#allocation23 + $0x430] sm:$0xff]  ;;  %v9481_v25 = vpack.c.bf16 %v4558_v22, %v4554_v11  ;;  %v4598_v11 = vld [vmem:[#allocation23 + $0x560] sm:$0xff]  ;;  %v4782_v56 = vld [vmem:[#allocation23 + $0x678] sm:$0xff] }
 0x78d   : > { %v4596_v22 = vld [vmem:[#allocation23 + $0x550] sm:$0xff] }
 0x78e   : > { %9430 = vmatpush1.bf16.msra.mxu0 %v9429_v26  ;;  %v9513_v26 = vpack.c.bf16 %v4560_v18, %v4556_v24  ;;  %v9531_v24 = vpack.c.bf16 %v4601_v6, %v4597_v5  ;;  %v4603_v18 = vld [vmem:[#allocation23 + $0x588] sm:$0xff]  ;;  %v4786_v5 = vld [vmem:[#allocation23 + $0x698] sm:$0xff] }
 0x78f   : > { %9462 = vmatpush1.bf16.msra.mxu1 %v9461_v27  ;;  %9432 = vmatprep.subr.bf16.mxu0 %v9431_v16  ;;  %v9483_v27 = vpack.c.bf16 %v4567_v21, %v4563_v20  ;;  %v4562_v16 = vld [vmem:[#allocation23 + $0x440] sm:$0xff]  ;;  %v4607_v20 = vld [vmem:[#allocation23 + $0x5a8] sm:$0xff]  ;;  %v4605_v21 = vld [vmem:[#allocation23 + $0x598] sm:$0xff] }
 0x790   : > { %9464 = vmatprep.subr.bf16.mxu1 %v9463_v31  ;;  %v4568_v31 = vld [vmem:[#allocation23 + $0x470] sm:$0xff]  ;;  %v9485_v36 = vpack.c.bf16 %v4566_v28, %v4562_v16  ;;  %v4606_v16 = vld [vmem:[#allocation23 + $0x5a0] sm:$0xff]  ;;  %v4790_v6 = vld [vmem:[#allocation23 + $0x6b8] sm:$0xff] }
 0x791   : > { %v4604_v28 = vld [vmem:[#allocation23 + $0x590] sm:$0xff] }
 0x792   : > { %9434 = vmatpush1.bf16.msra.mxu0 %v9433_v37  ;;  %v9517_v37 = vpack.c.bf16 %v4568_v31, %v4564_v29  ;;  %v9535_v29 = vpack.c.bf16 %v4609_v14, %v4605_v21  ;;  %v4611_v31 = vld [vmem:[#allocation23 + $0x5c8] sm:$0xff]  ;;  %v4794_v21 = vld [vmem:[#allocation23 + $0x6d8] sm:$0xff] }
 0x793   : > { %9466 = vmatpush1.bf16.msra.mxu1 %v9465_v38  ;;  %9436 = vmatprep.subr.bf16.mxu0 %v9435_v39  ;;  %v9487_v38 = vpack.c.bf16 %v4575_v33, %v4571_v32  ;;  %v4570_v39 = vld [vmem:[#allocation23 + $0x480] sm:$0xff]  ;;  %v4615_v32 = vld [vmem:[#allocation23 + $0x5e8] sm:$0xff]  ;;  %v4613_v33 = vld [vmem:[#allocation23 + $0x5d8] sm:$0xff] }
 0x794   : > { %9468 = vmatprep.subr.bf16.mxu1 %v9467_v43  ;;  %v4576_v43 = vld [vmem:[#allocation23 + $0x4b0] sm:$0xff]  ;;  %v9489_v46 = vpack.c.bf16 %v4574_v40, %v4570_v39  ;;  %v4614_v39 = vld [vmem:[#allocation23 + $0x5e0] sm:$0xff]  ;;  %v4798_v14 = vld [vmem:[#allocation23 + $0x6f8] sm:$0xff] }
 0x795   : > { %v4612_v40 = vld [vmem:[#allocation23 + $0x5d0] sm:$0xff] }
 0x796   : > { %9438 = vmatpush1.bf16.msra.mxu0 %v9437_v47  ;;  %v9521_v47 = vpack.c.bf16 %v4576_v43, %v4572_v41  ;;  %v9539_v41 = vpack.c.bf16 %v4617_v34, %v4613_v33  ;;  %v4768_v43 = vld [vmem:[#allocation23 + $0x608] sm:$0xff]  ;;  %v4802_v33 = vld [vmem:[#allocation23 + $0x718] sm:$0xff] }
 0x797   : > { %9470 = vmatpush1.bf16.msra.mxu1 %v9469_v48  ;;  %9440 = vmatprep.subr.bf16.mxu0 %v9439_v49  ;;  %v9491_v48 = vpack.c.bf16 %v4583_v45, %v4579_v44  ;;  %v4578_v49 = vld [vmem:[#allocation23 + $0x4c0] sm:$0xff]  ;;  %v4772_v44 = vld [vmem:[#allocation23 + $0x628] sm:$0xff]  ;;  %v4770_v45 = vld [vmem:[#allocation23 + $0x618] sm:$0xff] }
 0x798   : > { %9472 = vmatprep.subr.bf16.mxu1 %v9471_v53  ;;  %v4584_v53 = vld [vmem:[#allocation23 + $0x4f0] sm:$0xff]  ;;  %v9493_v58 = vpack.c.bf16 %v4582_v50, %v4578_v49  ;;  %v4771_v49 = vld [vmem:[#allocation23 + $0x620] sm:$0xff]  ;;  %v4806_v34 = vld [vmem:[#allocation23 + $0x738] sm:$0xff] }
 0x799   : > { %v4769_v50 = vld [vmem:[#allocation23 + $0x610] sm:$0xff] }
 0x79a   : > { %9442 = vmatpush1.bf16.msra.mxu0 %v9441_v59  ;;  %v9525_v59 = vpack.c.bf16 %v4584_v53, %v4580_v51  ;;  %v9575_v51 = vpack.c.bf16 %v4774_v2, %v4770_v45  ;;  %v4776_v53 = vld [vmem:[#allocation23 + $0x648] sm:$0xff]  ;;  %v4810_v45 = vld [vmem:[#allocation23 + $0x758] sm:$0xff] }
 0x79b   : > { %9474 = vmatpush1.bf16.msra.mxu1 %v9473_v0  ;;  %9444 = vmatprep.subr.bf16.mxu0 %v9443_v57  ;;  %v9495_v0 = vpack.c.bf16 %v4591_v17, %v4587_v54  ;;  %v4586_v57 = vld [vmem:[#allocation23 + $0x500] sm:$0xff]  ;;  %v4780_v54 = vld [vmem:[#allocation23 + $0x668] sm:$0xff]  ;;  %v4618_v17 = vrot.slane %v12248_v61, 2  ;;  %v4814_v2 = vld [vmem:[#allocation23 + $0x778] sm:$0xff] }
 0x79c   : > { %9476 = vmatprep.subr.bf16.mxu1 %v9475_v1  ;;  %v4592_v1 = vld [vmem:[#allocation23 + $0x530] sm:$0xff]  ;;  %v9497_v7 = vpack.c.bf16 %v4590_v62, %v4586_v57  ;;  %v4775_v57 = vld [vmem:[#allocation23 + $0x640] sm:$0xff] }
 0x79d   : > { %v4779_v62 = vld [vmem:[#allocation23 + $0x660] sm:$0xff] }
 0x79e   : > { %9446 = vmatpush1.bf16.msra.mxu0 %v9445_v8  ;;  %v9529_v8 = vpack.c.bf16 %v4592_v1, %v4588_v60  ;;  %v4777_v60 = vld [vmem:[#allocation23 + $0x650] sm:$0xff] }
 0x79f   : > { %9478 = vmatpush1.bf16.msra.mxu1 %v9477_v9  ;;  %9480 = vmatprep.subr.bf16.mxu0 %v9479_v10  ;;  %v9499_v9 = vpack.c.bf16 %v4599_v4, %v4595_v3  ;;  %v4594_v10 = vld [vmem:[#allocation23 + $0x540] sm:$0xff]  ;;  %v4781_v1 = vld [vmem:[#allocation23 + $0x670] sm:$0xff]  ;;  %v4784_v3 = vld [vmem:[#allocation23 + $0x688] sm:$0xff] }
 0x7a0   : > { %9512 = vmatprep.subr.bf16.mxu1 %v9511_v13  ;;  %v4600_v13 = vld [vmem:[#allocation23 + $0x570] sm:$0xff]  ;;  %v9501_v23 = vpack.c.bf16 %v4598_v11, %v4594_v10  ;;  %v4788_v4 = vld [vmem:[#allocation23 + $0x6a8] sm:$0xff]  ;;  %v4783_v10 = vld [vmem:[#allocation23 + $0x680] sm:$0xff] }
 0x7a1   : > { %4476 = vmatmul.mubr.f32.vlgmr.msra.gmra.mrb[0].mxu0 %v12248_v61  ;;  %v4787_v11 = vld [vmem:[#allocation23 + $0x6a0] sm:$0xff] }
 0x7a2   : > { %4547 = vmatmul.mubr.f32.vlgmr.msra.gmra.mrb[0].mxu1 %v12248_v61  ;;  %9482 = vmatpush1.bf16.msra.mxu0 %v9481_v25  ;;  %v9533_v25 = vpack.c.bf16 %v4600_v13, %v4596_v22  ;;  %v4785_v22 = vld [vmem:[#allocation23 + $0x690] sm:$0xff] }
 0x7a3   : > { %9514 = vmatpush1.bf16.msra.mxu1 %v9513_v26  ;;  %9484 = vmatprep.subr.bf16.mxu0 %v9483_v27  ;;  %v9503_v26 = vpack.c.bf16 %v4607_v20, %v4603_v18  ;;  %v4602_v27 = vld [vmem:[#allocation23 + $0x580] sm:$0xff]  ;;  %v4789_v13 = vld [vmem:[#allocation23 + $0x6b0] sm:$0xff]  ;;  %v4792_v18 = vld [vmem:[#allocation23 + $0x6c8] sm:$0xff] }
 0x7a4   : > { %9516 = vmatprep.subr.bf16.mxu1 %v9515_v30  ;;  %4684 = vmatprep.mubr.f32.mxu0 %v11201_v19  ;;  %v4608_v30 = vld [vmem:[#allocation23 + $0x5b0] sm:$0xff]  ;;  %v9505_v35 = vpack.c.bf16 %v4606_v16, %v4602_v27  ;;  %v4796_v20 = vld [vmem:[#allocation23 + $0x6e8] sm:$0xff]  ;;  %v4791_v27 = vld [vmem:[#allocation23 + $0x6c0] sm:$0xff] }
 0x7a5   : > { %4755 = vmatprep.mubr.f32.mxu1 %v11201_v19  ;;  %v4795_v16 = vld [vmem:[#allocation23 + $0x6e0] sm:$0xff] }
 0x7a6   : > { %9486 = vmatpush1.bf16.msra.mxu0 %v9485_v36  ;;  %v9537_v36 = vpack.c.bf16 %v4608_v30, %v4604_v28  ;;  %v4793_v28 = vld [vmem:[#allocation23 + $0x6d0] sm:$0xff] }
 0x7a7   : > { %9518 = vmatpush1.bf16.msra.mxu1 %v9517_v37  ;;  %9488 = vmatprep.subr.bf16.mxu0 %v9487_v38  ;;  %v9507_v37 = vpack.c.bf16 %v4615_v32, %v4611_v31  ;;  %v4610_v38 = vld [vmem:[#allocation23 + $0x5c0] sm:$0xff]  ;;  %v4797_v30 = vld [vmem:[#allocation23 + $0x6f0] sm:$0xff]  ;;  %v4800_v31 = vld [vmem:[#allocation23 + $0x708] sm:$0xff] }
 0x7a8   : > { %9520 = vmatprep.subr.bf16.mxu1 %v9519_v42  ;;  %v4616_v42 = vld [vmem:[#allocation23 + $0x5f0] sm:$0xff]  ;;  %v9509_v12 = vpack.c.bf16 %v4614_v39, %v4610_v38  ;;  %v4804_v32 = vld [vmem:[#allocation23 + $0x728] sm:$0xff]  ;;  %v4799_v38 = vld [vmem:[#allocation23 + $0x700] sm:$0xff] }
 0x7a9   : > { %v4803_v39 = vld [vmem:[#allocation23 + $0x720] sm:$0xff] }
 0x7aa   : > { %9490 = vmatpush1.bf16.msra.mxu0 %v9489_v46  ;;  %v9541_v46 = vpack.c.bf16 %v4616_v42, %v4612_v40  ;;  %v4801_v40 = vld [vmem:[#allocation23 + $0x710] sm:$0xff] }
 0x7ab   : > { %9522 = vmatpush1.bf16.msra.mxu1 %v9521_v47  ;;  %9492 = vmatprep.subr.bf16.mxu0 %v9491_v48  ;;  %v9543_v47 = vpack.c.bf16 %v4772_v44, %v4768_v43  ;;  %v4767_v48 = vld [vmem:[#allocation23 + $0x600] sm:$0xff]  ;;  %v4805_v42 = vld [vmem:[#allocation23 + $0x730] sm:$0xff]  ;;  %v4808_v43 = vld [vmem:[#allocation23 + $0x748] sm:$0xff] }
 0x7ac   : > { %9524 = vmatprep.subr.bf16.mxu1 %v9523_v52  ;;  %v4773_v52 = vld [vmem:[#allocation23 + $0x630] sm:$0xff]  ;;  %v4812_v44 = vld [vmem:[#allocation23 + $0x768] sm:$0xff] }
 0x7ae   : > { %9494 = vmatpush1.bf16.msra.mxu0 %v9493_v58  ;;  %v9545_v58 = vpack.c.bf16 %v4771_v49, %v4767_v48  ;;  %v4807_v48 = vld [vmem:[#allocation23 + $0x740] sm:$0xff] }
 0x7af   : > { %9526 = vmatpush1.bf16.msra.mxu1 %v9525_v59  ;;  %9496 = vmatprep.subr.bf16.mxu0 %v9495_v0  ;;  %v9577_v59 = vpack.c.bf16 %v4773_v52, %v4769_v50  ;;  %v9547_v0 = vpack.c.bf16 %v4780_v54, %v4776_v53  ;;  %v4811_v49 = vld [vmem:[#allocation23 + $0x760] sm:$0xff]  ;;  %v4809_v50 = vld [vmem:[#allocation23 + $0x750] sm:$0xff]  ;;  %v4816_v53 = vld [vmem:[#allocation23 + $0x788] sm:$0xff] }
 0x7b0   : > { %9528 = vmatprep.subr.bf16.mxu1 %v9527_v63  ;;  %v9579_v63 = vpack.c.bf16 %v4782_v56, %v4778_v55  ;;  %v4813_v52 = vld [vmem:[#allocation23 + $0x770] sm:$0xff]  ;;  %v4820_v54 = vld [vmem:[#allocation23 + $0x7a8] sm:$0xff]  ;;  %v4822_v55 = vld [vmem:[#allocation23 + $0x7b8] sm:$0xff]  ;;  %v9565_v56 = vpack.c.bf16 %v4811_v49, %v4807_v48 }
 0x7b1   : > { %v5002_v48 = vld [vmem:[#allocation23 + $0x8a0] sm:$0xff]  ;;  %v5000_v49 = vld [vmem:[#allocation23 + $0x890] sm:$0xff] }
 0x7b2   : > { %9498 = vmatpush1.bf16.msra.mxu0 %v9497_v7  ;;  %v9549_v7 = vpack.c.bf16 %v4779_v62, %v4775_v57  ;;  %v4819_v57 = vld [vmem:[#allocation23 + $0x7a0] sm:$0xff]  ;;  %v4817_v62 = vld [vmem:[#allocation23 + $0x790] sm:$0xff] }
 0x7b3   : > { %9530 = vmatpush1.bf16.msra.mxu1 %v9529_v8  ;;  %9500 = vmatprep.subr.bf16.mxu0 %v9499_v9  ;;  %v9581_v8 = vpack.c.bf16 %v4781_v1, %v4777_v60  ;;  %v9551_v9 = vpack.c.bf16 %v4788_v4, %v4784_v3  ;;  %v4824_v1 = vld [vmem:[#allocation23 + $0x7c8] sm:$0xff]  ;;  %v4826_v4 = vld [vmem:[#allocation23 + $0x7d8] sm:$0xff] }
 0x7b4   : > { %9532 = vmatprep.subr.bf16.mxu1 %v9531_v24  ;;  %v9583_v24 = vpack.c.bf16 %v4790_v6, %v4786_v5  ;;  %v4828_v3 = vld [vmem:[#allocation23 + $0x7e8] sm:$0xff]  ;;  %v4830_v5 = vld [vmem:[#allocation23 + $0x7f8] sm:$0xff] }
 0x7b6   : > { %9502 = vmatpush1.bf16.msra.mxu0 %v9501_v23  ;;  %v9553_v23 = vpack.c.bf16 %v4787_v11, %v4783_v10  ;;  %v4827_v10 = vld [vmem:[#allocation23 + $0x7e0] sm:$0xff]  ;;  %v4825_v11 = vld [vmem:[#allocation23 + $0x7d0] sm:$0xff] }
 0x7b7   : > { %9534 = vmatpush1.bf16.msra.mxu1 %v9533_v25  ;;  %9504 = vmatprep.subr.bf16.mxu0 %v9503_v26  ;;  %v9585_v25 = vpack.c.bf16 %v4789_v13, %v4785_v22  ;;  %v9555_v26 = vpack.c.bf16 %v4796_v20, %v4792_v18  ;;  %v9603_v22 = vpack.c.bf16 %v4830_v5, %v4826_v4  ;;  %v4983_v13 = vld [vmem:[#allocation23 + $0x808] sm:$0xff]  ;;  %v4985_v20 = vld [vmem:[#allocation23 + $0x818] sm:$0xff] }
 0x7b8   : > { %9536 = vmatprep.subr.bf16.mxu1 %v9535_v29  ;;  %v9587_v29 = vpack.c.bf16 %v4798_v14, %v4794_v21  ;;  %v4987_v18 = vld [vmem:[#allocation23 + $0x828] sm:$0xff]  ;;  %v4989_v21 = vld [vmem:[#allocation23 + $0x838] sm:$0xff] }
 0x7b9   : > { %v5021_v4 = vld [vmem:[#allocation23 + $0x938] sm:$0xff] }
 0x7ba   : > { %9506 = vmatpush1.bf16.msra.mxu0 %v9505_v35  ;;  %v9557_v35 = vpack.c.bf16 %v4795_v16, %v4791_v27  ;;  %v4986_v27 = vld [vmem:[#allocation23 + $0x820] sm:$0xff]  ;;  %v4984_v16 = vld [vmem:[#allocation23 + $0x810] sm:$0xff] }
 0x7bb   : > { %9538 = vmatpush1.bf16.msra.mxu1 %v9537_v36  ;;  %9508 = vmatprep.subr.bf16.mxu0 %v9507_v37  ;;  %v9589_v36 = vpack.c.bf16 %v4797_v30, %v4793_v28  ;;  %v9559_v37 = vpack.c.bf16 %v4804_v32, %v4800_v31  ;;  %v9639_v28 = vpack.c.bf16 %v4989_v21, %v4985_v20  ;;  %v4991_v30 = vld [vmem:[#allocation23 + $0x848] sm:$0xff]  ;;  %v4831_v32 = vrot.slane %v12248_v61, 3  ;;  %v5029_v20 = vld [vmem:[#allocation23 + $0x978] sm:$0xff] }
 0x7bc   : > { %9540 = vmatprep.subr.bf16.mxu1 %v9539_v41  ;;  %v9591_v41 = vpack.c.bf16 %v4806_v34, %v4802_v33  ;;  %v4995_v31 = vld [vmem:[#allocation23 + $0x868] sm:$0xff]  ;;  %v4993_v33 = vld [vmem:[#allocation23 + $0x858] sm:$0xff] }
 0x7bd   : > { %v4997_v34 = vld [vmem:[#allocation23 + $0x878] sm:$0xff] }
 0x7be   : > { %9510 = vmatpush1.bf16.msra.mxu0 %v9509_v12  ;;  %v9561_v12 = vpack.c.bf16 %v4803_v39, %v4799_v38  ;;  %v4990_v38 = vld [vmem:[#allocation23 + $0x840] sm:$0xff] }
 0x7bf   : > { %9542 = vmatpush1.bf16.msra.mxu1 %v9541_v46  ;;  %9544 = vmatprep.subr.bf16.mxu0 %v9543_v47  ;;  %v9593_v46 = vpack.c.bf16 %v4805_v42, %v4801_v40  ;;  %v9563_v47 = vpack.c.bf16 %v4812_v44, %v4808_v43  ;;  %v4994_v39 = vld [vmem:[#allocation23 + $0x860] sm:$0xff]  ;;  %v4992_v40 = vld [vmem:[#allocation23 + $0x850] sm:$0xff]  ;;  %v4999_v43 = vld [vmem:[#allocation23 + $0x888] sm:$0xff] }
 0x7c0   : > { %9576 = vmatprep.subr.bf16.mxu1 %v9575_v51  ;;  %v9595_v51 = vpack.c.bf16 %v4814_v2, %v4810_v45  ;;  %v4996_v42 = vld [vmem:[#allocation23 + $0x870] sm:$0xff]  ;;  %v5003_v44 = vld [vmem:[#allocation23 + $0x8a8] sm:$0xff]  ;;  %v5001_v45 = vld [vmem:[#allocation23 + $0x898] sm:$0xff]  ;;  %v9613_v61 = vpack.c.bf16 %v4994_v39, %v4990_v38 }
 0x7c1   : > { %4685 = vmatmul.mubr.f32.vlgmr.msra.gmra.mrb[0].mxu0 %v4618_v17  ;;  %v5005_v2 = vld [vmem:[#allocation23 + $0x8b8] sm:$0xff]  ;;  %v5032_v38 = vld [vmem:[#allocation23 + $0x990] sm:$0xff] }
 0x7c2   : > { %4756 = vmatmul.mubr.f32.vlgmr.msra.gmra.mrb[0].mxu1 %v4618_v17  ;;  %9546 = vmatpush1.bf16.msra.mxu0 %v9545_v58  ;;  %v4818_v17 = vld [vmem:[#allocation23 + $0x798] sm:$0xff]  ;;  %v9597_v58 = vpack.c.bf16 %v4813_v52, %v4809_v50  ;;  %v9647_v50 = vpack.c.bf16 %v5005_v2, %v5001_v45  ;;  %v5007_v52 = vld [vmem:[#allocation23 + $0x8c8] sm:$0xff] }
 0x7c3   : > { %9578 = vmatpush1.bf16.msra.mxu1 %v9577_v59  ;;  %9548 = vmatprep.subr.bf16.mxu0 %v9547_v0  ;;  %v9567_v59 = vpack.c.bf16 %v4820_v54, %v4816_v53  ;;  %v4815_v0 = vld [vmem:[#allocation23 + $0x780] sm:$0xff]  ;;  %v9599_v60 = vpack.c.bf16 %v4822_v55, %v4818_v17  ;;  %v5011_v53 = vld [vmem:[#allocation23 + $0x8e8] sm:$0xff]  ;;  %v5009_v54 = vld [vmem:[#allocation23 + $0x8d8] sm:$0xff] }
 0x7c4   : > { %9580 = vmatprep.subr.bf16.mxu1 %v9579_v63  ;;  %4897 = vmatprep.mubr.f32.mxu0 %v11201_v19  ;;  %v4821_v63 = vld [vmem:[#allocation23 + $0x7b0] sm:$0xff]  ;;  %v9569_v6 = vpack.c.bf16 %v4819_v57, %v4815_v0  ;;  %v5013_v17 = vld [vmem:[#allocation23 + $0x8f8] sm:$0xff]  ;;  %v5010_v0 = vld [vmem:[#allocation23 + $0x8e0] sm:$0xff] }
 0x7c5   : > { %4968 = vmatprep.mubr.f32.mxu1 %v11201_v19  ;;  %v5008_v57 = vld [vmem:[#allocation23 + $0x8d0] sm:$0xff] }
 0x7c6   : > { %9550 = vmatpush1.bf16.msra.mxu0 %v9549_v7  ;;  %v9601_v7 = vpack.c.bf16 %v4821_v63, %v4817_v62  ;;  %v9651_v62 = vpack.c.bf16 %v5013_v17, %v5009_v54  ;;  %v5015_v63 = vld [vmem:[#allocation23 + $0x908] sm:$0xff] }
 0x7c7   : > { %9582 = vmatpush1.bf16.msra.mxu1 %v9581_v8  ;;  %9552 = vmatprep.subr.bf16.mxu0 %v9551_v9  ;;  %v9571_v8 = vpack.c.bf16 %v4828_v3, %v4824_v1  ;;  %v4823_v9 = vld [vmem:[#allocation23 + $0x7c0] sm:$0xff]  ;;  %v5019_v1 = vld [vmem:[#allocation23 + $0x928] sm:$0xff]  ;;  %v5017_v3 = vld [vmem:[#allocation23 + $0x918] sm:$0xff] }
 0x7c8   : > { %9584 = vmatprep.subr.bf16.mxu1 %v9583_v24  ;;  %v4829_v24 = vld [vmem:[#allocation23 + $0x7f0] sm:$0xff]  ;;  %v9573_v14 = vpack.c.bf16 %v4827_v10, %v4823_v9  ;;  %v5018_v9 = vld [vmem:[#allocation23 + $0x920] sm:$0xff] }
 0x7c9   : > { %v5016_v10 = vld [vmem:[#allocation23 + $0x910] sm:$0xff] }
 0x7ca   : > { %9554 = vmatpush1.bf16.msra.mxu0 %v9553_v23  ;;  %v9605_v23 = vpack.c.bf16 %v4829_v24, %v4825_v11  ;;  %v9655_v11 = vpack.c.bf16 %v5021_v4, %v5017_v3  ;;  %v5023_v24 = vld [vmem:[#allocation23 + $0x948] sm:$0xff]  ;;  %v12263_v3 = vld [vmem:[#allocation8 + $0x4] sm:$0xf] }
 0x7cb   : > { %9586 = vmatpush1.bf16.msra.mxu1 %v9585_v25  ;;  %9556 = vmatprep.subr.bf16.mxu0 %v9555_v26  ;;  %v9607_v25 = vpack.c.bf16 %v4987_v18, %v4983_v13  ;;  %v4982_v26 = vld [vmem:[#allocation23 + $0x800] sm:$0xff]  ;;  %v5027_v13 = vld [vmem:[#allocation23 + $0x968] sm:$0xff]  ;;  %v5025_v18 = vld [vmem:[#allocation23 + $0x958] sm:$0xff] }
 0x7cc   : > { %9588 = vmatprep.subr.bf16.mxu1 %v9587_v29  ;;  %v4988_v29 = vld [vmem:[#allocation23 + $0x830] sm:$0xff] }
 0x7ce   : > { %9558 = vmatpush1.bf16.msra.mxu0 %v9557_v35  ;;  %v9609_v35 = vpack.c.bf16 %v4986_v27, %v4982_v26  ;;  %v5026_v26 = vld [vmem:[#allocation23 + $0x960] sm:$0xff]  ;;  %v5024_v27 = vld [vmem:[#allocation23 + $0x950] sm:$0xff] }
 0x7cf   : > { %9590 = vmatpush1.bf16.msra.mxu1 %v9589_v36  ;;  %9560 = vmatprep.subr.bf16.mxu0 %v9559_v37  ;;  %v9641_v36 = vpack.c.bf16 %v4988_v29, %v4984_v16  ;;  %v9611_v37 = vpack.c.bf16 %v4995_v31, %v4991_v30  ;;  %v9659_v16 = vpack.c.bf16 %v5029_v20, %v5025_v18  ;;  %v5031_v29 = vld [vmem:[#allocation23 + $0x988] sm:$0xff]  ;;  %v5033_v31 = vld [vmem:[#allocation23 + $0x998] sm:$0xff] }
 0x7d0   : > { %9592 = vmatprep.subr.bf16.mxu1 %v9591_v41  ;;  %v9643_v41 = vpack.c.bf16 %v4997_v34, %v4993_v33  ;;  %v5035_v30 = vld [vmem:[#allocation23 + $0x9a8] sm:$0xff]  ;;  %v5216_v18 = vld [vmem:[#allocation23 + $0xab8] sm:$0xff] }
 0x7d2   : > { %9562 = vmatpush1.bf16.msra.mxu0 %v9561_v12  ;;  %v9645_v12 = vpack.c.bf16 %v4996_v42, %v4992_v40  ;;  %v5036_v40 = vld [vmem:[#allocation23 + $0x9b0] sm:$0xff]  ;;  %v5043_v42 = vld [vmem:[#allocation23 + $0x9e8] sm:$0xff] }
 0x7d3   : > { %9594 = vmatpush1.bf16.msra.mxu1 %v9593_v46  ;;  %9564 = vmatprep.subr.bf16.mxu0 %v9563_v47  ;;  %v9615_v46 = vpack.c.bf16 %v5003_v44, %v4999_v43  ;;  %v4998_v47 = vld [vmem:[#allocation23 + $0x880] sm:$0xff]  ;;  %v5041_v43 = vld [vmem:[#allocation23 + $0x9d8] sm:$0xff]  ;;  %v9665_v2 = vpack.c.bf16 %v5036_v40, %v5032_v38  ;;  %v5226_v40 = vld [vmem:[#allocation23 + $0xb08] sm:$0xff] }
 0x7d4   : > { %9596 = vmatprep.subr.bf16.mxu1 %v9595_v51  ;;  %v5004_v51 = vld [vmem:[#allocation23 + $0x8b0] sm:$0xff]  ;;  %v9617_v55 = vpack.c.bf16 %v5002_v48, %v4998_v47  ;;  %v5045_v44 = vld [vmem:[#allocation23 + $0x9f8] sm:$0xff] }
 0x7d5   : > { %v5040_v47 = vld [vmem:[#allocation23 + $0x9d0] sm:$0xff]  ;;  %v9667_v48 = vpack.c.bf16 %v5045_v44, %v5041_v43  ;;  %v5232_v43 = vld [vmem:[#allocation23 + $0xb38] sm:$0xff] }
 0x7d6   : > { %9566 = vmatpush1.bf16.msra.mxu0 %v9565_v56  ;;  %v9649_v56 = vpack.c.bf16 %v5004_v51, %v5000_v49  ;;  %v5044_v49 = vld [vmem:[#allocation23 + $0x9f0] sm:$0xff]  ;;  %v5198_v51 = vld [vmem:[#allocation23 + $0xa28] sm:$0xff] }
 0x7d7   : > { %9598 = vmatpush1.bf16.msra.mxu1 %v9597_v58  ;;  %9568 = vmatprep.subr.bf16.mxu0 %v9567_v59  ;;  %v9619_v58 = vpack.c.bf16 %v5011_v53, %v5007_v52  ;;  %v5006_v59 = vld [vmem:[#allocation23 + $0x8c0] sm:$0xff]  ;;  %v5196_v52 = vld [vmem:[#allocation23 + $0xa18] sm:$0xff]  ;;  %v9669_v17 = vpack.c.bf16 %v5044_v49, %v5040_v47  ;;  %v5234_v49 = vld [vmem:[#allocation23 + $0xb48] sm:$0xff] }
 0x7d8   : > { %9600 = vmatprep.subr.bf16.mxu1 %v9599_v60  ;;  %v5012_v60 = vld [vmem:[#allocation23 + $0x8f0] sm:$0xff]  ;;  %v9621_v5 = vpack.c.bf16 %v5010_v0, %v5006_v59  ;;  %v5200_v53 = vld [vmem:[#allocation23 + $0xa38] sm:$0xff] }
 0x7d9   : > { %v5195_v59 = vld [vmem:[#allocation23 + $0xa10] sm:$0xff]  ;;  %v9703_v0 = vpack.c.bf16 %v5200_v53, %v5196_v52  ;;  %v5240_v52 = vld [vmem:[#allocation23 + $0xb78] sm:$0xff] }
 0x7da   : > { %9570 = vmatpush1.bf16.msra.mxu0 %v9569_v6  ;;  %v9653_v6 = vpack.c.bf16 %v5012_v60, %v5008_v57  ;;  %v5199_v57 = vld [vmem:[#allocation23 + $0xa30] sm:$0xff]  ;;  %v5206_v60 = vld [vmem:[#allocation23 + $0xa68] sm:$0xff] }
 0x7db   : > { %9602 = vmatpush1.bf16.msra.mxu1 %v9601_v7  ;;  %9572 = vmatprep.subr.bf16.mxu0 %v9571_v8  ;;  %v9623_v7 = vpack.c.bf16 %v5019_v1, %v5015_v63  ;;  %v5014_v8 = vld [vmem:[#allocation23 + $0x900] sm:$0xff]  ;;  %v5204_v63 = vld [vmem:[#allocation23 + $0xa58] sm:$0xff] }
 0x7dc   : > { %9604 = vmatprep.subr.bf16.mxu1 %v9603_v22  ;;  %v5020_v22 = vld [vmem:[#allocation23 + $0x930] sm:$0xff]  ;;  %v9625_v21 = vpack.c.bf16 %v5018_v9, %v5014_v8  ;;  %v5208_v1 = vld [vmem:[#allocation23 + $0xa78] sm:$0xff]  ;;  %v5205_v8 = vld [vmem:[#allocation23 + $0xa60] sm:$0xff] }
 0x7dd   : > { %v5203_v9 = vld [vmem:[#allocation23 + $0xa50] sm:$0xff] }
 0x7de   : > { %9574 = vmatpush1.bf16.msra.mxu0 %v9573_v14  ;;  %v9657_v14 = vpack.c.bf16 %v5020_v22, %v5016_v10  ;;  %v9707_v10 = vpack.c.bf16 %v5208_v1, %v5204_v63  ;;  %v5210_v22 = vld [vmem:[#allocation23 + $0xa88] sm:$0xff]  ;;  %v5248_v63 = vld [vmem:[#allocation23 + $0xbb8] sm:$0xff] }
 0x7df   : > { %9606 = vmatpush1.bf16.msra.mxu1 %v9605_v23  ;;  %9608 = vmatprep.subr.bf16.mxu0 %v9607_v25  ;;  %v9627_v23 = vpack.c.bf16 %v5027_v13, %v5023_v24  ;;  %v5022_v25 = vld [vmem:[#allocation23 + $0x940] sm:$0xff]  ;;  %v5214_v24 = vld [vmem:[#allocation23 + $0xaa8] sm:$0xff]  ;;  %v5212_v13 = vld [vmem:[#allocation23 + $0xa98] sm:$0xff] }
 0x7e0   : > { %9640 = vmatprep.subr.bf16.mxu1 %v9639_v28  ;;  %v5028_v28 = vld [vmem:[#allocation23 + $0x970] sm:$0xff]  ;;  %v9629_v33 = vpack.c.bf16 %v5026_v26, %v5022_v25  ;;  %v5213_v25 = vld [vmem:[#allocation23 + $0xaa0] sm:$0xff] }
 0x7e1   : > { %4898 = vmatmul.mubr.f32.vlgmr.msra.gmra.mrb[0].mxu0 %v4831_v32  ;;  %v9661_v34 = vpack.c.bf16 %v5028_v28, %v5024_v27  ;;  %v5211_v26 = vld [vmem:[#allocation23 + $0xa90] sm:$0xff]  ;;  %v9711_v27 = vpack.c.bf16 %v5216_v18, %v5212_v13  ;;  %v5218_v28 = vld [vmem:[#allocation23 + $0xac8] sm:$0xff]  ;;  %v5256_v13 = vld [vmem:[#allocation23 + $0xbf8] sm:$0xff] }
 0x7e2   : > { %4969 = vmatmul.mubr.f32.vlgmr.msra.gmra.mrb[0].mxu1 %v4831_v32  ;;  %9610 = vmatpush1.bf16.msra.mxu0 %v9609_v35  ;;  %v5037_v32 = vld [vmem:[#allocation23 + $0x9b8] sm:$0xff]  ;;  %v9631_v35 = vpack.c.bf16 %v5035_v30, %v5031_v29  ;;  %v5222_v29 = vld [vmem:[#allocation23 + $0xae8] sm:$0xff] }
 0x7e3   : > { %9642 = vmatpush1.bf16.msra.mxu1 %v9641_v36  ;;  %9612 = vmatprep.subr.bf16.mxu0 %v9611_v37  ;;  %v5030_v36 = vld [vmem:[#allocation23 + $0x980] sm:$0xff]  ;;  %v9663_v39 = vpack.c.bf16 %v5037_v32, %v5033_v31  ;;  %v5220_v30 = vld [vmem:[#allocation23 + $0xad8] sm:$0xff] }
 0x7e4   : > { %9644 = vmatprep.subr.bf16.mxu1 %v9643_v41  ;;  %5110 = vmatprep.mubr.f32.mxu0 %v11201_v19  ;;  %v5034_v37 = vld [vmem:[#allocation23 + $0x9a0] sm:$0xff]  ;;  %v5039_v41 = vld [vmem:[#allocation23 + $0x9c8] sm:$0xff]  ;;  %v5224_v31 = vld [vmem:[#allocation23 + $0xaf8] sm:$0xff] }
 0x7e5   : > { %5181 = vmatprep.mubr.f32.mxu1 %v11201_v19  ;;  %v9633_v45 = vpack.c.bf16 %v5034_v37, %v5030_v36  ;;  %v5221_v36 = vld [vmem:[#allocation23 + $0xae0] sm:$0xff]  ;;  %v5219_v37 = vld [vmem:[#allocation23 + $0xad0] sm:$0xff]  ;;  %v9715_v38 = vpack.c.bf16 %v5224_v31, %v5220_v30  ;;  %v5414_v30 = vld [vmem:[#allocation23 + $0xc38] sm:$0xff] }
 0x7e6   : > { %9614 = vmatpush1.bf16.msra.mxu0 %v9613_v61  ;;  %v9635_v61 = vpack.c.bf16 %v5043_v42, %v5039_v41  ;;  %v5230_v41 = vld [vmem:[#allocation23 + $0xb28] sm:$0xff]  ;;  %v5228_v42 = vld [vmem:[#allocation23 + $0xb18] sm:$0xff] }
 0x7e7   : > { %9646 = vmatpush1.bf16.msra.mxu1 %v9645_v12  ;;  %9616 = vmatprep.subr.bf16.mxu0 %v9615_v46  ;;  %v5038_v12 = vld [vmem:[#allocation23 + $0x9c0] sm:$0xff]  ;;  %v9719_v47 = vpack.c.bf16 %v5232_v43, %v5228_v42  ;;  %v5418_v42 = vld [vmem:[#allocation23 + $0xc58] sm:$0xff] }
 0x7e8   : > { %9648 = vmatprep.subr.bf16.mxu1 %v9647_v50  ;;  %v5042_v46 = vld [vmem:[#allocation23 + $0x9e0] sm:$0xff]  ;;  %v5194_v50 = vld [vmem:[#allocation23 + $0xa08] sm:$0xff]  ;;  %v5422_v43 = vld [vmem:[#allocation23 + $0xc78] sm:$0xff] }
 0x7e9   : > { %v9637_v54 = vpack.c.bf16 %v5042_v46, %v5038_v12  ;;  %v5229_v12 = vld [vmem:[#allocation23 + $0xb20] sm:$0xff]  ;;  %v5227_v46 = vld [vmem:[#allocation23 + $0xb10] sm:$0xff] }
 0x7ea   : > { %9618 = vmatpush1.bf16.msra.mxu0 %v9617_v55  ;;  %v9671_v55 = vpack.c.bf16 %v5198_v51, %v5194_v50  ;;  %v5238_v50 = vld [vmem:[#allocation23 + $0xb68] sm:$0xff]  ;;  %v5236_v51 = vld [vmem:[#allocation23 + $0xb58] sm:$0xff] }
 0x7eb   : > { %9650 = vmatpush1.bf16.msra.mxu1 %v9649_v56  ;;  %9620 = vmatprep.subr.bf16.mxu0 %v9619_v58  ;;  %v5193_v56 = vld [vmem:[#allocation23 + $0xa00] sm:$0xff] }
 0x7ec   : > { %9652 = vmatprep.subr.bf16.mxu1 %v9651_v62  ;;  %v5197_v58 = vld [vmem:[#allocation23 + $0xa20] sm:$0xff]  ;;  %v5202_v62 = vld [vmem:[#allocation23 + $0xa48] sm:$0xff] }
 0x7ed   : > { %v9673_v4 = vpack.c.bf16 %v5197_v58, %v5193_v56  ;;  %v5237_v56 = vld [vmem:[#allocation23 + $0xb60] sm:$0xff]  ;;  %v5235_v58 = vld [vmem:[#allocation23 + $0xb50] sm:$0xff] }
 0x7ee   : > { %9622 = vmatpush1.bf16.msra.mxu0 %v9621_v5  ;;  %v9705_v5 = vpack.c.bf16 %v5199_v57, %v5195_v59  ;;  %v9723_v59 = vpack.c.bf16 %v5240_v52, %v5236_v51  ;;  %v5242_v57 = vld [vmem:[#allocation23 + $0xb88] sm:$0xff]  ;;  %v5426_v51 = vld [vmem:[#allocation23 + $0xc98] sm:$0xff] }
 0x7ef   : > { %9654 = vmatpush1.bf16.msra.mxu1 %v9653_v6  ;;  %9624 = vmatprep.subr.bf16.mxu0 %v9623_v7  ;;  %v9675_v6 = vpack.c.bf16 %v5206_v60, %v5202_v62  ;;  %v5201_v7 = vld [vmem:[#allocation23 + $0xa40] sm:$0xff]  ;;  %v5246_v62 = vld [vmem:[#allocation23 + $0xba8] sm:$0xff]  ;;  %v5244_v60 = vld [vmem:[#allocation23 + $0xb98] sm:$0xff] }
 0x7f0   : > { %9656 = vmatprep.subr.bf16.mxu1 %v9655_v11  ;;  %v5207_v11 = vld [vmem:[#allocation23 + $0xa70] sm:$0xff]  ;;  %v9677_v20 = vpack.c.bf16 %v5205_v8, %v5201_v7  ;;  %v5245_v7 = vld [vmem:[#allocation23 + $0xba0] sm:$0xff]  ;;  %v5430_v52 = vld [vmem:[#allocation23 + $0xcb8] sm:$0xff] }
 0x7f1   : > { %v5243_v8 = vld [vmem:[#allocation23 + $0xb90] sm:$0xff] }
 0x7f2   : > { %9626 = vmatpush1.bf16.msra.mxu0 %v9625_v21  ;;  %v9709_v21 = vpack.c.bf16 %v5207_v11, %v5203_v9  ;;  %v9727_v9 = vpack.c.bf16 %v5248_v63, %v5244_v60  ;;  %v5250_v11 = vld [vmem:[#allocation23 + $0xbc8] sm:$0xff]  ;;  %v5434_v60 = vld [vmem:[#allocation23 + $0xcd8] sm:$0xff] }
 0x7f3   : > { %9658 = vmatpush1.bf16.msra.mxu1 %v9657_v14  ;;  %9628 = vmatprep.subr.bf16.mxu0 %v9627_v23  ;;  %v9679_v14 = vpack.c.bf16 %v5214_v24, %v5210_v22  ;;  %v5209_v23 = vld [vmem:[#allocation23 + $0xa80] sm:$0xff]  ;;  %v5254_v22 = vld [vmem:[#allocation23 + $0xbe8] sm:$0xff]  ;;  %v5252_v24 = vld [vmem:[#allocation23 + $0xbd8] sm:$0xff] }
 0x7f4   : > { %9660 = vmatprep.subr.bf16.mxu1 %v9659_v16  ;;  %v5215_v16 = vld [vmem:[#allocation23 + $0xab0] sm:$0xff]  ;;  %v9681_v32 = vpack.c.bf16 %v5213_v25, %v5209_v23  ;;  %v5253_v23 = vld [vmem:[#allocation23 + $0xbe0] sm:$0xff]  ;;  %v5438_v63 = vld [vmem:[#allocation23 + $0xcf8] sm:$0xff] }
 0x7f5   : > { %v5251_v25 = vld [vmem:[#allocation23 + $0xbd0] sm:$0xff] }
 0x7f6   : > { %9630 = vmatpush1.bf16.msra.mxu0 %v9629_v33  ;;  %v9713_v33 = vpack.c.bf16 %v5215_v16, %v5211_v26  ;;  %v9731_v26 = vpack.c.bf16 %v5256_v13, %v5252_v24  ;;  %v5408_v16 = vld [vmem:[#allocation23 + $0xc08] sm:$0xff]  ;;  %v5442_v24 = vld [vmem:[#allocation23 + $0xd18] sm:$0xff] }
 0x7f7   : > { %9662 = vmatpush1.bf16.msra.mxu1 %v9661_v34  ;;  %9632 = vmatprep.subr.bf16.mxu0 %v9631_v35  ;;  %v9683_v34 = vpack.c.bf16 %v5222_v29, %v5218_v28  ;;  %v5217_v35 = vld [vmem:[#allocation23 + $0xac0] sm:$0xff]  ;;  %v5412_v28 = vld [vmem:[#allocation23 + $0xc28] sm:$0xff]  ;;  %v5410_v29 = vld [vmem:[#allocation23 + $0xc18] sm:$0xff] }
 0x7f8   : > { %9664 = vmatprep.subr.bf16.mxu1 %v9663_v39  ;;  %v5223_v39 = vld [vmem:[#allocation23 + $0xaf0] sm:$0xff]  ;;  %v9685_v44 = vpack.c.bf16 %v5221_v36, %v5217_v35  ;;  %v5411_v35 = vld [vmem:[#allocation23 + $0xc20] sm:$0xff]  ;;  %v5446_v13 = vld [vmem:[#allocation23 + $0xd38] sm:$0xff] }
 0x7f9   : > { %v5409_v36 = vld [vmem:[#allocation23 + $0xc10] sm:$0xff] }
 0x7fa   : > { %9634 = vmatpush1.bf16.msra.mxu0 %v9633_v45  ;;  %v9717_v45 = vpack.c.bf16 %v5223_v39, %v5219_v37  ;;  %v9767_v37 = vpack.c.bf16 %v5414_v30, %v5410_v29  ;;  %v5416_v39 = vld [vmem:[#allocation23 + $0xc48] sm:$0xff]  ;;  %v5450_v29 = vld [vmem:[#allocation23 + $0xd58] sm:$0xff] }
 0x7fb   : > { %9666 = vmatpush1.bf16.msra.mxu1 %v9665_v2  ;;  %9636 = vmatprep.subr.bf16.mxu0 %v9635_v61  ;;  %v9687_v2 = vpack.c.bf16 %v5230_v41, %v5226_v40  ;;  %v5225_v61 = vld [vmem:[#allocation23 + $0xb00] sm:$0xff]  ;;  %v5420_v40 = vld [vmem:[#allocation23 + $0xc68] sm:$0xff]  ;;  %v5258_v41 = vrot.slane %v12263_v3, 1  ;;  %v5454_v30 = vld [vmem:[#allocation23 + $0xd78] sm:$0xff] }
 0x7fc   : > { %9668 = vmatprep.subr.bf16.mxu1 %v9667_v48  ;;  %v5231_v48 = vld [vmem:[#allocation23 + $0xb30] sm:$0xff]  ;;  %v9689_v53 = vpack.c.bf16 %v5229_v12, %v5225_v61  ;;  %v5415_v61 = vld [vmem:[#allocation23 + $0xc40] sm:$0xff] }
 0x7fd   : > { %v5419_v12 = vld [vmem:[#allocation23 + $0xc60] sm:$0xff] }
 0x7fe   : > { %9638 = vmatpush1.bf16.msra.mxu0 %v9637_v54  ;;  %v9721_v54 = vpack.c.bf16 %v5231_v48, %v5227_v46  ;;  %v5417_v46 = vld [vmem:[#allocation23 + $0xc50] sm:$0xff] }
 0x7ff   : > { %9670 = vmatpush1.bf16.msra.mxu1 %v9669_v17  ;;  %9672 = vmatprep.subr.bf16.mxu0 %v9671_v55  ;;  %v9691_v17 = vpack.c.bf16 %v5238_v50, %v5234_v49  ;;  %v5233_v55 = vld [vmem:[#allocation23 + $0xb40] sm:$0xff]  ;;  %v5421_v48 = vld [vmem:[#allocation23 + $0xc70] sm:$0xff]  ;;  %v5424_v49 = vld [vmem:[#allocation23 + $0xc88] sm:$0xff] }
 0x800   : > { %9704 = vmatprep.subr.bf16.mxu1 %v9703_v0  ;;  %v5239_v0 = vld [vmem:[#allocation23 + $0xb70] sm:$0xff]  ;;  %v9693_v1 = vpack.c.bf16 %v5237_v56, %v5233_v55  ;;  %v5428_v50 = vld [vmem:[#allocation23 + $0xca8] sm:$0xff]  ;;  %v5423_v55 = vld [vmem:[#allocation23 + $0xc80] sm:$0xff] }
 0x801   : > { %5111 = vmatmul.mubr.f32.vlgmr.msra.gmra.mrb[0].mxu0 %v12263_v3  ;;  %v5427_v56 = vld [vmem:[#allocation23 + $0xca0] sm:$0xff] }
 0x802   : > { %5182 = vmatmul.mubr.f32.vlgmr.msra.gmra.mrb[0].mxu1 %v12263_v3  ;;  %9674 = vmatpush1.bf16.msra.mxu0 %v9673_v4  ;;  %v9725_v4 = vpack.c.bf16 %v5239_v0, %v5235_v58  ;;  %v5425_v58 = vld [vmem:[#allocation23 + $0xc90] sm:$0xff] }
 0x803   : > { %9706 = vmatpush1.bf16.msra.mxu1 %v9705_v5  ;;  %9676 = vmatprep.subr.bf16.mxu0 %v9675_v6  ;;  %v9695_v5 = vpack.c.bf16 %v5246_v62, %v5242_v57  ;;  %v5241_v6 = vld [vmem:[#allocation23 + $0xb80] sm:$0xff]  ;;  %v5429_v0 = vld [vmem:[#allocation23 + $0xcb0] sm:$0xff]  ;;  %v5432_v57 = vld [vmem:[#allocation23 + $0xcc8] sm:$0xff] }
 0x804   : > { %9708 = vmatprep.subr.bf16.mxu1 %v9707_v10  ;;  %5324 = vmatprep.mubr.f32.mxu0 %v11201_v19  ;;  %v5247_v10 = vld [vmem:[#allocation23 + $0xbb0] sm:$0xff]  ;;  %v9697_v18 = vpack.c.bf16 %v5245_v7, %v5241_v6  ;;  %v5436_v62 = vld [vmem:[#allocation23 + $0xce8] sm:$0xff]  ;;  %v5431_v6 = vld [vmem:[#allocation23 + $0xcc0] sm:$0xff] }
 0x805   : > { %5395 = vmatprep.mubr.f32.mxu1 %v11201_v19  ;;  %v5435_v7 = vld [vmem:[#allocation23 + $0xce0] sm:$0xff] }
 0x806   : > { %9678 = vmatpush1.bf16.msra.mxu0 %v9677_v20  ;;  %v9729_v20 = vpack.c.bf16 %v5247_v10, %v5243_v8  ;;  %v5433_v8 = vld [vmem:[#allocation23 + $0xcd0] sm:$0xff] }
 0x807   : > { %9710 = vmatpush1.bf16.msra.mxu1 %v9709_v21  ;;  %9680 = vmatprep.subr.bf16.mxu0 %v9679_v14  ;;  %v9699_v21 = vpack.c.bf16 %v5254_v22, %v5250_v11  ;;  %v5249_v14 = vld [vmem:[#allocation23 + $0xbc0] sm:$0xff]  ;;  %v5437_v10 = vld [vmem:[#allocation23 + $0xcf0] sm:$0xff]  ;;  %v5440_v11 = vld [vmem:[#allocation23 + $0xd08] sm:$0xff] }
 0x808   : > { %9712 = vmatprep.subr.bf16.mxu1 %v9711_v27  ;;  %v5255_v27 = vld [vmem:[#allocation23 + $0xbf0] sm:$0xff]  ;;  %v9701_v31 = vpack.c.bf16 %v5253_v23, %v5249_v14  ;;  %v5444_v22 = vld [vmem:[#allocation23 + $0xd28] sm:$0xff]  ;;  %v5439_v14 = vld [vmem:[#allocation23 + $0xd00] sm:$0xff] }
 0x809   : > { %v5443_v23 = vld [vmem:[#allocation23 + $0xd20] sm:$0xff] }
 0x80a   : > { %9682 = vmatpush1.bf16.msra.mxu0 %v9681_v32  ;;  %v9733_v32 = vpack.c.bf16 %v5255_v27, %v5251_v25  ;;  %v5441_v25 = vld [vmem:[#allocation23 + $0xd10] sm:$0xff] }
 0x80b   : > { %9714 = vmatpush1.bf16.msra.mxu1 %v9713_v33  ;;  %9684 = vmatprep.subr.bf16.mxu0 %v9683_v34  ;;  %v9735_v33 = vpack.c.bf16 %v5412_v28, %v5408_v16  ;;  %v5407_v34 = vld [vmem:[#allocation23 + $0xc00] sm:$0xff]  ;;  %v5445_v27 = vld [vmem:[#allocation23 + $0xd30] sm:$0xff]  ;;  %v5448_v16 = vld [vmem:[#allocation23 + $0xd48] sm:$0xff] }
 0x80c   : > { %9716 = vmatprep.subr.bf16.mxu1 %v9715_v38  ;;  %v5413_v38 = vld [vmem:[#allocation23 + $0xc30] sm:$0xff]  ;;  %v5452_v28 = vld [vmem:[#allocation23 + $0xd68] sm:$0xff] }
 0x80e   : > { %9686 = vmatpush1.bf16.msra.mxu0 %v9685_v44  ;;  %v9737_v44 = vpack.c.bf16 %v5411_v35, %v5407_v34  ;;  %v5447_v34 = vld [vmem:[#allocation23 + $0xd40] sm:$0xff] }
 0x80f   : > { %9718 = vmatpush1.bf16.msra.mxu1 %v9717_v45  ;;  %9688 = vmatprep.subr.bf16.mxu0 %v9687_v2  ;;  %v9769_v45 = vpack.c.bf16 %v5413_v38, %v5409_v36  ;;  %v9739_v2 = vpack.c.bf16 %v5420_v40, %v5416_v39  ;;  %v5451_v35 = vld [vmem:[#allocation23 + $0xd60] sm:$0xff]  ;;  %v5449_v36 = vld [vmem:[#allocation23 + $0xd50] sm:$0xff]  ;;  %v5456_v39 = vld [vmem:[#allocation23 + $0xd88] sm:$0xff] }
 0x810   : > { %9720 = vmatprep.subr.bf16.mxu1 %v9719_v47  ;;  %v9771_v47 = vpack.c.bf16 %v5422_v43, %v5418_v42  ;;  %v5453_v38 = vld [vmem:[#allocation23 + $0xd70] sm:$0xff]  ;;  %v5460_v40 = vld [vmem:[#allocation23 + $0xda8] sm:$0xff]  ;;  %v5462_v42 = vld [vmem:[#allocation23 + $0xdb8] sm:$0xff]  ;;  %v9757_v43 = vpack.c.bf16 %v5451_v35, %v5447_v34 }
 0x811   : > { %v5636_v34 = vld [vmem:[#allocation23 + $0xe80] sm:$0xff] }
 0x812   : > { %9690 = vmatpush1.bf16.msra.mxu0 %v9689_v53  ;;  %v9741_v53 = vpack.c.bf16 %v5419_v12, %v5415_v61  ;;  %v5459_v61 = vld [vmem:[#allocation23 + $0xda0] sm:$0xff]  ;;  %v5457_v12 = vld [vmem:[#allocation23 + $0xd90] sm:$0xff] }
 0x813   : > { %9722 = vmatpush1.bf16.msra.mxu1 %v9721_v54  ;;  %9692 = vmatprep.subr.bf16.mxu0 %v9691_v17  ;;  %v9773_v54 = vpack.c.bf16 %v5421_v48, %v5417_v46  ;;  %v9743_v17 = vpack.c.bf16 %v5428_v50, %v5424_v49  ;;  %v5464_v48 = vld [vmem:[#allocation23 + $0xdc8] sm:$0xff]  ;;  %v5466_v50 = vld [vmem:[#allocation23 + $0xdd8] sm:$0xff]  ;;  %v5640_v35 = vld [vmem:[#allocation23 + $0xea0] sm:$0xff] }
 0x814   : > { %9724 = vmatprep.subr.bf16.mxu1 %v9723_v59  ;;  %v9775_v59 = vpack.c.bf16 %v5430_v52, %v5426_v51  ;;  %v5468_v49 = vld [vmem:[#allocation23 + $0xde8] sm:$0xff]  ;;  %v5470_v51 = vld [vmem:[#allocation23 + $0xdf8] sm:$0xff] }
 0x816   : > { %9694 = vmatpush1.bf16.msra.mxu0 %v9693_v1  ;;  %v9745_v1 = vpack.c.bf16 %v5427_v56, %v5423_v55  ;;  %v5467_v55 = vld [vmem:[#allocation23 + $0xde0] sm:$0xff]  ;;  %v5465_v56 = vld [vmem:[#allocation23 + $0xdd0] sm:$0xff] }
 0x817   : > { %9726 = vmatpush1.bf16.msra.mxu1 %v9725_v4  ;;  %9696 = vmatprep.subr.bf16.mxu0 %v9695_v5  ;;  %v9777_v4 = vpack.c.bf16 %v5429_v0, %v5425_v58  ;;  %v9747_v5 = vpack.c.bf16 %v5436_v62, %v5432_v57  ;;  %v9795_v58 = vpack.c.bf16 %v5470_v51, %v5466_v50  ;;  %v5621_v0 = vld [vmem:[#allocation23 + $0xe08] sm:$0xff]  ;;  %v5623_v62 = vld [vmem:[#allocation23 + $0xe18] sm:$0xff] }
 0x818   : > { %9728 = vmatprep.subr.bf16.mxu1 %v9727_v9  ;;  %v9779_v9 = vpack.c.bf16 %v5438_v63, %v5434_v60  ;;  %v5625_v57 = vld [vmem:[#allocation23 + $0xe28] sm:$0xff]  ;;  %v5627_v60 = vld [vmem:[#allocation23 + $0xe38] sm:$0xff] }
 0x819   : > { %v5655_v50 = vld [vmem:[#allocation23 + $0xf18] sm:$0xff] }
 0x81a   : > { %9698 = vmatpush1.bf16.msra.mxu0 %v9697_v18  ;;  %v9749_v18 = vpack.c.bf16 %v5435_v7, %v5431_v6  ;;  %v5624_v6 = vld [vmem:[#allocation23 + $0xe20] sm:$0xff]  ;;  %v5622_v7 = vld [vmem:[#allocation23 + $0xe10] sm:$0xff]  ;;  %v5659_v51 = vld [vmem:[#allocation23 + $0xf38] sm:$0xff] }
 0x81b   : > { %9730 = vmatpush1.bf16.msra.mxu1 %v9729_v20  ;;  %9700 = vmatprep.subr.bf16.mxu0 %v9699_v21  ;;  %v9781_v20 = vpack.c.bf16 %v5437_v10, %v5433_v8  ;;  %v9751_v21 = vpack.c.bf16 %v5444_v22, %v5440_v11  ;;  %v9831_v8 = vpack.c.bf16 %v5627_v60, %v5623_v62  ;;  %v5629_v10 = vld [vmem:[#allocation23 + $0xe48] sm:$0xff]  ;;  %v5471_v22 = vrot.slane %v12263_v3, 2  ;;  %v5663_v62 = vld [vmem:[#allocation23 + $0xf58] sm:$0xff] }
 0x81c   : > { %9732 = vmatprep.subr.bf16.mxu1 %v9731_v26  ;;  %v9783_v26 = vpack.c.bf16 %v5446_v13, %v5442_v24  ;;  %v5633_v11 = vld [vmem:[#allocation23 + $0xe68] sm:$0xff]  ;;  %v5631_v24 = vld [vmem:[#allocation23 + $0xe58] sm:$0xff] }
 0x81d   : > { %v5635_v13 = vld [vmem:[#allocation23 + $0xe78] sm:$0xff] }
 0x81e   : > { %9702 = vmatpush1.bf16.msra.mxu0 %v9701_v31  ;;  %v9753_v31 = vpack.c.bf16 %v5443_v23, %v5439_v14  ;;  %v5628_v14 = vld [vmem:[#allocation23 + $0xe40] sm:$0xff]  ;;  %v5667_v60 = vld [vmem:[#allocation23 + $0xf78] sm:$0xff] }
 0x81f   : > { %9734 = vmatpush1.bf16.msra.mxu1 %v9733_v32  ;;  %9736 = vmatprep.subr.bf16.mxu0 %v9735_v33  ;;  %v9785_v32 = vpack.c.bf16 %v5445_v27, %v5441_v25  ;;  %v9755_v33 = vpack.c.bf16 %v5452_v28, %v5448_v16  ;;  %v5632_v23 = vld [vmem:[#allocation23 + $0xe60] sm:$0xff]  ;;  %v5630_v25 = vld [vmem:[#allocation23 + $0xe50] sm:$0xff]  ;;  %v5637_v16 = vld [vmem:[#allocation23 + $0xe88] sm:$0xff] }
 0x820   : > { %9768 = vmatprep.subr.bf16.mxu1 %v9767_v37  ;;  %v9787_v37 = vpack.c.bf16 %v5454_v30, %v5450_v29  ;;  %v5634_v27 = vld [vmem:[#allocation23 + $0xe70] sm:$0xff]  ;;  %v5641_v28 = vld [vmem:[#allocation23 + $0xea8] sm:$0xff]  ;;  %v5639_v29 = vld [vmem:[#allocation23 + $0xe98] sm:$0xff] }
 0x821   : > { %5325 = vmatmul.mubr.f32.vlgmr.msra.gmra.mrb[0].mxu0 %v5258_v41  ;;  %v5643_v30 = vld [vmem:[#allocation23 + $0xeb8] sm:$0xff] }
 0x822   : > { %5396 = vmatmul.mubr.f32.vlgmr.msra.gmra.mrb[0].mxu1 %v5258_v41  ;;  %9738 = vmatpush1.bf16.msra.mxu0 %v9737_v44  ;;  %v5458_v41 = vld [vmem:[#allocation23 + $0xd98] sm:$0xff]  ;;  %v9789_v44 = vpack.c.bf16 %v5453_v38, %v5449_v36  ;;  %v5638_v36 = vld [vmem:[#allocation23 + $0xe90] sm:$0xff] }
 0x823   : > { %9770 = vmatpush1.bf16.msra.mxu1 %v9769_v45  ;;  %9740 = vmatprep.subr.bf16.mxu0 %v9739_v2  ;;  %v9759_v45 = vpack.c.bf16 %v5460_v40, %v5456_v39  ;;  %v5455_v2 = vld [vmem:[#allocation23 + $0xd80] sm:$0xff]  ;;  %v9791_v46 = vpack.c.bf16 %v5462_v42, %v5458_v41  ;;  %v5642_v38 = vld [vmem:[#allocation23 + $0xeb0] sm:$0xff]  ;;  %v5645_v39 = vld [vmem:[#allocation23 + $0xec8] sm:$0xff] }
 0x824   : > { %9772 = vmatprep.subr.bf16.mxu1 %v9771_v47  ;;  %5537 = vmatprep.mubr.f32.mxu0 %v11201_v19  ;;  %v5461_v47 = vld [vmem:[#allocation23 + $0xdb0] sm:$0xff]  ;;  %v9761_v52 = vpack.c.bf16 %v5459_v61, %v5455_v2  ;;  %v5649_v40 = vld [vmem:[#allocation23 + $0xee8] sm:$0xff]  ;;  %v5647_v41 = vld [vmem:[#allocation23 + $0xed8] sm:$0xff] }
 0x825   : > { %5608 = vmatprep.mubr.f32.mxu1 %v11201_v19  ;;  %v5651_v42 = vld [vmem:[#allocation23 + $0xef8] sm:$0xff]  ;;  %v5644_v2 = vld [vmem:[#allocation23 + $0xec0] sm:$0xff] }
 0x826   : > { %9742 = vmatpush1.bf16.msra.mxu0 %v9741_v53  ;;  %v9793_v53 = vpack.c.bf16 %v5461_v47, %v5457_v12  ;;  %v5648_v61 = vld [vmem:[#allocation23 + $0xee0] sm:$0xff]  ;;  %v5646_v12 = vld [vmem:[#allocation23 + $0xed0] sm:$0xff] }
 0x827   : > { %9774 = vmatpush1.bf16.msra.mxu1 %v9773_v54  ;;  %9744 = vmatprep.subr.bf16.mxu0 %v9743_v17  ;;  %v9763_v54 = vpack.c.bf16 %v5468_v49, %v5464_v48  ;;  %v5463_v17 = vld [vmem:[#allocation23 + $0xdc0] sm:$0xff]  ;;  %v5650_v47 = vld [vmem:[#allocation23 + $0xef0] sm:$0xff]  ;;  %v5653_v48 = vld [vmem:[#allocation23 + $0xf08] sm:$0xff] }
 0x828   : > { %9776 = vmatprep.subr.bf16.mxu1 %v9775_v59  ;;  %v5469_v59 = vld [vmem:[#allocation23 + $0xdf0] sm:$0xff]  ;;  %v9765_v63 = vpack.c.bf16 %v5467_v55, %v5463_v17  ;;  %v5657_v49 = vld [vmem:[#allocation23 + $0xf28] sm:$0xff]  ;;  %v5652_v17 = vld [vmem:[#allocation23 + $0xf00] sm:$0xff] }
 0x829   : > { %v5656_v55 = vld [vmem:[#allocation23 + $0xf20] sm:$0xff] }
 0x82a   : > { %9746 = vmatpush1.bf16.msra.mxu0 %v9745_v1  ;;  %v9797_v1 = vpack.c.bf16 %v5469_v59, %v5465_v56  ;;  %v5654_v56 = vld [vmem:[#allocation23 + $0xf10] sm:$0xff] }
 0x82b   : > { %9778 = vmatpush1.bf16.msra.mxu1 %v9777_v4  ;;  %9748 = vmatprep.subr.bf16.mxu0 %v9747_v5  ;;  %v9799_v4 = vpack.c.bf16 %v5625_v57, %v5621_v0  ;;  %v5620_v5 = vld [vmem:[#allocation23 + $0xe00] sm:$0xff]  ;;  %v5658_v59 = vld [vmem:[#allocation23 + $0xf30] sm:$0xff]  ;;  %v5661_v0 = vld [vmem:[#allocation23 + $0xf48] sm:$0xff] }
 0x82c   : > { %9780 = vmatprep.subr.bf16.mxu1 %v9779_v9  ;;  %v5626_v9 = vld [vmem:[#allocation23 + $0xe30] sm:$0xff]  ;;  %v5665_v57 = vld [vmem:[#allocation23 + $0xf68] sm:$0xff] }
 0x82e   : > { %9750 = vmatpush1.bf16.msra.mxu0 %v9749_v18  ;;  %v9801_v18 = vpack.c.bf16 %v5624_v6, %v5620_v5  ;;  %v5660_v5 = vld [vmem:[#allocation23 + $0xf40] sm:$0xff] }
 0x82f   : > { %9782 = vmatpush1.bf16.msra.mxu1 %v9781_v20  ;;  %9752 = vmatprep.subr.bf16.mxu0 %v9751_v21  ;;  %v9833_v20 = vpack.c.bf16 %v5626_v9, %v5622_v7  ;;  %v9803_v21 = vpack.c.bf16 %v5633_v11, %v5629_v10  ;;  %v5664_v6 = vld [vmem:[#allocation23 + $0xf60] sm:$0xff]  ;;  %v5662_v7 = vld [vmem:[#allocation23 + $0xf50] sm:$0xff]  ;;  %v5669_v10 = vld [vmem:[#allocation23 + $0xf88] sm:$0xff] }
 0x830   : > { %9784 = vmatprep.subr.bf16.mxu1 %v9783_v26  ;;  %v9835_v26 = vpack.c.bf16 %v5635_v13, %v5631_v24  ;;  %v5666_v9 = vld [vmem:[#allocation23 + $0xf70] sm:$0xff]  ;;  %v5673_v11 = vld [vmem:[#allocation23 + $0xfa8] sm:$0xff]  ;;  %v5675_v24 = vld [vmem:[#allocation23 + $0xfb8] sm:$0xff]  ;;  %v9821_v13 = vpack.c.bf16 %v5664_v6, %v5660_v5 }
 0x831   : > { %v5855_v5 = vld [vmem:[#allocation23 + $0x10a0] sm:$0xff]  ;;  %v5853_v6 = vld [vmem:[#allocation23 + $0x1090] sm:$0xff] }
 0x832   : > { %9754 = vmatpush1.bf16.msra.mxu0 %v9753_v31  ;;  %v9805_v31 = vpack.c.bf16 %v5632_v23, %v5628_v14  ;;  %v5672_v14 = vld [vmem:[#allocation23 + $0xfa0] sm:$0xff]  ;;  %v5670_v23 = vld [vmem:[#allocation23 + $0xf90] sm:$0xff] }
 0x833   : > { %9786 = vmatpush1.bf16.msra.mxu1 %v9785_v32  ;;  %9756 = vmatprep.subr.bf16.mxu0 %v9755_v33  ;;  %v9837_v32 = vpack.c.bf16 %v5634_v27, %v5630_v25  ;;  %v9807_v33 = vpack.c.bf16 %v5641_v28, %v5637_v16  ;;  %v5677_v27 = vld [vmem:[#allocation23 + $0xfc8] sm:$0xff]  ;;  %v5679_v28 = vld [vmem:[#allocation23 + $0xfd8] sm:$0xff] }
 0x834   : > { %9788 = vmatprep.subr.bf16.mxu1 %v9787_v37  ;;  %v9839_v37 = vpack.c.bf16 %v5643_v30, %v5639_v29  ;;  %v5681_v16 = vld [vmem:[#allocation23 + $0xfe8] sm:$0xff]  ;;  %v5683_v29 = vld [vmem:[#allocation23 + $0xff8] sm:$0xff] }
 0x836   : > { %9758 = vmatpush1.bf16.msra.mxu0 %v9757_v43  ;;  %v9809_v43 = vpack.c.bf16 %v5640_v35, %v5636_v34  ;;  %v5680_v34 = vld [vmem:[#allocation23 + $0xfe0] sm:$0xff]  ;;  %v5678_v35 = vld [vmem:[#allocation23 + $0xfd0] sm:$0xff] }
 0x837   : > { %9790 = vmatpush1.bf16.msra.mxu1 %v9789_v44  ;;  %9760 = vmatprep.subr.bf16.mxu0 %v9759_v45  ;;  %v9841_v44 = vpack.c.bf16 %v5642_v38, %v5638_v36  ;;  %v9811_v45 = vpack.c.bf16 %v5649_v40, %v5645_v39  ;;  %v9859_v36 = vpack.c.bf16 %v5683_v29, %v5679_v28  ;;  %v5836_v38 = vld [vmem:[#allocation23 + $0x1008] sm:$0xff]  ;;  %v5838_v40 = vld [vmem:[#allocation23 + $0x1018] sm:$0xff] }
 0x838   : > { %9792 = vmatprep.subr.bf16.mxu1 %v9791_v46  ;;  %v9843_v46 = vpack.c.bf16 %v5651_v42, %v5647_v41  ;;  %v5840_v39 = vld [vmem:[#allocation23 + $0x1028] sm:$0xff]  ;;  %v5842_v41 = vld [vmem:[#allocation23 + $0x1038] sm:$0xff] }
 0x839   : > { %v5874_v28 = vld [vmem:[#allocation23 + $0x1138] sm:$0xff] }
 0x83a   : > { %9762 = vmatpush1.bf16.msra.mxu0 %v9761_v52  ;;  %v9813_v52 = vpack.c.bf16 %v5648_v61, %v5644_v2  ;;  %v5839_v2 = vld [vmem:[#allocation23 + $0x1020] sm:$0xff]  ;;  %v5837_v61 = vld [vmem:[#allocation23 + $0x1010] sm:$0xff] }
 0x83b   : > { %9794 = vmatpush1.bf16.msra.mxu1 %v9793_v53  ;;  %9764 = vmatprep.subr.bf16.mxu0 %v9763_v54  ;;  %v9845_v53 = vpack.c.bf16 %v5650_v47, %v5646_v12  ;;  %v9815_v54 = vpack.c.bf16 %v5657_v49, %v5653_v48  ;;  %v9895_v12 = vpack.c.bf16 %v5842_v41, %v5838_v40  ;;  %v5844_v47 = vld [vmem:[#allocation23 + $0x1048] sm:$0xff]  ;;  %v5684_v49 = vrot.slane %v12263_v3, 3  ;;  %v5882_v40 = vld [vmem:[#allocation23 + $0x1178] sm:$0xff] }
 0x83c   : > { %9796 = vmatprep.subr.bf16.mxu1 %v9795_v58  ;;  %v9847_v58 = vpack.c.bf16 %v5659_v51, %v5655_v50  ;;  %v5848_v48 = vld [vmem:[#allocation23 + $0x1068] sm:$0xff]  ;;  %v5846_v50 = vld [vmem:[#allocation23 + $0x1058] sm:$0xff] }
 0x83d   : > { %v5850_v51 = vld [vmem:[#allocation23 + $0x1078] sm:$0xff] }
 0x83e   : > { %9766 = vmatpush1.bf16.msra.mxu0 %v9765_v63  ;;  %v9817_v63 = vpack.c.bf16 %v5656_v55, %v5652_v17  ;;  %v5843_v17 = vld [vmem:[#allocation23 + $0x1040] sm:$0xff] }
 0x83f   : > { %9798 = vmatpush1.bf16.msra.mxu1 %v9797_v1  ;;  %9800 = vmatprep.subr.bf16.mxu0 %v9799_v4  ;;  %v9849_v1 = vpack.c.bf16 %v5658_v59, %v5654_v56  ;;  %v9819_v4 = vpack.c.bf16 %v5665_v57, %v5661_v0  ;;  %v5847_v55 = vld [vmem:[#allocation23 + $0x1060] sm:$0xff]  ;;  %v5845_v56 = vld [vmem:[#allocation23 + $0x1050] sm:$0xff]  ;;  %v5852_v0 = vld [vmem:[#allocation23 + $0x1088] sm:$0xff] }
 0x840   : > { %9832 = vmatprep.subr.bf16.mxu1 %v9831_v8  ;;  %v9851_v8 = vpack.c.bf16 %v5667_v60, %v5663_v62  ;;  %v5849_v59 = vld [vmem:[#allocation23 + $0x1070] sm:$0xff]  ;;  %v5856_v57 = vld [vmem:[#allocation23 + $0x10a8] sm:$0xff]  ;;  %v5854_v62 = vld [vmem:[#allocation23 + $0x1098] sm:$0xff]  ;;  %v9869_v3 = vpack.c.bf16 %v5847_v55, %v5843_v17 }
 0x841   : > { %5538 = vmatmul.mubr.f32.vlgmr.msra.gmra.mrb[0].mxu0 %v5471_v22  ;;  %v5858_v60 = vld [vmem:[#allocation23 + $0x10b8] sm:$0xff]  ;;  %v5885_v17 = vld [vmem:[#allocation23 + $0x1190] sm:$0xff] }
 0x842   : > { %5609 = vmatmul.mubr.f32.vlgmr.msra.gmra.mrb[0].mxu1 %v5471_v22  ;;  %9802 = vmatpush1.bf16.msra.mxu0 %v9801_v18  ;;  %v5671_v22 = vld [vmem:[#allocation23 + $0xf98] sm:$0xff]  ;;  %v9853_v18 = vpack.c.bf16 %v5666_v9, %v5662_v7  ;;  %v9903_v7 = vpack.c.bf16 %v5858_v60, %v5854_v62  ;;  %v5860_v9 = vld [vmem:[#allocation23 + $0x10c8] sm:$0xff] }
 0x843   : > { %9834 = vmatpush1.bf16.msra.mxu1 %v9833_v20  ;;  %9804 = vmatprep.subr.bf16.mxu0 %v9803_v21  ;;  %v9823_v20 = vpack.c.bf16 %v5673_v11, %v5669_v10  ;;  %v5668_v21 = vld [vmem:[#allocation23 + $0xf80] sm:$0xff]  ;;  %v9855_v25 = vpack.c.bf16 %v5675_v24, %v5671_v22  ;;  %v5864_v10 = vld [vmem:[#allocation23 + $0x10e8] sm:$0xff]  ;;  %v5862_v11 = vld [vmem:[#allocation23 + $0x10d8] sm:$0xff] }
 0x844   : > { %9836 = vmatprep.subr.bf16.mxu1 %v9835_v26  ;;  %5750 = vmatprep.mubr.f32.mxu0 %v11201_v19  ;;  %v5674_v26 = vld [vmem:[#allocation23 + $0xfb0] sm:$0xff]  ;;  %v9825_v30 = vpack.c.bf16 %v5672_v14, %v5668_v21  ;;  %v5866_v22 = vld [vmem:[#allocation23 + $0x10f8] sm:$0xff]  ;;  %v5863_v21 = vld [vmem:[#allocation23 + $0x10e0] sm:$0xff] }
 0x845   : > { %5821 = vmatprep.mubr.f32.mxu1 %v11201_v19  ;;  %v5861_v14 = vld [vmem:[#allocation23 + $0x10d0] sm:$0xff] }
 0x846   : > { %9806 = vmatpush1.bf16.msra.mxu0 %v9805_v31  ;;  %v9857_v31 = vpack.c.bf16 %v5674_v26, %v5670_v23  ;;  %v9907_v23 = vpack.c.bf16 %v5866_v22, %v5862_v11  ;;  %v5868_v26 = vld [vmem:[#allocation23 + $0x1108] sm:$0xff] }
 0x847   : > { %9838 = vmatpush1.bf16.msra.mxu1 %v9837_v32  ;;  %9808 = vmatprep.subr.bf16.mxu0 %v9807_v33  ;;  %v9827_v32 = vpack.c.bf16 %v5681_v16, %v5677_v27  ;;  %v5676_v33 = vld [vmem:[#allocation23 + $0xfc0] sm:$0xff]  ;;  %v5872_v27 = vld [vmem:[#allocation23 + $0x1128] sm:$0xff]  ;;  %v5870_v16 = vld [vmem:[#allocation23 + $0x1118] sm:$0xff] }
 0x848   : > { %9840 = vmatprep.subr.bf16.mxu1 %v9839_v37  ;;  %v5682_v37 = vld [vmem:[#allocation23 + $0xff0] sm:$0xff]  ;;  %v9829_v42 = vpack.c.bf16 %v5680_v34, %v5676_v33  ;;  %v5871_v33 = vld [vmem:[#allocation23 + $0x1120] sm:$0xff] }
 0x849   : > { %v5869_v34 = vld [vmem:[#allocation23 + $0x1110] sm:$0xff] }
 0x84a   : > { %9810 = vmatpush1.bf16.msra.mxu0 %v9809_v43  ;;  %v9861_v43 = vpack.c.bf16 %v5682_v37, %v5678_v35  ;;  %v9911_v35 = vpack.c.bf16 %v5874_v28, %v5870_v16  ;;  %v5876_v37 = vld [vmem:[#allocation23 + $0x1148] sm:$0xff] }
 0x84b   : > { %9842 = vmatpush1.bf16.msra.mxu1 %v9841_v44  ;;  %9812 = vmatprep.subr.bf16.mxu0 %v9811_v45  ;;  %v9863_v44 = vpack.c.bf16 %v5840_v39, %v5836_v38  ;;  %v5835_v45 = vld [vmem:[#allocation23 + $0x1000] sm:$0xff]  ;;  %v5880_v38 = vld [vmem:[#allocation23 + $0x1168] sm:$0xff]  ;;  %v5878_v39 = vld [vmem:[#allocation23 + $0x1158] sm:$0xff] }
 0x84c   : > { %9844 = vmatprep.subr.bf16.mxu1 %v9843_v46  ;;  %v5841_v46 = vld [vmem:[#allocation23 + $0x1030] sm:$0xff]  ;;  %v12278_v16 = vld [vmem:[#allocation8 + $0x8] sm:$0xf] }
 0x84e   : > { %9814 = vmatpush1.bf16.msra.mxu0 %v9813_v52  ;;  %v9865_v52 = vpack.c.bf16 %v5839_v2, %v5835_v45  ;;  %v5879_v45 = vld [vmem:[#allocation23 + $0x1160] sm:$0xff]  ;;  %v5877_v2 = vld [vmem:[#allocation23 + $0x1150] sm:$0xff] }
 0x84f   : > { %9846 = vmatpush1.bf16.msra.mxu1 %v9845_v53  ;;  %9816 = vmatprep.subr.bf16.mxu0 %v9815_v54  ;;  %v9897_v53 = vpack.c.bf16 %v5841_v46, %v5837_v61  ;;  %v9867_v54 = vpack.c.bf16 %v5848_v48, %v5844_v47  ;;  %v9915_v61 = vpack.c.bf16 %v5882_v40, %v5878_v39  ;;  %v5884_v46 = vld [vmem:[#allocation23 + $0x1188] sm:$0xff]  ;;  %v5886_v48 = vld [vmem:[#allocation23 + $0x1198] sm:$0xff] }
 0x850   : > { %9848 = vmatprep.subr.bf16.mxu1 %v9847_v58  ;;  %v9899_v58 = vpack.c.bf16 %v5850_v51, %v5846_v50  ;;  %v5888_v47 = vld [vmem:[#allocation23 + $0x11a8] sm:$0xff]  ;;  %v6069_v39 = vld [vmem:[#allocation23 + $0x12b8] sm:$0xff] }
 0x852   : > { %9818 = vmatpush1.bf16.msra.mxu0 %v9817_v63  ;;  %v9901_v63 = vpack.c.bf16 %v5849_v59, %v5845_v56  ;;  %v5889_v56 = vld [vmem:[#allocation23 + $0x11b0] sm:$0xff]  ;;  %v5896_v59 = vld [vmem:[#allocation23 + $0x11e8] sm:$0xff] }
 0x853   : > { %9850 = vmatpush1.bf16.msra.mxu1 %v9849_v1  ;;  %9820 = vmatprep.subr.bf16.mxu0 %v9819_v4  ;;  %v9871_v1 = vpack.c.bf16 %v5856_v57, %v5852_v0  ;;  %v5851_v4 = vld [vmem:[#allocation23 + $0x1080] sm:$0xff]  ;;  %v5894_v0 = vld [vmem:[#allocation23 + $0x11d8] sm:$0xff]  ;;  %v9921_v60 = vpack.c.bf16 %v5889_v56, %v5885_v17  ;;  %v6079_v56 = vld [vmem:[#allocation23 + $0x1308] sm:$0xff] }
 0x854   : > { %9852 = vmatprep.subr.bf16.mxu1 %v9851_v8  ;;  %v5857_v8 = vld [vmem:[#allocation23 + $0x10b0] sm:$0xff]  ;;  %v9873_v24 = vpack.c.bf16 %v5855_v5, %v5851_v4  ;;  %v5898_v57 = vld [vmem:[#allocation23 + $0x11f8] sm:$0xff] }
 0x855   : > { %v5893_v4 = vld [vmem:[#allocation23 + $0x11d0] sm:$0xff]  ;;  %v9923_v5 = vpack.c.bf16 %v5898_v57, %v5894_v0  ;;  %v6085_v0 = vld [vmem:[#allocation23 + $0x1338] sm:$0xff] }
 0x856   : > { %9822 = vmatpush1.bf16.msra.mxu0 %v9821_v13  ;;  %v9905_v13 = vpack.c.bf16 %v5857_v8, %v5853_v6  ;;  %v5897_v6 = vld [vmem:[#allocation23 + $0x11f0] sm:$0xff]  ;;  %v6051_v8 = vld [vmem:[#allocation23 + $0x1228] sm:$0xff] }
 0x857   : > { %9854 = vmatpush1.bf16.msra.mxu1 %v9853_v18  ;;  %9824 = vmatprep.subr.bf16.mxu0 %v9823_v20  ;;  %v9875_v18 = vpack.c.bf16 %v5864_v10, %v5860_v9  ;;  %v5859_v20 = vld [vmem:[#allocation23 + $0x10c0] sm:$0xff]  ;;  %v6049_v9 = vld [vmem:[#allocation23 + $0x1218] sm:$0xff]  ;;  %v9925_v22 = vpack.c.bf16 %v5897_v6, %v5893_v4  ;;  %v6087_v6 = vld [vmem:[#allocation23 + $0x1348] sm:$0xff] }
 0x858   : > { %9856 = vmatprep.subr.bf16.mxu1 %v9855_v25  ;;  %v5865_v25 = vld [vmem:[#allocation23 + $0x10f0] sm:$0xff]  ;;  %v9877_v29 = vpack.c.bf16 %v5863_v21, %v5859_v20  ;;  %v6053_v10 = vld [vmem:[#allocation23 + $0x1238] sm:$0xff] }
 0x859   : > { %v6048_v20 = vld [vmem:[#allocation23 + $0x1210] sm:$0xff]  ;;  %v9959_v21 = vpack.c.bf16 %v6053_v10, %v6049_v9  ;;  %v6093_v9 = vld [vmem:[#allocation23 + $0x1378] sm:$0xff] }
 0x85a   : > { %9826 = vmatpush1.bf16.msra.mxu0 %v9825_v30  ;;  %v9909_v30 = vpack.c.bf16 %v5865_v25, %v5861_v14  ;;  %v6052_v14 = vld [vmem:[#allocation23 + $0x1230] sm:$0xff]  ;;  %v6059_v25 = vld [vmem:[#allocation23 + $0x1268] sm:$0xff] }
 0x85b   : > { %9858 = vmatpush1.bf16.msra.mxu1 %v9857_v31  ;;  %9828 = vmatprep.subr.bf16.mxu0 %v9827_v32  ;;  %v9879_v31 = vpack.c.bf16 %v5872_v27, %v5868_v26  ;;  %v5867_v32 = vld [vmem:[#allocation23 + $0x1100] sm:$0xff]  ;;  %v6057_v26 = vld [vmem:[#allocation23 + $0x1258] sm:$0xff] }
 0x85c   : > { %9860 = vmatprep.subr.bf16.mxu1 %v9859_v36  ;;  %v5873_v36 = vld [vmem:[#allocation23 + $0x1130] sm:$0xff]  ;;  %v9881_v41 = vpack.c.bf16 %v5871_v33, %v5867_v32  ;;  %v6061_v27 = vld [vmem:[#allocation23 + $0x1278] sm:$0xff]  ;;  %v6058_v32 = vld [vmem:[#allocation23 + $0x1260] sm:$0xff] }
 0x85d   : > { %v6056_v33 = vld [vmem:[#allocation23 + $0x1250] sm:$0xff] }
 0x85e   : > { %9830 = vmatpush1.bf16.msra.mxu0 %v9829_v42  ;;  %v9913_v42 = vpack.c.bf16 %v5873_v36, %v5869_v34  ;;  %v9963_v34 = vpack.c.bf16 %v6061_v27, %v6057_v26  ;;  %v6063_v36 = vld [vmem:[#allocation23 + $0x1288] sm:$0xff]  ;;  %v6101_v26 = vld [vmem:[#allocation23 + $0x13b8] sm:$0xff] }
 0x85f   : > { %9862 = vmatpush1.bf16.msra.mxu1 %v9861_v43  ;;  %9864 = vmatprep.subr.bf16.mxu0 %v9863_v44  ;;  %v9883_v43 = vpack.c.bf16 %v5880_v38, %v5876_v37  ;;  %v5875_v44 = vld [vmem:[#allocation23 + $0x1140] sm:$0xff]  ;;  %v6067_v37 = vld [vmem:[#allocation23 + $0x12a8] sm:$0xff]  ;;  %v6065_v38 = vld [vmem:[#allocation23 + $0x1298] sm:$0xff] }
 0x860   : > { %9896 = vmatprep.subr.bf16.mxu1 %v9895_v12  ;;  %v5881_v12 = vld [vmem:[#allocation23 + $0x1170] sm:$0xff]  ;;  %v9885_v50 = vpack.c.bf16 %v5879_v45, %v5875_v44  ;;  %v6066_v44 = vld [vmem:[#allocation23 + $0x12a0] sm:$0xff] }
 0x861   : > { %5751 = vmatmul.mubr.f32.vlgmr.msra.gmra.mrb[0].mxu0 %v5684_v49  ;;  %v9917_v51 = vpack.c.bf16 %v5881_v12, %v5877_v2  ;;  %v6064_v45 = vld [vmem:[#allocation23 + $0x1290] sm:$0xff]  ;;  %v9967_v2 = vpack.c.bf16 %v6069_v39, %v6065_v38  ;;  %v6071_v12 = vld [vmem:[#allocation23 + $0x12c8] sm:$0xff]  ;;  %v6109_v38 = vld [vmem:[#allocation23 + $0x13f8] sm:$0xff] }
 0x862   : > { %5822 = vmatmul.mubr.f32.vlgmr.msra.gmra.mrb[0].mxu1 %v5684_v49  ;;  %9866 = vmatpush1.bf16.msra.mxu0 %v9865_v52  ;;  %v5890_v49 = vld [vmem:[#allocation23 + $0x11b8] sm:$0xff]  ;;  %v9887_v52 = vpack.c.bf16 %v5888_v47, %v5884_v46  ;;  %v6075_v46 = vld [vmem:[#allocation23 + $0x12e8] sm:$0xff] }
 0x863   : > { %9898 = vmatpush1.bf16.msra.mxu1 %v9897_v53  ;;  %9868 = vmatprep.subr.bf16.mxu0 %v9867_v54  ;;  %v5883_v53 = vld [vmem:[#allocation23 + $0x1180] sm:$0xff]  ;;  %v9919_v55 = vpack.c.bf16 %v5890_v49, %v5886_v48  ;;  %v6073_v47 = vld [vmem:[#allocation23 + $0x12d8] sm:$0xff] }
 0x864   : > { %9900 = vmatprep.subr.bf16.mxu1 %v9899_v58  ;;  %5963 = vmatprep.mubr.f32.mxu0 %v11201_v19  ;;  %v5887_v54 = vld [vmem:[#allocation23 + $0x11a0] sm:$0xff]  ;;  %v5892_v58 = vld [vmem:[#allocation23 + $0x11c8] sm:$0xff]  ;;  %v6077_v48 = vld [vmem:[#allocation23 + $0x12f8] sm:$0xff] }
 0x865   : > { %6034 = vmatprep.mubr.f32.mxu1 %v11201_v19  ;;  %v9889_v62 = vpack.c.bf16 %v5887_v54, %v5883_v53  ;;  %v6074_v53 = vld [vmem:[#allocation23 + $0x12e0] sm:$0xff]  ;;  %v6072_v54 = vld [vmem:[#allocation23 + $0x12d0] sm:$0xff]  ;;  %v9971_v17 = vpack.c.bf16 %v6077_v48, %v6073_v47  ;;  %v6267_v47 = vld [vmem:[#allocation23 + $0x1438] sm:$0xff] }
 0x866   : > { %9870 = vmatpush1.bf16.msra.mxu0 %v9869_v3  ;;  %v9891_v3 = vpack.c.bf16 %v5896_v59, %v5892_v58  ;;  %v6083_v58 = vld [vmem:[#allocation23 + $0x1328] sm:$0xff]  ;;  %v6081_v59 = vld [vmem:[#allocation23 + $0x1318] sm:$0xff] }
 0x867   : > { %9902 = vmatpush1.bf16.msra.mxu1 %v9901_v63  ;;  %9872 = vmatprep.subr.bf16.mxu0 %v9871_v1  ;;  %v5891_v63 = vld [vmem:[#allocation23 + $0x11c0] sm:$0xff]  ;;  %v9975_v4 = vpack.c.bf16 %v6085_v0, %v6081_v59  ;;  %v6271_v59 = vld [vmem:[#allocation23 + $0x1458] sm:$0xff] }
 0x868   : > { %9904 = vmatprep.subr.bf16.mxu1 %v9903_v7  ;;  %v5895_v1 = vld [vmem:[#allocation23 + $0x11e0] sm:$0xff]  ;;  %v6047_v7 = vld [vmem:[#allocation23 + $0x1208] sm:$0xff]  ;;  %v6275_v0 = vld [vmem:[#allocation23 + $0x1478] sm:$0xff] }
 0x869   : > { %v9893_v11 = vpack.c.bf16 %v5895_v1, %v5891_v63  ;;  %v6082_v63 = vld [vmem:[#allocation23 + $0x1320] sm:$0xff]  ;;  %v6080_v1 = vld [vmem:[#allocation23 + $0x1310] sm:$0xff] }
 0x86a   : > { %9874 = vmatpush1.bf16.msra.mxu0 %v9873_v24  ;;  %v9927_v24 = vpack.c.bf16 %v6051_v8, %v6047_v7  ;;  %v6091_v7 = vld [vmem:[#allocation23 + $0x1368] sm:$0xff]  ;;  %v6089_v8 = vld [vmem:[#allocation23 + $0x1358] sm:$0xff] }
 0x86b   : > { %9906 = vmatpush1.bf16.msra.mxu1 %v9905_v13  ;;  %9876 = vmatprep.subr.bf16.mxu0 %v9875_v18  ;;  %v6046_v13 = vld [vmem:[#allocation23 + $0x1200] sm:$0xff] }
 0x86c   : > { %9908 = vmatprep.subr.bf16.mxu1 %v9907_v23  ;;  %v6050_v18 = vld [vmem:[#allocation23 + $0x1220] sm:$0xff]  ;;  %v6055_v23 = vld [vmem:[#allocation23 + $0x1248] sm:$0xff] }
 0x86d   : > { %v9929_v28 = vpack.c.bf16 %v6050_v18, %v6046_v13  ;;  %v6090_v13 = vld [vmem:[#allocation23 + $0x1360] sm:$0xff]  ;;  %v6088_v18 = vld [vmem:[#allocation23 + $0x1350] sm:$0xff] }
 0x86e   : > { %9878 = vmatpush1.bf16.msra.mxu0 %v9877_v29  ;;  %v9961_v29 = vpack.c.bf16 %v6052_v14, %v6048_v20  ;;  %v9979_v20 = vpack.c.bf16 %v6093_v9, %v6089_v8  ;;  %v6095_v14 = vld [vmem:[#allocation23 + $0x1388] sm:$0xff]  ;;  %v6279_v8 = vld [vmem:[#allocation23 + $0x1498] sm:$0xff] }
 0x86f   : > { %9910 = vmatpush1.bf16.msra.mxu1 %v9909_v30  ;;  %9880 = vmatprep.subr.bf16.mxu0 %v9879_v31  ;;  %v9931_v30 = vpack.c.bf16 %v6059_v25, %v6055_v23  ;;  %v6054_v31 = vld [vmem:[#allocation23 + $0x1240] sm:$0xff]  ;;  %v6099_v23 = vld [vmem:[#allocation23 + $0x13a8] sm:$0xff]  ;;  %v6097_v25 = vld [vmem:[#allocation23 + $0x1398] sm:$0xff] }
 0x870   : > { %9912 = vmatprep.subr.bf16.mxu1 %v9911_v35  ;;  %v6060_v35 = vld [vmem:[#allocation23 + $0x1270] sm:$0xff]  ;;  %v9933_v40 = vpack.c.bf16 %v6058_v32, %v6054_v31  ;;  %v6098_v31 = vld [vmem:[#allocation23 + $0x13a0] sm:$0xff]  ;;  %v6283_v9 = vld [vmem:[#allocation23 + $0x14b8] sm:$0xff] }
 0x871   : > { %v6096_v32 = vld [vmem:[#allocation23 + $0x1390] sm:$0xff] }
 0x872   : > { %9882 = vmatpush1.bf16.msra.mxu0 %v9881_v41  ;;  %v9965_v41 = vpack.c.bf16 %v6060_v35, %v6056_v33  ;;  %v9983_v33 = vpack.c.bf16 %v6101_v26, %v6097_v25  ;;  %v6103_v35 = vld [vmem:[#allocation23 + $0x13c8] sm:$0xff]  ;;  %v6287_v25 = vld [vmem:[#allocation23 + $0x14d8] sm:$0xff] }
 0x873   : > { %9914 = vmatpush1.bf16.msra.mxu1 %v9913_v42  ;;  %9884 = vmatprep.subr.bf16.mxu0 %v9883_v43  ;;  %v9935_v42 = vpack.c.bf16 %v6067_v37, %v6063_v36  ;;  %v6062_v43 = vld [vmem:[#allocation23 + $0x1280] sm:$0xff]  ;;  %v6107_v36 = vld [vmem:[#allocation23 + $0x13e8] sm:$0xff]  ;;  %v6105_v37 = vld [vmem:[#allocation23 + $0x13d8] sm:$0xff] }
 0x874   : > { %9916 = vmatprep.subr.bf16.mxu1 %v9915_v61  ;;  %v6068_v61 = vld [vmem:[#allocation23 + $0x12b0] sm:$0xff]  ;;  %v9937_v49 = vpack.c.bf16 %v6066_v44, %v6062_v43  ;;  %v6106_v43 = vld [vmem:[#allocation23 + $0x13e0] sm:$0xff]  ;;  %v6291_v26 = vld [vmem:[#allocation23 + $0x14f8] sm:$0xff] }
 0x875   : > { %v6104_v44 = vld [vmem:[#allocation23 + $0x13d0] sm:$0xff] }
 0x876   : > { %9886 = vmatpush1.bf16.msra.mxu0 %v9885_v50  ;;  %v9969_v50 = vpack.c.bf16 %v6068_v61, %v6064_v45  ;;  %v9987_v45 = vpack.c.bf16 %v6109_v38, %v6105_v37  ;;  %v6261_v61 = vld [vmem:[#allocation23 + $0x1408] sm:$0xff]  ;;  %v6295_v37 = vld [vmem:[#allocation23 + $0x1518] sm:$0xff] }
 0x877   : > { %9918 = vmatpush1.bf16.msra.mxu1 %v9917_v51  ;;  %9888 = vmatprep.subr.bf16.mxu0 %v9887_v52  ;;  %v9939_v51 = vpack.c.bf16 %v6075_v46, %v6071_v12  ;;  %v6070_v52 = vld [vmem:[#allocation23 + $0x12c0] sm:$0xff]  ;;  %v6265_v12 = vld [vmem:[#allocation23 + $0x1428] sm:$0xff]  ;;  %v6263_v46 = vld [vmem:[#allocation23 + $0x1418] sm:$0xff] }
 0x878   : > { %9920 = vmatprep.subr.bf16.mxu1 %v9919_v55  ;;  %v6076_v55 = vld [vmem:[#allocation23 + $0x12f0] sm:$0xff]  ;;  %v9941_v57 = vpack.c.bf16 %v6074_v53, %v6070_v52  ;;  %v6264_v52 = vld [vmem:[#allocation23 + $0x1420] sm:$0xff]  ;;  %v6299_v38 = vld [vmem:[#allocation23 + $0x1538] sm:$0xff] }
 0x879   : > { %v6262_v53 = vld [vmem:[#allocation23 + $0x1410] sm:$0xff] }
 0x87a   : > { %9890 = vmatpush1.bf16.msra.mxu0 %v9889_v62  ;;  %v9973_v62 = vpack.c.bf16 %v6076_v55, %v6072_v54  ;;  %v10023_v54 = vpack.c.bf16 %v6267_v47, %v6263_v46  ;;  %v6269_v55 = vld [vmem:[#allocation23 + $0x1448] sm:$0xff]  ;;  %v6303_v46 = vld [vmem:[#allocation23 + $0x1558] sm:$0xff] }
 0x87b   : > { %9922 = vmatpush1.bf16.msra.mxu1 %v9921_v60  ;;  %9892 = vmatprep.subr.bf16.mxu0 %v9891_v3  ;;  %v9943_v60 = vpack.c.bf16 %v6083_v58, %v6079_v56  ;;  %v6078_v3 = vld [vmem:[#allocation23 + $0x1300] sm:$0xff]  ;;  %v6273_v56 = vld [vmem:[#allocation23 + $0x1468] sm:$0xff]  ;;  %v6111_v58 = vrot.slane %v12278_v16, 1  ;;  %v6307_v47 = vld [vmem:[#allocation23 + $0x1578] sm:$0xff] }
 0x87c   : > { %9924 = vmatprep.subr.bf16.mxu1 %v9923_v5  ;;  %v6084_v5 = vld [vmem:[#allocation23 + $0x1330] sm:$0xff]  ;;  %v9945_v10 = vpack.c.bf16 %v6082_v63, %v6078_v3  ;;  %v6268_v3 = vld [vmem:[#allocation23 + $0x1440] sm:$0xff] }
 0x87d   : > { %v6272_v63 = vld [vmem:[#allocation23 + $0x1460] sm:$0xff] }
 0x87e   : > { %9894 = vmatpush1.bf16.msra.mxu0 %v9893_v11  ;;  %v9977_v11 = vpack.c.bf16 %v6084_v5, %v6080_v1  ;;  %v6270_v1 = vld [vmem:[#allocation23 + $0x1450] sm:$0xff] }
 0x87f   : > { %9926 = vmatpush1.bf16.msra.mxu1 %v9925_v22  ;;  %9928 = vmatprep.subr.bf16.mxu0 %v9927_v24  ;;  %v9947_v22 = vpack.c.bf16 %v6091_v7, %v6087_v6  ;;  %v6086_v24 = vld [vmem:[#allocation23 + $0x1340] sm:$0xff]  ;;  %v6274_v5 = vld [vmem:[#allocation23 + $0x1470] sm:$0xff]  ;;  %v6277_v6 = vld [vmem:[#allocation23 + $0x1488] sm:$0xff] }
 0x880   : > { %9960 = vmatprep.subr.bf16.mxu1 %v9959_v21  ;;  %v6092_v21 = vld [vmem:[#allocation23 + $0x1370] sm:$0xff]  ;;  %v9949_v27 = vpack.c.bf16 %v6090_v13, %v6086_v24  ;;  %v6281_v7 = vld [vmem:[#allocation23 + $0x14a8] sm:$0xff]  ;;  %v6276_v24 = vld [vmem:[#allocation23 + $0x1480] sm:$0xff] }
 0x881   : > { %5964 = vmatmul.mubr.f32.vlgmr.msra.gmra.mrb[0].mxu0 %v12278_v16  ;;  %v6280_v13 = vld [vmem:[#allocation23 + $0x14a0] sm:$0xff] }
 0x882   : > { %6035 = vmatmul.mubr.f32.vlgmr.msra.gmra.mrb[0].mxu1 %v12278_v16  ;;  %9930 = vmatpush1.bf16.msra.mxu0 %v9929_v28  ;;  %v9981_v28 = vpack.c.bf16 %v6092_v21, %v6088_v18  ;;  %v6278_v18 = vld [vmem:[#allocation23 + $0x1490] sm:$0xff] }
 0x883   : > { %9962 = vmatpush1.bf16.msra.mxu1 %v9961_v29  ;;  %9932 = vmatprep.subr.bf16.mxu0 %v9931_v30  ;;  %v9951_v29 = vpack.c.bf16 %v6099_v23, %v6095_v14  ;;  %v6094_v30 = vld [vmem:[#allocation23 + $0x1380] sm:$0xff]  ;;  %v6282_v21 = vld [vmem:[#allocation23 + $0x14b0] sm:$0xff]  ;;  %v6285_v14 = vld [vmem:[#allocation23 + $0x14c8] sm:$0xff] }
 0x884   : > { %9964 = vmatprep.subr.bf16.mxu1 %v9963_v34  ;;  %6177 = vmatprep.mubr.f32.mxu0 %v11201_v19  ;;  %v6100_v34 = vld [vmem:[#allocation23 + $0x13b0] sm:$0xff]  ;;  %v9953_v39 = vpack.c.bf16 %v6098_v31, %v6094_v30  ;;  %v6289_v23 = vld [vmem:[#allocation23 + $0x14e8] sm:$0xff]  ;;  %v6284_v30 = vld [vmem:[#allocation23 + $0x14c0] sm:$0xff] }
 0x885   : > { %6248 = vmatprep.mubr.f32.mxu1 %v11201_v19  ;;  %v6288_v31 = vld [vmem:[#allocation23 + $0x14e0] sm:$0xff] }
 0x886   : > { %9934 = vmatpush1.bf16.msra.mxu0 %v9933_v40  ;;  %v9985_v40 = vpack.c.bf16 %v6100_v34, %v6096_v32  ;;  %v6286_v32 = vld [vmem:[#allocation23 + $0x14d0] sm:$0xff] }
 0x887   : > { %9966 = vmatpush1.bf16.msra.mxu1 %v9965_v41  ;;  %9936 = vmatprep.subr.bf16.mxu0 %v9935_v42  ;;  %v9955_v41 = vpack.c.bf16 %v6107_v36, %v6103_v35  ;;  %v6102_v42 = vld [vmem:[#allocation23 + $0x13c0] sm:$0xff]  ;;  %v6290_v34 = vld [vmem:[#allocation23 + $0x14f0] sm:$0xff]  ;;  %v6293_v35 = vld [vmem:[#allocation23 + $0x1508] sm:$0xff] }
 0x888   : > { %9968 = vmatprep.subr.bf16.mxu1 %v9967_v2  ;;  %v6108_v2 = vld [vmem:[#allocation23 + $0x13f0] sm:$0xff]  ;;  %v9957_v48 = vpack.c.bf16 %v6106_v43, %v6102_v42  ;;  %v6297_v36 = vld [vmem:[#allocation23 + $0x1528] sm:$0xff]  ;;  %v6292_v42 = vld [vmem:[#allocation23 + $0x1500] sm:$0xff] }
 0x889   : > { %v6296_v43 = vld [vmem:[#allocation23 + $0x1520] sm:$0xff] }
 0x88a   : > { %9938 = vmatpush1.bf16.msra.mxu0 %v9937_v49  ;;  %v9989_v49 = vpack.c.bf16 %v6108_v2, %v6104_v44  ;;  %v6294_v44 = vld [vmem:[#allocation23 + $0x1510] sm:$0xff] }
 0x88b   : > { %9970 = vmatpush1.bf16.msra.mxu1 %v9969_v50  ;;  %9940 = vmatprep.subr.bf16.mxu0 %v9939_v51  ;;  %v9991_v50 = vpack.c.bf16 %v6265_v12, %v6261_v61  ;;  %v6260_v51 = vld [vmem:[#allocation23 + $0x1400] sm:$0xff]  ;;  %v6298_v2 = vld [vmem:[#allocation23 + $0x1530] sm:$0xff]  ;;  %v6301_v61 = vld [vmem:[#allocation23 + $0x1548] sm:$0xff] }
 0x88c   : > { %9972 = vmatprep.subr.bf16.mxu1 %v9971_v17  ;;  %v6266_v17 = vld [vmem:[#allocation23 + $0x1430] sm:$0xff]  ;;  %v6305_v12 = vld [vmem:[#allocation23 + $0x1568] sm:$0xff] }
 0x88e   : > { %9942 = vmatpush1.bf16.msra.mxu0 %v9941_v57  ;;  %v9993_v57 = vpack.c.bf16 %v6264_v52, %v6260_v51  ;;  %v6300_v51 = vld [vmem:[#allocation23 + $0x1540] sm:$0xff] }
 0x88f   : > { %9974 = vmatpush1.bf16.msra.mxu1 %v9973_v62  ;;  %9944 = vmatprep.subr.bf16.mxu0 %v9943_v60  ;;  %v10025_v62 = vpack.c.bf16 %v6266_v17, %v6262_v53  ;;  %v9995_v60 = vpack.c.bf16 %v6273_v56, %v6269_v55  ;;  %v6304_v52 = vld [vmem:[#allocation23 + $0x1560] sm:$0xff]  ;;  %v6302_v53 = vld [vmem:[#allocation23 + $0x1550] sm:$0xff]  ;;  %v6309_v55 = vld [vmem:[#allocation23 + $0x1588] sm:$0xff] }
 0x890   : > { %9976 = vmatprep.subr.bf16.mxu1 %v9975_v4  ;;  %v10027_v4 = vpack.c.bf16 %v6275_v0, %v6271_v59  ;;  %v6306_v17 = vld [vmem:[#allocation23 + $0x1570] sm:$0xff]  ;;  %v6313_v56 = vld [vmem:[#allocation23 + $0x15a8] sm:$0xff]  ;;  %v6315_v59 = vld [vmem:[#allocation23 + $0x15b8] sm:$0xff]  ;;  %v10013_v0 = vpack.c.bf16 %v6304_v52, %v6300_v51 }
 0x891   : > { %v6489_v51 = vld [vmem:[#allocation23 + $0x1680] sm:$0xff] }
 0x892   : > { %9946 = vmatpush1.bf16.msra.mxu0 %v9945_v10  ;;  %v9997_v10 = vpack.c.bf16 %v6272_v63, %v6268_v3  ;;  %v6312_v3 = vld [vmem:[#allocation23 + $0x15a0] sm:$0xff]  ;;  %v6310_v63 = vld [vmem:[#allocation23 + $0x1590] sm:$0xff] }
 0x893   : > { %9978 = vmatpush1.bf16.msra.mxu1 %v9977_v11  ;;  %9948 = vmatprep.subr.bf16.mxu0 %v9947_v22  ;;  %v10029_v11 = vpack.c.bf16 %v6274_v5, %v6270_v1  ;;  %v9999_v22 = vpack.c.bf16 %v6281_v7, %v6277_v6  ;;  %v6317_v5 = vld [vmem:[#allocation23 + $0x15c8] sm:$0xff]  ;;  %v6319_v7 = vld [vmem:[#allocation23 + $0x15d8] sm:$0xff]  ;;  %v6493_v52 = vld [vmem:[#allocation23 + $0x16a0] sm:$0xff] }
 0x894   : > { %9980 = vmatprep.subr.bf16.mxu1 %v9979_v20  ;;  %v10031_v20 = vpack.c.bf16 %v6283_v9, %v6279_v8  ;;  %v6321_v6 = vld [vmem:[#allocation23 + $0x15e8] sm:$0xff]  ;;  %v6323_v8 = vld [vmem:[#allocation23 + $0x15f8] sm:$0xff] }
 0x896   : > { %9950 = vmatpush1.bf16.msra.mxu0 %v9949_v27  ;;  %v10001_v27 = vpack.c.bf16 %v6280_v13, %v6276_v24  ;;  %v6320_v24 = vld [vmem:[#allocation23 + $0x15e0] sm:$0xff]  ;;  %v6318_v13 = vld [vmem:[#allocation23 + $0x15d0] sm:$0xff] }
 0x897   : > { %9982 = vmatpush1.bf16.msra.mxu1 %v9981_v28  ;;  %9952 = vmatprep.subr.bf16.mxu0 %v9951_v29  ;;  %v10033_v28 = vpack.c.bf16 %v6282_v21, %v6278_v18  ;;  %v10003_v29 = vpack.c.bf16 %v6289_v23, %v6285_v14  ;;  %v10051_v18 = vpack.c.bf16 %v6323_v8, %v6319_v7  ;;  %v6474_v21 = vld [vmem:[#allocation23 + $0x1608] sm:$0xff]  ;;  %v6476_v23 = vld [vmem:[#allocation23 + $0x1618] sm:$0xff] }
 0x898   : > { %9984 = vmatprep.subr.bf16.mxu1 %v9983_v33  ;;  %v10035_v33 = vpack.c.bf16 %v6291_v26, %v6287_v25  ;;  %v6478_v14 = vld [vmem:[#allocation23 + $0x1628] sm:$0xff]  ;;  %v6480_v25 = vld [vmem:[#allocation23 + $0x1638] sm:$0xff] }
 0x899   : > { %v6508_v7 = vld [vmem:[#allocation23 + $0x1718] sm:$0xff] }
 0x89a   : > { %9954 = vmatpush1.bf16.msra.mxu0 %v9953_v39  ;;  %v10005_v39 = vpack.c.bf16 %v6288_v31, %v6284_v30  ;;  %v6477_v30 = vld [vmem:[#allocation23 + $0x1620] sm:$0xff]  ;;  %v6475_v31 = vld [vmem:[#allocation23 + $0x1610] sm:$0xff]  ;;  %v6512_v8 = vld [vmem:[#allocation23 + $0x1738] sm:$0xff] }
 0x89b   : > { %9986 = vmatpush1.bf16.msra.mxu1 %v9985_v40  ;;  %9956 = vmatprep.subr.bf16.mxu0 %v9955_v41  ;;  %v10037_v40 = vpack.c.bf16 %v6290_v34, %v6286_v32  ;;  %v10007_v41 = vpack.c.bf16 %v6297_v36, %v6293_v35  ;;  %v10087_v32 = vpack.c.bf16 %v6480_v25, %v6476_v23  ;;  %v6482_v34 = vld [vmem:[#allocation23 + $0x1648] sm:$0xff]  ;;  %v6324_v36 = vrot.slane %v12278_v16, 2  ;;  %v6516_v23 = vld [vmem:[#allocation23 + $0x1758] sm:$0xff] }
 0x89c   : > { %9988 = vmatprep.subr.bf16.mxu1 %v9987_v45  ;;  %v10039_v45 = vpack.c.bf16 %v6299_v38, %v6295_v37  ;;  %v6486_v35 = vld [vmem:[#allocation23 + $0x1668] sm:$0xff]  ;;  %v6484_v37 = vld [vmem:[#allocation23 + $0x1658] sm:$0xff] }
 0x89d   : > { %v6488_v38 = vld [vmem:[#allocation23 + $0x1678] sm:$0xff] }
 0x89e   : > { %9958 = vmatpush1.bf16.msra.mxu0 %v9957_v48  ;;  %v10009_v48 = vpack.c.bf16 %v6296_v43, %v6292_v42  ;;  %v6481_v42 = vld [vmem:[#allocation23 + $0x1640] sm:$0xff]  ;;  %v6520_v25 = vld [vmem:[#allocation23 + $0x1778] sm:$0xff] }
 0x89f   : > { %9990 = vmatpush1.bf16.msra.mxu1 %v9989_v49  ;;  %9992 = vmatprep.subr.bf16.mxu0 %v9991_v50  ;;  %v10041_v49 = vpack.c.bf16 %v6298_v2, %v6294_v44  ;;  %v10011_v50 = vpack.c.bf16 %v6305_v12, %v6301_v61  ;;  %v6485_v43 = vld [vmem:[#allocation23 + $0x1660] sm:$0xff]  ;;  %v6483_v44 = vld [vmem:[#allocation23 + $0x1650] sm:$0xff]  ;;  %v6490_v61 = vld [vmem:[#allocation23 + $0x1688] sm:$0xff] }
 0x8a0   : > { %10024 = vmatprep.subr.bf16.mxu1 %v10023_v54  ;;  %v10043_v54 = vpack.c.bf16 %v6307_v47, %v6303_v46  ;;  %v6487_v2 = vld [vmem:[#allocation23 + $0x1670] sm:$0xff]  ;;  %v6494_v12 = vld [vmem:[#allocation23 + $0x16a8] sm:$0xff]  ;;  %v6492_v46 = vld [vmem:[#allocation23 + $0x1698] sm:$0xff] }
 0x8a1   : > { %6178 = vmatmul.mubr.f32.vlgmr.msra.gmra.mrb[0].mxu0 %v6111_v58  ;;  %v6496_v47 = vld [vmem:[#allocation23 + $0x16b8] sm:$0xff] }
 0x8a2   : > { %6249 = vmatmul.mubr.f32.vlgmr.msra.gmra.mrb[0].mxu1 %v6111_v58  ;;  %9994 = vmatpush1.bf16.msra.mxu0 %v9993_v57  ;;  %v6311_v58 = vld [vmem:[#allocation23 + $0x1598] sm:$0xff]  ;;  %v10045_v57 = vpack.c.bf16 %v6306_v17, %v6302_v53  ;;  %v6491_v53 = vld [vmem:[#allocation23 + $0x1690] sm:$0xff] }
 0x8a3   : > { %10026 = vmatpush1.bf16.msra.mxu1 %v10025_v62  ;;  %9996 = vmatprep.subr.bf16.mxu0 %v9995_v60  ;;  %v10015_v62 = vpack.c.bf16 %v6313_v56, %v6309_v55  ;;  %v6308_v60 = vld [vmem:[#allocation23 + $0x1580] sm:$0xff]  ;;  %v10047_v1 = vpack.c.bf16 %v6315_v59, %v6311_v58  ;;  %v6495_v17 = vld [vmem:[#allocation23 + $0x16b0] sm:$0xff]  ;;  %v6498_v55 = vld [vmem:[#allocation23 + $0x16c8] sm:$0xff] }
 0x8a4   : > { %10028 = vmatprep.subr.bf16.mxu1 %v10027_v4  ;;  %6390 = vmatprep.mubr.f32.mxu0 %v11201_v19  ;;  %v6314_v4 = vld [vmem:[#allocation23 + $0x15b0] sm:$0xff]  ;;  %v10017_v9 = vpack.c.bf16 %v6312_v3, %v6308_v60  ;;  %v6502_v56 = vld [vmem:[#allocation23 + $0x16e8] sm:$0xff]  ;;  %v6500_v58 = vld [vmem:[#allocation23 + $0x16d8] sm:$0xff] }
 0x8a5   : > { %6461 = vmatprep.mubr.f32.mxu1 %v11201_v19  ;;  %v6504_v59 = vld [vmem:[#allocation23 + $0x16f8] sm:$0xff]  ;;  %v6497_v60 = vld [vmem:[#allocation23 + $0x16c0] sm:$0xff] }
 0x8a6   : > { %9998 = vmatpush1.bf16.msra.mxu0 %v9997_v10  ;;  %v10049_v10 = vpack.c.bf16 %v6314_v4, %v6310_v63  ;;  %v6501_v3 = vld [vmem:[#allocation23 + $0x16e0] sm:$0xff]  ;;  %v6499_v63 = vld [vmem:[#allocation23 + $0x16d0] sm:$0xff] }
 0x8a7   : > { %10030 = vmatpush1.bf16.msra.mxu1 %v10029_v11  ;;  %10000 = vmatprep.subr.bf16.mxu0 %v9999_v22  ;;  %v10019_v11 = vpack.c.bf16 %v6321_v6, %v6317_v5  ;;  %v6316_v22 = vld [vmem:[#allocation23 + $0x15c0] sm:$0xff]  ;;  %v6503_v4 = vld [vmem:[#allocation23 + $0x16f0] sm:$0xff]  ;;  %v6506_v5 = vld [vmem:[#allocation23 + $0x1708] sm:$0xff] }
 0x8a8   : > { %10032 = vmatprep.subr.bf16.mxu1 %v10031_v20  ;;  %v6322_v20 = vld [vmem:[#allocation23 + $0x15f0] sm:$0xff]  ;;  %v10021_v26 = vpack.c.bf16 %v6320_v24, %v6316_v22  ;;  %v6510_v6 = vld [vmem:[#allocation23 + $0x1728] sm:$0xff]  ;;  %v6505_v22 = vld [vmem:[#allocation23 + $0x1700] sm:$0xff] }
 0x8a9   : > { %v6509_v24 = vld [vmem:[#allocation23 + $0x1720] sm:$0xff] }
 0x8aa   : > { %10002 = vmatpush1.bf16.msra.mxu0 %v10001_v27  ;;  %v10053_v27 = vpack.c.bf16 %v6322_v20, %v6318_v13  ;;  %v6507_v13 = vld [vmem:[#allocation23 + $0x1710] sm:$0xff] }
 0x8ab   : > { %10034 = vmatpush1.bf16.msra.mxu1 %v10033_v28  ;;  %10004 = vmatprep.subr.bf16.mxu0 %v10003_v29  ;;  %v10055_v28 = vpack.c.bf16 %v6478_v14, %v6474_v21  ;;  %v6473_v29 = vld [vmem:[#allocation23 + $0x1600] sm:$0xff]  ;;  %v6511_v20 = vld [vmem:[#allocation23 + $0x1730] sm:$0xff]  ;;  %v6514_v21 = vld [vmem:[#allocation23 + $0x1748] sm:$0xff] }
 0x8ac   : > { %10036 = vmatprep.subr.bf16.mxu1 %v10035_v33  ;;  %v6479_v33 = vld [vmem:[#allocation23 + $0x1630] sm:$0xff]  ;;  %v6518_v14 = vld [vmem:[#allocation23 + $0x1768] sm:$0xff] }
 0x8ae   : > { %10006 = vmatpush1.bf16.msra.mxu0 %v10005_v39  ;;  %v10057_v39 = vpack.c.bf16 %v6477_v30, %v6473_v29  ;;  %v6513_v29 = vld [vmem:[#allocation23 + $0x1740] sm:$0xff] }
 0x8af   : > { %10038 = vmatpush1.bf16.msra.mxu1 %v10037_v40  ;;  %10008 = vmatprep.subr.bf16.mxu0 %v10007_v41  ;;  %v10089_v40 = vpack.c.bf16 %v6479_v33, %v6475_v31  ;;  %v10059_v41 = vpack.c.bf16 %v6486_v35, %v6482_v34  ;;  %v6517_v30 = vld [vmem:[#allocation23 + $0x1760] sm:$0xff]  ;;  %v6515_v31 = vld [vmem:[#allocation23 + $0x1750] sm:$0xff]  ;;  %v6522_v34 = vld [vmem:[#allocation23 + $0x1788] sm:$0xff] }
 0x8b0   : > { %10040 = vmatprep.subr.bf16.mxu1 %v10039_v45  ;;  %v10091_v45 = vpack.c.bf16 %v6488_v38, %v6484_v37  ;;  %v6519_v33 = vld [vmem:[#allocation23 + $0x1770] sm:$0xff]  ;;  %v6526_v35 = vld [vmem:[#allocation23 + $0x17a8] sm:$0xff]  ;;  %v6528_v37 = vld [vmem:[#allocation23 + $0x17b8] sm:$0xff]  ;;  %v10077_v38 = vpack.c.bf16 %v6517_v30, %v6513_v29 }
 0x8b1   : > { %v6708_v29 = vld [vmem:[#allocation23 + $0x18a0] sm:$0xff]  ;;  %v6706_v30 = vld [vmem:[#allocation23 + $0x1890] sm:$0xff] }
 0x8b2   : > { %10010 = vmatpush1.bf16.msra.mxu0 %v10009_v48  ;;  %v10061_v48 = vpack.c.bf16 %v6485_v43, %v6481_v42  ;;  %v6525_v42 = vld [vmem:[#allocation23 + $0x17a0] sm:$0xff]  ;;  %v6523_v43 = vld [vmem:[#allocation23 + $0x1790] sm:$0xff] }
 0x8b3   : > { %10042 = vmatpush1.bf16.msra.mxu1 %v10041_v49  ;;  %10012 = vmatprep.subr.bf16.mxu0 %v10011_v50  ;;  %v10093_v49 = vpack.c.bf16 %v6487_v2, %v6483_v44  ;;  %v10063_v50 = vpack.c.bf16 %v6494_v12, %v6490_v61  ;;  %v6530_v2 = vld [vmem:[#allocation23 + $0x17c8] sm:$0xff]  ;;  %v6532_v12 = vld [vmem:[#allocation23 + $0x17d8] sm:$0xff] }
 0x8b4   : > { %10044 = vmatprep.subr.bf16.mxu1 %v10043_v54  ;;  %v10095_v54 = vpack.c.bf16 %v6496_v47, %v6492_v46  ;;  %v6534_v61 = vld [vmem:[#allocation23 + $0x17e8] sm:$0xff]  ;;  %v6536_v46 = vld [vmem:[#allocation23 + $0x17f8] sm:$0xff] }
 0x8b6   : > { %10014 = vmatpush1.bf16.msra.mxu0 %v10013_v0  ;;  %v10065_v0 = vpack.c.bf16 %v6493_v52, %v6489_v51  ;;  %v6533_v51 = vld [vmem:[#allocation23 + $0x17e0] sm:$0xff]  ;;  %v6531_v52 = vld [vmem:[#allocation23 + $0x17d0] sm:$0xff] }
 0x8b7   : > { %10046 = vmatpush1.bf16.msra.mxu1 %v10045_v57  ;;  %10016 = vmatprep.subr.bf16.mxu0 %v10015_v62  ;;  %v10097_v57 = vpack.c.bf16 %v6495_v17, %v6491_v53  ;;  %v10067_v62 = vpack.c.bf16 %v6502_v56, %v6498_v55  ;;  %v10115_v53 = vpack.c.bf16 %v6536_v46, %v6532_v12  ;;  %v6689_v17 = vld [vmem:[#allocation23 + $0x1808] sm:$0xff]  ;;  %v6691_v56 = vld [vmem:[#allocation23 + $0x1818] sm:$0xff] }
 0x8b8   : > { %10048 = vmatprep.subr.bf16.mxu1 %v10047_v1  ;;  %v10099_v1 = vpack.c.bf16 %v6504_v59, %v6500_v58  ;;  %v6693_v55 = vld [vmem:[#allocation23 + $0x1828] sm:$0xff]  ;;  %v6695_v58 = vld [vmem:[#allocation23 + $0x1838] sm:$0xff] }
 0x8b9   : > { %v6727_v12 = vld [vmem:[#allocation23 + $0x1938] sm:$0xff] }
 0x8ba   : > { %10018 = vmatpush1.bf16.msra.mxu0 %v10017_v9  ;;  %v10069_v9 = vpack.c.bf16 %v6501_v3, %v6497_v60  ;;  %v6692_v60 = vld [vmem:[#allocation23 + $0x1820] sm:$0xff]  ;;  %v6690_v3 = vld [vmem:[#allocation23 + $0x1810] sm:$0xff] }
 0x8bb   : > { %10050 = vmatpush1.bf16.msra.mxu1 %v10049_v10  ;;  %10020 = vmatprep.subr.bf16.mxu0 %v10019_v11  ;;  %v10101_v10 = vpack.c.bf16 %v6503_v4, %v6499_v63  ;;  %v10071_v11 = vpack.c.bf16 %v6510_v6, %v6506_v5  ;;  %v10151_v63 = vpack.c.bf16 %v6695_v58, %v6691_v56  ;;  %v6697_v4 = vld [vmem:[#allocation23 + $0x1848] sm:$0xff]  ;;  %v6537_v6 = vrot.slane %v12278_v16, 3  ;;  %v6735_v56 = vld [vmem:[#allocation23 + $0x1978] sm:$0xff] }
 0x8bc   : > { %10052 = vmatprep.subr.bf16.mxu1 %v10051_v18  ;;  %v10103_v18 = vpack.c.bf16 %v6512_v8, %v6508_v7  ;;  %v6701_v5 = vld [vmem:[#allocation23 + $0x1868] sm:$0xff]  ;;  %v6699_v7 = vld [vmem:[#allocation23 + $0x1858] sm:$0xff] }
 0x8bd   : > { %v6703_v8 = vld [vmem:[#allocation23 + $0x1878] sm:$0xff] }
 0x8be   : > { %10022 = vmatpush1.bf16.msra.mxu0 %v10021_v26  ;;  %v10073_v26 = vpack.c.bf16 %v6509_v24, %v6505_v22  ;;  %v6696_v22 = vld [vmem:[#allocation23 + $0x1840] sm:$0xff] }
 0x8bf   : > { %10054 = vmatpush1.bf16.msra.mxu1 %v10053_v27  ;;  %10056 = vmatprep.subr.bf16.mxu0 %v10055_v28  ;;  %v10105_v27 = vpack.c.bf16 %v6511_v20, %v6507_v13  ;;  %v10075_v28 = vpack.c.bf16 %v6518_v14, %v6514_v21  ;;  %v6700_v24 = vld [vmem:[#allocation23 + $0x1860] sm:$0xff]  ;;  %v6698_v13 = vld [vmem:[#allocation23 + $0x1850] sm:$0xff]  ;;  %v6705_v21 = vld [vmem:[#allocation23 + $0x1888] sm:$0xff] }
 0x8c0   : > { %10088 = vmatprep.subr.bf16.mxu1 %v10087_v32  ;;  %v10107_v32 = vpack.c.bf16 %v6520_v25, %v6516_v23  ;;  %v6702_v20 = vld [vmem:[#allocation23 + $0x1870] sm:$0xff]  ;;  %v6709_v14 = vld [vmem:[#allocation23 + $0x18a8] sm:$0xff]  ;;  %v6707_v23 = vld [vmem:[#allocation23 + $0x1898] sm:$0xff]  ;;  %v10125_v16 = vpack.c.bf16 %v6700_v24, %v6696_v22 }
 0x8c1   : > { %6391 = vmatmul.mubr.f32.vlgmr.msra.gmra.mrb[0].mxu0 %v6324_v36  ;;  %v6711_v25 = vld [vmem:[#allocation23 + $0x18b8] sm:$0xff]  ;;  %v6738_v22 = vld [vmem:[#allocation23 + $0x1990] sm:$0xff] }
 0x8c2   : > { %6462 = vmatmul.mubr.f32.vlgmr.msra.gmra.mrb[0].mxu1 %v6324_v36  ;;  %10058 = vmatpush1.bf16.msra.mxu0 %v10057_v39  ;;  %v6524_v36 = vld [vmem:[#allocation23 + $0x1798] sm:$0xff]  ;;  %v10109_v39 = vpack.c.bf16 %v6519_v33, %v6515_v31  ;;  %v10159_v31 = vpack.c.bf16 %v6711_v25, %v6707_v23  ;;  %v6713_v33 = vld [vmem:[#allocation23 + $0x18c8] sm:$0xff] }
 0x8c3   : > { %10090 = vmatpush1.bf16.msra.mxu1 %v10089_v40  ;;  %10060 = vmatprep.subr.bf16.mxu0 %v10059_v41  ;;  %v10079_v40 = vpack.c.bf16 %v6526_v35, %v6522_v34  ;;  %v6521_v41 = vld [vmem:[#allocation23 + $0x1780] sm:$0xff]  ;;  %v10111_v44 = vpack.c.bf16 %v6528_v37, %v6524_v36  ;;  %v6717_v34 = vld [vmem:[#allocation23 + $0x18e8] sm:$0xff]  ;;  %v6715_v35 = vld [vmem:[#allocation23 + $0x18d8] sm:$0xff] }
 0x8c4   : > { %10092 = vmatprep.subr.bf16.mxu1 %v10091_v45  ;;  %6603 = vmatprep.mubr.f32.mxu0 %v11201_v19  ;;  %v6527_v45 = vld [vmem:[#allocation23 + $0x17b0] sm:$0xff]  ;;  %v10081_v47 = vpack.c.bf16 %v6525_v42, %v6521_v41  ;;  %v6719_v36 = vld [vmem:[#allocation23 + $0x18f8] sm:$0xff]  ;;  %v6716_v41 = vld [vmem:[#allocation23 + $0x18e0] sm:$0xff] }
 0x8c5   : > { %6674 = vmatprep.mubr.f32.mxu1 %v11201_v19  ;;  %v6714_v42 = vld [vmem:[#allocation23 + $0x18d0] sm:$0xff] }
 0x8c6   : > { %10062 = vmatpush1.bf16.msra.mxu0 %v10061_v48  ;;  %v10113_v48 = vpack.c.bf16 %v6527_v45, %v6523_v43  ;;  %v10163_v43 = vpack.c.bf16 %v6719_v36, %v6715_v35  ;;  %v6721_v45 = vld [vmem:[#allocation23 + $0x1908] sm:$0xff] }
 0x8c7   : > { %10094 = vmatpush1.bf16.msra.mxu1 %v10093_v49  ;;  %10064 = vmatprep.subr.bf16.mxu0 %v10063_v50  ;;  %v10083_v49 = vpack.c.bf16 %v6534_v61, %v6530_v2  ;;  %v6529_v50 = vld [vmem:[#allocation23 + $0x17c0] sm:$0xff]  ;;  %v6725_v2 = vld [vmem:[#allocation23 + $0x1928] sm:$0xff]  ;;  %v6723_v61 = vld [vmem:[#allocation23 + $0x1918] sm:$0xff] }
 0x8c8   : > { %10096 = vmatprep.subr.bf16.mxu1 %v10095_v54  ;;  %v6535_v54 = vld [vmem:[#allocation23 + $0x17f0] sm:$0xff]  ;;  %v10085_v59 = vpack.c.bf16 %v6533_v51, %v6529_v50  ;;  %v6724_v50 = vld [vmem:[#allocation23 + $0x1920] sm:$0xff] }
 0x8c9   : > { %v6722_v51 = vld [vmem:[#allocation23 + $0x1910] sm:$0xff] }
 0x8ca   : > { %10066 = vmatpush1.bf16.msra.mxu0 %v10065_v0  ;;  %v10117_v0 = vpack.c.bf16 %v6535_v54, %v6531_v52  ;;  %v10167_v52 = vpack.c.bf16 %v6727_v12, %v6723_v61  ;;  %v6729_v54 = vld [vmem:[#allocation23 + $0x1948] sm:$0xff] }
 0x8cb   : > { %10098 = vmatpush1.bf16.msra.mxu1 %v10097_v57  ;;  %10068 = vmatprep.subr.bf16.mxu0 %v10067_v62  ;;  %v10119_v57 = vpack.c.bf16 %v6693_v55, %v6689_v17  ;;  %v6688_v62 = vld [vmem:[#allocation23 + $0x1800] sm:$0xff]  ;;  %v6733_v17 = vld [vmem:[#allocation23 + $0x1968] sm:$0xff]  ;;  %v6731_v55 = vld [vmem:[#allocation23 + $0x1958] sm:$0xff] }
 0x8cc   : > { %10100 = vmatprep.subr.bf16.mxu1 %v10099_v1  ;;  %v6694_v1 = vld [vmem:[#allocation23 + $0x1830] sm:$0xff]  ;;  %v12293_v61 = vld [vmem:[#allocation8 + $0xc] sm:$0xf] }
 0x8ce   : > { %10070 = vmatpush1.bf16.msra.mxu0 %v10069_v9  ;;  %v10121_v9 = vpack.c.bf16 %v6692_v60, %v6688_v62  ;;  %v6732_v62 = vld [vmem:[#allocation23 + $0x1960] sm:$0xff]  ;;  %v6730_v60 = vld [vmem:[#allocation23 + $0x1950] sm:$0xff] }
 0x8cf   : > { %10102 = vmatpush1.bf16.msra.mxu1 %v10101_v10  ;;  %10072 = vmatprep.subr.bf16.mxu0 %v10071_v11  ;;  %v10153_v10 = vpack.c.bf16 %v6694_v1, %v6690_v3  ;;  %v10123_v11 = vpack.c.bf16 %v6701_v5, %v6697_v4  ;;  %v10171_v3 = vpack.c.bf16 %v6735_v56, %v6731_v55  ;;  %v6737_v1 = vld [vmem:[#allocation23 + $0x1988] sm:$0xff]  ;;  %v6739_v5 = vld [vmem:[#allocation23 + $0x1998] sm:$0xff] }
 0x8d0   : > { %10104 = vmatprep.subr.bf16.mxu1 %v10103_v18  ;;  %v10155_v18 = vpack.c.bf16 %v6703_v8, %v6699_v7  ;;  %v6741_v4 = vld [vmem:[#allocation23 + $0x19a8] sm:$0xff]  ;;  %v6922_v55 = vld [vmem:[#allocation23 + $0x1ab8] sm:$0xff] }
 0x8d2   : > { %10074 = vmatpush1.bf16.msra.mxu0 %v10073_v26  ;;  %v10157_v26 = vpack.c.bf16 %v6702_v20, %v6698_v13  ;;  %v6742_v13 = vld [vmem:[#allocation23 + $0x19b0] sm:$0xff]  ;;  %v6749_v20 = vld [vmem:[#allocation23 + $0x19e8] sm:$0xff] }
 0x8d3   : > { %10106 = vmatpush1.bf16.msra.mxu1 %v10105_v27  ;;  %10076 = vmatprep.subr.bf16.mxu0 %v10075_v28  ;;  %v10127_v27 = vpack.c.bf16 %v6709_v14, %v6705_v21  ;;  %v6704_v28 = vld [vmem:[#allocation23 + $0x1880] sm:$0xff]  ;;  %v6747_v21 = vld [vmem:[#allocation23 + $0x19d8] sm:$0xff]  ;;  %v10177_v25 = vpack.c.bf16 %v6742_v13, %v6738_v22  ;;  %v6932_v13 = vld [vmem:[#allocation23 + $0x1b08] sm:$0xff] }
 0x8d4   : > { %10108 = vmatprep.subr.bf16.mxu1 %v10107_v32  ;;  %v6710_v32 = vld [vmem:[#allocation23 + $0x18b0] sm:$0xff]  ;;  %v10129_v37 = vpack.c.bf16 %v6708_v29, %v6704_v28  ;;  %v6751_v14 = vld [vmem:[#allocation23 + $0x19f8] sm:$0xff] }
 0x8d5   : > { %v6746_v28 = vld [vmem:[#allocation23 + $0x19d0] sm:$0xff]  ;;  %v10179_v29 = vpack.c.bf16 %v6751_v14, %v6747_v21  ;;  %v6938_v21 = vld [vmem:[#allocation23 + $0x1b38] sm:$0xff] }
 0x8d6   : > { %10078 = vmatpush1.bf16.msra.mxu0 %v10077_v38  ;;  %v10161_v38 = vpack.c.bf16 %v6710_v32, %v6706_v30  ;;  %v6750_v30 = vld [vmem:[#allocation23 + $0x19f0] sm:$0xff]  ;;  %v6904_v32 = vld [vmem:[#allocation23 + $0x1a28] sm:$0xff] }
 0x8d7   : > { %10110 = vmatpush1.bf16.msra.mxu1 %v10109_v39  ;;  %10080 = vmatprep.subr.bf16.mxu0 %v10079_v40  ;;  %v10131_v39 = vpack.c.bf16 %v6717_v34, %v6713_v33  ;;  %v6712_v40 = vld [vmem:[#allocation23 + $0x18c0] sm:$0xff]  ;;  %v6902_v33 = vld [vmem:[#allocation23 + $0x1a18] sm:$0xff]  ;;  %v10181_v36 = vpack.c.bf16 %v6750_v30, %v6746_v28  ;;  %v6940_v30 = vld [vmem:[#allocation23 + $0x1b48] sm:$0xff] }
 0x8d8   : > { %10112 = vmatprep.subr.bf16.mxu1 %v10111_v44  ;;  %v6718_v44 = vld [vmem:[#allocation23 + $0x18f0] sm:$0xff]  ;;  %v10133_v46 = vpack.c.bf16 %v6716_v41, %v6712_v40  ;;  %v6906_v34 = vld [vmem:[#allocation23 + $0x1a38] sm:$0xff] }
 0x8d9   : > { %v6901_v40 = vld [vmem:[#allocation23 + $0x1a10] sm:$0xff]  ;;  %v10215_v41 = vpack.c.bf16 %v6906_v34, %v6902_v33  ;;  %v6946_v33 = vld [vmem:[#allocation23 + $0x1b78] sm:$0xff] }
 0x8da   : > { %10082 = vmatpush1.bf16.msra.mxu0 %v10081_v47  ;;  %v10165_v47 = vpack.c.bf16 %v6718_v44, %v6714_v42  ;;  %v6905_v42 = vld [vmem:[#allocation23 + $0x1a30] sm:$0xff]  ;;  %v6912_v44 = vld [vmem:[#allocation23 + $0x1a68] sm:$0xff] }
 0x8db   : > { %10114 = vmatpush1.bf16.msra.mxu1 %v10113_v48  ;;  %10084 = vmatprep.subr.bf16.mxu0 %v10083_v49  ;;  %v10135_v48 = vpack.c.bf16 %v6725_v2, %v6721_v45  ;;  %v6720_v49 = vld [vmem:[#allocation23 + $0x1900] sm:$0xff]  ;;  %v6910_v45 = vld [vmem:[#allocation23 + $0x1a58] sm:$0xff] }
 0x8dc   : > { %10116 = vmatprep.subr.bf16.mxu1 %v10115_v53  ;;  %v6726_v53 = vld [vmem:[#allocation23 + $0x1930] sm:$0xff]  ;;  %v10137_v58 = vpack.c.bf16 %v6724_v50, %v6720_v49  ;;  %v6914_v2 = vld [vmem:[#allocation23 + $0x1a78] sm:$0xff]  ;;  %v6911_v49 = vld [vmem:[#allocation23 + $0x1a60] sm:$0xff] }
 0x8dd   : > { %v6909_v50 = vld [vmem:[#allocation23 + $0x1a50] sm:$0xff] }
 0x8de   : > { %10086 = vmatpush1.bf16.msra.mxu0 %v10085_v59  ;;  %v10169_v59 = vpack.c.bf16 %v6726_v53, %v6722_v51  ;;  %v10219_v51 = vpack.c.bf16 %v6914_v2, %v6910_v45  ;;  %v6916_v53 = vld [vmem:[#allocation23 + $0x1a88] sm:$0xff]  ;;  %v6954_v45 = vld [vmem:[#allocation23 + $0x1bb8] sm:$0xff] }
 0x8df   : > { %10118 = vmatpush1.bf16.msra.mxu1 %v10117_v0  ;;  %10120 = vmatprep.subr.bf16.mxu0 %v10119_v57  ;;  %v10139_v0 = vpack.c.bf16 %v6733_v17, %v6729_v54  ;;  %v6728_v57 = vld [vmem:[#allocation23 + $0x1940] sm:$0xff]  ;;  %v6920_v54 = vld [vmem:[#allocation23 + $0x1aa8] sm:$0xff]  ;;  %v6918_v17 = vld [vmem:[#allocation23 + $0x1a98] sm:$0xff] }
 0x8e0   : > { %10152 = vmatprep.subr.bf16.mxu1 %v10151_v63  ;;  %v6734_v63 = vld [vmem:[#allocation23 + $0x1970] sm:$0xff]  ;;  %v10141_v7 = vpack.c.bf16 %v6732_v62, %v6728_v57  ;;  %v6919_v57 = vld [vmem:[#allocation23 + $0x1aa0] sm:$0xff] }
 0x8e1   : > { %6604 = vmatmul.mubr.f32.vlgmr.msra.gmra.mrb[0].mxu0 %v6537_v6  ;;  %v10173_v8 = vpack.c.bf16 %v6734_v63, %v6730_v60  ;;  %v6917_v62 = vld [vmem:[#allocation23 + $0x1a90] sm:$0xff]  ;;  %v10223_v60 = vpack.c.bf16 %v6922_v55, %v6918_v17  ;;  %v6924_v63 = vld [vmem:[#allocation23 + $0x1ac8] sm:$0xff]  ;;  %v6962_v17 = vld [vmem:[#allocation23 + $0x1bf8] sm:$0xff] }
 0x8e2   : > { %6675 = vmatmul.mubr.f32.vlgmr.msra.gmra.mrb[0].mxu1 %v6537_v6  ;;  %10122 = vmatpush1.bf16.msra.mxu0 %v10121_v9  ;;  %v6743_v6 = vld [vmem:[#allocation23 + $0x19b8] sm:$0xff]  ;;  %v10143_v9 = vpack.c.bf16 %v6741_v4, %v6737_v1  ;;  %v6928_v1 = vld [vmem:[#allocation23 + $0x1ae8] sm:$0xff] }
 0x8e3   : > { %10154 = vmatpush1.bf16.msra.mxu1 %v10153_v10  ;;  %10124 = vmatprep.subr.bf16.mxu0 %v10123_v11  ;;  %v6736_v10 = vld [vmem:[#allocation23 + $0x1980] sm:$0xff]  ;;  %v10175_v24 = vpack.c.bf16 %v6743_v6, %v6739_v5  ;;  %v6926_v4 = vld [vmem:[#allocation23 + $0x1ad8] sm:$0xff] }
 0x8e4   : > { %10156 = vmatprep.subr.bf16.mxu1 %v10155_v18  ;;  %6816 = vmatprep.mubr.f32.mxu0 %v11201_v19  ;;  %v6740_v11 = vld [vmem:[#allocation23 + $0x19a0] sm:$0xff]  ;;  %v6745_v18 = vld [vmem:[#allocation23 + $0x19c8] sm:$0xff]  ;;  %v6930_v5 = vld [vmem:[#allocation23 + $0x1af8] sm:$0xff] }
 0x8e5   : > { %6887 = vmatprep.mubr.f32.mxu1 %v11201_v19  ;;  %v10145_v23 = vpack.c.bf16 %v6740_v11, %v6736_v10  ;;  %v6927_v10 = vld [vmem:[#allocation23 + $0x1ae0] sm:$0xff]  ;;  %v6925_v11 = vld [vmem:[#allocation23 + $0x1ad0] sm:$0xff]  ;;  %v10227_v22 = vpack.c.bf16 %v6930_v5, %v6926_v4  ;;  %v7120_v4 = vld [vmem:[#allocation23 + $0x1c38] sm:$0xff] }
 0x8e6   : > { %10126 = vmatpush1.bf16.msra.mxu0 %v10125_v16  ;;  %v10147_v16 = vpack.c.bf16 %v6749_v20, %v6745_v18  ;;  %v6936_v18 = vld [vmem:[#allocation23 + $0x1b28] sm:$0xff]  ;;  %v6934_v20 = vld [vmem:[#allocation23 + $0x1b18] sm:$0xff] }
 0x8e7   : > { %10158 = vmatpush1.bf16.msra.mxu1 %v10157_v26  ;;  %10128 = vmatprep.subr.bf16.mxu0 %v10127_v27  ;;  %v6744_v26 = vld [vmem:[#allocation23 + $0x19c0] sm:$0xff]  ;;  %v10231_v28 = vpack.c.bf16 %v6938_v21, %v6934_v20  ;;  %v7124_v20 = vld [vmem:[#allocation23 + $0x1c58] sm:$0xff] }
 0x8e8   : > { %10160 = vmatprep.subr.bf16.mxu1 %v10159_v31  ;;  %v6748_v27 = vld [vmem:[#allocation23 + $0x19e0] sm:$0xff]  ;;  %v6900_v31 = vld [vmem:[#allocation23 + $0x1a08] sm:$0xff]  ;;  %v7128_v21 = vld [vmem:[#allocation23 + $0x1c78] sm:$0xff] }
 0x8e9   : > { %v10149_v35 = vpack.c.bf16 %v6748_v27, %v6744_v26  ;;  %v6935_v26 = vld [vmem:[#allocation23 + $0x1b20] sm:$0xff]  ;;  %v6933_v27 = vld [vmem:[#allocation23 + $0x1b10] sm:$0xff] }
 0x8ea   : > { %10130 = vmatpush1.bf16.msra.mxu0 %v10129_v37  ;;  %v10183_v37 = vpack.c.bf16 %v6904_v32, %v6900_v31  ;;  %v6944_v31 = vld [vmem:[#allocation23 + $0x1b68] sm:$0xff]  ;;  %v6942_v32 = vld [vmem:[#allocation23 + $0x1b58] sm:$0xff] }
 0x8eb   : > { %10162 = vmatpush1.bf16.msra.mxu1 %v10161_v38  ;;  %10132 = vmatprep.subr.bf16.mxu0 %v10131_v39  ;;  %v6899_v38 = vld [vmem:[#allocation23 + $0x1a00] sm:$0xff] }
 0x8ec   : > { %10164 = vmatprep.subr.bf16.mxu1 %v10163_v43  ;;  %v6903_v39 = vld [vmem:[#allocation23 + $0x1a20] sm:$0xff]  ;;  %v6908_v43 = vld [vmem:[#allocation23 + $0x1a48] sm:$0xff] }
 0x8ed   : > { %v10185_v12 = vpack.c.bf16 %v6903_v39, %v6899_v38  ;;  %v6943_v38 = vld [vmem:[#allocation23 + $0x1b60] sm:$0xff]  ;;  %v6941_v39 = vld [vmem:[#allocation23 + $0x1b50] sm:$0xff] }
 0x8ee   : > { %10134 = vmatpush1.bf16.msra.mxu0 %v10133_v46  ;;  %v10217_v46 = vpack.c.bf16 %v6905_v42, %v6901_v40  ;;  %v10235_v40 = vpack.c.bf16 %v6946_v33, %v6942_v32  ;;  %v6948_v42 = vld [vmem:[#allocation23 + $0x1b88] sm:$0xff]  ;;  %v7132_v32 = vld [vmem:[#allocation23 + $0x1c98] sm:$0xff] }
 0x8ef   : > { %10166 = vmatpush1.bf16.msra.mxu1 %v10165_v47  ;;  %10136 = vmatprep.subr.bf16.mxu0 %v10135_v48  ;;  %v10187_v47 = vpack.c.bf16 %v6912_v44, %v6908_v43  ;;  %v6907_v48 = vld [vmem:[#allocation23 + $0x1a40] sm:$0xff]  ;;  %v6952_v43 = vld [vmem:[#allocation23 + $0x1ba8] sm:$0xff]  ;;  %v6950_v44 = vld [vmem:[#allocation23 + $0x1b98] sm:$0xff] }
 0x8f0   : > { %10168 = vmatprep.subr.bf16.mxu1 %v10167_v52  ;;  %v6913_v52 = vld [vmem:[#allocation23 + $0x1a70] sm:$0xff]  ;;  %v10189_v56 = vpack.c.bf16 %v6911_v49, %v6907_v48  ;;  %v6951_v48 = vld [vmem:[#allocation23 + $0x1ba0] sm:$0xff]  ;;  %v7136_v33 = vld [vmem:[#allocation23 + $0x1cb8] sm:$0xff] }
 0x8f1   : > { %v6949_v49 = vld [vmem:[#allocation23 + $0x1b90] sm:$0xff] }
 0x8f2   : > { %10138 = vmatpush1.bf16.msra.mxu0 %v10137_v58  ;;  %v10221_v58 = vpack.c.bf16 %v6913_v52, %v6909_v50  ;;  %v10239_v50 = vpack.c.bf16 %v6954_v45, %v6950_v44  ;;  %v6956_v52 = vld [vmem:[#allocation23 + $0x1bc8] sm:$0xff]  ;;  %v7140_v44 = vld [vmem:[#allocation23 + $0x1cd8] sm:$0xff] }
 0x8f3   : > { %10170 = vmatpush1.bf16.msra.mxu1 %v10169_v59  ;;  %10140 = vmatprep.subr.bf16.mxu0 %v10139_v0  ;;  %v10191_v59 = vpack.c.bf16 %v6920_v54, %v6916_v53  ;;  %v6915_v0 = vld [vmem:[#allocation23 + $0x1a80] sm:$0xff]  ;;  %v6960_v53 = vld [vmem:[#allocation23 + $0x1be8] sm:$0xff]  ;;  %v6958_v54 = vld [vmem:[#allocation23 + $0x1bd8] sm:$0xff] }
 0x8f4   : > { %10172 = vmatprep.subr.bf16.mxu1 %v10171_v3  ;;  %v6921_v3 = vld [vmem:[#allocation23 + $0x1ab0] sm:$0xff]  ;;  %v10193_v6 = vpack.c.bf16 %v6919_v57, %v6915_v0  ;;  %v6959_v0 = vld [vmem:[#allocation23 + $0x1be0] sm:$0xff]  ;;  %v7144_v45 = vld [vmem:[#allocation23 + $0x1cf8] sm:$0xff] }
 0x8f5   : > { %v6957_v57 = vld [vmem:[#allocation23 + $0x1bd0] sm:$0xff] }
 0x8f6   : > { %10142 = vmatpush1.bf16.msra.mxu0 %v10141_v7  ;;  %v10225_v7 = vpack.c.bf16 %v6921_v3, %v6917_v62  ;;  %v10243_v62 = vpack.c.bf16 %v6962_v17, %v6958_v54  ;;  %v7114_v3 = vld [vmem:[#allocation23 + $0x1c08] sm:$0xff]  ;;  %v7148_v54 = vld [vmem:[#allocation23 + $0x1d18] sm:$0xff] }
 0x8f7   : > { %10174 = vmatpush1.bf16.msra.mxu1 %v10173_v8  ;;  %10144 = vmatprep.subr.bf16.mxu0 %v10143_v9  ;;  %v10195_v8 = vpack.c.bf16 %v6928_v1, %v6924_v63  ;;  %v6923_v9 = vld [vmem:[#allocation23 + $0x1ac0] sm:$0xff]  ;;  %v7118_v63 = vld [vmem:[#allocation23 + $0x1c28] sm:$0xff]  ;;  %v7116_v1 = vld [vmem:[#allocation23 + $0x1c18] sm:$0xff] }
 0x8f8   : > { %10176 = vmatprep.subr.bf16.mxu1 %v10175_v24  ;;  %v6929_v24 = vld [vmem:[#allocation23 + $0x1af0] sm:$0xff]  ;;  %v10197_v14 = vpack.c.bf16 %v6927_v10, %v6923_v9  ;;  %v7117_v9 = vld [vmem:[#allocation23 + $0x1c20] sm:$0xff]  ;;  %v7152_v17 = vld [vmem:[#allocation23 + $0x1d38] sm:$0xff] }
 0x8f9   : > { %v7115_v10 = vld [vmem:[#allocation23 + $0x1c10] sm:$0xff] }
 0x8fa   : > { %10146 = vmatpush1.bf16.msra.mxu0 %v10145_v23  ;;  %v10229_v23 = vpack.c.bf16 %v6929_v24, %v6925_v11  ;;  %v10279_v11 = vpack.c.bf16 %v7120_v4, %v7116_v1  ;;  %v7122_v24 = vld [vmem:[#allocation23 + $0x1c48] sm:$0xff]  ;;  %v7156_v1 = vld [vmem:[#allocation23 + $0x1d58] sm:$0xff] }
 0x8fb   : > { %10178 = vmatpush1.bf16.msra.mxu1 %v10177_v25  ;;  %10148 = vmatprep.subr.bf16.mxu0 %v10147_v16  ;;  %v10199_v25 = vpack.c.bf16 %v6936_v18, %v6932_v13  ;;  %v6931_v16 = vld [vmem:[#allocation23 + $0x1b00] sm:$0xff]  ;;  %v7126_v13 = vld [vmem:[#allocation23 + $0x1c68] sm:$0xff]  ;;  %v6964_v18 = vrot.slane %v12293_v61, 1  ;;  %v7160_v4 = vld [vmem:[#allocation23 + $0x1d78] sm:$0xff] }
 0x8fc   : > { %10180 = vmatprep.subr.bf16.mxu1 %v10179_v29  ;;  %v6937_v29 = vld [vmem:[#allocation23 + $0x1b30] sm:$0xff]  ;;  %v10201_v34 = vpack.c.bf16 %v6935_v26, %v6931_v16  ;;  %v7121_v16 = vld [vmem:[#allocation23 + $0x1c40] sm:$0xff] }
 0x8fd   : > { %v7125_v26 = vld [vmem:[#allocation23 + $0x1c60] sm:$0xff] }
 0x8fe   : > { %10150 = vmatpush1.bf16.msra.mxu0 %v10149_v35  ;;  %v10233_v35 = vpack.c.bf16 %v6937_v29, %v6933_v27  ;;  %v7123_v27 = vld [vmem:[#allocation23 + $0x1c50] sm:$0xff] }
 0x8ff   : > { %10182 = vmatpush1.bf16.msra.mxu1 %v10181_v36  ;;  %10184 = vmatprep.subr.bf16.mxu0 %v10183_v37  ;;  %v10203_v36 = vpack.c.bf16 %v6944_v31, %v6940_v30  ;;  %v6939_v37 = vld [vmem:[#allocation23 + $0x1b40] sm:$0xff]  ;;  %v7127_v29 = vld [vmem:[#allocation23 + $0x1c70] sm:$0xff]  ;;  %v7130_v30 = vld [vmem:[#allocation23 + $0x1c88] sm:$0xff] }
 0x900   : > { %10216 = vmatprep.subr.bf16.mxu1 %v10215_v41  ;;  %v6945_v41 = vld [vmem:[#allocation23 + $0x1b70] sm:$0xff]  ;;  %v10205_v2 = vpack.c.bf16 %v6943_v38, %v6939_v37  ;;  %v7134_v31 = vld [vmem:[#allocation23 + $0x1ca8] sm:$0xff]  ;;  %v7129_v37 = vld [vmem:[#allocation23 + $0x1c80] sm:$0xff] }
 0x901   : > { %6817 = vmatmul.mubr.f32.vlgmr.msra.gmra.mrb[0].mxu0 %v12293_v61  ;;  %v7133_v38 = vld [vmem:[#allocation23 + $0x1ca0] sm:$0xff] }
 0x902   : > { %6888 = vmatmul.mubr.f32.vlgmr.msra.gmra.mrb[0].mxu1 %v12293_v61  ;;  %10186 = vmatpush1.bf16.msra.mxu0 %v10185_v12  ;;  %v10237_v12 = vpack.c.bf16 %v6945_v41, %v6941_v39  ;;  %v7131_v39 = vld [vmem:[#allocation23 + $0x1c90] sm:$0xff] }
 0x903   : > { %10218 = vmatpush1.bf16.msra.mxu1 %v10217_v46  ;;  %10188 = vmatprep.subr.bf16.mxu0 %v10187_v47  ;;  %v10207_v46 = vpack.c.bf16 %v6952_v43, %v6948_v42  ;;  %v6947_v47 = vld [vmem:[#allocation23 + $0x1b80] sm:$0xff]  ;;  %v7135_v41 = vld [vmem:[#allocation23 + $0x1cb0] sm:$0xff]  ;;  %v7138_v42 = vld [vmem:[#allocation23 + $0x1cc8] sm:$0xff] }
 0x904   : > { %10220 = vmatprep.subr.bf16.mxu1 %v10219_v51  ;;  %7030 = vmatprep.mubr.f32.mxu0 %v11201_v19  ;;  %v6953_v51 = vld [vmem:[#allocation23 + $0x1bb0] sm:$0xff]  ;;  %v10209_v55 = vpack.c.bf16 %v6951_v48, %v6947_v47  ;;  %v7142_v43 = vld [vmem:[#allocation23 + $0x1ce8] sm:$0xff]  ;;  %v7137_v47 = vld [vmem:[#allocation23 + $0x1cc0] sm:$0xff] }
 0x905   : > { %7101 = vmatprep.mubr.f32.mxu1 %v11201_v19  ;;  %v7141_v48 = vld [vmem:[#allocation23 + $0x1ce0] sm:$0xff] }
 0x906   : > { %10190 = vmatpush1.bf16.msra.mxu0 %v10189_v56  ;;  %v10241_v56 = vpack.c.bf16 %v6953_v51, %v6949_v49  ;;  %v7139_v49 = vld [vmem:[#allocation23 + $0x1cd0] sm:$0xff] }
 0x907   : > { %10222 = vmatpush1.bf16.msra.mxu1 %v10221_v58  ;;  %10192 = vmatprep.subr.bf16.mxu0 %v10191_v59  ;;  %v10211_v58 = vpack.c.bf16 %v6960_v53, %v6956_v52  ;;  %v6955_v59 = vld [vmem:[#allocation23 + $0x1bc0] sm:$0xff]  ;;  %v7143_v51 = vld [vmem:[#allocation23 + $0x1cf0] sm:$0xff]  ;;  %v7146_v52 = vld [vmem:[#allocation23 + $0x1d08] sm:$0xff] }
 0x908   : > { %10224 = vmatprep.subr.bf16.mxu1 %v10223_v60  ;;  %v6961_v60 = vld [vmem:[#allocation23 + $0x1bf0] sm:$0xff]  ;;  %v10213_v5 = vpack.c.bf16 %v6959_v0, %v6955_v59  ;;  %v7150_v53 = vld [vmem:[#allocation23 + $0x1d28] sm:$0xff]  ;;  %v7145_v59 = vld [vmem:[#allocation23 + $0x1d00] sm:$0xff] }
 0x909   : > { %v7149_v0 = vld [vmem:[#allocation23 + $0x1d20] sm:$0xff] }
 0x90a   : > { %10194 = vmatpush1.bf16.msra.mxu0 %v10193_v6  ;;  %v10245_v6 = vpack.c.bf16 %v6961_v60, %v6957_v57  ;;  %v7147_v57 = vld [vmem:[#allocation23 + $0x1d10] sm:$0xff] }
 0x90b   : > { %10226 = vmatpush1.bf16.msra.mxu1 %v10225_v7  ;;  %10196 = vmatprep.subr.bf16.mxu0 %v10195_v8  ;;  %v10247_v7 = vpack.c.bf16 %v7118_v63, %v7114_v3  ;;  %v7113_v8 = vld [vmem:[#allocation23 + $0x1c00] sm:$0xff]  ;;  %v7151_v60 = vld [vmem:[#allocation23 + $0x1d30] sm:$0xff]  ;;  %v7154_v3 = vld [vmem:[#allocation23 + $0x1d48] sm:$0xff] }
 0x90c   : > { %10228 = vmatprep.subr.bf16.mxu1 %v10227_v22  ;;  %v7119_v22 = vld [vmem:[#allocation23 + $0x1c30] sm:$0xff]  ;;  %v7158_v63 = vld [vmem:[#allocation23 + $0x1d68] sm:$0xff] }
 0x90e   : > { %10198 = vmatpush1.bf16.msra.mxu0 %v10197_v14  ;;  %v10249_v14 = vpack.c.bf16 %v7117_v9, %v7113_v8  ;;  %v7153_v8 = vld [vmem:[#allocation23 + $0x1d40] sm:$0xff] }
 0x90f   : > { %10230 = vmatpush1.bf16.msra.mxu1 %v10229_v23  ;;  %10200 = vmatprep.subr.bf16.mxu0 %v10199_v25  ;;  %v10281_v23 = vpack.c.bf16 %v7119_v22, %v7115_v10  ;;  %v10251_v25 = vpack.c.bf16 %v7126_v13, %v7122_v24  ;;  %v7157_v9 = vld [vmem:[#allocation23 + $0x1d60] sm:$0xff]  ;;  %v7155_v10 = vld [vmem:[#allocation23 + $0x1d50] sm:$0xff]  ;;  %v7162_v24 = vld [vmem:[#allocation23 + $0x1d88] sm:$0xff] }
 0x910   : > { %10232 = vmatprep.subr.bf16.mxu1 %v10231_v28  ;;  %v10283_v28 = vpack.c.bf16 %v7128_v21, %v7124_v20  ;;  %v7159_v22 = vld [vmem:[#allocation23 + $0x1d70] sm:$0xff]  ;;  %v7166_v13 = vld [vmem:[#allocation23 + $0x1da8] sm:$0xff]  ;;  %v7168_v20 = vld [vmem:[#allocation23 + $0x1db8] sm:$0xff]  ;;  %v10269_v21 = vpack.c.bf16 %v7157_v9, %v7153_v8 }
 0x911   : > { %v7342_v8 = vld [vmem:[#allocation23 + $0x1e80] sm:$0xff] }
 0x912   : > { %10202 = vmatpush1.bf16.msra.mxu0 %v10201_v34  ;;  %v10253_v34 = vpack.c.bf16 %v7125_v26, %v7121_v16  ;;  %v7165_v16 = vld [vmem:[#allocation23 + $0x1da0] sm:$0xff]  ;;  %v7163_v26 = vld [vmem:[#allocation23 + $0x1d90] sm:$0xff] }
 0x913   : > { %10234 = vmatpush1.bf16.msra.mxu1 %v10233_v35  ;;  %10204 = vmatprep.subr.bf16.mxu0 %v10203_v36  ;;  %v10285_v35 = vpack.c.bf16 %v7127_v29, %v7123_v27  ;;  %v10255_v36 = vpack.c.bf16 %v7134_v31, %v7130_v30  ;;  %v7170_v29 = vld [vmem:[#allocation23 + $0x1dc8] sm:$0xff]  ;;  %v7172_v31 = vld [vmem:[#allocation23 + $0x1dd8] sm:$0xff]  ;;  %v7346_v9 = vld [vmem:[#allocation23 + $0x1ea0] sm:$0xff] }
 0x914   : > { %10236 = vmatprep.subr.bf16.mxu1 %v10235_v40  ;;  %v10287_v40 = vpack.c.bf16 %v7136_v33, %v7132_v32  ;;  %v7174_v30 = vld [vmem:[#allocation23 + $0x1de8] sm:$0xff]  ;;  %v7176_v32 = vld [vmem:[#allocation23 + $0x1df8] sm:$0xff] }
 0x916   : > { %10206 = vmatpush1.bf16.msra.mxu0 %v10205_v2  ;;  %v10257_v2 = vpack.c.bf16 %v7133_v38, %v7129_v37  ;;  %v7173_v37 = vld [vmem:[#allocation23 + $0x1de0] sm:$0xff]  ;;  %v7171_v38 = vld [vmem:[#allocation23 + $0x1dd0] sm:$0xff] }
 0x917   : > { %10238 = vmatpush1.bf16.msra.mxu1 %v10237_v12  ;;  %10208 = vmatprep.subr.bf16.mxu0 %v10207_v46  ;;  %v10289_v12 = vpack.c.bf16 %v7135_v41, %v7131_v39  ;;  %v10259_v46 = vpack.c.bf16 %v7142_v43, %v7138_v42  ;;  %v10307_v39 = vpack.c.bf16 %v7176_v32, %v7172_v31  ;;  %v7327_v41 = vld [vmem:[#allocation23 + $0x1e08] sm:$0xff]  ;;  %v7329_v43 = vld [vmem:[#allocation23 + $0x1e18] sm:$0xff] }
 0x918   : > { %10240 = vmatprep.subr.bf16.mxu1 %v10239_v50  ;;  %v10291_v50 = vpack.c.bf16 %v7144_v45, %v7140_v44  ;;  %v7331_v42 = vld [vmem:[#allocation23 + $0x1e28] sm:$0xff]  ;;  %v7333_v44 = vld [vmem:[#allocation23 + $0x1e38] sm:$0xff] }
 0x919   : > { %v7361_v31 = vld [vmem:[#allocation23 + $0x1f18] sm:$0xff] }
 0x91a   : > { %10210 = vmatpush1.bf16.msra.mxu0 %v10209_v55  ;;  %v10261_v55 = vpack.c.bf16 %v7141_v48, %v7137_v47  ;;  %v7330_v47 = vld [vmem:[#allocation23 + $0x1e20] sm:$0xff]  ;;  %v7328_v48 = vld [vmem:[#allocation23 + $0x1e10] sm:$0xff]  ;;  %v7365_v32 = vld [vmem:[#allocation23 + $0x1f38] sm:$0xff] }
 0x91b   : > { %10242 = vmatpush1.bf16.msra.mxu1 %v10241_v56  ;;  %10212 = vmatprep.subr.bf16.mxu0 %v10211_v58  ;;  %v10293_v56 = vpack.c.bf16 %v7143_v51, %v7139_v49  ;;  %v10263_v58 = vpack.c.bf16 %v7150_v53, %v7146_v52  ;;  %v10343_v49 = vpack.c.bf16 %v7333_v44, %v7329_v43  ;;  %v7335_v51 = vld [vmem:[#allocation23 + $0x1e48] sm:$0xff]  ;;  %v7177_v53 = vrot.slane %v12293_v61, 2  ;;  %v7373_v43 = vld [vmem:[#allocation23 + $0x1f78] sm:$0xff] }
 0x91c   : > { %10244 = vmatprep.subr.bf16.mxu1 %v10243_v62  ;;  %v10295_v62 = vpack.c.bf16 %v7152_v17, %v7148_v54  ;;  %v7339_v52 = vld [vmem:[#allocation23 + $0x1e68] sm:$0xff]  ;;  %v7337_v54 = vld [vmem:[#allocation23 + $0x1e58] sm:$0xff] }
 0x91d   : > { %v7341_v17 = vld [vmem:[#allocation23 + $0x1e78] sm:$0xff] }
 0x91e   : > { %10214 = vmatpush1.bf16.msra.mxu0 %v10213_v5  ;;  %v10265_v5 = vpack.c.bf16 %v7149_v0, %v7145_v59  ;;  %v7334_v59 = vld [vmem:[#allocation23 + $0x1e40] sm:$0xff] }
 0x91f   : > { %10246 = vmatpush1.bf16.msra.mxu1 %v10245_v6  ;;  %10248 = vmatprep.subr.bf16.mxu0 %v10247_v7  ;;  %v10297_v6 = vpack.c.bf16 %v7151_v60, %v7147_v57  ;;  %v10267_v7 = vpack.c.bf16 %v7158_v63, %v7154_v3  ;;  %v7338_v0 = vld [vmem:[#allocation23 + $0x1e60] sm:$0xff]  ;;  %v7336_v57 = vld [vmem:[#allocation23 + $0x1e50] sm:$0xff]  ;;  %v7343_v3 = vld [vmem:[#allocation23 + $0x1e88] sm:$0xff] }
 0x920   : > { %10280 = vmatprep.subr.bf16.mxu1 %v10279_v11  ;;  %v10299_v11 = vpack.c.bf16 %v7160_v4, %v7156_v1  ;;  %v7340_v60 = vld [vmem:[#allocation23 + $0x1e70] sm:$0xff]  ;;  %v7347_v63 = vld [vmem:[#allocation23 + $0x1ea8] sm:$0xff]  ;;  %v7345_v1 = vld [vmem:[#allocation23 + $0x1e98] sm:$0xff] }
 0x921   : > { %7031 = vmatmul.mubr.f32.vlgmr.msra.gmra.mrb[0].mxu0 %v6964_v18  ;;  %v7349_v4 = vld [vmem:[#allocation23 + $0x1eb8] sm:$0xff] }
 0x922   : > { %7102 = vmatmul.mubr.f32.vlgmr.msra.gmra.mrb[0].mxu1 %v6964_v18  ;;  %10250 = vmatpush1.bf16.msra.mxu0 %v10249_v14  ;;  %v7164_v18 = vld [vmem:[#allocation23 + $0x1d98] sm:$0xff]  ;;  %v10301_v14 = vpack.c.bf16 %v7159_v22, %v7155_v10  ;;  %v7344_v10 = vld [vmem:[#allocation23 + $0x1e90] sm:$0xff] }
 0x923   : > { %10282 = vmatpush1.bf16.msra.mxu1 %v10281_v23  ;;  %10252 = vmatprep.subr.bf16.mxu0 %v10251_v25  ;;  %v10271_v23 = vpack.c.bf16 %v7166_v13, %v7162_v24  ;;  %v7161_v25 = vld [vmem:[#allocation23 + $0x1d80] sm:$0xff]  ;;  %v10303_v27 = vpack.c.bf16 %v7168_v20, %v7164_v18  ;;  %v7348_v22 = vld [vmem:[#allocation23 + $0x1eb0] sm:$0xff]  ;;  %v7351_v24 = vld [vmem:[#allocation23 + $0x1ec8] sm:$0xff] }
 0x924   : > { %10284 = vmatprep.subr.bf16.mxu1 %v10283_v28  ;;  %7243 = vmatprep.mubr.f32.mxu0 %v11201_v19  ;;  %v7167_v28 = vld [vmem:[#allocation23 + $0x1db0] sm:$0xff]  ;;  %v10273_v33 = vpack.c.bf16 %v7165_v16, %v7161_v25  ;;  %v7355_v13 = vld [vmem:[#allocation23 + $0x1ee8] sm:$0xff]  ;;  %v7353_v18 = vld [vmem:[#allocation23 + $0x1ed8] sm:$0xff] }
 0x925   : > { %7314 = vmatprep.mubr.f32.mxu1 %v11201_v19  ;;  %v7357_v20 = vld [vmem:[#allocation23 + $0x1ef8] sm:$0xff]  ;;  %v7350_v25 = vld [vmem:[#allocation23 + $0x1ec0] sm:$0xff] }
 0x926   : > { %10254 = vmatpush1.bf16.msra.mxu0 %v10253_v34  ;;  %v10305_v34 = vpack.c.bf16 %v7167_v28, %v7163_v26  ;;  %v7354_v16 = vld [vmem:[#allocation23 + $0x1ee0] sm:$0xff]  ;;  %v7352_v26 = vld [vmem:[#allocation23 + $0x1ed0] sm:$0xff] }
 0x927   : > { %10286 = vmatpush1.bf16.msra.mxu1 %v10285_v35  ;;  %10256 = vmatprep.subr.bf16.mxu0 %v10255_v36  ;;  %v10275_v35 = vpack.c.bf16 %v7174_v30, %v7170_v29  ;;  %v7169_v36 = vld [vmem:[#allocation23 + $0x1dc0] sm:$0xff]  ;;  %v7356_v28 = vld [vmem:[#allocation23 + $0x1ef0] sm:$0xff]  ;;  %v7359_v29 = vld [vmem:[#allocation23 + $0x1f08] sm:$0xff] }
 0x928   : > { %10288 = vmatprep.subr.bf16.mxu1 %v10287_v40  ;;  %v7175_v40 = vld [vmem:[#allocation23 + $0x1df0] sm:$0xff]  ;;  %v10277_v45 = vpack.c.bf16 %v7173_v37, %v7169_v36  ;;  %v7363_v30 = vld [vmem:[#allocation23 + $0x1f28] sm:$0xff]  ;;  %v7362_v36 = vld [vmem:[#allocation23 + $0x1f20] sm:$0xff] }
 0x929   : > { %v7360_v37 = vld [vmem:[#allocation23 + $0x1f10] sm:$0xff] }
 0x92a   : > { %10258 = vmatpush1.bf16.msra.mxu0 %v10257_v2  ;;  %v10309_v2 = vpack.c.bf16 %v7175_v40, %v7171_v38  ;;  %v10359_v38 = vpack.c.bf16 %v7365_v32, %v7361_v31  ;;  %v7367_v40 = vld [vmem:[#allocation23 + $0x1f48] sm:$0xff]  ;;  %v7619_v31 = vld [vmem:[%s12563_s11 + $0x198] sm:$0xff] }
 0x92b   : > { %10290 = vmatpush1.bf16.msra.mxu1 %v10289_v12  ;;  %10260 = vmatprep.subr.bf16.mxu0 %v10259_v46  ;;  %v10311_v12 = vpack.c.bf16 %v7331_v42, %v7327_v41  ;;  %v7326_v46 = vld [vmem:[#allocation23 + $0x1e00] sm:$0xff]  ;;  %v7371_v41 = vld [vmem:[#allocation23 + $0x1f68] sm:$0xff]  ;;  %v7369_v42 = vld [vmem:[#allocation23 + $0x1f58] sm:$0xff] }
 0x92c   : > { %10292 = vmatprep.subr.bf16.mxu1 %v10291_v50  ;;  %v7332_v50 = vld [vmem:[#allocation23 + $0x1e30] sm:$0xff] }
 0x92e   : > { %10262 = vmatpush1.bf16.msra.mxu0 %v10261_v55  ;;  %v10313_v55 = vpack.c.bf16 %v7330_v47, %v7326_v46  ;;  %v7370_v46 = vld [vmem:[#allocation23 + $0x1f60] sm:$0xff]  ;;  %v7368_v47 = vld [vmem:[#allocation23 + $0x1f50] sm:$0xff] }
 0x92f   : > { %10294 = vmatpush1.bf16.msra.mxu1 %v10293_v56  ;;  %10264 = vmatprep.subr.bf16.mxu0 %v10263_v58  ;;  %v10345_v56 = vpack.c.bf16 %v7332_v50, %v7328_v48  ;;  %v10315_v58 = vpack.c.bf16 %v7339_v52, %v7335_v51  ;;  %v10363_v48 = vpack.c.bf16 %v7373_v43, %v7369_v42  ;;  %v7375_v50 = vld [vmem:[#allocation23 + $0x1f88] sm:$0xff]  ;;  %v7377_v52 = vld [vmem:[#allocation23 + $0x1f98] sm:$0xff] }
 0x930   : > { %10296 = vmatprep.subr.bf16.mxu1 %v10295_v62  ;;  %v10347_v62 = vpack.c.bf16 %v7341_v17, %v7337_v54  ;;  %v7379_v51 = vld [vmem:[#allocation23 + $0x1fa8] sm:$0xff] }
 0x932   : > { %10266 = vmatpush1.bf16.msra.mxu0 %v10265_v5  ;;  %v10317_v5 = vpack.c.bf16 %v7338_v0, %v7334_v59  ;;  %v7376_v59 = vld [vmem:[#allocation23 + $0x1f90] sm:$0xff] }
 0x933   : > { %10298 = vmatpush1.bf16.msra.mxu1 %v10297_v6  ;;  %10268 = vmatprep.subr.bf16.mxu0 %v10267_v7  ;;  %v10349_v6 = vpack.c.bf16 %v7340_v60, %v7336_v57  ;;  %v10319_v7 = vpack.c.bf16 %v7347_v63, %v7343_v3  ;;  %v7380_v57 = vld [vmem:[#allocation23 + $0x1fb0] sm:$0xff]  ;;  %v7387_v60 = vld [vmem:[#allocation23 + $0x1fe8] sm:$0xff]  ;;  %v7385_v3 = vld [vmem:[#allocation23 + $0x1fd8] sm:$0xff] }
 0x934   : > { %10300 = vmatprep.subr.bf16.mxu1 %v10299_v11  ;;  %v10351_v11 = vpack.c.bf16 %v7349_v4, %v7345_v1  ;;  %v7389_v63 = vld [vmem:[#allocation23 + $0x1ff8] sm:$0xff]  ;;  %v10369_v4 = vpack.c.bf16 %v7380_v57, %v7376_v59  ;;  %v7593_v57 = vld [vmem:[%s12563_s11 + $0xc8] sm:$0xff] }
 0x935   : > { %v7607_v59 = vld [vmem:[%s12563_s11 + $0x138] sm:$0xff] }
 0x936   : > { %10270 = vmatpush1.bf16.msra.mxu0 %v10269_v21  ;;  %v10321_v21 = vpack.c.bf16 %v7346_v9, %v7342_v8  ;;  %v7384_v8 = vld [vmem:[#allocation23 + $0x1fd0] sm:$0xff]  ;;  %v10371_v9 = vpack.c.bf16 %v7389_v63, %v7385_v3 }
 0x937   : > { %10302 = vmatpush1.bf16.msra.mxu1 %v10301_v14  ;;  %10272 = vmatprep.subr.bf16.mxu0 %v10271_v23  ;;  %v10353_v14 = vpack.c.bf16 %v7348_v22, %v7344_v10  ;;  %v10323_v23 = vpack.c.bf16 %v7355_v13, %v7351_v24  ;;  %v7388_v10 = vld [vmem:[#allocation23 + $0x1ff0] sm:$0xff]  ;;  %v7585_v22 = vld [vmem:[%s12563_s11 + $0x88] sm:$0xff]  ;;  %v7616_v24 = vld [vmem:[%s12563_s11 + $0x180] sm:$0xff] }
 0x938   : > { %10304 = vmatprep.subr.bf16.mxu1 %v10303_v27  ;;  %v10355_v27 = vpack.c.bf16 %v7357_v20, %v7353_v18  ;;  %v7617_v13 = vld [vmem:[%s12563_s11 + $0x188] sm:$0xff]  ;;  %v10373_v20 = vpack.c.bf16 %v7388_v10, %v7384_v8  ;;  %v7595_v10 = vld [vmem:[%s12563_s11 + $0xd8] sm:$0xff] }
 0x939   : > { %v7609_v8 = vld [vmem:[%s12563_s11 + $0x148] sm:$0xff] }
 0x93a   : > { %10274 = vmatpush1.bf16.msra.mxu0 %v10273_v33  ;;  %v10325_v33 = vpack.c.bf16 %v7354_v16, %v7350_v25  ;;  %v7600_v25 = vld [vmem:[%s12563_s11 + $0x100] sm:$0xff]  ;;  %v10407_v16 = vpack.c.bf16 %v7617_v13, %v7616_v24 }
 0x93b   : > { %10306 = vmatpush1.bf16.msra.mxu1 %v10305_v34  ;;  %10276 = vmatprep.subr.bf16.mxu0 %v10275_v35  ;;  %v10327_v34 = vpack.c.bf16 %v7363_v30, %v7359_v29  ;;  %v7358_v35 = vld [vmem:[#allocation23 + $0x1f00] sm:$0xff]  ;;  %v7390_v29 = vrot.slane %v12293_v61, 3  ;;  %v7618_v30 = vld [vmem:[%s12563_s11 + $0x190] sm:$0xff]  ;;  %v7571_v61 = vld [vmem:[%s12563_s11 + $0x18] sm:$0xff] }
 0x93c   : > { %10308 = vmatprep.subr.bf16.mxu1 %v10307_v39  ;;  %v7364_v39 = vld [vmem:[#allocation23 + $0x1f30] sm:$0xff]  ;;  %v10329_v44 = vpack.c.bf16 %v7362_v36, %v7358_v35  ;;  %v10411_v36 = vpack.c.bf16 %v7619_v31, %v7618_v30 }
 0x93d   : > { %v7602_v35 = vld [vmem:[%s12563_s11 + $0x110] sm:$0xff] }
 0x93e   : > { %10278 = vmatpush1.bf16.msra.mxu0 %v10277_v45  ;;  %v10361_v45 = vpack.c.bf16 %v7364_v39, %v7360_v37  ;;  %v7603_v37 = vld [vmem:[%s12563_s11 + $0x118] sm:$0xff]  ;;  %v7589_v39 = vld [vmem:[%s12563_s11 + $0xa8] sm:$0xff] }
 0x93f   : > { %10310 = vmatpush1.bf16.msra.mxu1 %v10309_v2  ;;  %10312 = vmatprep.subr.bf16.mxu0 %v10311_v12  ;;  %v10331_v2 = vpack.c.bf16 %v7371_v41, %v7367_v40  ;;  %v7366_v12 = vld [vmem:[#allocation23 + $0x1f40] sm:$0xff]  ;;  %v10413_v43 = vpack.c.bf16 %v7603_v37, %v7602_v35  ;;  %v7598_v37 = vld [vmem:[%s12563_s11 + $0xf0] sm:$0xff] }
 0x940   : > { %10344 = vmatprep.subr.bf16.mxu1 %v10343_v49  ;;  %v7372_v49 = vld [vmem:[#allocation23 + $0x1f70] sm:$0xff]  ;;  %v10333_v54 = vpack.c.bf16 %v7370_v46, %v7366_v12  ;;  %v7620_v40 = vld [vmem:[%s12563_s11 + $0x1a0] sm:$0xff]  ;;  %v7621_v41 = vld [vmem:[%s12563_s11 + $0x1a8] sm:$0xff] }
 0x941   : > { %7244 = vmatmul.mubr.f32.vlgmr.msra.gmra.mrb[0].mxu0 %v7177_v53  ;;  %v10365_v17 = vpack.c.bf16 %v7372_v49, %v7368_v47  ;;  %v7604_v12 = vld [vmem:[%s12563_s11 + $0x120] sm:$0xff]  ;;  %v10415_v46 = vpack.c.bf16 %v7621_v41, %v7620_v40  ;;  %v7605_v47 = vld [vmem:[%s12563_s11 + $0x128] sm:$0xff]  ;;  %v7591_v49 = vld [vmem:[%s12563_s11 + $0xb8] sm:$0xff] }
 0x942   : > { %7315 = vmatmul.mubr.f32.vlgmr.msra.gmra.mrb[0].mxu1 %v7177_v53  ;;  %10314 = vmatpush1.bf16.msra.mxu0 %v10313_v55  ;;  %v7381_v53 = vld [vmem:[#allocation23 + $0x1fb8] sm:$0xff]  ;;  %v10335_v55 = vpack.c.bf16 %v7379_v51, %v7375_v50  ;;  %v7622_v50 = vld [vmem:[%s12563_s11 + $0x1b0] sm:$0xff]  ;;  %v7613_v35 = vld [vmem:[%s12563_s11 + $0x168] sm:$0xff] }
 0x943   : > { %10346 = vmatpush1.bf16.msra.mxu1 %v10345_v56  ;;  %10316 = vmatprep.subr.bf16.mxu0 %v10315_v58  ;;  %v7374_v56 = vld [vmem:[#allocation23 + $0x1f80] sm:$0xff]  ;;  %v10367_v0 = vpack.c.bf16 %v7381_v53, %v7377_v52  ;;  %v7623_v51 = vld [vmem:[%s12563_s11 + $0x1b8] sm:$0xff]  ;;  %v10417_v53 = vpack.c.bf16 %v7605_v47, %v7604_v12  ;;  %v7542_v47 = vsub.s32 0, %v12038_v15 }
 0x944   : > { %10348 = vmatprep.subr.bf16.mxu1 %v10347_v62  ;;  %7456 = vmatprep.mubr.f32.mxu0 %v11201_v19  ;;  %v7378_v58 = vld [vmem:[#allocation23 + $0x1fa0] sm:$0xff]  ;;  %v7383_v62 = vld [vmem:[#allocation23 + $0x1fc8] sm:$0xff]  ;;  %v7631_v41 = vld [vmem:[%s12563_s11 + $0x1f8] sm:$0xff] }
 0x945   : > { %7527 = vmatprep.mubr.f32.mxu1 %v11201_v19  ;;  %v10357_v19 = vpack.c.bf16 %v7356_v28, %v7352_v26  ;;  %v10337_v1 = vpack.c.bf16 %v7378_v58, %v7374_v56  ;;  %v7601_v26 = vld [vmem:[%s12563_s11 + $0x108] sm:$0xff]  ;;  %v7587_v28 = vld [vmem:[%s12563_s11 + $0x98] sm:$0xff]  ;;  %v7606_v56 = vld [vmem:[%s12563_s11 + $0x130] sm:$0xff]  ;;  %v10419_v58 = vpack.c.bf16 %v7623_v51, %v7622_v50  ;;  %v7546_v50 = vsub.s32 1, %v12038_v15 }
 0x946   : > { %10318 = vmatpush1.bf16.msra.mxu0 %v10317_v5  ;;  %v10339_v5 = vpack.c.bf16 %v7387_v60, %v7383_v62  ;;  %v7624_v62 = vld [vmem:[%s12563_s11 + $0x1c0] sm:$0xff]  ;;  %v7625_v60 = vld [vmem:[%s12563_s11 + $0x1c8] sm:$0xff]  ;;  %v10421_v63 = vpack.c.bf16 %v7607_v59, %v7606_v56  ;;  %v7615_v12 = vld [vmem:[%s12563_s11 + $0x178] sm:$0xff]  ;;  %v7554_v51 = vsub.s32 3, %v12038_v15 }
 0x947   : > { %10350 = vmatpush1.bf16.msra.mxu1 %v10349_v6  ;;  %10320 = vmatprep.subr.bf16.mxu0 %v10319_v7  ;;  %v7382_v6 = vld [vmem:[#allocation23 + $0x1fc0] sm:$0xff] }
 0x948   : > { %10352 = vmatprep.subr.bf16.mxu1 %v10351_v11  ;;  %v7386_v7 = vld [vmem:[#allocation23 + $0x1fe0] sm:$0xff] }
 0x949   : > { %v7584_v11 = vld [vmem:[%s12563_s11 + $0x80] sm:$0xff]  ;;  %v10341_v18 = vpack.c.bf16 %v7386_v7, %v7382_v6  ;;  %v10423_v7 = vpack.c.bf16 %v7625_v60, %v7624_v62 }
 0x94a   : > { %10322 = vmatpush1.bf16.msra.mxu0 %v10321_v21  ;;  %v10375_v21 = vpack.c.bf16 %v7585_v22, %v7584_v11  ;;  %v7608_v6 = vld [vmem:[%s12563_s11 + $0x140] sm:$0xff]  ;;  %v7626_v11 = vld [vmem:[%s12563_s11 + $0x1d0] sm:$0xff]  ;;  %v7627_v22 = vld [vmem:[%s12563_s11 + $0x1d8] sm:$0xff] }
 0x94b   : > { %10354 = vmatpush1.bf16.msra.mxu1 %v10353_v14  ;;  %10324 = vmatprep.subr.bf16.mxu0 %v10323_v23  ;;  %v7568_v14 = vld [vmem:[%s12563_s11] sm:$0xff]  ;;  %v7569_v23 = vld [vmem:[%s12563_s11 + $0x8] sm:$0xff]  ;;  %v10425_v13 = vpack.c.bf16 %v7609_v8, %v7608_v6 }
 0x94c   : > { %10356 = vmatprep.subr.bf16.mxu1 %v10355_v27  ;;  %v7586_v27 = vld [vmem:[%s12563_s11 + $0x90] sm:$0xff]  ;;  %v10377_v32 = vpack.c.bf16 %v7569_v23, %v7568_v14  ;;  %v10427_v23 = vpack.c.bf16 %v7627_v22, %v7626_v11  ;;  %v7632_v6 = vld [vmem:[#allocation26] sm:$0x1] }
 0x94d   : > { %v7610_v14 = vld [vmem:[%s12563_s11 + $0x150] sm:$0xff] }
 0x94e   : > { %10326 = vmatpush1.bf16.msra.mxu0 %v10325_v33  ;;  %v10409_v33 = vpack.c.bf16 %v7601_v26, %v7600_v25  ;;  %v7611_v25 = vld [vmem:[%s12563_s11 + $0x158] sm:$0xff]  ;;  %v7597_v26 = vld [vmem:[%s12563_s11 + $0xe8] sm:$0xff] }
 0x94f   : > { %10358 = vmatpush1.bf16.msra.mxu1 %v10357_v19  ;;  %10328 = vmatprep.subr.bf16.mxu0 %v10327_v34  ;;  %v10379_v19 = vpack.c.bf16 %v7587_v28, %v7586_v27  ;;  %v7570_v34 = vld [vmem:[%s12563_s11 + $0x10] sm:$0xff]  ;;  %v7628_v27 = vld [vmem:[%s12563_s11 + $0x1e0] sm:$0xff]  ;;  %v7629_v28 = vld [vmem:[%s12563_s11 + $0x1e8] sm:$0xff]  ;;  %v10429_v30 = vpack.c.bf16 %v7611_v25, %v7610_v14 }
 0x950   : > { %10360 = vmatprep.subr.bf16.mxu1 %v10359_v38  ;;  %v7588_v38 = vld [vmem:[%s12563_s11 + $0xa0] sm:$0xff]  ;;  %v10381_v42 = vpack.c.bf16 %v7571_v61, %v7570_v34 }
 0x951   : > { %v7612_v34 = vld [vmem:[%s12563_s11 + $0x160] sm:$0xff] }
 0x952   : > { %10330 = vmatpush1.bf16.msra.mxu0 %v10329_v44  ;;  %v10383_v44 = vpack.c.bf16 %v7589_v39, %v7588_v38  ;;  %v7599_v38 = vld [vmem:[%s12563_s11 + $0xf8] sm:$0xff]  ;;  %v7630_v39 = vld [vmem:[%s12563_s11 + $0x1f0] sm:$0xff] }
 0x953   : > { %10362 = vmatpush1.bf16.msra.mxu1 %v10361_v45  ;;  %10332 = vmatprep.subr.bf16.mxu0 %v10331_v2  ;;  %v7572_v45 = vld [vmem:[%s12563_s11 + $0x20] sm:$0xff]  ;;  %v7573_v2 = vld [vmem:[%s12563_s11 + $0x28] sm:$0xff]  ;;  %v10403_v40 = vpack.c.bf16 %v7599_v38, %v7598_v37 }
 0x954   : > { %10364 = vmatprep.subr.bf16.mxu1 %v10363_v48  ;;  %v7590_v48 = vld [vmem:[%s12563_s11 + $0xb0] sm:$0xff]  ;;  %v10385_v52 = vpack.c.bf16 %v7573_v2, %v7572_v45 }
 0x955   : > { %v7614_v2 = vld [vmem:[%s12563_s11 + $0x170] sm:$0xff] }
 0x956   : > { %10334 = vmatpush1.bf16.msra.mxu0 %v10333_v54  ;;  %v10387_v54 = vpack.c.bf16 %v7591_v49, %v7590_v48  ;;  %v7538_v48 = vld [vmem:[#allocation24] sm:$0xf]  ;;  %v7550_v49 = vsub.s32 2, %v12038_v15 }
 0x957   : > { %10366 = vmatpush1.bf16.msra.mxu1 %v10365_v17  ;;  %10336 = vmatprep.subr.bf16.mxu0 %v10335_v55  ;;  %v7574_v17 = vld [vmem:[%s12563_s11 + $0x30] sm:$0xff]  ;;  %v7575_v55 = vld [vmem:[%s12563_s11 + $0x38] sm:$0xff] }
 0x958   : > { %10368 = vmatprep.subr.bf16.mxu1 %v10367_v0  ;;  %v7592_v0 = vld [vmem:[%s12563_s11 + $0xc0] sm:$0xff]  ;;  %v10389_v3 = vpack.c.bf16 %v7575_v55, %v7574_v17  ;;  %v7555_v17 = vrot.slane %v7538_v48, %v7554_v51 }
 0x95a   : > { %10338 = vmatpush1.bf16.msra.mxu0 %v10337_v1  ;;  %v10391_v1 = vpack.c.bf16 %v7593_v57, %v7592_v0 }
 0x95b   : > { %10370 = vmatpush1.bf16.msra.mxu1 %v10369_v4  ;;  %10340 = vmatprep.subr.bf16.mxu0 %v10339_v5  ;;  %v7576_v4 = vld [vmem:[%s12563_s11 + $0x40] sm:$0xff]  ;;  %v7577_v5 = vld [vmem:[%s12563_s11 + $0x48] sm:$0xff] }
 0x95c   : > { %10372 = vmatprep.subr.bf16.mxu1 %v10371_v9  ;;  %v7594_v9 = vld [vmem:[%s12563_s11 + $0xd0] sm:$0xff]  ;;  %v10393_v24 = vpack.c.bf16 %v7577_v5, %v7576_v4 }
 0x95e   : > { %10342 = vmatpush1.bf16.msra.mxu0 %v10341_v18  ;;  %v10395_v18 = vpack.c.bf16 %v7595_v10, %v7594_v9 }
 0x95f   : > { %10374 = vmatpush1.bf16.msra.mxu1 %v10373_v20  ;;  %10376 = vmatprep.subr.bf16.mxu0 %v10375_v21  ;;  %v7578_v20 = vld [vmem:[%s12563_s11 + $0x50] sm:$0xff]  ;;  %v7579_v21 = vld [vmem:[%s12563_s11 + $0x58] sm:$0xff] }
 0x960   : > { %10408 = vmatprep.subr.bf16.mxu1 %v10407_v16  ;;  %v7596_v16 = vld [vmem:[%s12563_s11 + $0xe0] sm:$0xff] }
 0x961   : > { %7457 = vmatmul.mubr.f32.vlgmr.msra.gmra.mrb[0].mxu0 %v7390_v29  ;;  %v10399_v31 = vpack.c.bf16 %v7597_v26, %v7596_v16 }
 0x962   : > { %7528 = vmatmul.mubr.f32.vlgmr.msra.gmra.mrb[0].mxu1 %v7390_v29  ;;  %10378 = vmatpush3.bf16.msra.mxu0 %v10377_v32  ;;  %v10397_v29 = vpack.c.bf16 %v7579_v21, %v7578_v20  ;;  %v10431_v32 = vpack.c.bf16 %v7629_v28, %v7628_v27 }
 0x963   : > { %10410 = vmatpush3.bf16.msra.mxu1 %v10409_v33  ;;  %10380 = vmatprep.subr.bf16.mxu0 %v10379_v19  ;;  %v7580_v33 = vld [vmem:[%s12563_s11 + $0x60] sm:$0xff]  ;;  %v7581_v19 = vld [vmem:[%s12563_s11 + $0x68] sm:$0xff] }
 0x964   : > { %10412 = vmatprep.subr.bf16.mxu1 %v10411_v36  ;;  %v10401_v61 = vpack.c.bf16 %v7581_v19, %v7580_v33  ;;  %v10433_v36 = vpack.c.bf16 %v7613_v35, %v7612_v34 }
 0x966   : > { %10382 = vmatpush3.bf16.msra.mxu0 %v10381_v42  ;;  %v7582_v42 = vld [vmem:[%s12563_s11 + $0x70] sm:$0xff] }
 0x967   : > { %10414 = vmatpush3.bf16.msra.mxu1 %v10413_v43  ;;  %10384 = vmatprep.subr.bf16.mxu0 %v10383_v44  ;;  %v7583_v43 = vld [vmem:[%s12563_s11 + $0x78] sm:$0xff]  ;;  %v10435_v44 = vpack.c.bf16 %v7631_v41, %v7630_v39 }
 0x968   : > { %10416 = vmatprep.subr.bf16.mxu1 %v10415_v46  ;;  %v10405_v45 = vpack.c.bf16 %v7583_v43, %v7582_v42  ;;  %v10437_v46 = vpack.c.bf16 %v7615_v12, %v7614_v2 }
 0x96a   : > { %10386 = vmatpush3.bf16.msra.mxu0 %v10385_v52  ;;  %v7543_v52 = vrot.slane %v7538_v48, %v7542_v47 }
 0x96b   : > { %10418 = vmatpush3.bf16.msra.mxu1 %v10417_v53  ;;  %10388 = vmatprep.subr.bf16.mxu0 %v10387_v54  ;;  %v7551_v53 = vrot.slane %v7538_v48, %v7550_v49  ;;  %v7547_v54 = vrot.slane %v7538_v48, %v7546_v50 }
 0x96c   : > { %10420 = vmatprep.subr.bf16.mxu1 %v10419_v58 }
 0x96e   : > { %10390 = vmatpush3.bf16.msra.mxu0 %v10389_v3 }
 0x96f   : > { %10422 = vmatpush3.bf16.msra.mxu1 %v10421_v63  ;;  %10392 = vmatprep.subr.bf16.mxu0 %v10391_v1 }
 0x970   : > { %10424 = vmatprep.subr.bf16.mxu1 %v10423_v7 }
 0x972   : > { %10394 = vmatpush3.bf16.msra.mxu0 %v10393_v24 }
 0x973   : > { %10426 = vmatpush3.bf16.msra.mxu1 %v10425_v13  ;;  %10396 = vmatprep.subr.bf16.mxu0 %v10395_v18 }
 0x974   : > { %10428 = vmatprep.subr.bf16.mxu1 %v10427_v23 }
 0x976   : > { %10398 = vmatpush3.bf16.msra.mxu0 %v10397_v29 }
 0x977   : > { %10430 = vmatpush3.bf16.msra.mxu1 %v10429_v30  ;;  %10400 = vmatprep.subr.bf16.mxu0 %v10399_v31 }
 0x978   : > { %10432 = vmatprep.subr.bf16.mxu1 %v10431_v32 }
 0x97a   : > { %10402 = vmatpush3.bf16.msra.mxu0 %v10401_v61 }
 0x97b   : > { %10434 = vmatpush3.bf16.msra.mxu1 %v10433_v36  ;;  %10404 = vmatprep.subr.bf16.mxu0 %v10403_v40 }
 0x97c   : > { %10436 = vmatprep.subr.bf16.mxu1 %v10435_v44 }
 0x97e   : > { %10406 = vmatpush3.bf16.msra.mxu0 %v10405_v45 }
 0x97f   : > { %10438 = vmatpush3.bf16.msra.mxu1 %v10437_v46 }
 0xa34   : > { %v7458_v55 = vpop.f32.mrb[0].mxu0 }
 0xa35   : > { %v7560_v56 = vadd.f32 %v7543_v52, %v7458_v55  ;;  %v7529_v58 = vpop.f32.mrb[0].mxu1  ;;  %v7460_v59 = vpop.f32.mrb[1].mxu0 }
 0xa36   : > { %v7562_v0 = vadd.f32 %v7551_v53, %v7529_v58  ;;  %v7561_v57 = vadd.f32 %v7547_v54, %v7460_v59  ;;  %v7531_v62 = vpop.f32.mrb[1].mxu1 }
 0xa37   : > { %v7563_v60 = vadd.f32 %v7555_v17, %v7531_v62  ;;  %v7564_v63 = vmax.f32 %v7560_v56, 0.0 }
 0xa38   : > { %v7565_v3 = vmax.f32 %v7561_v57, 0.0  ;;  %v7566_v4 = vmax.f32 %v7562_v0, 0.0 }
 0xa39   : > { %v7567_v1 = vmax.f32 %v7563_v60, 0.0 }
 0xa3a   : > { %7697 = vmatprep.mubr.f32.mxu0 %v7565_v3 }
 0xa3b   : > { %7767 = vmatprep.mubr.f32.mxu1 %v7567_v1  ;;  %7698 = vmatmul.mubr.f32.vlgmr.msra.gmra.mrb[2].mxu0 %v7564_v63 }
 0xa3c   : > { %7768 = vmatmul.mubr.f32.vlgmr.msra.gmra.mrb[2].mxu1 %v7566_v4 }
 0xb0e   : > { %v8476_v15 = vpop.f32.mrb[2].mxu0 }
 0xb0f   : > { %v8511_v5 = vpop.f32.mrb[2].mxu1  ;;  %v8477_v7 = vpop.f32.mrb[3].mxu0 }
 0xb10   : > { %v8478_v8 = vadd.f32 %v8477_v7, %v8476_v15  ;;  %v8512_v9 = vpop.f32.mrb[3].mxu1 }
 0xb11   : > { %v8513_v10 = vadd.f32 %v8512_v9, %v8511_v5 }
 0xb12   : > { %v7700_v11 = vadd.f32 %v8478_v8, %v7632_v6 }
 0xb14   : > { %v7770_v22 = vadd.f32 %v8513_v10, %v7700_v11 }
 0xb16   : > { %7774 = vst.msk [vmem:[%s11828_s27] sm:$0x1] %vm7773_vm2, %v7770_v22 }
 0xb17   : > { %11057 = shalt.err (!%p11054_p11)
}
 0xb18   : > { %s11058_s20 = scalar_lea.hbm %s12507_s1, 16  ;;  %s11062_s24 = scalar_lea.hbm %s12609_s13, 32 }
 0xb19   : > { %p11059_p13 = scmp.ne.s32.totalorder %s12507_s1, %s11058_s20  ;;  %p11063_p6 = scmp.lt.u32.totalorder %s12507_s1, %s12609_s13 }
 0xb1a   : > { %p11064_p5 = scmp.lt.u32.totalorder %s11062_s24, %s11058_s20  ;;  %p11066_p12 = scmp.lt.u32.totalorder %s11058_s20, %s12507_s1 }
 0xb1b   : > { %p11060_p1 = pnand %p11059_p13, %p12610_p10 }
 0xb1c   : > { %p11065_p9 = por %p11064_p5, %p11063_p6 }
 0xb1d   : > { %p11061_p0 = pneg %p11060_p1 }
 0xb1e   : > { %p11067_p2 = por %p11066_p12, %p11065_p9 }
 0xb20   : > { %p11068_p3 = pnand %p11067_p2, %p11061_p0 }
 0xb22   : > { %11071 = shalt.err (!%p11068_p3)
}
 0xb23   : > { %10564 = dma.vmem_to_hbm [thread:$0]  (%p12610_p10), %s12509_s19, 16, %s12507_s1, %s7776_s28  }
 0xb24 PF: > { %s12611_s21 = sld [smem:[#allocation37_spill]]  ;;  %s12612_s14 = sld [smem:[#allocation35_spill]] }
 0xb25   : > { %s12613_s6 = sld [smem:[#allocation40_spill]] }
 0xb2a   : > { %p10626_p4 = scmp.ge.s32.totalorder %s12611_s21, 2  ;;  %s7800_s4 = sand.u32 1, %s12612_s14  }
 0xb2b   : > { %p12614_p7 = scmp.ne.s32.totalorder %s12613_s6, 0  ;;  %s7801_s2 = scalar_lea.sflag [#allocation11], %s7800_s4 }
 0xb2d   : > { %p10601_p8 = pnand %p10626_p4, %p12614_p7 }
 0xb2f   : > { %11137 = dma.done.wait (!%p10601_p8), %s7801_s2, 16  }
 0xb30   : > { %11139 = vsyncadd (!%p10601_p8), %s7801_s2, 4294967280  ;;  %s12615_s28 = sld [smem:[#allocation38_spill]]  ;;  %s12616_s22 = sld [smem:[#allocation36_spill]] }
 0xb31   : > { %s12617_s27 = sld [smem:[#allocation39_spill]]  ;;  %s12618_s25 = smov %s11146_s26 }
 0xb36   : > { %p29_p11 = scmp.ge.s32.totalorder %s12615_s28, 4   ;;  %s12619_s26 = smov %s12616_s22 }
 0xb38   :  { %31 = sbr.rel (!%p29_p11) target bundleno = 15 (0xf), region = 332 }
 0xb3f   :  { %7805 = vsyncpa [#allocation10], 1 }
 0xb40   :  { %7807 = vsyncpa [#allocation10 + $0x1], 1 }
 0xb41   :  { %7808 = vsyncpa [#allocation13], 1 }
 0xb42   :  { %7809 = vsyncpa [#allocation16], 1 }
 0xb43   :  { %7810 = vsyncpa [#allocation19], 1 }
 0xb44   :  { %7811 = vsyncpa [#allocation22], 1 }
 0xb45   :  { %7812 = vsyncpa [#allocation25], 1 }
 0xb46   :  { %7813 = vsyncpa [#allocation11], 1 }
 0xb47   :  { %7815 = vsyncpa [#allocation11 + $0x1], 1 }

</bundles_post_ra>
